<compile_context>
chip_gen: v6e
topology: v6e:2x2x1
jax: 0.10.0
libtpu: 0.0.40
codegen_flags: <defaults>
</compile_context>

<pallas_src>
import jax
import jax.numpy as jnp
from jax import lax
from jax.experimental import pallas as pl
from jax.experimental.pallas import tpu as pltpu

SEQ = 384          # sequence length (torch input: [1, 384, 768])
H = 768            # hidden size
FF = 3072          # intermediate size
TM = 192           # row tile  (SEQ // TM = 2 -> one tile per TC on v7x)
TF = 512           # FF streaming tile (FF // TF = 6 reduction steps)

_INV_SQRT2 = 0.7071067811865476


def _gelu_exact(x):
    # torch._C._nn.gelu default: 0.5 * x * (1 + erf(x / sqrt(2)))  (f32)
    return 0.5 * x * (1.0 + lax.erf(x * _INV_SQRT2))


def _ffn_kernel(x_ref, w1_ref, b1_ref, w2_ref, b2_ref, o_ref, acc_ref):
    # x_ref:  (TM, H)  bf16        w1_ref: (H, TF) bf16    b1_ref: (1, TF) f32
    # w2_ref: (TF, H)  bf16        b2_ref: (1, H)  f32
    # o_ref:  (TM, H)  f32         acc_ref: (TM, H) f32 scratch (persists over k)
    k = pl.program_id(1)

    @pl.when(k == 0)
    def _init():
        acc_ref[...] = jnp.zeros_like(acc_ref)

    # (TM, H) @ (H, TF) -> (TM, TF), f32 accumulate on the MXU.
    h = jnp.dot(x_ref[...], w1_ref[...], preferred_element_type=jnp.float32)
    h = _gelu_exact(h + b1_ref[...])

    # Accumulate (TM, TF) @ (TF, H) partial product of the second Linear.
    acc_ref[...] += jnp.dot(h.astype(jnp.bfloat16), w2_ref[...],
                            preferred_element_type=jnp.float32)

    @pl.when(k == pl.num_programs(1) - 1)
    def _finalize():
        o_ref[...] = (acc_ref[...] + b2_ref[...]).astype(o_ref.dtype)


def ffn(x, w1, b1, w2, b2, *, tm=TM, tf=TF):
    """x: (S, H) f32; w1: (H, FF); b1: (FF,); w2: (FF, H); b2: (H,) -> (S, H) f32"""
    S, Hdim = x.shape
    assert Hdim == H and S % tm == 0 and FF % tf == 0

    # bf16 operands for the MXU (halves weight HBM traffic / VMEM residency);
    # biases stay f32 and are added to the f32 accumulators.
    x_bf = x.astype(jnp.bfloat16)
    w1_bf = w1.astype(jnp.bfloat16)
    w2_bf = w2.astype(jnp.bfloat16)
    b1_2d = b1.reshape(1, FF).astype(jnp.float32)
    b2_2d = b2.reshape(1, H).astype(jnp.float32)

    grid = (S // tm, FF // tf)   # rows (parallel) x FF reduction (arbitrary, innermost)
    return pl.pallas_call(
        _ffn_kernel,
        out_shape=jax.ShapeDtypeStruct((S, H), jnp.float32),
        grid=grid,
        in_specs=[
            pl.BlockSpec((tm, H), lambda i, k: (i, 0)),   # x tile (constant over k)
            pl.BlockSpec((H, tf), lambda i, k: (0, k)),   # W1 slab, streamed over FF
            pl.BlockSpec((1, tf), lambda i, k: (0, k)),   # b1 slab
            pl.BlockSpec((tf, H), lambda i, k: (k, 0)),   # W2 slab, streamed over FF
            pl.BlockSpec((1, H), lambda i, k: (0, 0)),    # b2
        ],
        out_specs=pl.BlockSpec((tm, H), lambda i, k: (i, 0)),
        scratch_shapes=[pltpu.VMEM((tm, H), jnp.float32)],  # f32 accumulator
        compiler_params=pltpu.CompilerParams(
            dimension_semantics=("parallel", "arbitrary"),
            vmem_limit_bytes=48 << 20,   # <= v7x's 64 MiB physical VMEM
        ),
    )(x_bf, w1_bf, b1_2d, w2_bf, b2_2d)


def module_forward(x357, params):
    """x357: (1, SEQ, H) -- mirrors the PyTorch forward exactly."""
    w1, b1, w2, b2 = params
    x2d = x357.reshape(SEQ, H)
    y2d = ffn(x2d, w1, b1, w2, b2)
    return y2d.reshape(1, SEQ, H)


def init_params(key):
    k1, k2, k3, k4 = jax.random.split(key, 4)
    # nn.Linear shapes, stored transposed so y = x @ W + b:
    #   linear5.weight (3072, 768) -> (768, 3072);  linear6.weight (768, 3072) -> (3072, 768)
    lim1 = 1.0 / jnp.sqrt(jnp.float32(H))
    lim2 = 1.0 / jnp.sqrt(jnp.float32(FF))
    w1 = jax.random.uniform(k1, (H, FF), jnp.float32, -lim1, lim1)
    b1 = jax.random.uniform(k2, (FF,), jnp.float32, -lim1, lim1)
    w2 = jax.random.uniform(k3, (FF, H), jnp.float32, -lim2, lim2)
    b2 = jax.random.uniform(k4, (H,), jnp.float32, -lim2, lim2)
    return w1, b1, w2, b2


if __name__ == "__main__":
    key = jax.random.PRNGKey(0)
    kx, kp = jax.random.split(key)
    x357 = jax.random.normal(kx, (1, SEQ, H), jnp.float32)
    params = init_params(kp)

    out = module_forward(x357, params)
    out = jax.block_until_ready(out)
    assert out.shape == (1, SEQ, H)

    w1, b1, w2, b2 = params
    x2d = x357.reshape(SEQ, H)

    # Precision-matched reference (bf16 operands, f32 math) -> tight tolerance.
    xb = x2d.astype(jnp.bfloat16).astype(jnp.float32)
    w1b = w1.astype(jnp.bfloat16).astype(jnp.float32)
    w2b = w2.astype(jnp.bfloat16).astype(jnp.float32)
    h = xb @ w1b + b1
    h = 0.5 * h * (1.0 + lax.erf(h * _INV_SQRT2))
    h = h.astype(jnp.bfloat16).astype(jnp.float32)
    ref_matched = (h @ w2b + b2).reshape(1, SEQ, H)
    assert jnp.allclose(out, ref_matched, atol=2e-3, rtol=2e-3)

    # Loose sanity check against the full-f32 torch-equivalent math.
    hf = x2d @ w1 + b1
    hf = 0.5 * hf * (1.0 + lax.erf(hf * _INV_SQRT2))
    ref_f32 = (hf @ w2 + b2).reshape(1, SEQ, H)
    assert jnp.allclose(out, ref_f32, atol=2.5e-2, rtol=2.5e-2)

    print("KERNEL_OK")
</pallas_src>

<mosaic_0001>
module attributes {stable_mosaic.version = 11 : i64} {
  func.func @_ffn_kernel(%arg0: i32, %arg1: i32, %arg2: memref<192x768xbf16, #tpu.memory_space<vmem>>, %arg3: memref<768x512xbf16, #tpu.memory_space<vmem>>, %arg4: memref<1x512xf32, #tpu.memory_space<vmem>>, %arg5: memref<512x768xbf16, #tpu.memory_space<vmem>>, %arg6: memref<1x768xf32, #tpu.memory_space<vmem>>, %arg7: memref<192x768xf32, #tpu.memory_space<vmem>>, %arg8: memref<192x768xf32, #tpu.memory_space<vmem>>) attributes {dimension_semantics = [#tpu.dimension_semantics<parallel>, #tpu.dimension_semantics<arbitrary>], iteration_bounds = array<i64: 2, 6>, scalar_prefetch = 0 : i64, scratch_operands = 1 : i64, tpu.core_type = #tpu.core_type<tc>, window_params = [{transform_indices = @transform_0, window_bounds = array<i64: 192, 768>}, {transform_indices = @transform_1, window_bounds = array<i64: 768, 512>}, {transform_indices = @transform_2, window_bounds = array<i64: 1, 512>}, {transform_indices = @transform_3, window_bounds = array<i64: 512, 768>}, {pipeline_mode = #tpu.pipeline_mode<synchronous>, transform_indices = @transform_4, window_bounds = array<i64: 1, 768>}, {transform_indices = @transform_5, window_bounds = array<i64: 192, 768>}]} {
    %c0_i32 = arith.constant 0 : i32
    %0 = arith.cmpi eq, %arg1, %c0_i32 : i32
    %1 = arith.extui %0 : i1 to i32
    %c0_i32_0 = arith.constant 0 : i32
    %2 = arith.cmpi ne, %1, %c0_i32_0 : i32
    scf.if %2 {
      %cst_17 = arith.constant 0.000000e+00 : f32
      %26 = vector.broadcast %cst_17 : f32 to vector<192x768xf32>
      %c0_18 = arith.constant 0 : index
      %c0_19 = arith.constant 0 : index
      %27 = vector.load %arg8[%c0_18, %c0_19] : memref<192x768xf32, #tpu.memory_space<vmem>>, vector<192x768xf32>
      tpu.vector_store %arg8[%c0_18, %c0_19], %26 {strides = array<i32>} : memref<192x768xf32, #tpu.memory_space<vmem>>, vector<192x768xf32>,
    } else {
    }
    %c0 = arith.constant 0 : index
    %c0_1 = arith.constant 0 : index
    %3 = vector.load %arg2[%c0, %c0_1] : memref<192x768xbf16, #tpu.memory_space<vmem>>, vector<192x768xbf16>
    %c0_2 = arith.constant 0 : index
    %c0_3 = arith.constant 0 : index
    %4 = vector.load %arg3[%c0_2, %c0_3] : memref<768x512xbf16, #tpu.memory_space<vmem>>, vector<768x512xbf16>
    %cst = arith.constant dense<0.000000e+00> : vector<192x512xf32>
    %5 = tpu.matmul %3, %4, %cst {dimension_numbers = #tpu.dot_dimension_numbers<[1], [0], [0], [1], [0, 0, 1, 1], [], []>} : vector<192x768xbf16>, vector<768x512xbf16>, vector<192x512xf32> -> vector<192x512xf32>
    %c0_4 = arith.constant 0 : index
    %c0_5 = arith.constant 0 : index
    %6 = vector.load %arg4[%c0_4, %c0_5] : memref<1x512xf32, #tpu.memory_space<vmem>>, vector<1x512xf32>
    %7 = vector.broadcast %6 : vector<1x512xf32> to vector<192x512xf32>
    %8 = arith.addf %5, %7 : vector<192x512xf32>
    %cst_6 = arith.constant 5.000000e-01 : f32
    %9 = vector.broadcast %cst_6 : f32 to vector<192x512xf32>
    %10 = arith.mulf %9, %8 : vector<192x512xf32>
    %cst_7 = arith.constant 0.707106769 : f32
    %11 = vector.broadcast %cst_7 : f32 to vector<192x512xf32>
    %12 = arith.mulf %8, %11 : vector<192x512xf32>
    %13 = math.erf %12 : vector<192x512xf32>
    %cst_8 = arith.constant 1.000000e+00 : f32
    %14 = vector.broadcast %cst_8 : f32 to vector<192x512xf32>
    %15 = arith.addf %14, %13 : vector<192x512xf32>
    %16 = arith.mulf %10, %15 : vector<192x512xf32>
    %c0_9 = arith.constant 0 : index
    %c0_10 = arith.constant 0 : index
    %17 = vector.load %arg8[%c0_9, %c0_10] : memref<192x768xf32, #tpu.memory_space<vmem>>, vector<192x768xf32>
    %18 = arith.truncf %16 : vector<192x512xf32> to vector<192x512xbf16>
    %c0_11 = arith.constant 0 : index
    %c0_12 = arith.constant 0 : index
    %19 = vector.load %arg5[%c0_11, %c0_12] : memref<512x768xbf16, #tpu.memory_space<vmem>>, vector<512x768xbf16>
    %cst_13 = arith.constant dense<0.000000e+00> : vector<192x768xf32>
    %20 = tpu.matmul %18, %19, %cst_13 {dimension_numbers = #tpu.dot_dimension_numbers<[1], [0], [0], [1], [0, 0, 1, 1], [], []>} : vector<192x512xbf16>, vector<512x768xbf16>, vector<192x768xf32> -> vector<192x768xf32>
    %21 = arith.addf %17, %20 : vector<192x768xf32>
    %c0_14 = arith.constant 0 : index
    %c0_15 = arith.constant 0 : index
    %22 = vector.load %arg8[%c0_14, %c0_15] : memref<192x768xf32, #tpu.memory_space<vmem>>, vector<192x768xf32>
    tpu.vector_store %arg8[%c0_14, %c0_15], %21 {strides = array<i32>} : memref<192x768xf32, #tpu.memory_space<vmem>>, vector<192x768xf32>,
    %c5_i32 = arith.constant 5 : i32
    %23 = arith.cmpi eq, %arg1, %c5_i32 : i32
    %24 = arith.extui %23 : i1 to i32
    %c0_i32_16 = arith.constant 0 : i32
    %25 = arith.cmpi ne, %24, %c0_i32_16 : i32
    scf.if %25 {
      %c0_17 = arith.constant 0 : index
      %c0_18 = arith.constant 0 : index
      %26 = vector.load %arg8[%c0_17, %c0_18] : memref<192x768xf32, #tpu.memory_space<vmem>>, vector<192x768xf32>
      %c0_19 = arith.constant 0 : index
      %c0_20 = arith.constant 0 : index
      %27 = vector.load %arg6[%c0_19, %c0_20] : memref<1x768xf32, #tpu.memory_space<vmem>>, vector<1x768xf32>
      %28 = vector.broadcast %27 : vector<1x768xf32> to vector<192x768xf32>
      %29 = arith.addf %26, %28 : vector<192x768xf32>
      %c0_21 = arith.constant 0 : index
      %c0_22 = arith.constant 0 : index
      %30 = vector.load %arg7[%c0_21, %c0_22] : memref<192x768xf32, #tpu.memory_space<vmem>>, vector<192x768xf32>
      tpu.vector_store %arg7[%c0_21, %c0_22], %29 {strides = array<i32>} : memref<192x768xf32, #tpu.memory_space<vmem>>, vector<192x768xf32>,
    } else {
    }
    return
  }
  func.func @transform_0(%arg0: i32, %arg1: i32) -> (i32, i32) {
    %c0_i32 = arith.constant 0 : i32
    %c0_i32_0 = arith.constant 0 : i32
    return %arg0, %c0_i32 : i32, i32
  }
  func.func @transform_1(%arg0: i32, %arg1: i32) -> (i32, i32) {
    %c0_i32 = arith.constant 0 : i32
    %c0_i32_0 = arith.constant 0 : i32
    return %c0_i32, %arg1 : i32, i32
  }
  func.func @transform_2(%arg0: i32, %arg1: i32) -> (i32, i32) {
    %c0_i32 = arith.constant 0 : i32
    %c0_i32_0 = arith.constant 0 : i32
    return %c0_i32, %arg1 : i32, i32
  }
  func.func @transform_3(%arg0: i32, %arg1: i32) -> (i32, i32) {
    %c0_i32 = arith.constant 0 : i32
    %c0_i32_0 = arith.constant 0 : i32
    return %arg1, %c0_i32 : i32, i32
  }
  func.func @transform_4(%arg0: i32, %arg1: i32) -> (i32, i32) {
    %c0_i32 = arith.constant 0 : i32
    %c0_i32_0 = arith.constant 0 : i32
    %c0_i32_1 = arith.constant 0 : i32
    return %c0_i32, %c0_i32_0 : i32, i32
  }
  func.func @transform_5(%arg0: i32, %arg1: i32) -> (i32, i32) {
    %c0_i32 = arith.constant 0 : i32
    %c0_i32_0 = arith.constant 0 : i32
    return %arg0, %c0_i32 : i32, i32
  }
}

</mosaic_0001>

<bundles_post_ra>
// kernel: tpu_custom_call.1
= control target key start
LH: loop header
LB: loop body
LE: loop exit
PB: predicated region body
PF: predicated region fallthrough
CT: control target
= control target key end

     0   :  { %s11606_s0 = inlined_call_operand.hbm [shape: bf16[384,768], index: 0, kind: input, shape index: {}]   ;;  %s11607_s1 = inlined_call_operand.hbm [shape: bf16[768,3072], index: 1, kind: input, shape index: {}]   ;;  %s11608_s2 = inlined_call_operand.hbm [shape: f32[1,3072], index: 2, kind: input, shape index: {}]   ;;  %s11609_s3 = inlined_call_operand.hbm [shape: bf16[3072,768], index: 3, kind: input, shape index: {}]   ;;  %s11610_s4 = inlined_call_operand.hbm [shape: f32[1,768], index: 4, kind: input, shape index: {}]   ;;  %s11611_s5 = inlined_call_operand.hbm [shape: f32[384,768], index: 5, kind: output, shape index: {}]  }
   0x1   :  { %11687 = sst [smem:[#allocation72_spill]] %s11606_s0 }
   0x2   :  { %11688 = sst [smem:[#allocation73_spill]] %s11607_s1 }
   0x3   :  { %11689 = sst [smem:[#allocation74_spill]] %s11610_s4 }
   0x4   :  { %11690 = sst [smem:[#allocation75_spill]] %s11611_s5 }
   0x5   :  { %10 = vsyncpa [#allocation4], 0 }
   0x6   :  { %12 = vsyncpa [#allocation4 + $0x1], 0 }
   0x7   :  { %13 = vsyncpa [#allocation7], 0 }
   0x8   :  { %15 = vsyncpa [#allocation7 + $0x1], 0 }
   0x9   :  { %16 = vsyncpa [#allocation10], 0 }
   0xa   :  { %18 = vsyncpa [#allocation10 + $0x1], 0 }
   0xb   :  { %19 = vsyncpa [#allocation5], 0 }
   0xc   :  { %21 = vsyncpa [#allocation5 + $0x1], 0  ;;  %s8577_s18 = smov 0   ;;  %s8579_s19 = smov 0  }
   0xd   :  { %s8581_s20 = smov 0   ;;  %s8583_s21 = smov 0  }
   0xe   :  { %s8585_s22 = smov 0   ;;  %s8587_s23 = smov 0  }
   0xf   :  { %s8589_s24 = smov 0   ;;  %s8591_s25 = smov 0  }
  0x10   :  { %s8593_s26 = smov 0   ;;  %s8595_s27 = smov 0  }
  0x11   :  { %s8597_s28 = smov 0  }
  0x12 LB: > { %11691 = sst [smem:[#allocation18_spill]] %s8495_s19  ;;  %s8631_s29 = sadd.s32 4294967295, %s8531_s28   ;;  %s8531_s28 = sphi %s8597_s28, %s27_s28   ;;  %s8527_s27 = sphi %s8595_s27, %s11943_s27   ;;  %s8523_s26 = sphi %s8593_s26, %s11942_s26   ;;  %s8519_s25 = sphi %s8591_s25, %s11941_s25   ;;  %s8515_s24 = sphi %s8589_s24, %s11940_s24   ;;  %s8511_s23 = sphi %s8587_s23, %s11939_s23   ;;  %s8507_s22 = sphi %s8585_s22, %s11938_s22   ;;  %s8503_s21 = sphi %s8583_s21, %s11937_s21   ;;  %s8499_s20 = sphi %s8581_s20, %s11936_s20   ;;  %s8495_s19 = sphi %s8579_s19, %s11935_s19   ;;  %s8491_s18 = sphi %s8577_s18, %s11932_s18  }
  0x13   : > { %11692 = sst [smem:[#allocation19_spill]] %s8503_s21  ;;  %s6734_s30 = sadd.s32 4294967294, %s8531_s28  }
  0x14   : > { %11693 = sst [smem:[#allocation20_spill]] %s8515_s24  ;;  %p53_p0 = scmp.ne.s32.totalorder %s8511_s23, %s8507_s22 }
  0x15   : > { %11694 = sst [smem:[#allocation21_spill]] %s8519_s25  ;;  %p54_p1 = scmp.eq.s32.totalorder %s8531_s28, 0 }
  0x16   : > { %11695 = sst [smem:[#allocation22_spill]] %s8631_s29  ;;  %p59_p2 = scmp.ne.s32.totalorder %s8507_s22, %s8503_s21 }
  0x17   : > { %p60_p3 = scmp.eq.s32.totalorder %s8631_s29, 0  ;;  %p8645_p4 = por %p54_p1, %p53_p0 }
  0x18   : > { %p79_p5 = scmp.ne.s32.totalorder %s8499_s20, %s8495_s19  ;;  %p85_p7 = scmp.ne.s32.totalorder %s8495_s19, %s8491_s18 }
  0x19   : > { %s11696_s8 = scalar_select %p8645_p4, 1, 0 }
  0x1a   : > { %p8656_p6 = por %p60_p3, %p59_p2  ;;  %p8661_p8 = por %p79_p5, %p54_p1 }
  0x1b   : > { %p182_p9 = scmp.eq.s32.totalorder %s8631_s29, 11  ;;  %p8668_p10 = por %p85_p7, %p60_p3 }
  0x1c   : > { %s11697_s9 = scalar_select %p8656_p6, 1, 0 }
  0x1d   : > { %s11699_s11 = scalar_select %p8668_p10, 1, 0 }
  0x1e   : > { %p188_p11 = scmp.eq.s32.totalorder %s6734_s30, 11  ;;  %p8675_p12 = por %p182_p9, %p53_p0 }
  0x1f   : > { %11700 = sst [smem:[#allocation23_spill]] %s11699_s11  ;;  %p6735_p13 = scmp.ge.s32.totalorder %s8531_s28, 1 }
  0x20   : > { %s11701_s12 = scalar_select %p8675_p12, 1, 0 }
  0x21   : > { %p8683_p1 = por %p188_p11, %p59_p2  ;;  %p195_p5 = scmp.lt.s32.totalorder %s8531_s28, 13 }
  0x22   : > { %11702 = sst [smem:[#allocation24_spill]] %s11701_s12  ;;  %s8533_s15 = smov [#allocation11]  }
  0x23   : > { %s11703_s13 = scalar_select %p8683_p1, 1, 0 }
  0x24   : > { %p8688_p6 = pnand %p6735_p13, %p195_p5  ;;  %s208_s16 = sshll.u32 %s8533_s15, 4  ;;  %s209_s16 = int_to_ptr.vmem [resolvable:$true] %s208_s16 }
  0x25   : > { %11704 = sst [smem:[#allocation25_spill]] %s11703_s13  ;;  %p7258_p7 = scmp.lt.s32.totalorder %s8531_s28, 12 }
  0x26   : > { %s11705_s14 = scalar_select %p8688_p6, 1, 0 }
  0x27   : > { %p7236_p0 = pneg %p8688_p6  ;;  %p8702_p2 = pnand %p7258_p7, %p8661_p8 }
  0x28   : > { %s8272_s30 = scalar_lea.vmem %s209_s16, 96  ;;  %p8280_p12 = scmp.lt.s32.totalorder %s209_s16, %s209_s16 }
  0x29   : > { %p7237_p9 = pnand %p7236_p0, %p60_p3  ;;  %p8273_p13 = scmp.ne.s32.totalorder %s209_s16, %s8272_s30 }
  0x2a   : > { %p8281_p10 = scmp.lt.s32.totalorder %s8272_s30, %s8272_s30 }
  0x2b   : > { %p8263_p11 = pneg %p7237_p9 }
  0x2c   : > { %p8282_p4 = por %p8281_p10, %p8280_p12 }
  0x2d   : > { %p8275_p5 = pnand %p8273_p13, %p8263_p11 }
  0x2f   : > { %p8276_p1 = pneg %p8275_p5 }
  0x31   : > { %p8283_p6 = pnand %p8282_p4, %p8276_p1 }
  0x33   : > { %8286 = shalt.err (!%p8283_p6)
}
  0x34   : > { %s11707_s4 = sld [smem:[#allocation74_spill]]  ;;  %s36_s10 = sadd.s32 1, %s8523_s26 }
  0x35   : > { %s11621_s17 = sand.u32 1, %s8499_s20   ;;  %p8711_p8 = scmp.ge.s32.totalorder %s36_s10, 6 }
  0x36   : > { %s8717_s6 = smul.u32 1536, %s11621_s17  ;;  %s7211_s15 = sshll.u32 %s8523_s26, 8 }
  0x37   : > { %s11945_s10 = smov (%p8711_p8, %s36_s10), 0  ;;  %s11710_s1 = sld [smem:[#allocation73_spill]] }
  0x38   : > { %11709 = sst [smem:[#allocation26_spill]] %s11945_s10  ;;  %s245_s21 = scalar_lea.vmem [#allocation6], %s8717_s6 }
  0x39   : > { %s252_s5 = sshll.u32 %s245_s21, 4  ;;  %s11711_s12 = sadd.s32 1, %s8499_s20  ;;  %s253_s5 = int_to_ptr.vmem [resolvable:$true] %s252_s5 }
  0x3a   : > { %7239 = dma.hbm_to_vmem [thread:$0]  (!%p7237_p9), %s11707_s4, 96, %s209_s16, [#allocation10]  }
  0x3b   : > { %s69_s4 = ssub.s32 %s8523_s26, %s11945_s10  ;;  %s11713_s17 = sand.u32 1, %s8531_s28  }
  0x3c   : > { %p70_p4 = scmp.eq.s32.totalorder %s69_s4, 0  ;;  %s8739_s24 = scalar_lea.sflag [#allocation7], %s11713_s17 }
  0x3d   : > { %s8727_s16 = scalar_lea.hbm %s11710_s1, %s7211_s15  ;;  %p8289_p6 = pneg %p8702_p2 }
  0x3e   : > { %s8735_s25 = scalar_select %p70_p4, %s8499_s20, %s11711_s12  }
  0x3f   : > { %s8300_s11 = scalar_lea.vmem %s253_s5, 24576  ;;  %s8534_s7 = smov [#allocation6]  }
  0x40   : > { %11712 = sst [smem:[#allocation27_spill]] %s8735_s25  ;;  %p8301_p10 = scmp.ne.s32.totalorder %s253_s5, %s8300_s11 }
  0x41   : > { %s8305_s13 = sshll.u32 %s8534_s7, 4  ;;  %s8306_s13 = int_to_ptr.vmem [resolvable:$false] %s8305_s13 }
  0x42   : > { %p8303_p12 = pnand %p8301_p10, %p8289_p6  ;;  %s8307_s21 = scalar_lea.vmem %s8306_s13, 49152 }
  0x43   : > { %p8308_p0 = scmp.lt.s32.totalorder %s253_s5, %s8306_s13  ;;  %p8309_p9 = scmp.lt.s32.totalorder %s8307_s21, %s8300_s11 }
  0x44   : > { %p8304_p1 = pneg %p8303_p12 }
  0x45   : > { %p8310_p11 = por %p8309_p9, %p8308_p0 }
  0x47   : > { %p8311_p13 = pnand %p8310_p11, %p8304_p1 }
  0x49   : > { %8314 = shalt.err (!%p8311_p13)
}
  0x4a   : > { %s8535_s4 = smov 1536   ;;  %s8536_s12 = smov 256  }
  0x4b   : > { %s8537_s17 = smov 16   ;;  %s219_s11 = sand.u32 1, %s8511_s23  }
  0x4c   : > { %7246 = dma.hbm_to_vmem [thread:$0]  (!%p8702_p2), %s8727_s16, 24576, %s253_s5, %s8739_s24, %s8535_s4, %s8536_s12, %s8537_s17  }
  0x4d   : > { %s39_s15 = sadd.s32 1, %s8527_s27  ;;  %s7213_s7 = smul.u32 576, %s219_s11 }
  0x4e   : > { %s11947_s15 = smov (!%p8711_p8, %s39_s15), %s8527_s27  ;;  %s7259_s13 = smul.u32 9216, %s8527_s27 }
  0x4f   : > { %p41_p5 = scmp.ge.s32.totalorder %s11947_s15, 2  ;;  %s223_s21 = scalar_lea.vmem [#allocation3], %s7213_s7 }
  0x50   : > { %s231_s1 = sshll.u32 %s223_s21, 4  ;;  %p11714_p4 = scmp.ne.s32.totalorder %s11696_s8, 0  ;;  %s232_s1 = int_to_ptr.vmem [resolvable:$true] %s231_s1 }
  0x51   : > { %s11949_s15 = smov (%p41_p5, %s11947_s15), 0  ;;  %s11716_s0 = sld [smem:[#allocation72_spill]] }
  0x52   : > { %p8760_p10 = pnand %p7258_p7, %p11714_p4  ;;  %s43_s30 = ssub.s32 %s8527_s27, %s11949_s15 }
  0x53   : > { %p44_p8 = scmp.eq.s32.totalorder %s43_s30, 0  ;;  %s11717_s12 = sand.u32 1, %s8499_s20  }
  0x54   : > { %s6741_s17 = sshll.u32 %s11717_s12, 2  ;;  %s11718_s7 = sadd.s32 1, %s8511_s23 }
  0x55   : > { %s8776_s8 = scalar_select %p44_p8, %s8511_s23, %s11718_s7  }
  0x56   : > { %s220_s21 = scalar_lea.sflag [#allocation4], %s219_s11  ;;  %p8317_p7 = pneg %p8760_p10 }
  0x57   : > { %s230_s4 = scalar_lea.hbm %s11716_s0, %s7259_s13  ;;  %s8328_s25 = scalar_lea.vmem %s232_s1, 9216 }
  0x58   : > { %p8329_p12 = scmp.ne.s32.totalorder %s232_s1, %s8328_s25  ;;  %s8538_s19 = smov [#allocation3]  }
  0x59   : > { %s8333_s29 = sshll.u32 %s8538_s19, 4  ;;  %s8334_s29 = int_to_ptr.vmem [resolvable:$false] %s8333_s29 }
  0x5a   : > { %p8331_p1 = pnand %p8329_p12, %p8317_p7  ;;  %s8335_s5 = scalar_lea.vmem %s8334_s29, 18432 }
  0x5b   : > { %p8336_p9 = scmp.lt.s32.totalorder %s232_s1, %s8334_s29  ;;  %p8337_p11 = scmp.lt.s32.totalorder %s8335_s5, %s8328_s25 }
  0x5c   : > { %p8332_p0 = pneg %p8331_p1 }
  0x5d   : > { %p8338_p13 = por %p8337_p11, %p8336_p9 }
  0x5f   : > { %p8339_p5 = pnand %p8338_p13, %p8332_p0 }
  0x61   : > { %8342 = shalt.err (!%p8339_p5)
}
  0x62   : > { %s8539_s13 = smov 384   ;;  %s8540_s11 = smov 24  }
  0x63   : > { %7243 = dma.hbm_to_vmem [thread:$0]  (!%p8760_p10), %s230_s4, 9216, %s232_s1, %s220_s21, %s8539_s13, %s8539_s13, %s8540_s11  }
  0x64   : > { %s7212_s16 = sshll.u32 %s8523_s26, 6  ;;  %s266_s29 = scalar_lea.vmem [#allocation8], %s6741_s17 }
  0x65   : > { %s272_s12 = scalar_lea.hbm %s11608_s2, %s7212_s16  ;;  %s274_s25 = sshll.u32 %s266_s29, 4  ;;  %s275_s25 = int_to_ptr.vmem [resolvable:$true] %s274_s25 }
  0x66   : > { %s8356_s7 = scalar_lea.vmem %s275_s25, 64  ;;  %s8541_s5 = smov [#allocation8]  }
  0x67   : > { %p8357_p4 = scmp.ne.s32.totalorder %s275_s25, %s8356_s7  ;;  %s8361_s10 = sshll.u32 %s8541_s5, 4  ;;  %s8362_s10 = int_to_ptr.vmem [resolvable:$false] %s8361_s10 }
  0x68   : > { %s8363_s0 = scalar_lea.vmem %s8362_s10, 128  ;;  %p8364_p12 = scmp.lt.s32.totalorder %s275_s25, %s8362_s10 }
  0x69   : > { %p8359_p8 = pnand %p8357_p4, %p8289_p6  ;;  %p8365_p10 = scmp.lt.s32.totalorder %s8363_s0, %s8356_s7 }
  0x6b   : > { %p8360_p7 = pneg %p8359_p8  ;;  %p8366_p1 = por %p8365_p10, %p8364_p12 }
  0x6d   : > { %p8367_p0 = pnand %p8366_p1, %p8360_p7 }
  0x6f   : > { %8370 = shalt.err (!%p8367_p0)
}
  0x70   : > { %7249 = dma.hbm_to_vmem [thread:$0]  (!%p8702_p2), %s272_s12, 64, %s275_s25, %s8739_s24  }
  0x71   : > { %s7217_s1 = smul.u32 24576, %s8523_s26  ;;  %s285_s4 = scalar_lea.vmem [#allocation9], %s8717_s6 }
  0x72   : > { %s293_s17 = sshll.u32 %s285_s4, 4  ;;  %s11719_s0 = sand.u32 1, %s8531_s28   ;;  %s294_s17 = int_to_ptr.vmem [resolvable:$true] %s293_s17 }
  0x73   : > { %s292_s30 = scalar_lea.hbm %s11609_s3, %s7217_s1  ;;  %s282_s19 = scalar_lea.sflag [#allocation10], %s11719_s0 }
  0x74   : > { %s8384_s29 = scalar_lea.vmem %s294_s17, 24576  ;;  %s8542_s7 = smov [#allocation9]  }
  0x75   : > { %p8385_p9 = scmp.ne.s32.totalorder %s294_s17, %s8384_s29  ;;  %s8389_s5 = sshll.u32 %s8542_s7, 4  ;;  %s8390_s5 = int_to_ptr.vmem [resolvable:$false] %s8389_s5 }
  0x76   : > { %s8391_s24 = scalar_lea.vmem %s8390_s5, 49152  ;;  %p8392_p5 = scmp.lt.s32.totalorder %s294_s17, %s8390_s5 }
  0x77   : > { %p8387_p11 = pnand %p8385_p9, %p8289_p6  ;;  %p8393_p4 = scmp.lt.s32.totalorder %s8391_s24, %s8384_s29 }
  0x79   : > { %p8388_p13 = pneg %p8387_p11  ;;  %p8394_p8 = por %p8393_p4, %p8392_p5 }
  0x7b   : > { %p8395_p7 = pnand %p8394_p8, %p8388_p13 }
  0x7d   : > { %8398 = shalt.err (!%p8395_p7)
}
  0x7e   : > { %7252 = dma.hbm_to_vmem [thread:$0]  (!%p8702_p2), %s292_s30, 24576, %s294_s17, %s282_s19, %s8539_s13, %s8539_s13, %s8540_s11  }
  0x7f   : > { %p11720_p12 = scmp.ne.s32.totalorder %s11705_s14, 0 }
  0x81   : > { %305 = sbr.rel (%p11720_p12) target bundleno = 1321 (0x529), region = 40 }
  0x86   : > { %s8813_s6 = sand.u32 1, %s8507_s22   ;;  %p11721_p6 = scmp.ne.s32.totalorder %s11697_s9, 0 }
  0x87   : > { %s7218_s12 = smul.u32 576, %s8813_s6  ;;  %s308_s25 = scalar_lea.sflag [#allocation4], %s8813_s6 }
  0x89   : > { %s8817_s10 = scalar_lea.vmem [#allocation3], %s7218_s12 }
  0x8a   : > { %8470 = dma.done.wait (%p11721_p6), %s308_s25, 9216  }
  0x8b   : > { %8472 = vsyncadd (%p11721_p6), %s308_s25, 4294958080  ;;  %s11722_s18 = sld [smem:[#allocation22_spill]] }
  0x8c   : > { %s11723_s13 = sld [smem:[#allocation18_spill]] }
  0x8d   : > { %s11724_s11 = sld [smem:[#allocation23_spill]] }
  0x91   : > { %s316_s14 = sand.u32 1, %s11722_s18  }
  0x92   : > { %s318_s1 = sand.u32 1, %s11723_s13   ;;  %s317_s17 = scalar_lea.sflag [#allocation7], %s316_s14 }
  0x93   : > { %s7219_s4 = smul.u32 1536, %s318_s1  ;;  %p11725_p2 = scmp.ne.s32.totalorder %s11724_s11, 0 }
  0x95   : > { %s8825_s21 = scalar_lea.vmem [#allocation6], %s7219_s4 }
  0x96   : > { %8474 = dma.done.wait (%p11725_p2), %s317_s17, 24640  }
  0x97   : > { %8476 = vsyncadd (%p11725_p2), %s317_s17, 4294942656  ;;  %s8831_s16 = sshll.u32 %s318_s1, 2  ;;  %s335_s30 = scalar_lea.sflag [#allocation10], %s316_s14 }
  0x98   : > { %s329_s9 = scalar_lea.vmem [#allocation8], %s8831_s16  ;;  %s8834_s0 = scalar_lea.vmem [#allocation9], %s7219_s4 }
  0x99   : > { %8478 = dma.done.wait (%p11725_p2), %s335_s30, 24576  }
  0x9a   : > { %8480 = vsyncadd (%p11725_p2), %s335_s30, 4294942720 }
  0x9b   : > { %8482 = dma.done.wait (%p60_p3), [#allocation10], 96  }
  0x9c   : > { %8484 = vsyncadd (%p60_p3), [#allocation10], 4294967200  ;;  %s7220_s19 = smul.u32 1152, %s8813_s6  ;;  %s11726_s7 = sld [smem:[#allocation20_spill]] }
  0x9e   : > { %s8845_s29 = scalar_lea.vmem [#allocation12], %s7220_s19 }
  0xa2   : > { %p6750_p10 = scmp.ne.s32.totalorder %s11726_s7, 0 }
  0xa4   : > { %392 = sbr.rel (%p6750_p10) target bundleno = 242 (0xf2), region = 64 }
  0xa9   : > { %v8543_v0 = vmov 0.0  }
  0xaa   : > { %393 = vst [vmem:[#allocation2 + $0x2b0] sm:$0xff] %v8543_v0  ;;  %394 = vst [vmem:[#allocation2 + $0x3b0] sm:$0xff] %v8543_v0 }
  0xab   : > { %395 = vst [vmem:[#allocation2 + $0x10] sm:$0xff] %v8543_v0  ;;  %396 = vst [vmem:[#allocation2 + $0x448] sm:$0xff] %v8543_v0 }
  0xac   : > { %397 = vst [vmem:[#allocation2 + $0x320] sm:$0xff] %v8543_v0  ;;  %398 = vst [vmem:[#allocation2 + $0x438] sm:$0xff] %v8543_v0 }
  0xad   : > { %399 = vst [vmem:[#allocation2 + $0x370] sm:$0xff] %v8543_v0  ;;  %400 = vst [vmem:[#allocation2 + $0x100] sm:$0xff] %v8543_v0 }
  0xae   : > { %401 = vst [vmem:[#allocation2 + $0x300] sm:$0xff] %v8543_v0  ;;  %402 = vst [vmem:[#allocation2 + $0x2f0] sm:$0xff] %v8543_v0 }
  0xaf   : > { %403 = vst [vmem:[#allocation2 + $0x290] sm:$0xff] %v8543_v0  ;;  %404 = vst [vmem:[#allocation2 + $0x380] sm:$0xff] %v8543_v0 }
  0xb0   : > { %405 = vst [vmem:[#allocation2 + $0x48] sm:$0xff] %v8543_v0  ;;  %406 = vst [vmem:[#allocation2 + $0xc0] sm:$0xff] %v8543_v0 }
  0xb1   : > { %407 = vst [vmem:[#allocation2 + $0x30] sm:$0xff] %v8543_v0  ;;  %408 = vst [vmem:[#allocation2 + $0x148] sm:$0xff] %v8543_v0 }
  0xb2   : > { %409 = vst [vmem:[#allocation2 + $0x208] sm:$0xff] %v8543_v0  ;;  %410 = vst [vmem:[#allocation2 + $0x88] sm:$0xff] %v8543_v0 }
  0xb3   : > { %411 = vst [vmem:[#allocation2 + $0x348] sm:$0xff] %v8543_v0  ;;  %412 = vst [vmem:[#allocation2 + $0xe0] sm:$0xff] %v8543_v0 }
  0xb4   : > { %413 = vst [vmem:[#allocation2 + $0x368] sm:$0xff] %v8543_v0  ;;  %414 = vst [vmem:[#allocation2 + $0x3e0] sm:$0xff] %v8543_v0 }
  0xb5   : > { %415 = vst [vmem:[#allocation2 + $0x1a8] sm:$0xff] %v8543_v0  ;;  %416 = vst [vmem:[#allocation2 + $0x450] sm:$0xff] %v8543_v0 }
  0xb6   : > { %417 = vst [vmem:[#allocation2 + $0x420] sm:$0xff] %v8543_v0  ;;  %418 = vst [vmem:[#allocation2 + $0x398] sm:$0xff] %v8543_v0 }
  0xb7   : > { %419 = vst [vmem:[#allocation2 + $0x350] sm:$0xff] %v8543_v0  ;;  %420 = vst [vmem:[#allocation2 + $0xc8] sm:$0xff] %v8543_v0 }
  0xb8   : > { %421 = vst [vmem:[#allocation2 + $0x240] sm:$0xff] %v8543_v0  ;;  %422 = vst [vmem:[#allocation2 + $0x390] sm:$0xff] %v8543_v0 }
  0xb9   : > { %423 = vst [vmem:[#allocation2 + $0x458] sm:$0xff] %v8543_v0  ;;  %424 = vst [vmem:[#allocation2 + $0x68] sm:$0xff] %v8543_v0 }
  0xba   : > { %425 = vst [vmem:[#allocation2 + $0x470] sm:$0xff] %v8543_v0  ;;  %426 = vst [vmem:[#allocation2 + $0x298] sm:$0xff] %v8543_v0 }
  0xbb   : > { %427 = vst [vmem:[#allocation2 + $0x278] sm:$0xff] %v8543_v0  ;;  %428 = vst [vmem:[#allocation2 + $0x170] sm:$0xff] %v8543_v0 }
  0xbc   : > { %429 = vst [vmem:[#allocation2 + $0x198] sm:$0xff] %v8543_v0  ;;  %430 = vst [vmem:[#allocation2 + $0xb0] sm:$0xff] %v8543_v0 }
  0xbd   : > { %431 = vst [vmem:[#allocation2 + $0x20] sm:$0xff] %v8543_v0  ;;  %432 = vst [vmem:[#allocation2 + $0x1e8] sm:$0xff] %v8543_v0 }
  0xbe   : > { %433 = vst [vmem:[#allocation2 + $0x1f8] sm:$0xff] %v8543_v0  ;;  %434 = vst [vmem:[#allocation2 + $0x60] sm:$0xff] %v8543_v0 }
  0xbf   : > { %435 = vst [vmem:[#allocation2 + $0x3c8] sm:$0xff] %v8543_v0  ;;  %436 = vst [vmem:[#allocation2 + $0x18] sm:$0xff] %v8543_v0 }
  0xc0   : > { %437 = vst [vmem:[#allocation2 + $0xa0] sm:$0xff] %v8543_v0  ;;  %438 = vst [vmem:[#allocation2 + $0x1d0] sm:$0xff] %v8543_v0 }
  0xc1   : > { %439 = vst [vmem:[#allocation2 + $0x258] sm:$0xff] %v8543_v0  ;;  %440 = vst [vmem:[#allocation2 + $0xd0] sm:$0xff] %v8543_v0 }
  0xc2   : > { %441 = vst [vmem:[#allocation2 + $0x408] sm:$0xff] %v8543_v0  ;;  %442 = vst [vmem:[#allocation2 + $0x2c0] sm:$0xff] %v8543_v0 }
  0xc3   : > { %443 = vst [vmem:[#allocation2 + $0x3f8] sm:$0xff] %v8543_v0  ;;  %444 = vst [vmem:[#allocation2 + $0x3f0] sm:$0xff] %v8543_v0 }
  0xc4   : > { %445 = vst [vmem:[#allocation2 + $0x338] sm:$0xff] %v8543_v0  ;;  %446 = vst [vmem:[#allocation2 + $0x248] sm:$0xff] %v8543_v0 }
  0xc5   : > { %447 = vst [vmem:[#allocation2 + $0x330] sm:$0xff] %v8543_v0  ;;  %448 = vst [vmem:[#allocation2 + $0x220] sm:$0xff] %v8543_v0 }
  0xc6   : > { %449 = vst [vmem:[#allocation2 + $0x1b8] sm:$0xff] %v8543_v0  ;;  %450 = vst [vmem:[#allocation2 + $0x310] sm:$0xff] %v8543_v0 }
  0xc7   : > { %451 = vst [vmem:[#allocation2 + $0x280] sm:$0xff] %v8543_v0  ;;  %452 = vst [vmem:[#allocation2 + $0x288] sm:$0xff] %v8543_v0 }
  0xc8   : > { %453 = vst [vmem:[#allocation2 + $0x2e8] sm:$0xff] %v8543_v0  ;;  %454 = vst [vmem:[#allocation2 + $0x120] sm:$0xff] %v8543_v0 }
  0xc9   : > { %455 = vst [vmem:[#allocation2 + $0x2c8] sm:$0xff] %v8543_v0  ;;  %456 = vst [vmem:[#allocation2 + $0x3c0] sm:$0xff] %v8543_v0 }
  0xca   : > { %457 = vst [vmem:[#allocation2 + $0x418] sm:$0xff] %v8543_v0  ;;  %458 = vst [vmem:[#allocation2 + $0x70] sm:$0xff] %v8543_v0 }
  0xcb   : > { %459 = vst [vmem:[#allocation2 + $0x270] sm:$0xff] %v8543_v0  ;;  %460 = vst [vmem:[#allocation2 + $0x200] sm:$0xff] %v8543_v0 }
  0xcc   : > { %461 = vst [vmem:[#allocation2 + $0x1a0] sm:$0xff] %v8543_v0  ;;  %462 = vst [vmem:[#allocation2 + $0x140] sm:$0xff] %v8543_v0 }
  0xcd   : > { %463 = vst [vmem:[#allocation2 + $0x3a0] sm:$0xff] %v8543_v0  ;;  %464 = vst [vmem:[#allocation2 + $0xf8] sm:$0xff] %v8543_v0 }
  0xce   : > { %465 = vst [vmem:[#allocation2 + $0x128] sm:$0xff] %v8543_v0  ;;  %466 = vst [vmem:[#allocation2 + $0x160] sm:$0xff] %v8543_v0 }
  0xcf   : > { %467 = vst [vmem:[#allocation2 + $0x2a8] sm:$0xff] %v8543_v0  ;;  %468 = vst [vmem:[#allocation2 + $0x130] sm:$0xff] %v8543_v0 }
  0xd0   : > { %469 = vst [vmem:[#allocation2 + $0x318] sm:$0xff] %v8543_v0  ;;  %470 = vst [vmem:[#allocation2 + $0x268] sm:$0xff] %v8543_v0 }
  0xd1   : > { %471 = vst [vmem:[#allocation2 + $0x228] sm:$0xff] %v8543_v0  ;;  %472 = vst [vmem:[#allocation2 + $0x410] sm:$0xff] %v8543_v0 }
  0xd2   : > { %473 = vst [vmem:[#allocation2 + $0x210] sm:$0xff] %v8543_v0  ;;  %474 = vst [vmem:[#allocation2 + $0x1c0] sm:$0xff] %v8543_v0 }
  0xd3   : > { %475 = vst [vmem:[#allocation2 + $0x358] sm:$0xff] %v8543_v0  ;;  %476 = vst [vmem:[#allocation2 + $0x8] sm:$0xff] %v8543_v0 }
  0xd4   : > { %477 = vst [vmem:[#allocation2 + $0x400] sm:$0xff] %v8543_v0  ;;  %478 = vst [vmem:[#allocation2 + $0x1b0] sm:$0xff] %v8543_v0 }
  0xd5   : > { %479 = vst [vmem:[#allocation2 + $0x328] sm:$0xff] %v8543_v0  ;;  %480 = vst [vmem:[#allocation2 + $0x230] sm:$0xff] %v8543_v0 }
  0xd6   : > { %481 = vst [vmem:[#allocation2 + $0xb8] sm:$0xff] %v8543_v0  ;;  %482 = vst [vmem:[#allocation2 + $0x468] sm:$0xff] %v8543_v0 }
  0xd7   : > { %483 = vst [vmem:[#allocation2 + $0x2d0] sm:$0xff] %v8543_v0  ;;  %484 = vst [vmem:[#allocation2 + $0x78] sm:$0xff] %v8543_v0 }
  0xd8   : > { %485 = vst [vmem:[#allocation2 + $0x2f8] sm:$0xff] %v8543_v0  ;;  %486 = vst [vmem:[#allocation2 + $0x218] sm:$0xff] %v8543_v0 }
  0xd9   : > { %487 = vst [vmem:[#allocation2 + $0x1f0] sm:$0xff] %v8543_v0  ;;  %488 = vst [vmem:[#allocation2 + $0x178] sm:$0xff] %v8543_v0 }
  0xda   : > { %489 = vst [vmem:[#allocation2 + $0x110] sm:$0xff] %v8543_v0  ;;  %490 = vst [vmem:[#allocation2 + $0x460] sm:$0xff] %v8543_v0 }
  0xdb   : > { %491 = vst [vmem:[#allocation2 + $0x2a0] sm:$0xff] %v8543_v0  ;;  %492 = vst [vmem:[#allocation2 + $0x3d8] sm:$0xff] %v8543_v0 }
  0xdc   : > { %493 = vst [vmem:[#allocation2 + $0xa8] sm:$0xff] %v8543_v0  ;;  %494 = vst [vmem:[#allocation2 + $0x1d8] sm:$0xff] %v8543_v0 }
  0xdd   : > { %495 = vst [vmem:[#allocation2 + $0x118] sm:$0xff] %v8543_v0  ;;  %496 = vst [vmem:[#allocation2] sm:$0xff] %v8543_v0 }
  0xde   : > { %497 = vst [vmem:[#allocation2 + $0x478] sm:$0xff] %v8543_v0  ;;  %498 = vst [vmem:[#allocation2 + $0x138] sm:$0xff] %v8543_v0 }
  0xdf   : > { %499 = vst [vmem:[#allocation2 + $0xd8] sm:$0xff] %v8543_v0  ;;  %500 = vst [vmem:[#allocation2 + $0x2d8] sm:$0xff] %v8543_v0 }
  0xe0   : > { %501 = vst [vmem:[#allocation2 + $0x260] sm:$0xff] %v8543_v0  ;;  %502 = vst [vmem:[#allocation2 + $0x3b8] sm:$0xff] %v8543_v0 }
  0xe1   : > { %503 = vst [vmem:[#allocation2 + $0x180] sm:$0xff] %v8543_v0  ;;  %504 = vst [vmem:[#allocation2 + $0x28] sm:$0xff] %v8543_v0 }
  0xe2   : > { %505 = vst [vmem:[#allocation2 + $0x108] sm:$0xff] %v8543_v0  ;;  %506 = vst [vmem:[#allocation2 + $0x378] sm:$0xff] %v8543_v0 }
  0xe3   : > { %507 = vst [vmem:[#allocation2 + $0x440] sm:$0xff] %v8543_v0  ;;  %508 = vst [vmem:[#allocation2 + $0x158] sm:$0xff] %v8543_v0 }
  0xe4   : > { %509 = vst [vmem:[#allocation2 + $0x360] sm:$0xff] %v8543_v0  ;;  %510 = vst [vmem:[#allocation2 + $0x50] sm:$0xff] %v8543_v0 }
  0xe5   : > { %511 = vst [vmem:[#allocation2 + $0x308] sm:$0xff] %v8543_v0  ;;  %512 = vst [vmem:[#allocation2 + $0x340] sm:$0xff] %v8543_v0 }
  0xe6   : > { %513 = vst [vmem:[#allocation2 + $0x2e0] sm:$0xff] %v8543_v0  ;;  %514 = vst [vmem:[#allocation2 + $0x3e8] sm:$0xff] %v8543_v0 }
  0xe7   : > { %515 = vst [vmem:[#allocation2 + $0x250] sm:$0xff] %v8543_v0  ;;  %516 = vst [vmem:[#allocation2 + $0x1c8] sm:$0xff] %v8543_v0 }
  0xe8   : > { %517 = vst [vmem:[#allocation2 + $0x190] sm:$0xff] %v8543_v0  ;;  %518 = vst [vmem:[#allocation2 + $0x3d0] sm:$0xff] %v8543_v0 }
  0xe9   : > { %519 = vst [vmem:[#allocation2 + $0xe8] sm:$0xff] %v8543_v0  ;;  %520 = vst [vmem:[#allocation2 + $0xf0] sm:$0xff] %v8543_v0 }
  0xea   : > { %521 = vst [vmem:[#allocation2 + $0x168] sm:$0xff] %v8543_v0  ;;  %522 = vst [vmem:[#allocation2 + $0x90] sm:$0xff] %v8543_v0 }
  0xeb   : > { %523 = vst [vmem:[#allocation2 + $0x1e0] sm:$0xff] %v8543_v0  ;;  %524 = vst [vmem:[#allocation2 + $0x38] sm:$0xff] %v8543_v0 }
  0xec   : > { %525 = vst [vmem:[#allocation2 + $0x388] sm:$0xff] %v8543_v0  ;;  %526 = vst [vmem:[#allocation2 + $0x430] sm:$0xff] %v8543_v0 }
  0xed   : > { %527 = vst [vmem:[#allocation2 + $0x80] sm:$0xff] %v8543_v0  ;;  %528 = vst [vmem:[#allocation2 + $0x428] sm:$0xff] %v8543_v0 }
  0xee   : > { %529 = vst [vmem:[#allocation2 + $0x238] sm:$0xff] %v8543_v0  ;;  %530 = vst [vmem:[#allocation2 + $0x2b8] sm:$0xff] %v8543_v0 }
  0xef   : > { %531 = vst [vmem:[#allocation2 + $0x40] sm:$0xff] %v8543_v0  ;;  %532 = vst [vmem:[#allocation2 + $0x150] sm:$0xff] %v8543_v0 }
  0xf0   : > { %533 = vst [vmem:[#allocation2 + $0x3a8] sm:$0xff] %v8543_v0  ;;  %534 = vst [vmem:[#allocation2 + $0x98] sm:$0xff] %v8543_v0 }
  0xf1   : > { %535 = vst [vmem:[#allocation2 + $0x58] sm:$0xff] %v8543_v0  ;;  %536 = vst [vmem:[#allocation2 + $0x188] sm:$0xff] %v8543_v0 }
  0xf2 PF: > { %v7360_v1 = vld [vmem:[%s8825_s21 + $0xe4] ss:$16 sps:$4 sm:$0xff]   ;;  %v7364_v3 = vld [vmem:[%s8825_s21 + $0xe0] ss:$16 sps:$4 sm:$0xff]   ;;  %s11919_s5 = sld [smem:[#allocation20_spill]] }
  0xf3   : > { %v7362_v2 = vld [vmem:[%s8825_s21 + $0x2e4] ss:$16 sps:$4 sm:$0xff]   ;;  %2143 = vmatprep.subr.bf16.mxu0 %v7360_v1  ;;  %v7365_v4 = vld [vmem:[%s8825_s21 + $0x2e0] ss:$16 sps:$4 sm:$0xff]  }
  0xf4   : > { %2296 = vmatprep.subr.bf16.mxu1 %v7362_v2  ;;  %v7366_v5 = vld [vmem:[%s8825_s21 + $0xc4] ss:$16 sps:$4 sm:$0xff]   ;;  %2144 = vmatpush1.bf16.msra.mxu0 %v7364_v3  ;;  %v7370_v7 = vld [vmem:[%s8825_s21 + $0xc0] ss:$16 sps:$4 sm:$0xff]  }
  0xf5   : > { %2297 = vmatpush1.bf16.msra.mxu1 %v7365_v4  ;;  %v7368_v6 = vld [vmem:[%s8825_s21 + $0x2c4] ss:$16 sps:$4 sm:$0xff]   ;;  %2145 = vmatprep.subr.bf16.mxu0 %v7366_v5  ;;  %v7371_v8 = vld [vmem:[%s8825_s21 + $0x2c0] ss:$16 sps:$4 sm:$0xff]   ;;  %v7467_v4 = vld [vmem:[%s8825_s21 + $0xec] ss:$16 sps:$4 sm:$0xff]  }
  0xf6   : > { %2298 = vmatprep.subr.bf16.mxu1 %v7368_v6  ;;  %v7372_v9 = vld [vmem:[%s8825_s21 + $0xa4] ss:$16 sps:$4 sm:$0xff]   ;;  %v7376_v11 = vld [vmem:[%s8825_s21 + $0xa0] ss:$16 sps:$4 sm:$0xff]  }
  0xf7   : > { %v7374_v10 = vld [vmem:[%s8825_s21 + $0x2a4] ss:$16 sps:$4 sm:$0xff]   ;;  %v7377_v12 = vld [vmem:[%s8825_s21 + $0x2a0] ss:$16 sps:$4 sm:$0xff]  }
  0xf8   : > { %2146 = vmatpush1.bf16.msra.mxu0 %v7370_v7  ;;  %v7378_v13 = vld [vmem:[%s8825_s21 + $0x84] ss:$16 sps:$4 sm:$0xff]   ;;  %v7382_v15 = vld [vmem:[%s8825_s21 + $0x80] ss:$16 sps:$4 sm:$0xff]   ;;  %p7207_p3 = scmp.ne.s32.totalorder %s11919_s5, 5 }
  0xf9   : > { %2299 = vmatpush1.bf16.msra.mxu1 %v7371_v8  ;;  %2147 = vmatprep.subr.bf16.mxu0 %v7372_v9  ;;  %v7380_v14 = vld [vmem:[%s8825_s21 + $0x284] ss:$16 sps:$4 sm:$0xff]   ;;  %v7383_v16 = vld [vmem:[%s8825_s21 + $0x280] ss:$16 sps:$4 sm:$0xff]   ;;  %v7465_v8 = vld [vmem:[%s8825_s21 + $0xe8] ss:$16 sps:$4 sm:$0xff]  }
  0xfa   : > { %2300 = vmatprep.subr.bf16.mxu1 %v7374_v10  ;;  %v7384_v17 = vld [vmem:[%s8825_s21 + $0x64] ss:$16 sps:$4 sm:$0xff]   ;;  %v7388_v19 = vld [vmem:[%s8825_s21 + $0x60] ss:$16 sps:$4 sm:$0xff]  }
  0xfb   : > { %v7386_v18 = vld [vmem:[%s8825_s21 + $0x264] ss:$16 sps:$4 sm:$0xff]   ;;  %v7389_v20 = vld [vmem:[%s8825_s21 + $0x260] ss:$16 sps:$4 sm:$0xff]  }
  0xfc   : > { %2148 = vmatpush1.bf16.msra.mxu0 %v7376_v11  ;;  %v7390_v21 = vld [vmem:[%s8825_s21 + $0x44] ss:$16 sps:$4 sm:$0xff]   ;;  %v7394_v23 = vld [vmem:[%s8825_s21 + $0x40] ss:$16 sps:$4 sm:$0xff]  }
  0xfd   : > { %2301 = vmatpush1.bf16.msra.mxu1 %v7377_v12  ;;  %2149 = vmatprep.subr.bf16.mxu0 %v7378_v13  ;;  %v7392_v22 = vld [vmem:[%s8825_s21 + $0x244] ss:$16 sps:$4 sm:$0xff]   ;;  %v7395_v24 = vld [vmem:[%s8825_s21 + $0x240] ss:$16 sps:$4 sm:$0xff]   ;;  %v7479_v12 = vld [vmem:[%s8825_s21 + $0xcc] ss:$16 sps:$4 sm:$0xff]  }
  0xfe   : > { %2302 = vmatprep.subr.bf16.mxu1 %v7380_v14  ;;  %v7396_v25 = vld [vmem:[%s8825_s21 + $0x24] ss:$16 sps:$4 sm:$0xff]   ;;  %v7400_v27 = vld [vmem:[%s8825_s21 + $0x20] ss:$16 sps:$4 sm:$0xff]   ;;  %v7477_v14 = vld [vmem:[%s8825_s21 + $0xc8] ss:$16 sps:$4 sm:$0xff]  }
  0xff   : > { %v7398_v26 = vld [vmem:[%s8825_s21 + $0x224] ss:$16 sps:$4 sm:$0xff]   ;;  %v7401_v28 = vld [vmem:[%s8825_s21 + $0x220] ss:$16 sps:$4 sm:$0xff]  }
 0x100   : > { %2150 = vmatpush1.bf16.msra.mxu0 %v7382_v15  ;;  %v7402_v29 = vld [vmem:[%s8825_s21 + $0x4] ss:$16 sps:$4 sm:$0xff]   ;;  %v7406_v31 = vld [vmem:[%s8825_s21] ss:$16 sps:$4 sm:$0xff]  }
 0x101   : > { %2303 = vmatpush1.bf16.msra.mxu1 %v7383_v16  ;;  %2151 = vmatprep.subr.bf16.mxu0 %v7384_v17  ;;  %v7404_v30 = vld [vmem:[%s8825_s21 + $0x204] ss:$16 sps:$4 sm:$0xff]   ;;  %v7407_v32 = vld [vmem:[%s8825_s21 + $0x200] ss:$16 sps:$4 sm:$0xff]   ;;  %v7485_v16 = vld [vmem:[%s8825_s21 + $0xac] ss:$16 sps:$4 sm:$0xff]  }
 0x102   : > { %2304 = vmatprep.subr.bf16.mxu1 %v7386_v18  ;;  %v7408_v33 = vld [vmem:[%s8825_s21 + $0x1e4] ss:$16 sps:$4 sm:$0xff]   ;;  %v7412_v35 = vld [vmem:[%s8825_s21 + $0x1e0] ss:$16 sps:$4 sm:$0xff]  }
 0x103   : > { %v7410_v34 = vld [vmem:[%s8825_s21 + $0x3e4] ss:$16 sps:$4 sm:$0xff]   ;;  %v7413_v36 = vld [vmem:[%s8825_s21 + $0x3e0] ss:$16 sps:$4 sm:$0xff]  }
 0x104   : > { %2152 = vmatpush1.bf16.msra.mxu0 %v7388_v19  ;;  %v7414_v37 = vld [vmem:[%s8825_s21 + $0x1c4] ss:$16 sps:$4 sm:$0xff]   ;;  %v7418_v39 = vld [vmem:[%s8825_s21 + $0x1c0] ss:$16 sps:$4 sm:$0xff]  }
 0x105   : > { %2305 = vmatpush1.bf16.msra.mxu1 %v7389_v20  ;;  %2153 = vmatprep.subr.bf16.mxu0 %v7390_v21  ;;  %v7416_v38 = vld [vmem:[%s8825_s21 + $0x3c4] ss:$16 sps:$4 sm:$0xff]   ;;  %v7419_v40 = vld [vmem:[%s8825_s21 + $0x3c0] ss:$16 sps:$4 sm:$0xff]   ;;  %v7483_v20 = vld [vmem:[%s8825_s21 + $0xa8] ss:$16 sps:$4 sm:$0xff]  }
 0x106   : > { %2306 = vmatprep.subr.bf16.mxu1 %v7392_v22  ;;  %v7420_v41 = vld [vmem:[%s8825_s21 + $0x1a4] ss:$16 sps:$4 sm:$0xff]   ;;  %v7424_v43 = vld [vmem:[%s8825_s21 + $0x1a0] ss:$16 sps:$4 sm:$0xff]  }
 0x107   : > { %v7422_v42 = vld [vmem:[%s8825_s21 + $0x3a4] ss:$16 sps:$4 sm:$0xff]   ;;  %v7425_v44 = vld [vmem:[%s8825_s21 + $0x3a0] ss:$16 sps:$4 sm:$0xff]  }
 0x108   : > { %2154 = vmatpush1.bf16.msra.mxu0 %v7394_v23  ;;  %v7426_v45 = vld [vmem:[%s8825_s21 + $0x184] ss:$16 sps:$4 sm:$0xff]   ;;  %v7430_v47 = vld [vmem:[%s8825_s21 + $0x180] ss:$16 sps:$4 sm:$0xff]  }
 0x109   : > { %2307 = vmatpush1.bf16.msra.mxu1 %v7395_v24  ;;  %2155 = vmatprep.subr.bf16.mxu0 %v7396_v25  ;;  %v7428_v46 = vld [vmem:[%s8825_s21 + $0x384] ss:$16 sps:$4 sm:$0xff]   ;;  %v7431_v48 = vld [vmem:[%s8825_s21 + $0x380] ss:$16 sps:$4 sm:$0xff]   ;;  %v7497_v24 = vld [vmem:[%s8825_s21 + $0x8c] ss:$16 sps:$4 sm:$0xff]  }
 0x10a   : > { %2308 = vmatprep.subr.bf16.mxu1 %v7398_v26  ;;  %v7432_v49 = vld [vmem:[%s8825_s21 + $0x164] ss:$16 sps:$4 sm:$0xff]   ;;  %v7436_v53 = vld [vmem:[%s8825_s21 + $0x160] ss:$16 sps:$4 sm:$0xff]   ;;  %v7495_v26 = vld [vmem:[%s8825_s21 + $0x88] ss:$16 sps:$4 sm:$0xff]  }
 0x10b   : > { %v9042_v50 = vld [vmem:[%s8817_s10 + $0x4] ss:$24 sps:$4 sm:$0xff]   ;;  %v7437_v54 = vld [vmem:[%s8825_s21 + $0x360] ss:$16 sps:$4 sm:$0xff]   ;;  %v9071_v10 = vld [vmem:[%s8817_s10 + $0x34] ss:$24 sps:$4 sm:$0xff]  }
 0x10c   : > { %2156 = vmatpush1.bf16.msra.mxu0 %v7400_v27  ;;  %v7434_v51 = vld [vmem:[%s8825_s21 + $0x364] ss:$16 sps:$4 sm:$0xff]   ;;  %2175 = vmatprep.mubr.bf16.mxu0 %v9042_v50  ;;  %v7442_v57 = vld [vmem:[%s8825_s21 + $0x140] ss:$16 sps:$4 sm:$0xff]  }
 0x10d   : > { %2309 = vmatpush1.bf16.msra.mxu1 %v7401_v28  ;;  %2157 = vmatprep.subr.bf16.mxu0 %v7402_v29  ;;  %v7461_v52 = vld [vmem:[%s8817_s10 + $0xc] ss:$24 sps:$4 sm:$0xff]   ;;  %v7443_v58 = vld [vmem:[%s8825_s21 + $0x340] ss:$16 sps:$4 sm:$0xff]   ;;  %v7473_v11 = vld [vmem:[%s8817_s10 + $0x3c] ss:$24 sps:$4 sm:$0xff]  }
 0x10e   : > { %2310 = vmatprep.subr.bf16.mxu1 %v7404_v30  ;;  %2328 = vmatprep.mubr.bf16.mxu1 %v7461_v52  ;;  %v7438_v55 = vld [vmem:[%s8825_s21 + $0x144] ss:$16 sps:$4 sm:$0xff]   ;;  %v7448_v61 = vld [vmem:[%s8825_s21 + $0x120] ss:$16 sps:$4 sm:$0xff]   ;;  %v7509_v30 = vld [vmem:[%s8825_s21 + $0x6c] ss:$16 sps:$4 sm:$0xff]  }
 0x10f   : > { %v7440_v56 = vld [vmem:[%s8825_s21 + $0x344] ss:$16 sps:$4 sm:$0xff]   ;;  %v7449_v62 = vld [vmem:[%s8825_s21 + $0x320] ss:$16 sps:$4 sm:$0xff]  }
 0x110   : > { %2158 = vmatpush1.bf16.msra.mxu0 %v7406_v31  ;;  %v7444_v59 = vld [vmem:[%s8825_s21 + $0x124] ss:$16 sps:$4 sm:$0xff]   ;;  %v7454_v1 = vld [vmem:[%s8825_s21 + $0x100] ss:$16 sps:$4 sm:$0xff]  }
 0x111   : > { %2311 = vmatpush1.bf16.msra.mxu1 %v7407_v32  ;;  %2159 = vmatprep.subr.bf16.mxu0 %v7408_v33  ;;  %v7446_v60 = vld [vmem:[%s8825_s21 + $0x324] ss:$16 sps:$4 sm:$0xff]   ;;  %v7455_v2 = vld [vmem:[%s8825_s21 + $0x300] ss:$16 sps:$4 sm:$0xff]  }
 0x112   : > { %2312 = vmatprep.subr.bf16.mxu1 %v7410_v34  ;;  %v7450_v63 = vld [vmem:[%s8825_s21 + $0x104] ss:$16 sps:$4 sm:$0xff]   ;;  %v9064_v5 = vld [vmem:[%s8817_s10] ss:$24 sps:$4 sm:$0xff]   ;;  %v9082_v17 = vld [vmem:[%s8817_s10 + $0x30] ss:$24 sps:$4 sm:$0xff]  }
 0x113   : > { %v7452_v0 = vld [vmem:[%s8825_s21 + $0x304] ss:$16 sps:$4 sm:$0xff]   ;;  %v7459_v6 = vld [vmem:[%s8817_s10 + $0x8] ss:$24 sps:$4 sm:$0xff]   ;;  %v7476_v18 = vld [vmem:[%s8817_s10 + $0x38] ss:$24 sps:$4 sm:$0xff]  }
 0x114   : > { %2160 = vmatpush2.bf16.msra.mxu0 %v7412_v35  ;;  %v7464_v3 = vld [vmem:[%s8825_s21 + $0x4e4] ss:$16 sps:$4 sm:$0xff]   ;;  %v7462_v7 = vld [vmem:[%s8825_s21 + $0x4e0] ss:$16 sps:$4 sm:$0xff]   ;;  %v7507_v34 = vld [vmem:[%s8825_s21 + $0x68] ss:$16 sps:$4 sm:$0xff]  }
 0x115   : > { %2313 = vmatpush2.bf16.msra.mxu1 %v7413_v36  ;;  %2161 = vmatprep.subr.bf16.mxu0 %v7414_v37  ;;  %v7470_v9 = vld [vmem:[%s8825_s21 + $0x4c4] ss:$16 sps:$4 sm:$0xff]   ;;  %v7468_v13 = vld [vmem:[%s8825_s21 + $0x4c0] ss:$16 sps:$4 sm:$0xff]   ;;  %v7521_v36 = vld [vmem:[%s8825_s21 + $0x4c] ss:$16 sps:$4 sm:$0xff]  }
 0x116   : > { %2314 = vmatprep.subr.bf16.mxu1 %v7416_v38  ;;  %v7482_v15 = vld [vmem:[%s8825_s21 + $0x4a4] ss:$16 sps:$4 sm:$0xff]   ;;  %v7480_v19 = vld [vmem:[%s8825_s21 + $0x4a0] ss:$16 sps:$4 sm:$0xff]  }
 0x117   : > { %v9088_v21 = vld [vmem:[%s8817_s10 + $0x64] ss:$24 sps:$4 sm:$0xff]   ;;  %v7492_v25 = vld [vmem:[%s8825_s21 + $0x480] ss:$16 sps:$4 sm:$0xff]   ;;  %v9104_v31 = vld [vmem:[%s8817_s10 + $0x94] ss:$24 sps:$4 sm:$0xff]  }
 0x118   : > { %2162 = vmatpush2.bf16.msra.mxu0 %v7418_v39  ;;  %v7488_v22 = vld [vmem:[%s8817_s10 + $0x6c] ss:$24 sps:$4 sm:$0xff]   ;;  %v9098_v27 = vld [vmem:[%s8817_s10 + $0x60] ss:$24 sps:$4 sm:$0xff]   ;;  %v7500_v32 = vld [vmem:[%s8817_s10 + $0x9c] ss:$24 sps:$4 sm:$0xff]  }
 0x119   : > { %2315 = vmatpush2.bf16.msra.mxu1 %v7419_v40  ;;  %2163 = vmatprep.subr.bf16.mxu0 %v7420_v41  ;;  %v7494_v23 = vld [vmem:[%s8825_s21 + $0x484] ss:$16 sps:$4 sm:$0xff]   ;;  %v7491_v29 = vld [vmem:[%s8817_s10 + $0x68] ss:$24 sps:$4 sm:$0xff]   ;;  %v7503_v39 = vld [vmem:[%s8817_s10 + $0x98] ss:$24 sps:$4 sm:$0xff]  }
 0x11a   : > { %2316 = vmatprep.subr.bf16.mxu1 %v7422_v42  ;;  %v7506_v28 = vld [vmem:[%s8825_s21 + $0x464] ss:$16 sps:$4 sm:$0xff]   ;;  %v7504_v33 = vld [vmem:[%s8825_s21 + $0x460] ss:$16 sps:$4 sm:$0xff]   ;;  %v7519_v40 = vld [vmem:[%s8825_s21 + $0x48] ss:$16 sps:$4 sm:$0xff]  }
 0x11b   : > { %v7512_v35 = vld [vmem:[%s8825_s21 + $0x444] ss:$16 sps:$4 sm:$0xff]   ;;  %v7510_v37 = vld [vmem:[%s8825_s21 + $0x440] ss:$16 sps:$4 sm:$0xff]   ;;  %v7527_v42 = vld [vmem:[%s8825_s21 + $0x2c] ss:$16 sps:$4 sm:$0xff]  }
 0x11c   : > { %2164 = vmatpush2.bf16.msra.mxu0 %v7424_v43  ;;  %v9115_v38 = vld [vmem:[%s8817_s10 + $0x90] ss:$24 sps:$4 sm:$0xff]   ;;  %v7524_v41 = vld [vmem:[%s8825_s21 + $0x424] ss:$16 sps:$4 sm:$0xff]   ;;  %v9134_v52 = vld [vmem:[%s8817_s10 + $0xc0] ss:$24 sps:$4 sm:$0xff]  }
 0x11d   : > { %2317 = vmatpush2.bf16.msra.mxu1 %v7425_v44  ;;  %2165 = vmatprep.subr.bf16.mxu0 %v7426_v45  ;;  %v9122_v43 = vld [vmem:[%s8817_s10 + $0xc4] ss:$24 sps:$4 sm:$0xff]   ;;  %v7522_v45 = vld [vmem:[%s8825_s21 + $0x420] ss:$16 sps:$4 sm:$0xff]  }
 0x11e   : > { %2318 = vmatprep.subr.bf16.mxu1 %v7428_v46  ;;  %v7515_v44 = vld [vmem:[%s8817_s10 + $0xcc] ss:$24 sps:$4 sm:$0xff]   ;;  %v7525_v46 = vld [vmem:[%s8825_s21 + $0x28] ss:$16 sps:$4 sm:$0xff]  }
 0x120   : > { %2166 = vmatpush2.bf16.msra.mxu0 %v7430_v47  ;;  %v7536_v47 = vld [vmem:[%s8825_s21 + $0x404] ss:$16 sps:$4 sm:$0xff]  }
 0x121   : > { %2319 = vmatpush2.bf16.msra.mxu1 %v7431_v48  ;;  %2167 = vmatprep.subr.bf16.mxu0 %v7432_v49  ;;  %v7539_v48 = vld [vmem:[%s8825_s21 + $0xc] ss:$16 sps:$4 sm:$0xff]   ;;  %v7534_v49 = vld [vmem:[%s8825_s21 + $0x400] ss:$16 sps:$4 sm:$0xff]  }
 0x122   : > { %2320 = vmatprep.subr.bf16.mxu1 %v7434_v51  ;;  %v7537_v51 = vld [vmem:[%s8825_s21 + $0x8] ss:$16 sps:$4 sm:$0xff]  }
 0x124   : > { %2168 = vmatpush2.bf16.msra.mxu0 %v7436_v53  ;;  %v7548_v53 = vld [vmem:[%s8825_s21 + $0x5e4] ss:$16 sps:$4 sm:$0xff]  }
 0x125   : > { %2321 = vmatpush2.bf16.msra.mxu1 %v7437_v54  ;;  %2169 = vmatprep.subr.bf16.mxu0 %v7438_v55  ;;  %v7551_v54 = vld [vmem:[%s8825_s21 + $0x1ec] ss:$16 sps:$4 sm:$0xff]   ;;  %v7518_v55 = vld [vmem:[%s8817_s10 + $0xc8] ss:$24 sps:$4 sm:$0xff]  }
 0x126   : > { %2322 = vmatprep.subr.bf16.mxu1 %v7440_v56  ;;  %v9140_v56 = vld [vmem:[%s8817_s10 + $0xf4] ss:$24 sps:$4 sm:$0xff]  }
 0x128   : > { %2170 = vmatpush2.bf16.msra.mxu0 %v7442_v57  ;;  %v7530_v57 = vld [vmem:[%s8817_s10 + $0xfc] ss:$24 sps:$4 sm:$0xff]  }
 0x129   : > { %2323 = vmatpush2.bf16.msra.mxu1 %v7443_v58  ;;  %2171 = vmatprep.subr.bf16.mxu0 %v7444_v59  ;;  %v7546_v58 = vld [vmem:[%s8825_s21 + $0x5e0] ss:$16 sps:$4 sm:$0xff]   ;;  %v7549_v59 = vld [vmem:[%s8825_s21 + $0x1e8] ss:$16 sps:$4 sm:$0xff]  }
 0x12a   : > { %2324 = vmatprep.subr.bf16.mxu1 %v7446_v60  ;;  %v7554_v60 = vld [vmem:[%s8825_s21 + $0x5c4] ss:$16 sps:$4 sm:$0xff]  }
 0x12c   : > { %2172 = vmatpush2.bf16.msra.mxu0 %v7448_v61  ;;  %v7563_v61 = vld [vmem:[%s8825_s21 + $0x1cc] ss:$16 sps:$4 sm:$0xff]  }
 0x12d   : > { %2325 = vmatpush2.bf16.msra.mxu1 %v7449_v62  ;;  %2173 = vmatprep.subr.bf16.mxu0 %v7450_v63  ;;  %v7552_v62 = vld [vmem:[%s8825_s21 + $0x5c0] ss:$16 sps:$4 sm:$0xff]  }
 0x12e   : > { %2326 = vmatprep.subr.bf16.mxu1 %v7452_v0  ;;  %v9151_v63 = vld [vmem:[%s8817_s10 + $0xf0] ss:$24 sps:$4 sm:$0xff]  }
 0x12f   : > { %v7533_v0 = vld [vmem:[%s8817_s10 + $0xf8] ss:$24 sps:$4 sm:$0xff]  }
 0x130   : > { %2174 = vmatpush2.bf16.msra.mxu0 %v7454_v1  ;;  %v7561_v1 = vld [vmem:[%s8825_s21 + $0x1c8] ss:$16 sps:$4 sm:$0xff]  }
 0x131   : > { %2327 = vmatpush2.bf16.msra.mxu1 %v7455_v2  ;;  %2449 = vmatprep.subr.bf16.mxu0 %v7464_v3  ;;  %v9156_v2 = vld [vmem:[%s8817_s10 + $0x124] ss:$24 sps:$4 sm:$0xff]  }
 0x132   : > { %2602 = vmatprep.subr.bf16.mxu1 %v7467_v4  ;;  %v7566_v3 = vld [vmem:[%s8825_s21 + $0x5a4] ss:$16 sps:$4 sm:$0xff]   ;;  %v7569_v4 = vld [vmem:[%s8825_s21 + $0x1ac] ss:$16 sps:$4 sm:$0xff]  }
 0x133   : > { %2176 = vmatmul.mubr.bf16.vlgmr.msra.gmra.mxu0 %v9064_v5 }
 0x134   : > { %2329 = vmatmul.mubr.bf16.vlgmr.msra.gmra.mxu1 %v7459_v6  ;;  %2450 = vmatpush1.bf16.msra.mxu0 %v7462_v7  ;;  %v7542_v6 = vld [vmem:[%s8817_s10 + $0x12c] ss:$24 sps:$4 sm:$0xff]   ;;  %v7564_v7 = vld [vmem:[%s8825_s21 + $0x5a0] ss:$16 sps:$4 sm:$0xff]  }
 0x135   : > { %2603 = vmatpush1.bf16.msra.mxu1 %v7465_v8  ;;  %2451 = vmatprep.subr.bf16.mxu0 %v7470_v9  ;;  %v7567_v8 = vld [vmem:[%s8825_s21 + $0x1a8] ss:$16 sps:$4 sm:$0xff]   ;;  %v7578_v9 = vld [vmem:[%s8825_s21 + $0x584] ss:$16 sps:$4 sm:$0xff]  }
 0x136   : > { %2185 = vmatprep.mubr.bf16.mxu0 %v9071_v10  ;;  %2338 = vmatprep.mubr.bf16.mxu1 %v7473_v11  ;;  %v7581_v11 = vld [vmem:[%s8825_s21 + $0x18c] ss:$16 sps:$4 sm:$0xff]  }
 0x137   : > { %2604 = vmatprep.subr.bf16.mxu1 %v7479_v12  ;;  %v7576_v12 = vld [vmem:[%s8825_s21 + $0x580] ss:$16 sps:$4 sm:$0xff]  }
 0x138   : > { %2452 = vmatpush1.bf16.msra.mxu0 %v7468_v13  ;;  %v9169_v13 = vld [vmem:[%s8817_s10 + $0x120] ss:$24 sps:$4 sm:$0xff]  }
 0x139   : > { %2605 = vmatpush1.bf16.msra.mxu1 %v7477_v14  ;;  %2453 = vmatprep.subr.bf16.mxu0 %v7482_v15  ;;  %v7545_v14 = vld [vmem:[%s8817_s10 + $0x128] ss:$24 sps:$4 sm:$0xff]  }
 0x13a   : > { %2606 = vmatprep.subr.bf16.mxu1 %v7485_v16  ;;  %v7579_v15 = vld [vmem:[%s8825_s21 + $0x188] ss:$16 sps:$4 sm:$0xff]   ;;  %v7590_v16 = vld [vmem:[%s8825_s21 + $0x564] ss:$16 sps:$4 sm:$0xff]  }
 0x13b   : > { %2186 = vmatmul.mubr.bf16.gmra.mxu0 %v9082_v17 }
 0x13c   : > { %2339 = vmatmul.mubr.bf16.gmra.mxu1 %v7476_v18  ;;  %2454 = vmatpush1.bf16.msra.mxu0 %v7480_v19  ;;  %v7593_v18 = vld [vmem:[%s8825_s21 + $0x16c] ss:$16 sps:$4 sm:$0xff]  }
 0x13d   : > { %2195 = vmatprep.mubr.bf16.mxu0 %v9088_v21  ;;  %2348 = vmatprep.mubr.bf16.mxu1 %v7488_v22  ;;  %v9176_v19 = vld [vmem:[%s8817_s10 + $0x154] ss:$24 sps:$4 sm:$0xff]   ;;  %v7588_v22 = vld [vmem:[%s8825_s21 + $0x560] ss:$16 sps:$4 sm:$0xff]  }
 0x13e   : > { %2607 = vmatpush1.bf16.msra.mxu1 %v7483_v20  ;;  %2455 = vmatprep.subr.bf16.mxu0 %v7494_v23  ;;  %v7557_v20 = vld [vmem:[%s8817_s10 + $0x15c] ss:$24 sps:$4 sm:$0xff]   ;;  %v7591_v23 = vld [vmem:[%s8825_s21 + $0x168] ss:$16 sps:$4 sm:$0xff]  }
 0x13f   : > { %2608 = vmatprep.subr.bf16.mxu1 %v7497_v24  ;;  %v7596_v24 = vld [vmem:[%s8825_s21 + $0x544] ss:$16 sps:$4 sm:$0xff]  }
 0x140   : > { %2456 = vmatpush1.bf16.msra.mxu0 %v7492_v25  ;;  %v7605_v25 = vld [vmem:[%s8825_s21 + $0x14c] ss:$16 sps:$4 sm:$0xff]  }
 0x141   : > { %2457 = vmatprep.subr.bf16.mxu0 %v7506_v28  ;;  %v9187_v28 = vld [vmem:[%s8817_s10 + $0x150] ss:$24 sps:$4 sm:$0xff]  }
 0x142   : > { %2609 = vmatpush1.bf16.msra.mxu1 %v7495_v26  ;;  %v7594_v26 = vld [vmem:[%s8825_s21 + $0x540] ss:$16 sps:$4 sm:$0xff]  }
 0x143   : > { %2610 = vmatprep.subr.bf16.mxu1 %v7509_v30  ;;  %2196 = vmatmul.mubr.bf16.gmra.mxu0 %v9098_v27  ;;  %v7603_v30 = vld [vmem:[%s8825_s21 + $0x148] ss:$16 sps:$4 sm:$0xff]  }
 0x144   : > { %2349 = vmatmul.mubr.bf16.gmra.mxu1 %v7491_v29  ;;  %2205 = vmatprep.mubr.bf16.mxu0 %v9104_v31  ;;  %v7560_v29 = vld [vmem:[%s8817_s10 + $0x158] ss:$24 sps:$4 sm:$0xff]  }
 0x145   : > { %2358 = vmatprep.mubr.bf16.mxu1 %v7500_v32  ;;  %2458 = vmatpush1.bf16.msra.mxu0 %v7504_v33  ;;  %v7608_v32 = vld [vmem:[%s8825_s21 + $0x524] ss:$16 sps:$4 sm:$0xff]   ;;  %v7611_v33 = vld [vmem:[%s8825_s21 + $0x12c] ss:$16 sps:$4 sm:$0xff]  }
 0x146   : > { %2611 = vmatpush1.bf16.msra.mxu1 %v7507_v34  ;;  %2459 = vmatprep.subr.bf16.mxu0 %v7512_v35  ;;  %v9194_v34 = vld [vmem:[%s8817_s10 + $0x184] ss:$24 sps:$4 sm:$0xff]  }
 0x147   : > { %2612 = vmatprep.subr.bf16.mxu1 %v7521_v36  ;;  %v7572_v35 = vld [vmem:[%s8817_s10 + $0x18c] ss:$24 sps:$4 sm:$0xff]   ;;  %v7606_v36 = vld [vmem:[%s8825_s21 + $0x520] ss:$16 sps:$4 sm:$0xff]  }
 0x149   : > { %2460 = vmatpush1.bf16.msra.mxu0 %v7510_v37  ;;  %v7609_v37 = vld [vmem:[%s8825_s21 + $0x128] ss:$16 sps:$4 sm:$0xff]  }
 0x14a   : > { %2613 = vmatpush1.bf16.msra.mxu1 %v7519_v40  ;;  %2461 = vmatprep.subr.bf16.mxu0 %v7524_v41  ;;  %v7623_v40 = vld [vmem:[%s8825_s21 + $0x10c] ss:$16 sps:$4 sm:$0xff]   ;;  %v7618_v41 = vld [vmem:[%s8825_s21 + $0x500] ss:$16 sps:$4 sm:$0xff]  }
 0x14b   : > { %2614 = vmatprep.subr.bf16.mxu1 %v7527_v42  ;;  %2206 = vmatmul.mubr.bf16.gmra.mxu0 %v9115_v38  ;;  %v9205_v42 = vld [vmem:[%s8817_s10 + $0x180] ss:$24 sps:$4 sm:$0xff]  }
 0x14c   : > { %2359 = vmatmul.mubr.bf16.gmra.mxu1 %v7503_v39  ;;  %2215 = vmatprep.mubr.bf16.mxu0 %v9122_v43  ;;  %v7620_v39 = vld [vmem:[%s8825_s21 + $0x504] ss:$16 sps:$4 sm:$0xff]  }
 0x14d   : > { %2368 = vmatprep.mubr.bf16.mxu1 %v7515_v44  ;;  %2462 = vmatpush1.bf16.msra.mxu0 %v7522_v45  ;;  %v7621_v44 = vld [vmem:[%s8825_s21 + $0x108] ss:$16 sps:$4 sm:$0xff]   ;;  %v7629_v45 = vld [vmem:[%s8825_s21 + $0x2ec] ss:$16 sps:$4 sm:$0xff]  }
 0x14e   : > { %2615 = vmatpush1.bf16.msra.mxu1 %v7525_v46  ;;  %2463 = vmatprep.subr.bf16.mxu0 %v7536_v47  ;;  %v7632_v46 = vld [vmem:[%s8825_s21 + $0x4ec] ss:$16 sps:$4 sm:$0xff]   ;;  %v7575_v47 = vld [vmem:[%s8817_s10 + $0x188] ss:$24 sps:$4 sm:$0xff]  }
 0x14f   : > { %2616 = vmatprep.subr.bf16.mxu1 %v7539_v48  ;;  %v9212_v48 = vld [vmem:[%s8817_s10 + $0x1b4] ss:$24 sps:$4 sm:$0xff]  }
 0x151   : > { %2464 = vmatpush1.bf16.msra.mxu0 %v7534_v49  ;;  %v7584_v49 = vld [vmem:[%s8817_s10 + $0x1bc] ss:$24 sps:$4 sm:$0xff]  }
 0x152   : > { %2617 = vmatpush1.bf16.msra.mxu1 %v7537_v51  ;;  %2465 = vmatprep.subr.bf16.mxu0 %v7548_v53  ;;  %v9218_v51 = vld [vmem:[%s8817_s10 + $0x1b0] ss:$24 sps:$4 sm:$0xff]  }
 0x153   : > { %2618 = vmatprep.subr.bf16.mxu1 %v7551_v54  ;;  %2216 = vmatmul.mubr.bf16.gmra.mxu0 %v9134_v52  ;;  %v7587_v53 = vld [vmem:[%s8817_s10 + $0x1b8] ss:$24 sps:$4 sm:$0xff]   ;;  %v9222_v54 = vld [vmem:[%s8817_s10 + $0x1e4] ss:$24 sps:$4 sm:$0xff]  }
 0x154   : > { %2369 = vmatmul.mubr.bf16.gmra.mxu1 %v7518_v55  ;;  %2225 = vmatprep.mubr.bf16.mxu0 %v9140_v56  ;;  %v7599_v55 = vld [vmem:[%s8817_s10 + $0x1ec] ss:$24 sps:$4 sm:$0xff]  }
 0x155   : > { %2378 = vmatprep.mubr.bf16.mxu1 %v7530_v57  ;;  %2466 = vmatpush2.bf16.msra.mxu0 %v7546_v58  ;;  %v9228_v57 = vld [vmem:[%s8817_s10 + $0x1e0] ss:$24 sps:$4 sm:$0xff]  }
 0x156   : > { %2619 = vmatpush2.bf16.msra.mxu1 %v7549_v59  ;;  %2467 = vmatprep.subr.bf16.mxu0 %v7554_v60  ;;  %v7602_v58 = vld [vmem:[%s8817_s10 + $0x1e8] ss:$24 sps:$4 sm:$0xff]   ;;  %v9232_v59 = vld [vmem:[%s8817_s10 + $0x214] ss:$24 sps:$4 sm:$0xff]  }
 0x157   : > { %2620 = vmatprep.subr.bf16.mxu1 %v7563_v61  ;;  %v7614_v60 = vld [vmem:[%s8817_s10 + $0x21c] ss:$24 sps:$4 sm:$0xff]   ;;  %v9238_v61 = vld [vmem:[%s8817_s10 + $0x210] ss:$24 sps:$4 sm:$0xff]  }
 0x159   : > { %2468 = vmatpush2.bf16.msra.mxu0 %v7552_v62  ;;  %v7617_v62 = vld [vmem:[%s8817_s10 + $0x218] ss:$24 sps:$4 sm:$0xff]  }
 0x15a   : > { %2621 = vmatpush2.bf16.msra.mxu1 %v7561_v1  ;;  %2469 = vmatprep.subr.bf16.mxu0 %v7566_v3  ;;  %v9248_v1 = vld [vmem:[%s8817_s10 + $0x10] ss:$24 sps:$4 sm:$0xff]  }
 0x15b   : > { %2622 = vmatprep.subr.bf16.mxu1 %v7569_v4  ;;  %2226 = vmatmul.mubr.bf16.gmra.mxu0 %v9151_v63  ;;  %v7627_v3 = vld [vmem:[%s8825_s21 + $0x2e8] ss:$16 sps:$4 sm:$0xff]  }
 0x15c   : > { %2379 = vmatmul.mubr.bf16.gmra.mxu1 %v7533_v0  ;;  %2235 = vmatprep.mubr.bf16.mxu0 %v9156_v2  ;;  %v9242_v0 = vld [vmem:[%s8817_s10 + $0x14] ss:$24 sps:$4 sm:$0xff]   ;;  %v7630_v4 = vld [vmem:[%s8825_s21 + $0x4e8] ss:$16 sps:$4 sm:$0xff]  }
 0x15d   : > { %2388 = vmatprep.mubr.bf16.mxu1 %v7542_v6  ;;  %2470 = vmatpush2.bf16.msra.mxu0 %v7564_v7  ;;  %v7635_v6 = vld [vmem:[%s8825_s21 + $0x2cc] ss:$16 sps:$4 sm:$0xff]  }
 0x15e   : > { %2623 = vmatpush2.bf16.msra.mxu1 %v7567_v8  ;;  %2471 = vmatprep.subr.bf16.mxu0 %v7578_v9  ;;  %v9254_v7 = vld [vmem:[%s8817_s10 + $0x44] ss:$24 sps:$4 sm:$0xff]   ;;  %v7633_v9 = vld [vmem:[%s8825_s21 + $0x2c8] ss:$16 sps:$4 sm:$0xff]  }
 0x15f   : > { %2624 = vmatprep.subr.bf16.mxu1 %v7581_v11  ;;  %v7641_v8 = vld [vmem:[%s8825_s21 + $0x4cc] ss:$16 sps:$4 sm:$0xff]   ;;  %v7639_v11 = vld [vmem:[%s8825_s21 + $0x4c8] ss:$16 sps:$4 sm:$0xff]  }
 0x161   : > { %2472 = vmatpush2.bf16.msra.mxu0 %v7576_v12  ;;  %v7647_v12 = vld [vmem:[%s8825_s21 + $0x4ac] ss:$16 sps:$4 sm:$0xff]  }
 0x162   : > { %2625 = vmatpush2.bf16.msra.mxu1 %v7579_v15  ;;  %2473 = vmatprep.subr.bf16.mxu0 %v7590_v16  ;;  %v9270_v15 = vld [vmem:[%s8817_s10 + $0x74] ss:$24 sps:$4 sm:$0xff]   ;;  %v7645_v16 = vld [vmem:[%s8825_s21 + $0x4a8] ss:$16 sps:$4 sm:$0xff]  }
 0x163   : > { %2626 = vmatprep.subr.bf16.mxu1 %v7593_v18  ;;  %2236 = vmatmul.mubr.bf16.gmra.mxu0 %v9169_v13  ;;  %v7653_v18 = vld [vmem:[%s8825_s21 + $0x28c] ss:$16 sps:$4 sm:$0xff]  }
 0x164   : > { %2389 = vmatmul.mubr.bf16.gmra.mxu1 %v7545_v14  ;;  %2245 = vmatprep.mubr.bf16.mxu0 %v9176_v19  ;;  %v9266_v14 = vld [vmem:[%s8817_s10 + $0x40] ss:$24 sps:$4 sm:$0xff]  }
 0x165   : > { %2398 = vmatprep.mubr.bf16.mxu1 %v7557_v20  ;;  %2474 = vmatpush2.bf16.msra.mxu0 %v7588_v22  ;;  %v7656_v20 = vld [vmem:[%s8825_s21 + $0x48c] ss:$16 sps:$4 sm:$0xff]   ;;  %v7654_v22 = vld [vmem:[%s8825_s21 + $0x488] ss:$16 sps:$4 sm:$0xff]  }
 0x166   : > { %2627 = vmatpush2.bf16.msra.mxu1 %v7591_v23  ;;  %2475 = vmatprep.subr.bf16.mxu0 %v7596_v24  ;;  %v9282_v23 = vld [vmem:[%s8817_s10 + $0x70] ss:$24 sps:$4 sm:$0xff]   ;;  %v7662_v24 = vld [vmem:[%s8825_s21 + $0x26c] ss:$16 sps:$4 sm:$0xff]  }
 0x167   : > { %2628 = vmatprep.subr.bf16.mxu1 %v7605_v25  ;;  %v9286_v25 = vld [vmem:[%s8817_s10 + $0xa4] ss:$24 sps:$4 sm:$0xff]  }
 0x169   : > { %2476 = vmatpush2.bf16.msra.mxu0 %v7594_v26  ;;  %v7660_v26 = vld [vmem:[%s8825_s21 + $0x268] ss:$16 sps:$4 sm:$0xff]  }
 0x16a   : > { %2629 = vmatpush2.bf16.msra.mxu1 %v7603_v30  ;;  %2477 = vmatprep.subr.bf16.mxu0 %v7608_v32  ;;  %v7668_v30 = vld [vmem:[%s8825_s21 + $0x24c] ss:$16 sps:$4 sm:$0xff]  }
 0x16b   : > { %2630 = vmatprep.subr.bf16.mxu1 %v7611_v33  ;;  %2246 = vmatmul.mubr.bf16.gmra.mxu0 %v9187_v28  ;;  %v7674_v32 = vld [vmem:[%s8825_s21 + $0x44c] ss:$16 sps:$4 sm:$0xff]   ;;  %v7672_v33 = vld [vmem:[%s8825_s21 + $0x448] ss:$16 sps:$4 sm:$0xff]  }
 0x16c   : > { %2399 = vmatmul.mubr.bf16.gmra.mxu1 %v7560_v29  ;;  %2255 = vmatprep.mubr.bf16.mxu0 %v9194_v34  ;;  %v7663_v29 = vld [vmem:[%s8825_s21 + $0x468] ss:$16 sps:$4 sm:$0xff]  }
 0x16d   : > { %2408 = vmatprep.mubr.bf16.mxu1 %v7572_v35  ;;  %2478 = vmatpush2.bf16.msra.mxu0 %v7606_v36  ;;  %v7677_v35 = vld [vmem:[%s8825_s21 + $0x22c] ss:$16 sps:$4 sm:$0xff]  }
 0x16e   : > { %2631 = vmatpush2.bf16.msra.mxu1 %v7609_v37  ;;  %2479 = vmatprep.subr.bf16.mxu0 %v7620_v39  ;;  %v7680_v36 = vld [vmem:[%s8825_s21 + $0x42c] ss:$16 sps:$4 sm:$0xff]   ;;  %v9302_v37 = vld [vmem:[%s8817_s10 + $0xa0] ss:$24 sps:$4 sm:$0xff]  }
 0x16f   : > { %2632 = vmatprep.subr.bf16.mxu1 %v7623_v40  ;;  %v9305_v39 = vld [vmem:[%s8817_s10 + $0xd4] ss:$24 sps:$4 sm:$0xff]   ;;  %v7678_v40 = vld [vmem:[%s8825_s21 + $0x428] ss:$16 sps:$4 sm:$0xff]  }
 0x171   : > { %2480 = vmatpush2.bf16.msra.mxu0 %v7618_v41  ;;  %v7686_v41 = vld [vmem:[%s8825_s21 + $0x20c] ss:$16 sps:$4 sm:$0xff]  }
 0x172   : > { %2633 = vmatpush2.bf16.msra.mxu1 %v7621_v44  ;;  %2755 = vmatprep.subr.bf16.mxu0 %v7629_v45  ;;  %v7689_v44 = vld [vmem:[%s8825_s21 + $0x40c] ss:$16 sps:$4 sm:$0xff]   ;;  %v7687_v45 = vld [vmem:[%s8825_s21 + $0x408] ss:$16 sps:$4 sm:$0xff]  }
 0x173   : > { %2908 = vmatprep.subr.bf16.mxu1 %v7632_v46  ;;  %2256 = vmatmul.mubr.bf16.gmra.mxu0 %v9205_v42  ;;  %v7695_v46 = vld [vmem:[%s8825_s21 + $0x3ec] ss:$16 sps:$4 sm:$0xff]  }
 0x174   : > { %2409 = vmatmul.mubr.bf16.gmra.mxu1 %v7575_v47  ;;  %2265 = vmatprep.mubr.bf16.mxu0 %v9212_v48  ;;  %v7698_v47 = vld [vmem:[%s8825_s21 + $0x5ec] ss:$16 sps:$4 sm:$0xff]  }
 0x175   : > { %2418 = vmatprep.mubr.bf16.mxu1 %v7584_v49  ;;  %v9320_v49 = vld [vmem:[%s8817_s10 + $0xd0] ss:$24 sps:$4 sm:$0xff]  }
 0x17b   : > { %2266 = vmatmul.mubr.bf16.gmra.mxu0 %v9218_v51 }
 0x17c   : > { %2419 = vmatmul.mubr.bf16.gmra.mxu1 %v7587_v53  ;;  %2275 = vmatprep.mubr.bf16.mxu0 %v9222_v54  ;;  %v9323_v53 = vld [vmem:[%s8817_s10 + $0x104] ss:$24 sps:$4 sm:$0xff]  }
 0x17d   : > { %2428 = vmatprep.mubr.bf16.mxu1 %v7599_v55  ;;  %v7696_v55 = vld [vmem:[%s8825_s21 + $0x5e8] ss:$16 sps:$4 sm:$0xff]  }
 0x183   : > { %2276 = vmatmul.mubr.bf16.gmra.mxu0 %v9228_v57 }
 0x184   : > { %2429 = vmatmul.mubr.bf16.gmra.mxu1 %v7602_v58  ;;  %2285 = vmatprep.mubr.bf16.mxu0 %v9232_v59  ;;  %v7707_v58 = vld [vmem:[%s8825_s21 + $0x5cc] ss:$16 sps:$4 sm:$0xff]  }
 0x185   : > { %2438 = vmatprep.mubr.bf16.mxu1 %v7614_v60  ;;  %v7699_v60 = vld [vmem:[%s8825_s21 + $0x3c8] ss:$16 sps:$4 sm:$0xff]  }
 0x18b   : > { %2286 = vmatmul.mubr.bf16.gmra.mxu0 %v9238_v61 }
 0x18c   : > { %2439 = vmatmul.mubr.bf16.gmra.mxu1 %v7617_v62  ;;  %2481 = vmatprep.mubr.bf16.mxu0 %v9242_v0  ;;  %v7705_v62 = vld [vmem:[%s8825_s21 + $0x5c8] ss:$16 sps:$4 sm:$0xff]  }
 0x18d   : > { %2634 = vmatprep.mubr.bf16.mxu1 %v9042_v50  ;;  %v7644_v50 = vld [vmem:[%s8825_s21 + $0x2ac] ss:$16 sps:$4 sm:$0xff]  }
 0x193   : > { %2482 = vmatmul.mubr.bf16.vlgmr.msra.gmra.mxu0 %v9248_v1 }
 0x194   : > { %2635 = vmatmul.mubr.bf16.vlgmr.msra.gmra.mxu1 %v9064_v5  ;;  %2756 = vmatpush1.bf16.msra.mxu0 %v7627_v3  ;;  %v7642_v5 = vld [vmem:[%s8825_s21 + $0x2a8] ss:$16 sps:$4 sm:$0xff]  }
 0x195   : > { %2909 = vmatpush1.bf16.msra.mxu1 %v7630_v4  ;;  %2757 = vmatprep.subr.bf16.mxu0 %v7635_v6  ;;  %v9336_v3 = vld [vmem:[%s8817_s10 + $0x100] ss:$24 sps:$4 sm:$0xff]   ;;  %v7710_v4 = vld [vmem:[%s8825_s21 + $0x3ac] ss:$16 sps:$4 sm:$0xff]  }
 0x196   : > { %2491 = vmatprep.mubr.bf16.mxu0 %v9254_v7  ;;  %2644 = vmatprep.mubr.bf16.mxu1 %v9071_v10  ;;  %v7651_v10 = vld [vmem:[%s8825_s21 + $0x288] ss:$16 sps:$4 sm:$0xff]   ;;  %v9340_v6 = vld [vmem:[%s8817_s10 + $0x134] ss:$24 sps:$4 sm:$0xff]  }
 0x197   : > { %2910 = vmatprep.subr.bf16.mxu1 %v7641_v8  ;;  %v7708_v8 = vld [vmem:[%s8825_s21 + $0x3a8] ss:$16 sps:$4 sm:$0xff]  }
 0x198   : > { %2758 = vmatpush1.bf16.msra.mxu0 %v7633_v9  ;;  %v7711_v9 = vld [vmem:[%s8825_s21 + $0x5a8] ss:$16 sps:$4 sm:$0xff]  }
 0x199   : > { %2911 = vmatpush1.bf16.msra.mxu1 %v7639_v11  ;;  %2759 = vmatprep.subr.bf16.mxu0 %v7644_v50  ;;  %v7722_v11 = vld [vmem:[%s8825_s21 + $0x58c] ss:$16 sps:$4 sm:$0xff]   ;;  %v7717_v50 = vld [vmem:[%s8825_s21 + $0x388] ss:$16 sps:$4 sm:$0xff]  }
 0x19a   : > { %2912 = vmatprep.subr.bf16.mxu1 %v7647_v12  ;;  %v7720_v12 = vld [vmem:[%s8825_s21 + $0x588] ss:$16 sps:$4 sm:$0xff]  }
 0x19b   : > { %2492 = vmatmul.mubr.bf16.gmra.mxu0 %v9266_v14 }
 0x19c   : > { %2645 = vmatmul.mubr.bf16.gmra.mxu1 %v9082_v17  ;;  %2760 = vmatpush1.bf16.msra.mxu0 %v7642_v5  ;;  %v7665_v17 = vld [vmem:[%s8825_s21 + $0x46c] ss:$16 sps:$4 sm:$0xff]   ;;  %v9354_v5 = vld [vmem:[%s8817_s10 + $0x130] ss:$24 sps:$4 sm:$0xff]  }
 0x19d   : > { %2501 = vmatprep.mubr.bf16.mxu0 %v9270_v15  ;;  %2654 = vmatprep.mubr.bf16.mxu1 %v9088_v21  ;;  %v7666_v21 = vld [vmem:[%s8825_s21 + $0x248] ss:$16 sps:$4 sm:$0xff]  }
 0x19e   : > { %2913 = vmatpush1.bf16.msra.mxu1 %v7645_v16  ;;  %2761 = vmatprep.subr.bf16.mxu0 %v7653_v18  ;;  %v7728_v16 = vld [vmem:[%s8825_s21 + $0x36c] ss:$16 sps:$4 sm:$0xff]  }
 0x19f   : > { %2914 = vmatprep.subr.bf16.mxu1 %v7656_v20  ;;  %v9358_v18 = vld [vmem:[%s8817_s10 + $0x164] ss:$24 sps:$4 sm:$0xff]   ;;  %v7726_v20 = vld [vmem:[%s8825_s21 + $0x368] ss:$16 sps:$4 sm:$0xff]  }
 0x1a0   : > { %2762 = vmatpush1.bf16.msra.mxu0 %v7651_v10  ;;  %v7729_v10 = vld [vmem:[%s8825_s21 + $0x568] ss:$16 sps:$4 sm:$0xff]  }
 0x1a1   : > { %2763 = vmatprep.subr.bf16.mxu0 %v7662_v24  ;;  %v7732_v24 = vld [vmem:[%s8825_s21 + $0x348] ss:$16 sps:$4 sm:$0xff]  }
 0x1a2   : > { %2915 = vmatpush1.bf16.msra.mxu1 %v7654_v22  ;;  %v7740_v22 = vld [vmem:[%s8825_s21 + $0x54c] ss:$16 sps:$4 sm:$0xff]  }
 0x1a3   : > { %2916 = vmatprep.subr.bf16.mxu1 %v7665_v17  ;;  %2502 = vmatmul.mubr.bf16.gmra.mxu0 %v9282_v23  ;;  %v7738_v17 = vld [vmem:[%s8825_s21 + $0x548] ss:$16 sps:$4 sm:$0xff]  }
 0x1a4   : > { %2655 = vmatmul.mubr.bf16.gmra.mxu1 %v9098_v27  ;;  %2511 = vmatprep.mubr.bf16.mxu0 %v9286_v25  ;;  %v7675_v27 = vld [vmem:[%s8825_s21 + $0x228] ss:$16 sps:$4 sm:$0xff]  }
 0x1a5   : > { %2664 = vmatprep.mubr.bf16.mxu1 %v9104_v31  ;;  %2764 = vmatpush1.bf16.msra.mxu0 %v7660_v26  ;;  %v7684_v31 = vld [vmem:[%s8825_s21 + $0x208] ss:$16 sps:$4 sm:$0xff]  }
 0x1a6   : > { %2917 = vmatpush1.bf16.msra.mxu1 %v7663_v29  ;;  %2765 = vmatprep.subr.bf16.mxu0 %v7668_v30  ;;  %v9372_v26 = vld [vmem:[%s8817_s10 + $0x160] ss:$24 sps:$4 sm:$0xff]   ;;  %v7743_v29 = vld [vmem:[%s8825_s21 + $0x32c] ss:$16 sps:$4 sm:$0xff]  }
 0x1a7   : > { %2918 = vmatprep.subr.bf16.mxu1 %v7674_v32  ;;  %v9376_v30 = vld [vmem:[%s8817_s10 + $0x194] ss:$24 sps:$4 sm:$0xff]   ;;  %v7741_v32 = vld [vmem:[%s8825_s21 + $0x328] ss:$16 sps:$4 sm:$0xff]  }
 0x1a9   : > { %2766 = vmatpush1.bf16.msra.mxu0 %v7666_v21  ;;  %v7744_v21 = vld [vmem:[%s8825_s21 + $0x528] ss:$16 sps:$4 sm:$0xff]  }
 0x1aa   : > { %2919 = vmatpush1.bf16.msra.mxu1 %v7672_v33  ;;  %2767 = vmatprep.subr.bf16.mxu0 %v7677_v35  ;;  %v7755_v33 = vld [vmem:[%s8825_s21 + $0x50c] ss:$16 sps:$4 sm:$0xff]   ;;  %v7750_v35 = vld [vmem:[%s8825_s21 + $0x308] ss:$16 sps:$4 sm:$0xff]  }
 0x1ab   : > { %2920 = vmatprep.subr.bf16.mxu1 %v7680_v36  ;;  %2512 = vmatmul.mubr.bf16.gmra.mxu0 %v9302_v37  ;;  %v9389_v36 = vld [vmem:[%s8817_s10 + $0x190] ss:$24 sps:$4 sm:$0xff]  }
 0x1ac   : > { %2665 = vmatmul.mubr.bf16.gmra.mxu1 %v9115_v38  ;;  %2521 = vmatprep.mubr.bf16.mxu0 %v9305_v39  ;;  %v7693_v38 = vld [vmem:[%s8825_s21 + $0x3e8] ss:$16 sps:$4 sm:$0xff]  }
 0x1ad   : > { %2674 = vmatprep.mubr.bf16.mxu1 %v9122_v43  ;;  %2768 = vmatpush1.bf16.msra.mxu0 %v7675_v27  ;;  %v7701_v43 = vld [vmem:[%s8825_s21 + $0x3cc] ss:$16 sps:$4 sm:$0xff]   ;;  %v7753_v27 = vld [vmem:[%s8825_s21 + $0x508] ss:$16 sps:$4 sm:$0xff]  }
 0x1ae   : > { %2921 = vmatpush1.bf16.msra.mxu1 %v7678_v40  ;;  %2769 = vmatprep.subr.bf16.mxu0 %v7686_v41  ;;  %v9393_v40 = vld [vmem:[%s8817_s10 + $0x1c4] ss:$24 sps:$4 sm:$0xff]  }
 0x1af   : > { %2922 = vmatprep.subr.bf16.mxu1 %v7689_v44  ;;  %v7758_v41 = vld [vmem:[%s8834_s0 + $0x154] ss:$24 sps:$4 sm:$0xff]  }
 0x1b0   : > { %v9414_v44 = vld [vmem:[%s8817_s10 + $0x224] ss:$24 sps:$4 sm:$0xff]  }
 0x1b1   : > { %2770 = vmatpush1.bf16.msra.mxu0 %v7684_v31  ;;  %v8236_v31 = vld [vmem:[%s8817_s10 + $0xc] ss:$24 sps:$4 sm:$0xff]  }
 0x1b2   : > { %2923 = vmatpush1.bf16.msra.mxu1 %v7687_v45  ;;  %2771 = vmatprep.subr.bf16.mxu0 %v7695_v46  ;;  %v801_v45 = vld [vmem:[%s329_s9] sm:$0xf] }
 0x1b3   : > { %2924 = vmatprep.subr.bf16.mxu1 %v7698_v47  ;;  %2522 = vmatmul.mubr.bf16.gmra.mxu0 %v9320_v49  ;;  %v7756_v47 = vld [vmem:[%s8834_s0 + $0x150] ss:$24 sps:$4 sm:$0xff]  }
 0x1b4   : > { %2675 = vmatmul.mubr.bf16.gmra.mxu1 %v9134_v52  ;;  %2531 = vmatprep.mubr.bf16.mxu0 %v9323_v53  ;;  %v7713_v52 = vld [vmem:[%s8825_s21 + $0x5ac] ss:$16 sps:$4 sm:$0xff]  }
 0x1b5   : > { %2684 = vmatprep.mubr.bf16.mxu1 %v9140_v56  ;;  %2772 = vmatpush2.bf16.msra.mxu0 %v7693_v38  ;;  %v7719_v56 = vld [vmem:[%s8825_s21 + $0x38c] ss:$16 sps:$4 sm:$0xff]  }
 0x1b6   : > { %2925 = vmatpush2.bf16.msra.mxu1 %v7696_v55  ;;  %2773 = vmatprep.subr.bf16.mxu0 %v7701_v43  ;;  %v7761_v38 = vld [vmem:[%s8834_s0 + $0x124] ss:$24 sps:$4 sm:$0xff]   ;;  %v8237_v43 = vld [vmem:[%s8817_s10 + $0x8] ss:$24 sps:$4 sm:$0xff]  }
 0x1b7   : > { %2926 = vmatprep.subr.bf16.mxu1 %v7707_v58 }
 0x1b9   : > { %2774 = vmatpush2.bf16.msra.mxu0 %v7699_v60  ;;  %v8238_v60 = vld [vmem:[%s8817_s10 + $0x3c] ss:$24 sps:$4 sm:$0xff]  }
 0x1ba   : > { %2927 = vmatpush2.bf16.msra.mxu1 %v7705_v62  ;;  %2775 = vmatprep.subr.bf16.mxu0 %v7710_v4 }
 0x1bb   : > { %2928 = vmatprep.subr.bf16.mxu1 %v7713_v52  ;;  %2532 = vmatmul.mubr.bf16.gmra.mxu0 %v9336_v3  ;;  %v7759_v52 = vld [vmem:[%s8834_s0 + $0x120] ss:$24 sps:$4 sm:$0xff]  }
 0x1bc   : > { %2685 = vmatmul.mubr.bf16.gmra.mxu1 %v9151_v63  ;;  %2541 = vmatprep.mubr.bf16.mxu0 %v9340_v6  ;;  %v7731_v63 = vld [vmem:[%s8825_s21 + $0x56c] ss:$16 sps:$4 sm:$0xff]  }
 0x1bd   : > { %2694 = vmatprep.mubr.bf16.mxu1 %v9156_v2  ;;  %2776 = vmatpush2.bf16.msra.mxu0 %v7708_v8  ;;  %v7734_v2 = vld [vmem:[%s8825_s21 + $0x34c] ss:$16 sps:$4 sm:$0xff]  }
 0x1be   : > { %2929 = vmatpush2.bf16.msra.mxu1 %v7711_v9  ;;  %2777 = vmatprep.subr.bf16.mxu0 %v7719_v56  ;;  %v7764_v56 = vld [vmem:[%s8834_s0 + $0xf4] ss:$24 sps:$4 sm:$0xff]  }
 0x1bf   : > { %2930 = vmatprep.subr.bf16.mxu1 %v7722_v11 }
 0x1c1   : > { %2778 = vmatpush2.bf16.msra.mxu0 %v7717_v50 }
 0x1c2   : > { %2931 = vmatpush2.bf16.msra.mxu1 %v7720_v12  ;;  %2779 = vmatprep.subr.bf16.mxu0 %v7728_v16 }
 0x1c3   : > { %2932 = vmatprep.subr.bf16.mxu1 %v7731_v63  ;;  %2542 = vmatmul.mubr.bf16.gmra.mxu0 %v9354_v5  ;;  %v7762_v63 = vld [vmem:[%s8834_s0 + $0xf0] ss:$24 sps:$4 sm:$0xff]  }
 0x1c4   : > { %2695 = vmatmul.mubr.bf16.gmra.mxu1 %v9169_v13  ;;  %2551 = vmatprep.mubr.bf16.mxu0 %v9358_v18  ;;  %v7746_v13 = vld [vmem:[%s8825_s21 + $0x52c] ss:$16 sps:$4 sm:$0xff]  }
 0x1c5   : > { %2704 = vmatprep.mubr.bf16.mxu1 %v9176_v19  ;;  %2780 = vmatpush2.bf16.msra.mxu0 %v7726_v20  ;;  %v7752_v19 = vld [vmem:[%s8825_s21 + $0x30c] ss:$16 sps:$4 sm:$0xff]  }
 0x1c6   : > { %2933 = vmatpush2.bf16.msra.mxu1 %v7729_v10  ;;  %2781 = vmatprep.subr.bf16.mxu0 %v7734_v2  ;;  %v7767_v2 = vld [vmem:[%s8834_s0 + $0xc4] ss:$24 sps:$4 sm:$0xff]  }
 0x1c7   : > { %2934 = vmatprep.subr.bf16.mxu1 %v7740_v22 }
 0x1c9   : > { %2782 = vmatpush2.bf16.msra.mxu0 %v7732_v24 }
 0x1ca   : > { %2935 = vmatpush2.bf16.msra.mxu1 %v7738_v17  ;;  %2783 = vmatprep.subr.bf16.mxu0 %v7743_v29  ;;  %v8239_v17 = vld [vmem:[%s8817_s10 + $0x38] ss:$24 sps:$4 sm:$0xff]  }
 0x1cb   : > { %2936 = vmatprep.subr.bf16.mxu1 %v7746_v13  ;;  %2552 = vmatmul.mubr.bf16.gmra.mxu0 %v9372_v26 }
 0x1cc   : > { %2705 = vmatmul.mubr.bf16.gmra.mxu1 %v9187_v28  ;;  %2561 = vmatprep.mubr.bf16.mxu0 %v9376_v30  ;;  %v9401_v28 = vld [vmem:[%s8817_s10 + $0x1c0] ss:$24 sps:$4 sm:$0xff]  }
 0x1cd   : > { %2714 = vmatprep.mubr.bf16.mxu1 %v9194_v34  ;;  %2784 = vmatpush2.bf16.msra.mxu0 %v7741_v32  ;;  %v9404_v34 = vld [vmem:[%s8817_s10 + $0x1f4] ss:$24 sps:$4 sm:$0xff]  }
 0x1ce   : > { %2937 = vmatpush2.bf16.msra.mxu1 %v7744_v21  ;;  %2785 = vmatprep.subr.bf16.mxu0 %v7752_v19  ;;  %v8240_v32 = vld [vmem:[%s8817_s10 + $0x6c] ss:$24 sps:$4 sm:$0xff]  }
 0x1cf   : > { %2938 = vmatprep.subr.bf16.mxu1 %v7755_v33  ;;  %v7765_v33 = vld [vmem:[%s8834_s0 + $0xc0] ss:$24 sps:$4 sm:$0xff]  }
 0x1d1   : > { %2786 = vmatpush2.bf16.msra.mxu0 %v7750_v35 }
 0x1d2   : > { %2939 = vmatpush2.bf16.msra.mxu1 %v7753_v27  ;;  %4885 = vmatprep.subr.bf16.mxu0 %v7758_v41 }
 0x1d3   : > { %2562 = vmatmul.mubr.bf16.gmra.mxu0 %v9389_v36 }
 0x1d4   : > { %2715 = vmatmul.mubr.bf16.gmra.mxu1 %v9205_v42  ;;  %2571 = vmatprep.mubr.bf16.mxu0 %v9393_v40  ;;  %v9411_v42 = vld [vmem:[%s8817_s10 + $0x1f0] ss:$24 sps:$4 sm:$0xff]  }
 0x1d5   : > { %2724 = vmatprep.mubr.bf16.mxu1 %v9212_v48  ;;  %v803_v48 = vlaneseq }
 0x1db   : > { %2572 = vmatmul.mubr.bf16.gmra.mxu0 %v9401_v28 }
 0x1dc   : > { %2725 = vmatmul.mubr.bf16.gmra.mxu1 %v9218_v51  ;;  %2581 = vmatprep.mubr.bf16.mxu0 %v9404_v34  ;;  %v9421_v51 = vld [vmem:[%s8817_s10 + $0x220] ss:$24 sps:$4 sm:$0xff]  }
 0x1dd   : > { %2734 = vmatprep.mubr.bf16.mxu1 %v9222_v54  ;;  %v9423_v54 = vshrl.u32 %v803_v48, 7 }
 0x1df   : > { %11727 = vst [vmem:[#allocation28_spill] sm:$0xff] %v9423_v54 }
 0x1e3   : > { %2582 = vmatmul.mubr.bf16.gmra.mxu0 %v9411_v42 }
 0x1e4   : > { %2735 = vmatmul.mubr.bf16.gmra.mxu1 %v9228_v57  ;;  %2591 = vmatprep.mubr.bf16.mxu0 %v9414_v44  ;;  %v11629_v57 = vsub.s32 0, %v9423_v54 }
 0x1e5   : > { %2744 = vmatprep.mubr.bf16.mxu1 %v9232_v59  ;;  %v11628_v59 = vsub.s32 1, %v9423_v54 }
 0x1e6   : > { %v9435_v46 = vrot.slane %v801_v45, %v11629_v57 }
 0x1eb   : > { %2592 = vmatmul.mubr.bf16.gmra.mxu0 %v9421_v51 }
 0x1ec   : > { %2745 = vmatmul.mubr.bf16.gmra.mxu1 %v9238_v61  ;;  %2787 = vmatprep.mubr.bf16.mxu0 %v8236_v31  ;;  %v9440_v61 = vrot.slane %v801_v45, %v11628_v59  ;;  %v7890_v59 = vld [vmem:[%s8834_s0 + $0x4b4] ss:$24 sps:$4 sm:$0xff]  }
 0x1ed   : > { %2940 = vmatprep.mubr.bf16.mxu1 %v9242_v0 }
 0x1f3   : > { %v2177_v55 = vpop.f32.mrf.mxu0  ;;  %2788 = vmatmul.mubr.bf16.vlgmr.msra.gmra.mxu0 %v8237_v43  ;;  %v7773_v43 = vld [vmem:[%s8834_s0 + $0x64] ss:$24 sps:$4 sm:$0xff]  }
 0x1f4   : > { %v2330_v0 = vpop.f32.mrf.mxu1  ;;  %2941 = vmatmul.mubr.bf16.vlgmr.msra.gmra.mxu1 %v9248_v1  ;;  %v2178_v58 = vadd.f32 %v2177_v55, %v9435_v46  ;;  %2797 = vmatprep.mubr.bf16.mxu0 %v8238_v60 }
 0x1f5   : > { %2950 = vmatprep.mubr.bf16.mxu1 %v9254_v7  ;;  %v2179_v62 = vpop.f32.mrf.mxu0  ;;  %4886 = vmatpush1.bf16.msra.mxu0 %v7756_v47 }
 0x1f6   : > { %v2332_v4 = vpop.f32.mrf.mxu1  ;;  %v9449_v8 = vadd.f32 %v2330_v0, %v2178_v58  ;;  %v2180_v9 = vadd.f32 %v2179_v62, %v9440_v61  ;;  %4887 = vmatprep.subr.bf16.mxu0 %v7761_v38  ;;  %v7768_v38 = vld [vmem:[%s8834_s0 + $0x90] ss:$24 sps:$4 sm:$0xff]   ;;  %v8241_v62 = vld [vmem:[%s8817_s10 + $0x68] ss:$24 sps:$4 sm:$0xff]  }
 0x1f7   : > { %v2181_v1 = vpop.f32.mrf.mxu0 }
 0x1f8   : > { %v2334_v11 = vpop.f32.mrf.mxu1  ;;  %v9453_v50 = vadd.f32 %v2332_v4, %v2180_v9  ;;  %v2182_v12 = vadd.f32 %v2181_v1, %v9435_v46  ;;  %v8242_v9 = vld [vmem:[%s8817_s10 + $0x9c] ss:$24 sps:$4 sm:$0xff]  }
 0x1f9   : > { %v2183_v7 = vpop.f32.mrf.mxu0  ;;  %4888 = vmatpush1.bf16.msra.mxu0 %v7759_v52 }
 0x1fa   : > { %v2336_v16 = vpop.f32.mrf.mxu1  ;;  %v9457_v20 = vadd.f32 %v2334_v11, %v2182_v12  ;;  %v2184_v10 = vadd.f32 %v2183_v7, %v9440_v61  ;;  %4889 = vmatprep.subr.bf16.mxu0 %v7764_v56  ;;  %v7771_v11 = vld [vmem:[%s8834_s0 + $0x60] ss:$24 sps:$4 sm:$0xff]  }
 0x1fb   : > { %v2187_v22 = vpop.f32.mrf.mxu0  ;;  %2798 = vmatmul.mubr.bf16.gmra.mxu0 %v8239_v17 }
 0x1fc   : > { %v2340_v24 = vpop.f32.mrf.mxu1  ;;  %2951 = vmatmul.mubr.bf16.gmra.mxu1 %v9266_v14  ;;  %v9463_v29 = vadd.f32 %v2336_v16, %v2184_v10  ;;  %v2188_v13 = vadd.f32 %v2187_v22, %v9435_v46  ;;  %2807 = vmatprep.mubr.bf16.mxu0 %v8240_v32  ;;  %v7770_v14 = vld [vmem:[%s8834_s0 + $0x94] ss:$24 sps:$4 sm:$0xff]   ;;  %v7779_v32 = vld [vmem:[%s8834_s0 + $0x4] ss:$24 sps:$4 sm:$0xff]  }
 0x1fd   : > { %2960 = vmatprep.mubr.bf16.mxu1 %v9270_v15  ;;  %v2189_v21 = vpop.f32.mrf.mxu0  ;;  %4890 = vmatpush1.bf16.msra.mxu0 %v7762_v63 }
 0x1fe   : > { %v2342_v19 = vpop.f32.mrf.mxu1  ;;  %v9469_v35 = vadd.f32 %v2340_v24, %v2188_v13  ;;  %v2190_v27 = vadd.f32 %v2189_v21, %v9440_v61  ;;  %4891 = vmatprep.subr.bf16.mxu0 %v7767_v2  ;;  %v7774_v24 = vld [vmem:[%s8834_s0 + $0x30] ss:$24 sps:$4 sm:$0xff]  }
 0x1ff   : > { %v2191_v41 = vpop.f32.mrf.mxu0 }
 0x200   : > { %v2344_v48 = vpop.f32.mrf.mxu1  ;;  %v9473_v31 = vadd.f32 %v2342_v19, %v2190_v27  ;;  %v2192_v45 = vadd.f32 %v2191_v41, %v9435_v46  ;;  %v7804_v27 = vld [vmem:[%s8834_s0 + $0x450] ss:$24 sps:$4 sm:$0xff]  }
 0x201   : > { %v2193_v15 = vpop.f32.mrf.mxu0  ;;  %4892 = vmatpush1.bf16.msra.mxu0 %v7765_v33  ;;  %v8243_v33 = vld [vmem:[%s8817_s10 + $0x98] ss:$24 sps:$4 sm:$0xff]  }
 0x202   : > { %v2346_v47 = vpop.f32.mrf.mxu1  ;;  %v9477_v55 = vadd.f32 %v2344_v48, %v2192_v45  ;;  %v2194_v0 = vadd.f32 %v2193_v15, %v9440_v61  ;;  %4893 = vmatprep.subr.bf16.mxu0 %v7770_v14  ;;  %v7806_v14 = vld [vmem:[%s8834_s0 + $0x454] ss:$24 sps:$4 sm:$0xff]   ;;  %v8244_v45 = vld [vmem:[%s8817_s10 + $0xcc] ss:$24 sps:$4 sm:$0xff]  }
 0x203   : > { %v2197_v58 = vpop.f32.mrf.mxu0  ;;  %2808 = vmatmul.mubr.bf16.gmra.mxu0 %v8241_v62  ;;  %5038 = vmatprep.subr.bf16.mxu1 %v7806_v14 }
 0x204   : > { %v2350_v60 = vpop.f32.mrf.mxu1  ;;  %2961 = vmatmul.mubr.bf16.gmra.mxu1 %v9282_v23  ;;  %v9483_v4 = vadd.f32 %v2346_v47, %v2194_v0  ;;  %v2198_v52 = vadd.f32 %v2197_v58, %v9435_v46  ;;  %2817 = vmatprep.mubr.bf16.mxu0 %v8242_v9  ;;  %v7776_v23 = vld [vmem:[%s8834_s0 + $0x34] ss:$24 sps:$4 sm:$0xff]  }
 0x205   : > { %2970 = vmatprep.mubr.bf16.mxu1 %v9286_v25  ;;  %v2199_v56 = vpop.f32.mrf.mxu0  ;;  %4894 = vmatpush1.bf16.msra.mxu0 %v7768_v38  ;;  %v7777_v38 = vld [vmem:[%s8834_s0] ss:$24 sps:$4 sm:$0xff]  }
 0x206   : > { %v2352_v1 = vpop.f32.mrf.mxu1  ;;  %v9489_v12 = vadd.f32 %v2350_v60, %v2198_v52  ;;  %v2200_v7 = vadd.f32 %v2199_v56, %v9440_v61  ;;  %4895 = vmatprep.subr.bf16.mxu0 %v7773_v43  ;;  %v7782_v43 = vld [vmem:[%s8834_s0 + $0x2d4] ss:$24 sps:$4 sm:$0xff]   ;;  %5039 = vmatpush1.bf16.msra.mxu1 %v7804_v27  ;;  %v7780_v56 = vld [vmem:[%s8834_s0 + $0x2d0] ss:$24 sps:$4 sm:$0xff]  }
 0x207   : > { %v2201_v16 = vpop.f32.mrf.mxu0  ;;  %v7788_v27 = vld [vmem:[%s8834_s0 + $0x274] ss:$24 sps:$4 sm:$0xff]  }
 0x208   : > { %v2354_v63 = vpop.f32.mrf.mxu1  ;;  %v9493_v10 = vadd.f32 %v2352_v1, %v2200_v7  ;;  %v2202_v25 = vadd.f32 %v2201_v16, %v9435_v46  ;;  %v7809_v1 = vld [vmem:[%s8834_s0 + $0x424] ss:$24 sps:$4 sm:$0xff]   ;;  %v7807_v16 = vld [vmem:[%s8834_s0 + $0x420] ss:$24 sps:$4 sm:$0xff]  }
 0x209   : > { %v2203_v2 = vpop.f32.mrf.mxu0  ;;  %4896 = vmatpush1.bf16.msra.mxu0 %v7771_v11  ;;  %5040 = vmatprep.subr.bf16.mxu1 %v7809_v1 }
 0x20a   : > { %v2356_v22 = vpop.f32.mrf.mxu1  ;;  %v9497_v17 = vadd.f32 %v2354_v63, %v2202_v25  ;;  %v2204_v13 = vadd.f32 %v2203_v2, %v9440_v61  ;;  %4897 = vmatprep.subr.bf16.mxu0 %v7776_v23  ;;  %v7785_v23 = vld [vmem:[%s8834_s0 + $0x2a4] ss:$24 sps:$4 sm:$0xff]   ;;  %v8245_v2 = vld [vmem:[%s8817_s10 + $0xc8] ss:$24 sps:$4 sm:$0xff]   ;;  %5041 = vmatpush1.bf16.msra.mxu1 %v7807_v16 }
 0x20b   : > { %v2207_v21 = vpop.f32.mrf.mxu0  ;;  %2818 = vmatmul.mubr.bf16.gmra.mxu0 %v8243_v33 }
 0x20c   : > { %v2360_v19 = vpop.f32.mrf.mxu1  ;;  %2971 = vmatmul.mubr.bf16.gmra.mxu1 %v9302_v37  ;;  %v9505_v41 = vadd.f32 %v2356_v22, %v2204_v13  ;;  %v2208_v48 = vadd.f32 %v2207_v21, %v9435_v46  ;;  %2827 = vmatprep.mubr.bf16.mxu0 %v8244_v45  ;;  %v8246_v13 = vld [vmem:[%s8817_s10 + $0xfc] ss:$24 sps:$4 sm:$0xff]   ;;  %v7810_v45 = vld [vmem:[%s8834_s0 + $0x3f0] ss:$24 sps:$4 sm:$0xff]  }
 0x20d   : > { %2980 = vmatprep.mubr.bf16.mxu1 %v9305_v39  ;;  %v2209_v15 = vpop.f32.mrf.mxu0  ;;  %4898 = vmatpush1.bf16.msra.mxu0 %v7774_v24 }
 0x20e   : > { %v2362_v47 = vpop.f32.mrf.mxu1  ;;  %v9511_v0 = vadd.f32 %v2360_v19, %v2208_v48  ;;  %v2210_v37 = vadd.f32 %v2209_v15, %v9440_v61  ;;  %4899 = vmatprep.subr.bf16.mxu0 %v7779_v32  ;;  %v7783_v19 = vld [vmem:[%s8834_s0 + $0x2a0] ss:$24 sps:$4 sm:$0xff]   ;;  %v7812_v15 = vld [vmem:[%s8834_s0 + $0x3f4] ss:$24 sps:$4 sm:$0xff]  }
 0x20f   : > { %v2211_v58 = vpop.f32.mrf.mxu0  ;;  %5042 = vmatprep.subr.bf16.mxu1 %v7812_v15 }
 0x210   : > { %v2364_v60 = vpop.f32.mrf.mxu1  ;;  %v9515_v39 = vadd.f32 %v2362_v47, %v2210_v37  ;;  %v2212_v62 = vadd.f32 %v2211_v58, %v9435_v46  ;;  %5043 = vmatpush1.bf16.msra.mxu1 %v7810_v45 }
 0x211   : > { %v2213_v52 = vpop.f32.mrf.mxu0  ;;  %4900 = vmatpush1.bf16.msra.mxu0 %v7777_v38 }
 0x212   : > { %v2366_v9 = vpop.f32.mrf.mxu1  ;;  %v9520_v11 = vadd.f32 %v2364_v60, %v2212_v62  ;;  %v2214_v7 = vadd.f32 %v2213_v52, %v9440_v61  ;;  %4901 = vmatprep.subr.bf16.mxu0 %v7782_v43  ;;  %v7786_v43 = vld [vmem:[%s8834_s0 + $0x270] ss:$24 sps:$4 sm:$0xff]   ;;  %v7791_v62 = vld [vmem:[%s8834_s0 + $0x244] ss:$24 sps:$4 sm:$0xff]  }
 0x213   : > { %v2217_v63 = vpop.f32.mrf.mxu0  ;;  %2828 = vmatmul.mubr.bf16.gmra.mxu0 %v8245_v2 }
 0x214   : > { %v2370_v25 = vpop.f32.mrf.mxu1  ;;  %2981 = vmatmul.mubr.bf16.gmra.mxu1 %v9320_v49  ;;  %v9527_v22 = vadd.f32 %v2366_v9, %v2214_v7  ;;  %v2218_v24 = vadd.f32 %v2217_v63, %v9435_v46  ;;  %2837 = vmatprep.mubr.bf16.mxu0 %v8246_v13  ;;  %v7794_v13 = vld [vmem:[%s8834_s0 + $0x214] ss:$24 sps:$4 sm:$0xff]  }
 0x215   : > { %2990 = vmatprep.mubr.bf16.mxu1 %v9323_v53  ;;  %v2219_v32 = vpop.f32.mrf.mxu0  ;;  %4902 = vmatpush2.bf16.msra.mxu0 %v7780_v56  ;;  %v8247_v56 = vld [vmem:[%s8817_s10 + $0xf8] ss:$24 sps:$4 sm:$0xff]  }
 0x216   : > { %v2372_v21 = vpop.f32.mrf.mxu1  ;;  %v9533_v33 = vadd.f32 %v2370_v25, %v2218_v24  ;;  %v2220_v49 = vadd.f32 %v2219_v32, %v9440_v61  ;;  %4903 = vmatprep.subr.bf16.mxu0 %v7785_v23  ;;  %v8248_v23 = vld [vmem:[%s8817_s10 + $0x12c] ss:$24 sps:$4 sm:$0xff]   ;;  %v7789_v25 = vld [vmem:[%s8834_s0 + $0x240] ss:$24 sps:$4 sm:$0xff]  }
 0x217   : > { %v2221_v14 = vpop.f32.mrf.mxu0  ;;  %v7815_v32 = vld [vmem:[%s8834_s0 + $0x3c4] ss:$24 sps:$4 sm:$0xff]  }
 0x218   : > { %v2374_v48 = vpop.f32.mrf.mxu1  ;;  %v9539_v53 = vadd.f32 %v2372_v21, %v2220_v49  ;;  %v2222_v47 = vadd.f32 %v2221_v14, %v9435_v46  ;;  %5044 = vmatprep.subr.bf16.mxu1 %v7815_v32  ;;  %v7821_v32 = vld [vmem:[%s8834_s0 + $0x364] ss:$24 sps:$4 sm:$0xff]  }
 0x219   : > { %v2223_v38 = vpop.f32.mrf.mxu0  ;;  %4904 = vmatpush2.bf16.msra.mxu0 %v7783_v19 }
 0x21a   : > { %v2376_v37 = vpop.f32.mrf.mxu1  ;;  %v9543_v58 = vadd.f32 %v2374_v48, %v2222_v47  ;;  %v2224_v60 = vadd.f32 %v2223_v38, %v9440_v61  ;;  %4905 = vmatprep.subr.bf16.mxu0 %v7788_v27  ;;  %v7792_v48 = vld [vmem:[%s8834_s0 + $0x210] ss:$24 sps:$4 sm:$0xff]   ;;  %v7797_v47 = vld [vmem:[%s8834_s0 + $0x1e4] ss:$24 sps:$4 sm:$0xff]  }
 0x21b   : > { %v2227_v52 = vpop.f32.mrf.mxu0  ;;  %2838 = vmatmul.mubr.bf16.gmra.mxu0 %v8247_v56  ;;  %v8250_v56 = vld [vmem:[%s8817_s10 + $0x15c] ss:$24 sps:$4 sm:$0xff]  }
 0x21c   : > { %v2380_v9 = vpop.f32.mrf.mxu1  ;;  %2991 = vmatmul.mubr.bf16.gmra.mxu1 %v9336_v3  ;;  %v9549_v1 = vadd.f32 %v2376_v37, %v2224_v60  ;;  %v2228_v7 = vadd.f32 %v2227_v52, %v9435_v46  ;;  %2847 = vmatprep.mubr.bf16.mxu0 %v8248_v23  ;;  %v7813_v3 = vld [vmem:[%s8834_s0 + $0x3c0] ss:$24 sps:$4 sm:$0xff]   ;;  %v7816_v60 = vld [vmem:[%s8834_s0 + $0x390] ss:$24 sps:$4 sm:$0xff]  }
 0x21d   : > { %3000 = vmatprep.mubr.bf16.mxu1 %v9340_v6  ;;  %v2229_v16 = vpop.f32.mrf.mxu0  ;;  %4906 = vmatpush2.bf16.msra.mxu0 %v7786_v43  ;;  %v8249_v43 = vld [vmem:[%s8817_s10 + $0x128] ss:$24 sps:$4 sm:$0xff]  }
 0x21e   : > { %v2382_v63 = vpop.f32.mrf.mxu1  ;;  %v9555_v2 = vadd.f32 %v2380_v9, %v2228_v7  ;;  %v2230_v24 = vadd.f32 %v2229_v16, %v9440_v61  ;;  %4907 = vmatprep.subr.bf16.mxu0 %v7791_v62  ;;  %5045 = vmatpush1.bf16.msra.mxu1 %v7813_v3  ;;  %v7818_v62 = vld [vmem:[%s8834_s0 + $0x394] ss:$24 sps:$4 sm:$0xff]   ;;  %v7795_v16 = vld [vmem:[%s8834_s0 + $0x1e0] ss:$24 sps:$4 sm:$0xff]  }
 0x21f   : > { %v2231_v21 = vpop.f32.mrf.mxu0  ;;  %5046 = vmatprep.subr.bf16.mxu1 %v7818_v62  ;;  %v8252_v62 = vld [vmem:[%s8817_s10 + $0x18c] ss:$24 sps:$4 sm:$0xff]  }
 0x220   : > { %v2384_v19 = vpop.f32.mrf.mxu1  ;;  %v9561_v49 = vadd.f32 %v2382_v63, %v2230_v24  ;;  %v2232_v6 = vadd.f32 %v2231_v21, %v9435_v46 }
 0x221   : > { %v2233_v27 = vpop.f32.mrf.mxu0  ;;  %4908 = vmatpush2.bf16.msra.mxu0 %v7789_v25  ;;  %v7800_v25 = vld [vmem:[%s8834_s0 + $0x1b4] ss:$24 sps:$4 sm:$0xff]  }
 0x222   : > { %v2386_v14 = vpop.f32.mrf.mxu1  ;;  %v9565_v45 = vadd.f32 %v2384_v19, %v2232_v6  ;;  %v2234_v15 = vadd.f32 %v2233_v27, %v9440_v61  ;;  %4909 = vmatprep.subr.bf16.mxu0 %v7794_v13  ;;  %5047 = vmatpush1.bf16.msra.mxu1 %v7816_v60  ;;  %v7798_v6 = vld [vmem:[%s8834_s0 + $0x1b0] ss:$24 sps:$4 sm:$0xff]   ;;  %v7819_v27 = vld [vmem:[%s8834_s0 + $0x360] ss:$24 sps:$4 sm:$0xff]  }
 0x223   : > { %v2237_v38 = vpop.f32.mrf.mxu0  ;;  %2848 = vmatmul.mubr.bf16.gmra.mxu0 %v8249_v43  ;;  %5048 = vmatprep.subr.bf16.mxu1 %v7821_v32  ;;  %v7836_v32 = vld [vmem:[%s8834_s0 + $0x304] ss:$24 sps:$4 sm:$0xff]  }
 0x224   : > { %v2390_v37 = vpop.f32.mrf.mxu1  ;;  %3001 = vmatmul.mubr.bf16.gmra.mxu1 %v9354_v5  ;;  %v9573_v52 = vadd.f32 %v2386_v14, %v2234_v15  ;;  %v2238_v9 = vadd.f32 %v2237_v38, %v9435_v46  ;;  %2857 = vmatprep.mubr.bf16.mxu0 %v8250_v56  ;;  %v7803_v15 = vld [vmem:[%s8834_s0 + $0x184] ss:$24 sps:$4 sm:$0xff]  }
 0x225   : > { %3010 = vmatprep.mubr.bf16.mxu1 %v9358_v18  ;;  %v2239_v7 = vpop.f32.mrf.mxu0  ;;  %4910 = vmatpush2.bf16.msra.mxu0 %v7792_v48 }
 0x226   : > { %v2392_v23 = vpop.f32.mrf.mxu1  ;;  %v9579_v5 = vadd.f32 %v2390_v37, %v2238_v9  ;;  %v2240_v63 = vadd.f32 %v2239_v7, %v9440_v61  ;;  %4911 = vmatprep.subr.bf16.mxu0 %v7797_v47  ;;  %v8251_v37 = vld [vmem:[%s8817_s10 + $0x158] ss:$24 sps:$4 sm:$0xff]   ;;  %v7830_v9 = vld [vmem:[%s8834_s0 + $0x334] ss:$24 sps:$4 sm:$0xff]   ;;  %5049 = vmatpush1.bf16.msra.mxu1 %v7819_v27 }
 0x227   : > { %v2241_v24 = vpop.f32.mrf.mxu0  ;;  %5050 = vmatprep.subr.bf16.mxu1 %v7830_v9  ;;  %v7845_v9 = vld [vmem:[%s8834_s0 + $0x5d4] ss:$24 sps:$4 sm:$0xff]  }
 0x228   : > { %v2394_v13 = vpop.f32.mrf.mxu1  ;;  %v9583_v3 = vadd.f32 %v2392_v23, %v2240_v63  ;;  %v2242_v18 = vadd.f32 %v2241_v24, %v9435_v46  ;;  %v7801_v23 = vld [vmem:[%s8834_s0 + $0x180] ss:$24 sps:$4 sm:$0xff]  }
 0x229   : > { %v2243_v21 = vpop.f32.mrf.mxu0  ;;  %4912 = vmatpush2.bf16.msra.mxu0 %v7795_v16  ;;  %v7828_v16 = vld [vmem:[%s8834_s0 + $0x330] ss:$24 sps:$4 sm:$0xff]  }
 0x22a   : > { %v2396_v19 = vpop.f32.mrf.mxu1  ;;  %v9589_v14 = vadd.f32 %v2394_v13, %v2242_v18  ;;  %v2244_v48 = vadd.f32 %v2243_v21, %v9440_v61  ;;  %4913 = vmatprep.subr.bf16.mxu0 %v7800_v25  ;;  %v7824_v25 = vld [vmem:[%s8834_s0 + $0x15c] ss:$24 sps:$4 sm:$0xff]   ;;  %5051 = vmatpush1.bf16.msra.mxu1 %v7828_v16 }
 0x22b   : > { %v2247_v47 = vpop.f32.mrf.mxu0  ;;  %2858 = vmatmul.mubr.bf16.gmra.mxu0 %v8251_v37  ;;  %5052 = vmatprep.subr.bf16.mxu1 %v7836_v32 }
 0x22c   : > { %v2400_v38 = vpop.f32.mrf.mxu1  ;;  %3011 = vmatmul.mubr.bf16.gmra.mxu1 %v9372_v26  ;;  %v9595_v43 = vadd.f32 %v2396_v19, %v2244_v48  ;;  %v2248_v60 = vadd.f32 %v2247_v47, %v9435_v46  ;;  %2867 = vmatprep.mubr.bf16.mxu0 %v8252_v62  ;;  %v8254_v62 = vld [vmem:[%s8817_s10 + $0x1bc] ss:$24 sps:$4 sm:$0xff]  }
 0x22d   : > { %3020 = vmatprep.mubr.bf16.mxu1 %v9376_v30  ;;  %v2249_v56 = vpop.f32.mrf.mxu0  ;;  %4914 = vmatpush2.bf16.msra.mxu0 %v7798_v6  ;;  %v7834_v6 = vld [vmem:[%s8834_s0 + $0x300] ss:$24 sps:$4 sm:$0xff]  }
 0x22e   : > { %v2402_v7 = vpop.f32.mrf.mxu1  ;;  %v9603_v63 = vadd.f32 %v2400_v38, %v2248_v60  ;;  %v2250_v26 = vadd.f32 %v2249_v56, %v9440_v61  ;;  %4915 = vmatprep.subr.bf16.mxu0 %v7803_v15  ;;  %v8253_v38 = vld [vmem:[%s8817_s10 + $0x188] ss:$24 sps:$4 sm:$0xff]   ;;  %5053 = vmatpush1.bf16.msra.mxu1 %v7834_v6 }
 0x22f   : > { %v2251_v24 = vpop.f32.mrf.mxu0  ;;  %5054 = vmatprep.subr.bf16.mxu1 %v7845_v9 }
 0x230   : > { %v2404_v13 = vpop.f32.mrf.mxu1  ;;  %v9607_v30 = vadd.f32 %v2402_v7, %v2250_v26  ;;  %v2252_v18 = vadd.f32 %v2251_v24, %v9435_v46 }
 0x231   : > { %v2253_v21 = vpop.f32.mrf.mxu0  ;;  %4916 = vmatpush2.bf16.msra.mxu0 %v7801_v23  ;;  %v7843_v23 = vld [vmem:[%s8834_s0 + $0x5d0] ss:$24 sps:$4 sm:$0xff]  }
 0x232   : > { %v2406_v19 = vpop.f32.mrf.mxu1  ;;  %v9612_v27 = vadd.f32 %v2404_v13, %v2252_v18  ;;  %v2254_v48 = vadd.f32 %v2253_v21, %v9440_v61  ;;  %5191 = vmatprep.subr.bf16.mxu0 %v7824_v25  ;;  %5055 = vmatpush2.bf16.msra.mxu1 %v7843_v23  ;;  %v7849_v21 = vld [vmem:[%s8834_s0 + $0x5a0] ss:$24 sps:$4 sm:$0xff]  }
 0x233   : > { %v2257_v15 = vpop.f32.mrf.mxu0  ;;  %2868 = vmatmul.mubr.bf16.gmra.mxu0 %v8253_v38  ;;  %v8256_v38 = vld [vmem:[%s8817_s10 + $0x1ec] ss:$24 sps:$4 sm:$0xff]  }
 0x234   : > { %v2410_v47 = vpop.f32.mrf.mxu1  ;;  %3021 = vmatmul.mubr.bf16.gmra.mxu1 %v9389_v36  ;;  %v9617_v37 = vadd.f32 %v2406_v19, %v2254_v48  ;;  %v2258_v60 = vadd.f32 %v2257_v15, %v9435_v46  ;;  %2877 = vmatprep.mubr.bf16.mxu0 %v8254_v62  ;;  %v8255_v15 = vld [vmem:[%s8817_s10 + $0x1b8] ss:$24 sps:$4 sm:$0xff]  }
 0x235   : > { %3030 = vmatprep.mubr.bf16.mxu1 %v9393_v40  ;;  %v2259_v56 = vpop.f32.mrf.mxu0  ;;  %v7851_v40 = vld [vmem:[%s8834_s0 + $0x5a4] ss:$24 sps:$4 sm:$0xff]  }
 0x236   : > { %v2412_v7 = vpop.f32.mrf.mxu1  ;;  %v9624_v16 = vadd.f32 %v2410_v47, %v2258_v60  ;;  %v2260_v36 = vadd.f32 %v2259_v56, %v9440_v61  ;;  %5056 = vmatprep.subr.bf16.mxu1 %v7851_v40  ;;  %v7860_v60 = vld [vmem:[%s8834_s0 + $0x574] ss:$24 sps:$4 sm:$0xff]   ;;  %v7858_v56 = vld [vmem:[%s8834_s0 + $0x570] ss:$24 sps:$4 sm:$0xff]  }
 0x237   : > { %v2261_v26 = vpop.f32.mrf.mxu0  ;;  %5057 = vmatpush2.bf16.msra.mxu1 %v7849_v21  ;;  %v7864_v21 = vld [vmem:[%s8834_s0 + $0x540] ss:$24 sps:$4 sm:$0xff]  }
 0x238   : > { %v2414_v25 = vpop.f32.mrf.mxu1  ;;  %v9627_v24 = vadd.f32 %v2412_v7, %v2260_v36  ;;  %v2262_v13 = vadd.f32 %v2261_v26, %v9435_v46  ;;  %5058 = vmatprep.subr.bf16.mxu1 %v7860_v60  ;;  %v8258_v60 = vld [vmem:[%s8817_s10 + $0x21c] ss:$24 sps:$4 sm:$0xff]  }
 0x239   : > { %v9631_v18 = vpop.f32.mrf.mxu0 }
 0x23a   : > { %v9633_v32 = vpop.f32.mrf.mxu1  ;;  %v9636_v19 = vadd.f32 %v2414_v25, %v2262_v13 }
 0x23b   : > { %v2267_v6 = vpop.f32.mrf.mxu0  ;;  %2878 = vmatmul.mubr.bf16.gmra.mxu0 %v8255_v15  ;;  %5059 = vmatpush2.bf16.msra.mxu1 %v7858_v56 }
 0x23c   : > { %v2420_v48 = vpop.f32.mrf.mxu1  ;;  %3031 = vmatmul.mubr.bf16.gmra.mxu1 %v9401_v28  ;;  %v2268_v47 = vadd.f32 %v2267_v6, %v9435_v46  ;;  %2887 = vmatprep.mubr.bf16.mxu0 %v8256_v38 }
 0x23d   : > { %3040 = vmatprep.mubr.bf16.mxu1 %v9404_v34  ;;  %v2269_v62 = vpop.f32.mrf.mxu0  ;;  %v7866_v34 = vld [vmem:[%s8834_s0 + $0x544] ss:$24 sps:$4 sm:$0xff]  }
 0x23e   : > { %v2422_v9 = vpop.f32.mrf.mxu1  ;;  %v9645_v7 = vadd.f32 %v2420_v48, %v2268_v47  ;;  %v2270_v23 = vadd.f32 %v2269_v62, %v9440_v61  ;;  %5060 = vmatprep.subr.bf16.mxu1 %v7866_v34  ;;  %v8257_v47 = vld [vmem:[%s8817_s10 + $0x1e8] ss:$24 sps:$4 sm:$0xff]   ;;  %v7875_v62 = vld [vmem:[%s8834_s0 + $0x514] ss:$24 sps:$4 sm:$0xff]  }
 0x23f   : > { %v2271_v28 = vpop.f32.mrf.mxu0  ;;  %5061 = vmatpush2.bf16.msra.mxu1 %v7864_v21  ;;  %v7879_v21 = vld [vmem:[%s8834_s0 + $0x4e0] ss:$24 sps:$4 sm:$0xff]  }
 0x240   : > { %v2424_v36 = vpop.f32.mrf.mxu1  ;;  %v9648_v26 = vadd.f32 %v2422_v9, %v2270_v23  ;;  %v2272_v25 = vadd.f32 %v2271_v28, %v9435_v46  ;;  %v7873_v23 = vld [vmem:[%s8834_s0 + $0x510] ss:$24 sps:$4 sm:$0xff]   ;;  %5062 = vmatprep.subr.bf16.mxu1 %v7875_v62 }
 0x241   : > { %v9652_v13 = vpop.f32.mrf.mxu0 }
 0x242   : > { %v9654_v40 = vpop.f32.mrf.mxu1  ;;  %v9657_v6 = vadd.f32 %v2424_v36, %v2272_v25 }
 0x243   : > { %v2277_v48 = vpop.f32.mrf.mxu0  ;;  %2888 = vmatmul.mubr.bf16.gmra.mxu0 %v8257_v47  ;;  %v7881_v47 = vld [vmem:[%s8834_s0 + $0x4e4] ss:$24 sps:$4 sm:$0xff]   ;;  %5063 = vmatpush2.bf16.msra.mxu1 %v7873_v23 }
 0x244   : > { %11728 = vst [vmem:[#allocation29_spill] sm:$0xff] %v9657_v6  ;;  %v2430_v15 = vpop.f32.mrf.mxu1  ;;  %3041 = vmatmul.mubr.bf16.gmra.mxu1 %v9411_v42  ;;  %v2278_v38 = vadd.f32 %v2277_v48, %v9435_v46  ;;  %2897 = vmatprep.mubr.bf16.mxu0 %v8258_v60 }
 0x245   : > { %3050 = vmatprep.mubr.bf16.mxu1 %v9414_v44  ;;  %v2279_v9 = vpop.f32.mrf.mxu0  ;;  %5064 = vmatprep.subr.bf16.mxu1 %v7881_v47 }
 0x246   : > { %v2432_v56 = vpop.f32.mrf.mxu1  ;;  %v9666_v28 = vadd.f32 %v2430_v15, %v2278_v38  ;;  %v2280_v36 = vadd.f32 %v2279_v9, %v9440_v61  ;;  %v8259_v9 = vld [vmem:[%s8817_s10 + $0x218] ss:$24 sps:$4 sm:$0xff]  }
 0x247   : > { %v2281_v42 = vpop.f32.mrf.mxu0  ;;  %5065 = vmatpush2.bf16.msra.mxu1 %v7879_v21 }
 0x248   : > { %11729 = vst [vmem:[#allocation30_spill] sm:$0xff] %v9666_v28  ;;  %v2434_v25 = vpop.f32.mrf.mxu1  ;;  %v9669_v34 = vadd.f32 %v2432_v56, %v2280_v36  ;;  %v2282_v48 = vadd.f32 %v2281_v42, %v9435_v46  ;;  %5066 = vmatprep.subr.bf16.mxu1 %v7890_v59 }
 0x249   : > { %v9673_v44 = vpop.f32.mrf.mxu0 }
 0x24a   : > { %11730 = vst [vmem:[#allocation31_spill] sm:$0xff] %v9669_v34  ;;  %v9675_v60 = vpop.f32.mrf.mxu1  ;;  %v9678_v15 = vadd.f32 %v2434_v25, %v2282_v48  ;;  %v7888_v48 = vld [vmem:[%s8834_s0 + $0x4b0] ss:$24 sps:$4 sm:$0xff]   ;;  %v7896_v34 = vld [vmem:[%s8834_s0 + $0x484] ss:$24 sps:$4 sm:$0xff]  }
 0x24b   : > { %v2287_v38 = vpop.f32.mrf.mxu0  ;;  %2898 = vmatmul.mubr.bf16.gmra.mxu0 %v8259_v9  ;;  %5067 = vmatpush2.bf16.msra.mxu1 %v7888_v48 }
 0x24c   : > { %11731 = vst [vmem:[#allocation32_spill] sm:$0xff] %v9678_v15  ;;  %v2440_v62 = vpop.f32.mrf.mxu1  ;;  %3051 = vmatmul.mubr.bf16.gmra.mxu1 %v9421_v51  ;;  %v2288_v56 = vadd.f32 %v2287_v38, %v9435_v46  ;;  %5068 = vmatprep.subr.bf16.mxu1 %v7896_v34 }
 0x24d   : > { %v2289_v36 = vpop.f32.mrf.mxu0 }
 0x24e   : > { %v2442_v42 = vpop.f32.mrf.mxu1  ;;  %v9684_v23 = vadd.f32 %v2440_v62, %v2288_v56  ;;  %v2290_v25 = vadd.f32 %v2289_v36, %v9440_v61  ;;  %v7894_v62 = vld [vmem:[%s8834_s0 + $0x480] ss:$24 sps:$4 sm:$0xff]  }
 0x24f   : > { %v2291_v47 = vpop.f32.mrf.mxu0  ;;  %5069 = vmatpush2.bf16.msra.mxu1 %v7894_v62 }
 0x250   : > { %11732 = vst [vmem:[#allocation33_spill] sm:$0xff] %v9684_v23  ;;  %v2444_v57 = vpop.f32.mrf.mxu1  ;;  %v9688_v15 = vadd.f32 %v2442_v42, %v2290_v25  ;;  %v2292_v51 = vadd.f32 %v2291_v47, %v9435_v46 }
 0x251   : > { %v9691_v9 = vpop.f32.mrf.mxu0 }
 0x252   : > { %11733 = vst [vmem:[#allocation34_spill] sm:$0xff] %v9688_v15  ;;  %v9693_v38 = vpop.f32.mrf.mxu1  ;;  %v9696_v21 = vadd.f32 %v2444_v57, %v2292_v51 }
 0x253   : > { %11734 = vst [vmem:[#allocation35_spill] sm:$0xff] %v9693_v38  ;;  %v2483_v56 = vpop.f32.mrf.mxu0 }
 0x254   : > { %11735 = vst [vmem:[#allocation36_spill] sm:$0xff] %v9696_v21  ;;  %v9699_v23 = vpop.f32.mrf.mxu1  ;;  %v2484_v36 = vadd.f32 %v2483_v56, %v9449_v8 }
 0x255   : > { %11736 = vst [vmem:[#allocation37_spill] sm:$0xff] %v9699_v23  ;;  %v2485_v59 = vpop.f32.mrf.mxu0 }
 0x256   : > { %v9702_v42 = vpop.f32.mrf.mxu1  ;;  %v3157_v46 = vmul.f32 0.70710677, %v2484_v36  ;;  %v2486_v25 = vadd.f32 %v2485_v59, %v9453_v50 }
 0x257   : > { %11737 = vst [vmem:[#allocation38_spill] sm:$0xff] %v9702_v42  ;;  %v2487_v47 = vpop.f32.mrf.mxu0 }
 0x258   : > { %v9705_v15 = vpop.f32.mrf.mxu1  ;;  %8044 = verf.f32 %v3157_v46  ;;  %v3158_v57 = vmul.f32 0.70710677, %v2486_v25  ;;  %v2488_v48 = vadd.f32 %v2487_v47, %v9457_v20 }
 0x259   : > { %11738 = vst [vmem:[#allocation39_spill] sm:$0xff] %v9705_v15  ;;  %v2489_v51 = vpop.f32.mrf.mxu0  ;;  %v3062_v15 = vmul.f32 0.5, %v2486_v25 }
 0x25a   : > { %v9708_v21 = vpop.f32.mrf.mxu1  ;;  %8046 = verf.f32 %v3158_v57  ;;  %v3161_v34 = vmul.f32 0.70710677, %v2488_v48  ;;  %v2490_v8 = vadd.f32 %v2489_v51, %v9463_v29 }
 0x25b   : > { %11739 = vst [vmem:[#allocation40_spill] sm:$0xff] %v9708_v21  ;;  %v2493_v56 = vpop.f32.mrf.mxu0 }
 0x25c   : > { %v9711_v28 = vpop.f32.mrf.mxu1  ;;  %8048 = verf.f32 %v3161_v34  ;;  %v3162_v62 = vmul.f32 0.70710677, %v2490_v8  ;;  %v9714_v50 = vadd.f32 %v2493_v56, %v9469_v35 }
 0x25d   : > { %11740 = vst [vmem:[#allocation41_spill] sm:$0xff] %v9711_v28  ;;  %v2495_v59 = vpop.f32.mrf.mxu0 }
 0x25e   : > { %v9716_v46 = vpop.f32.mrf.mxu1  ;;  %8050 = verf.f32 %v3162_v62  ;;  %v3165_v20 = vmul.f32 0.70710677, %v9714_v50  ;;  %v9720_v47 = vadd.f32 %v2495_v59, %v9473_v31 }
 0x25f   : > { %11741 = vst [vmem:[#allocation42_spill] sm:$0xff] %v9716_v46  ;;  %v2497_v57 = vpop.f32.mrf.mxu0 }
 0x260   : > { %v9722_v21 = vpop.f32.mrf.mxu1  ;;  %8052 = verf.f32 %v3165_v20  ;;  %v3166_v29 = vmul.f32 0.70710677, %v9720_v47  ;;  %v9726_v51 = vadd.f32 %v2497_v57, %v9477_v55 }
 0x261   : > { %11742 = vst [vmem:[#allocation43_spill] sm:$0xff] %v9722_v21  ;;  %v2499_v35 = vpop.f32.mrf.mxu0 }
 0x262   : > { %v9728_v34 = vpop.f32.mrf.mxu1  ;;  %8054 = verf.f32 %v3166_v29  ;;  %v3169_v56 = vmul.f32 0.70710677, %v9726_v51  ;;  %v9732_v62 = vadd.f32 %v2499_v35, %v9483_v4 }
 0x263   : > { %11743 = vst [vmem:[#allocation44_spill] sm:$0xff] %v9728_v34  ;;  %v2503_v31 = vpop.f32.mrf.mxu0 }
 0x264   : > { %v9734_v59 = vpop.f32.mrf.mxu1  ;;  %8056 = verf.f32 %v3169_v56  ;;  %v3170_v20 = vmul.f32 0.70710677, %v9732_v62  ;;  %v9738_v21 = vadd.f32 %v2503_v31, %v9489_v12  ;;  %v3061_v31 = vmul.f32 0.5, %v2484_v36 }
 0x265   : > { %11744 = vst [vmem:[#allocation45_spill] sm:$0xff] %v9734_v59  ;;  %v8045_v55 = vpop.eup %8044  ;;  %v2505_v57 = vpop.f32.mrf.mxu0 }
 0x266   : > { %v9740_v46 = vpop.f32.mrf.mxu1  ;;  %8058 = verf.f32 %v3170_v20  ;;  %v3173_v29 = vmul.f32 0.70710677, %v9738_v21  ;;  %v3349_v28 = vadd.f32 1.0, %v8045_v55  ;;  %v9744_v4 = vadd.f32 %v2505_v57, %v9493_v10 }
 0x267   : > { %11745 = vst [vmem:[#allocation46_spill] sm:$0xff] %v9740_v46  ;;  %v8047_v34 = vpop.eup %8046  ;;  %v2507_v35 = vpop.f32.mrf.mxu0  ;;  %v3065_v55 = vmul.f32 0.5, %v2488_v48 }
 0x268   : > { %v9746_v59 = vpop.f32.mrf.mxu1  ;;  %8060 = verf.f32 %v3173_v29  ;;  %v9749_v56 = vadd.f32 %v2507_v35, %v9497_v17  ;;  %v3174_v46 = vmul.f32 0.70710677, %v9744_v4  ;;  %v3350_v23 = vadd.f32 1.0, %v8047_v34 }
 0x269   : > { %11746 = vst [vmem:[#allocation47_spill] sm:$0xff] %v9746_v59  ;;  %v8049_v12 = vpop.eup %8048  ;;  %v2509_v20 = vpop.f32.mrf.mxu0  ;;  %v3445_v38 = vmul.f32 %v3349_v28, %v3061_v31  ;;  %v3066_v59 = vmul.f32 0.5, %v2490_v8 }
 0x26a   : > { %v9752_v42 = vpop.f32.mrf.mxu1  ;;  %v3353_v6 = vadd.f32 1.0, %v8049_v12  ;;  %v3177_v10 = vmul.f32 0.70710677, %v9749_v56  ;;  %8062 = verf.f32 %v3174_v46  ;;  %v9756_v17 = vadd.f32 %v2509_v20, %v9505_v41  ;;  %v7902_v20 = vld [vmem:[%s8834_s0 + $0x45c] ss:$24 sps:$4 sm:$0xff]  }
 0x26b   : > { %11747 = vst [vmem:[#allocation48_spill] sm:$0xff] %v9752_v42  ;;  %v8051_v57 = vpop.eup %8050  ;;  %v2513_v36 = vpop.f32.mrf.mxu0  ;;  %v3446_v46 = vmul.f32 %v3350_v23, %v3062_v15  ;;  %v7822_v23 = vld [vmem:[%s8834_s0 + $0x158] ss:$24 sps:$4 sm:$0xff]   ;;  %5344 = vmatprep.subr.bf16.mxu1 %v7902_v20 }
 0x26c   : > { %v9758_v25 = vpop.f32.mrf.mxu1  ;;  %v3449_v29 = vmul.f32 %v3353_v6, %v3065_v55  ;;  %v3354_v35 = vadd.f32 1.0, %v8051_v57  ;;  %8064 = verf.f32 %v3177_v10  ;;  %v9761_v34 = vadd.f32 %v2513_v36, %v9511_v0 }
 0x26d   : > { %11748 = vst [vmem:[#allocation49_spill] sm:$0xff] %v9758_v25  ;;  %v8053_v48 = vpop.eup %8052  ;;  %v3178_v12 = vmul.f32 0.70710677, %v9756_v17  ;;  %v2515_v28 = vpop.f32.mrf.mxu0  ;;  %v3069_v57 = vmul.f32 0.5, %v9714_v50  ;;  %v3073_v50 = vmul.f32 0.5, %v9726_v51 }
 0x26e   : > { %v9764_v8 = vpop.f32.mrf.mxu1  ;;  %v9766_v31 = vpack.c.bf16 %v3449_v29, %v3445_v38  ;;  %v3450_v41 = vmul.f32 %v3354_v35, %v3066_v59  ;;  %v3357_v25 = vadd.f32 1.0, %v8053_v48  ;;  %v3181_v6 = vmul.f32 0.70710677, %v9761_v34  ;;  %v7827_v48 = vld [vmem:[%s8834_s0 + $0x12c] ss:$24 sps:$4 sm:$0xff]  }
 0x26f   : > { %v8055_v42 = vpop.eup %8054  ;;  %8066 = verf.f32 %v3178_v12  ;;  %v9771_v0 = vadd.f32 %v2515_v28, %v9515_v39  ;;  %v2517_v55 = vpop.f32.mrf.mxu0  ;;  %v3070_v59 = vmul.f32 0.5, %v9720_v47 }
 0x270   : > { %11749 = vst [vmem:[#allocation50_spill] sm:$0xff] %v9766_v31  ;;  %v9773_v10 = vpop.f32.mrf.mxu1  ;;  %v9777_v15 = vadd.f32 %v2517_v55, %v9520_v11  ;;  %8068 = verf.f32 %v3181_v6  ;;  %v9784_v39 = vpack.c.bf16 %v3450_v41, %v3446_v46  ;;  %v3358_v12 = vadd.f32 1.0, %v8055_v42 }
 0x271   : > { %11750 = vst [vmem:[#allocation51_spill] sm:$0xff] %v9773_v10  ;;  %v8057_v38 = vpop.eup %8056  ;;  %v3182_v36 = vmul.f32 0.70710677, %v9771_v0  ;;  %v2519_v29 = vpop.f32.mrf.mxu0  ;;  %v3453_v20 = vmul.f32 %v3357_v25, %v3069_v57  ;;  %v3074_v10 = vmul.f32 0.5, %v9732_v62 }
 0x272   : > { %v9782_v35 = vpop.f32.mrf.mxu1  ;;  %11751 = vst [vmem:[#allocation52_spill] sm:$0xff] %v9784_v39  ;;  %v3361_v28 = vadd.f32 1.0, %v8057_v38  ;;  %v3185_v11 = vmul.f32 0.70710677, %v9777_v15  ;;  %v9791_v47 = vadd.f32 %v2519_v29, %v9527_v22  ;;  %4917 = vmatprep.mubr.bf16.mxu0 %v9784_v39  ;;  %v7825_v38 = vld [vmem:[%s8834_s0 + $0x128] ss:$24 sps:$4 sm:$0xff]  }
 0x273   : > { %v8059_v55 = vpop.eup %8058  ;;  %8070 = verf.f32 %v3182_v36  ;;  %v2523_v46 = vpop.f32.mrf.mxu0  ;;  %4918 = vmatmul.mubr.bf16.vlgmr.msra.gmra.mxu0 %v9766_v31  ;;  %v3454_v36 = vmul.f32 %v3358_v12, %v3070_v59 }
 0x274   : > { %v9794_v41 = vpop.f32.mrf.mxu1  ;;  %v3457_v42 = vmul.f32 %v3361_v28, %v3073_v50  ;;  %v3362_v51 = vadd.f32 1.0, %v8059_v55  ;;  %8072 = verf.f32 %v3185_v11  ;;  %v9797_v6 = vadd.f32 %v2523_v46, %v9533_v33  ;;  %5192 = vmatpush1.bf16.msra.mxu0 %v7822_v23  ;;  %v7833_v50 = vld [vmem:[%s8834_s0 + $0xfc] ss:$24 sps:$4 sm:$0xff]  }
 0x275   : > { %v8061_v62 = vpop.eup %8060  ;;  %v3186_v25 = vmul.f32 0.70710677, %v9791_v47  ;;  %v2525_v57 = vpop.f32.mrf.mxu0  ;;  %5193 = vmatprep.subr.bf16.mxu0 %v7827_v48  ;;  %v3077_v48 = vmul.f32 0.5, %v9738_v21  ;;  %v7839_v21 = vld [vmem:[%s8834_s0 + $0xcc] ss:$24 sps:$4 sm:$0xff]  }
 0x276   : > { %v9801_v22 = vpop.f32.mrf.mxu1  ;;  %v9804_v29 = vpack.c.bf16 %v3457_v42, %v3453_v20  ;;  %v3458_v39 = vmul.f32 %v3362_v51, %v3074_v10  ;;  %v3189_v33 = vmul.f32 0.70710677, %v9797_v6  ;;  %v9809_v28 = vadd.f32 %v2525_v57, %v9539_v53  ;;  %v7831_v42 = vld [vmem:[%s8834_s0 + $0xf8] ss:$24 sps:$4 sm:$0xff]  }
 0x277   : > { %8074 = verf.f32 %v3186_v25  ;;  %v2527_v11 = vpop.f32.mrf.mxu0  ;;  %v8063_v46 = vpop.eup %8062  ;;  %v3365_v31 = vadd.f32 1.0, %v8061_v62  ;;  %v3081_v51 = vmul.f32 0.5, %v9749_v56 }
 0x278   : > { %11752 = vst [vmem:[#allocation53_spill] sm:$0xff] %v9804_v29  ;;  %v9811_v55 = vpop.f32.mrf.mxu1  ;;  %v9814_v23 = vadd.f32 %v2527_v11, %v9543_v58  ;;  %v9816_v59 = vpack.c.bf16 %v3458_v39, %v3454_v36  ;;  %8076 = verf.f32 %v3189_v33  ;;  %v3190_v12 = vmul.f32 0.70710677, %v9809_v28  ;;  %5194 = vmatpush1.bf16.msra.mxu0 %v7825_v38 }
 0x279   : > { %v8065_v10 = vpop.eup %8064  ;;  %v2529_v20 = vpop.f32.mrf.mxu0  ;;  %5195 = vmatprep.subr.bf16.mxu0 %v7833_v50  ;;  %v3366_v39 = vadd.f32 1.0, %v8063_v46  ;;  %v3461_v33 = vmul.f32 %v3365_v31, %v3077_v48  ;;  %v3082_v50 = vmul.f32 0.5, %v9756_v17  ;;  %v7837_v31 = vld [vmem:[%s8834_s0 + $0xc8] ss:$24 sps:$4 sm:$0xff]  }
 0x27a   : > { %11753 = vst [vmem:[#allocation54_spill] sm:$0xff] %v9816_v59  ;;  %v9820_v53 = vpop.f32.mrf.mxu1  ;;  %v3369_v62 = vadd.f32 1.0, %v8065_v10  ;;  %v3193_v58 = vmul.f32 0.70710677, %v9814_v23  ;;  %v9826_v25 = vadd.f32 %v2529_v20, %v9549_v1  ;;  %4927 = vmatprep.mubr.bf16.mxu0 %v9816_v59  ;;  %8078 = verf.f32 %v3190_v12 }
 0x27b   : > { %v2533_v57 = vpop.f32.mrf.mxu0  ;;  %4928 = vmatmul.mubr.bf16.gmra.mxu0 %v9804_v29  ;;  %v3078_v1 = vmul.f32 0.5, %v9744_v4  ;;  %v7842_v4 = vld [vmem:[%s8834_s0 + $0x9c] ss:$24 sps:$4 sm:$0xff]  }
 0x27c   : > { %v9830_v36 = vpop.f32.mrf.mxu1  ;;  %v8067_v38 = vpop.eup %8066  ;;  %v3465_v11 = vmul.f32 %v3369_v62, %v3081_v51  ;;  %8080 = verf.f32 %v3193_v58  ;;  %v3194_v56 = vmul.f32 0.70710677, %v9826_v25  ;;  %v9837_v46 = vadd.f32 %v2533_v57, %v9555_v2  ;;  %5196 = vmatpush1.bf16.msra.mxu0 %v7831_v42 }
 0x27d   : > { %v3370_v10 = vadd.f32 1.0, %v8067_v38  ;;  %v2535_v12 = vpop.f32.mrf.mxu0  ;;  %v8069_v48 = vpop.eup %8068  ;;  %5197 = vmatprep.subr.bf16.mxu0 %v7839_v21  ;;  %v3462_v17 = vmul.f32 %v3366_v39, %v3078_v1  ;;  %v7840_v1 = vld [vmem:[%s8834_s0 + $0x98] ss:$24 sps:$4 sm:$0xff]  }
 0x27e   : > { %v9839_v20 = vpop.f32.mrf.mxu1  ;;  %v9842_v51 = vpack.c.bf16 %v3465_v11, %v3461_v33  ;;  %8082 = verf.f32 %v3194_v56  ;;  %v9845_v62 = vadd.f32 %v2535_v12, %v9561_v49  ;;  %v3197_v2 = vmul.f32 0.70710677, %v9837_v46 }
 0x27f   : > { %v3466_v58 = vmul.f32 %v3370_v10, %v3082_v50  ;;  %v2537_v57 = vpop.f32.mrf.mxu0  ;;  %v3373_v29 = vadd.f32 1.0, %v8069_v48  ;;  %v7848_v50 = vld [vmem:[%s8834_s0 + $0x6c] ss:$24 sps:$4 sm:$0xff]   ;;  %v3085_v10 = vmul.f32 0.5, %v9761_v34  ;;  %v3089_v12 = vmul.f32 0.5, %v9777_v15 }
 0x280   : > { %11754 = vst [vmem:[#allocation55_spill] sm:$0xff] %v9842_v51  ;;  %v9849_v38 = vpop.f32.mrf.mxu1  ;;  %v8071_v42 = vpop.eup %8070  ;;  %v3198_v33 = vmul.f32 0.70710677, %v9845_v62  ;;  %v9853_v11 = vadd.f32 %v2537_v57, %v9565_v45  ;;  %8084 = verf.f32 %v3197_v2  ;;  %5198 = vmatpush1.bf16.msra.mxu0 %v7837_v31 }
 0x281   : > { %v8073_v49 = vpop.eup %8072  ;;  %v2539_v21 = vpop.f32.mrf.mxu0  ;;  %v9857_v39 = vpack.c.bf16 %v3466_v58, %v3462_v17  ;;  %5199 = vmatprep.subr.bf16.mxu0 %v7842_v4  ;;  %v3374_v45 = vadd.f32 1.0, %v8071_v42  ;;  %v3469_v57 = vmul.f32 %v3373_v29, %v3085_v10  ;;  %v7846_v4 = vld [vmem:[%s8834_s0 + $0x68] ss:$24 sps:$4 sm:$0xff]   ;;  %v3086_v42 = vmul.f32 0.5, %v9771_v0 }
 0x282   : > { %v9855_v56 = vpop.f32.mrf.mxu1  ;;  %v3377_v48 = vadd.f32 1.0, %v8073_v49  ;;  %v3201_v59 = vmul.f32 0.70710677, %v9853_v11  ;;  %8086 = verf.f32 %v3198_v33  ;;  %v9865_v2 = vadd.f32 %v2539_v21, %v9573_v52 }
 0x283   : > { %11755 = vst [vmem:[#allocation56_spill] sm:$0xff] %v9857_v39  ;;  %4937 = vmatprep.mubr.bf16.mxu0 %v9857_v39  ;;  %v2543_v17 = vpop.f32.mrf.mxu0  ;;  %v3090_v52 = vmul.f32 0.5, %v9791_v47  ;;  %v3470_v0 = vmul.f32 %v3374_v45, %v3086_v42 }
 0x284   : > { %v9868_v31 = vpop.f32.mrf.mxu1  ;;  %v8075_v58 = vpop.eup %8074  ;;  %v3473_v34 = vmul.f32 %v3377_v48, %v3089_v12  ;;  %8088 = verf.f32 %v3201_v59  ;;  %v9871_v15 = vadd.f32 %v2543_v17, %v9579_v5  ;;  %4938 = vmatmul.mubr.bf16.gmra.mxu0 %v9842_v51  ;;  %v3202_v49 = vmul.f32 0.70710677, %v9865_v2  ;;  %v7854_v12 = vld [vmem:[%s8834_s0 + $0x3c] ss:$24 sps:$4 sm:$0xff]  }
 0x285   : > { %v3378_v33 = vadd.f32 1.0, %v8075_v58  ;;  %v2545_v21 = vpop.f32.mrf.mxu0  ;;  %5200 = vmatpush1.bf16.msra.mxu0 %v7840_v1  ;;  %v8077_v29 = vpop.eup %8076 }
 0x286   : > { %v9878_v39 = vpop.f32.mrf.mxu1  ;;  %v9880_v59 = vpack.c.bf16 %v3473_v34, %v3469_v57  ;;  %v3205_v5 = vmul.f32 0.70710677, %v9871_v15  ;;  %v9884_v10 = vadd.f32 %v2545_v21, %v9583_v3  ;;  %5201 = vmatprep.subr.bf16.mxu0 %v7848_v50  ;;  %v3381_v48 = vadd.f32 1.0, %v8077_v29 }
 0x287   : > { %v3474_v47 = vmul.f32 %v3378_v33, %v3090_v52  ;;  %8090 = verf.f32 %v3202_v49  ;;  %v2547_v17 = vpop.f32.mrf.mxu0  ;;  %v8079_v1 = vpop.eup %8078  ;;  %v3093_v50 = vmul.f32 0.5, %v9797_v6  ;;  %v7852_v52 = vld [vmem:[%s8834_s0 + $0x38] ss:$24 sps:$4 sm:$0xff]   ;;  %v7857_v33 = vld [vmem:[%s8834_s0 + $0xc] ss:$24 sps:$4 sm:$0xff]   ;;  %v3097_v49 = vmul.f32 0.5, %v9814_v23 }
 0x288   : > { %11756 = vst [vmem:[#allocation57_spill] sm:$0xff] %v9880_v59  ;;  %v9887_v58 = vpop.f32.mrf.mxu1  ;;  %8092 = verf.f32 %v3205_v5  ;;  %v3206_v57 = vmul.f32 0.70710677, %v9884_v10  ;;  %v9891_v34 = vadd.f32 %v2547_v17, %v9589_v14  ;;  %v3098_v5 = vmul.f32 0.5, %v9826_v25 }
 0x289   : > { %11757 = vst [vmem:[#allocation58_spill] sm:$0xff] %v9887_v58  ;;  %v8081_v3 = vpop.eup %8080  ;;  %v2549_v21 = vpop.f32.mrf.mxu0  ;;  %v9896_v42 = vpack.c.bf16 %v3474_v47, %v3470_v0  ;;  %5202 = vmatpush1.bf16.msra.mxu0 %v7846_v4  ;;  %v3477_v17 = vmul.f32 %v3381_v48, %v3093_v50  ;;  %v3382_v58 = vadd.f32 1.0, %v8079_v1 }
 0x28a   : > { %v9894_v45 = vpop.f32.mrf.mxu1  ;;  %v3385_v29 = vadd.f32 1.0, %v8081_v3  ;;  %v3209_v51 = vmul.f32 0.70710677, %v9891_v34  ;;  %5203 = vmatprep.subr.bf16.mxu0 %v7854_v12  ;;  %8094 = verf.f32 %v3206_v57  ;;  %v9904_v6 = vadd.f32 %v2549_v21, %v9595_v43  ;;  %v7855_v57 = vld [vmem:[%s8834_s0 + $0x8] ss:$24 sps:$4 sm:$0xff]  }
 0x28b   : > { %11758 = vst [vmem:[#allocation59_spill] sm:$0xff] %v9896_v42  ;;  %v8083_v14 = vpop.eup %8082  ;;  %4947 = vmatprep.mubr.bf16.mxu0 %v9896_v42  ;;  %v2553_v4 = vpop.f32.mrf.mxu0  ;;  %v3094_v12 = vmul.f32 0.5, %v9809_v28 }
 0x28c   : > { %v9907_v0 = vpop.f32.mrf.mxu1  ;;  %v3481_v23 = vmul.f32 %v3385_v29, %v3097_v49  ;;  %v3386_v47 = vadd.f32 1.0, %v8083_v14  ;;  %8096 = verf.f32 %v3209_v51  ;;  %v9910_v25 = vadd.f32 %v2553_v4, %v9603_v63  ;;  %4948 = vmatmul.mubr.bf16.gmra.mxu0 %v9880_v59  ;;  %v7863_v63 = vld [vmem:[%s8834_s0 + $0x2dc] ss:$24 sps:$4 sm:$0xff]  }
 0x28d   : > { %v3210_v48 = vmul.f32 0.70710677, %v9904_v6  ;;  %v2555_v43 = vpop.f32.mrf.mxu0  ;;  %5204 = vmatpush1.bf16.msra.mxu0 %v7852_v52  ;;  %v8085_v3 = vpop.eup %8084  ;;  %v3478_v29 = vmul.f32 %v3382_v58, %v3094_v12  ;;  %v3101_v49 = vmul.f32 0.5, %v9837_v46 }
 0x28e   : > { %v9915_v1 = vpop.f32.mrf.mxu1  ;;  %v9918_v50 = vpack.c.bf16 %v3481_v23, %v3477_v17  ;;  %v3482_v21 = vmul.f32 %v3386_v47, %v3098_v5  ;;  %v3213_v51 = vmul.f32 0.70710677, %v9910_v25  ;;  %5205 = vmatprep.subr.bf16.mxu0 %v7857_v33  ;;  %v9924_v28 = vadd.f32 %v2555_v43, %v9607_v30  ;;  %v7861_v30 = vld [vmem:[%s8834_s0 + $0x2d8] ss:$24 sps:$4 sm:$0xff]   ;;  %v7869_v43 = vld [vmem:[%s8834_s0 + $0x2ac] ss:$24 sps:$4 sm:$0xff]  }
 0x28f   : > { %8098 = verf.f32 %v3210_v48  ;;  %v2557_v14 = vpop.f32.mrf.mxu0  ;;  %v8087_v4 = vpop.eup %8086  ;;  %v3389_v5 = vadd.f32 1.0, %v8085_v3  ;;  %v3105_v17 = vmul.f32 0.5, %v9853_v11 }
 0x290   : > { %11759 = vst [vmem:[#allocation60_spill] sm:$0xff] %v9918_v50  ;;  %v9926_v52 = vpop.f32.mrf.mxu1  ;;  %8100 = verf.f32 %v3213_v51  ;;  %v9930_v33 = vadd.f32 %v2557_v14, %v9612_v27  ;;  %v3214_v58 = vmul.f32 0.70710677, %v9924_v28  ;;  %v9935_v48 = vpack.c.bf16 %v3482_v21, %v3478_v29 }
 0x291   : > { %v8089_v23 = vpop.eup %8088  ;;  %v2559_v47 = vpop.f32.mrf.mxu0  ;;  %5206 = vmatpush1.bf16.msra.mxu0 %v7855_v57  ;;  %v2264_v51 = vadd.f32 %v9631_v18, %v9440_v61  ;;  %v3390_v14 = vadd.f32 1.0, %v8087_v4  ;;  %v3485_v11 = vmul.f32 %v3389_v5, %v3101_v49  ;;  %v7867_v18 = vld [vmem:[%s8834_s0 + $0x2a8] ss:$24 sps:$4 sm:$0xff]   ;;  %v8260_v49 = vld [vmem:[%s329_s9] sm:$0xf]  ;;  %v11764_v5 = vsub.s32 3, %v9423_v54 }
 0x292   : > { %v9933_v12 = vpop.f32.mrf.mxu1  ;;  %11760 = vst [vmem:[#allocation61_spill] sm:$0xff] %v9935_v48  ;;  %v3393_v3 = vadd.f32 1.0, %v8089_v23  ;;  %v3217_v27 = vmul.f32 0.70710677, %v9930_v33  ;;  %5207 = vmatprep.subr.bf16.mxu0 %v7863_v63  ;;  %8102 = verf.f32 %v3214_v58  ;;  %v9945_v21 = vadd.f32 %v2559_v47, %v9617_v37  ;;  %4957 = vmatprep.mubr.bf16.mxu0 %v9935_v48 }
 0x293   : > { %v2563_v57 = vpop.f32.mrf.mxu0  ;;  %v3102_v37 = vmul.f32 0.5, %v9845_v62  ;;  %v3106_v58 = vmul.f32 0.5, %v9865_v2 }
 0x294   : > { %v9948_v29 = vpop.f32.mrf.mxu1  ;;  %v8091_v46 = vpop.eup %8090  ;;  %v3489_v23 = vmul.f32 %v3393_v3, %v3105_v17  ;;  %8104 = verf.f32 %v3217_v27  ;;  %v9951_v63 = vadd.f32 %v2563_v57, %v9624_v16  ;;  %4958 = vmatmul.mubr.bf16.gmra.mxu0 %v9918_v50  ;;  %v3218_v48 = vmul.f32 0.70710677, %v9945_v21  ;;  %v7872_v27 = vld [vmem:[%s8834_s0 + $0x27c] ss:$24 sps:$4 sm:$0xff]  }
 0x295   : > { %11761 = vst [vmem:[#allocation62_spill] sm:$0xff] %v9948_v29  ;;  %v8093_v4 = vpop.eup %8092  ;;  %v3394_v47 = vadd.f32 1.0, %v8091_v46  ;;  %v2565_v59 = vpop.f32.mrf.mxu0  ;;  %5208 = vmatpush2.bf16.msra.mxu0 %v7861_v30  ;;  %v11763_v16 = vsub.s32 2, %v9423_v54  ;;  %v9968_v3 = vrot.slane %v8260_v49, %v11764_v5  ;;  %v3486_v57 = vmul.f32 %v3390_v14, %v3102_v37 }
 0x296   : > { %v9958_v42 = vpop.f32.mrf.mxu1  ;;  %v9970_v62 = vpack.c.bf16 %v3489_v23, %v3485_v11  ;;  %v3221_v2 = vmul.f32 0.70710677, %v9951_v63  ;;  %5209 = vmatprep.subr.bf16.mxu0 %v7869_v43  ;;  %8106 = verf.f32 %v3218_v48  ;;  %v9975_v30 = vadd.f32 %v2565_v59, %v9627_v24 }
 0x297   : > { %11762 = vst [vmem:[#allocation63_spill] sm:$0xff] %v9958_v42  ;;  %v9964_v17 = vrot.slane %v8260_v49, %v11763_v16  ;;  %v3490_v46 = vmul.f32 %v3394_v47, %v3106_v58  ;;  %v2567_v50 = vpop.f32.mrf.mxu0  ;;  %v8095_v54 = vpop.eup %8094  ;;  %v2417_v49 = vadd.f32 %v9633_v32, %v2264_v51  ;;  %v3397_v11 = vadd.f32 1.0, %v8093_v4  ;;  %v7870_v32 = vld [vmem:[%s8834_s0 + $0x278] ss:$24 sps:$4 sm:$0xff]   ;;  %v7878_v51 = vld [vmem:[%s8834_s0 + $0x24c] ss:$24 sps:$4 sm:$0xff]  }
 0x298   : > { %11765 = vst [vmem:[#allocation64_spill] sm:$0xff] %v9970_v62  ;;  %v9977_v16 = vpop.f32.mrf.mxu1  ;;  %8108 = verf.f32 %v3221_v2  ;;  %v9981_v23 = vadd.f32 %v2567_v50, %v9636_v19  ;;  %v2274_v48 = vadd.f32 %v9652_v13, %v9440_v61  ;;  %v2284_v24 = vadd.f32 %v9673_v44, %v9440_v61  ;;  %v11802_v42 = vld [vmem:[#allocation48_spill] sm:$0xff] }
 0x299   : > { %11766 = vst [vmem:[#allocation65_spill] sm:$0xff] %v9977_v16  ;;  %v8097_v43 = vpop.eup %8096  ;;  %v3222_v59 = vmul.f32 0.70710677, %v9975_v30  ;;  %v2569_v14 = vpop.f32.mrf.mxu0  ;;  %v9990_v58 = vpack.c.bf16 %v3490_v46, %v3486_v57  ;;  %5210 = vmatpush2.bf16.msra.mxu0 %v7867_v18  ;;  %v3109_v19 = vmul.f32 0.5, %v9871_v15  ;;  %v3113_v50 = vmul.f32 0.5, %v9891_v34 }
 0x29a   : > { %v9988_v37 = vpop.f32.mrf.mxu1  ;;  %v3401_v4 = vadd.f32 1.0, %v8097_v43  ;;  %v3225_v13 = vmul.f32 0.70710677, %v9981_v23  ;;  %5211 = vmatprep.subr.bf16.mxu0 %v7872_v27  ;;  %v2294_v44 = vadd.f32 %v9691_v9, %v9440_v61  ;;  %v3398_v47 = vadd.f32 1.0, %v8095_v54  ;;  %v7876_v61 = vld [vmem:[%s8834_s0 + $0x248] ss:$24 sps:$4 sm:$0xff]  }
 0x29b   : > { %11767 = vst [vmem:[#allocation66_spill] sm:$0xff] %v9988_v37  ;;  %11768 = vst [vmem:[#allocation67_spill] sm:$0xff] %v9990_v58  ;;  %8110 = verf.f32 %v3222_v59  ;;  %v9999_v5 = vadd.f32 %v2569_v14, %v2417_v49  ;;  %4967 = vmatprep.mubr.bf16.mxu0 %v9990_v58  ;;  %v2573_v18 = vpop.f32.mrf.mxu0  ;;  %v3493_v57 = vmul.f32 %v3397_v11, %v3109_v19  ;;  %v3110_v9 = vmul.f32 0.5, %v9884_v10  ;;  %v7884_v10 = vld [vmem:[%s8834_s0 + $0x21c] ss:$24 sps:$4 sm:$0xff]  }
 0x29c   : > { %v10002_v2 = vpop.f32.mrf.mxu1  ;;  %v8099_v15 = vpop.eup %8098  ;;  %v3497_v34 = vmul.f32 %v3401_v4, %v3113_v50  ;;  %8112 = verf.f32 %v3225_v13  ;;  %v10005_v46 = vadd.f32 %v2573_v18, %v9645_v7  ;;  %4968 = vmatmul.mubr.bf16.gmra.mxu0 %v9970_v62  ;;  %v3114_v27 = vmul.f32 0.5, %v9904_v6 }
 0x29d   : > { %11769 = vst [vmem:[#allocation68_spill] sm:$0xff] %v10002_v2  ;;  %v8101_v54 = vpop.eup %8100  ;;  %v3402_v49 = vadd.f32 1.0, %v8099_v15  ;;  %v3226_v43 = vmul.f32 0.70710677, %v9999_v5  ;;  %v2575_v59 = vpop.f32.mrf.mxu0  ;;  %5212 = vmatpush2.bf16.msra.mxu0 %v7870_v32  ;;  %v2427_v11 = vadd.f32 %v9654_v40, %v2274_v48  ;;  %v10016_v7 = vadd.f32 %v9675_v60, %v2284_v24  ;;  %v11773_v48 = vld [vmem:[#allocation35_spill] sm:$0xff]  ;;  %v11774_v15 = vld [vmem:[#allocation29_spill] sm:$0xff] }
 0x29e   : > { %v10012_v14 = vpop.f32.mrf.mxu1  ;;  %v10018_v19 = vpack.c.bf16 %v3497_v34, %v3493_v57  ;;  %v3229_v50 = vmul.f32 0.70710677, %v10005_v46  ;;  %5213 = vmatprep.subr.bf16.mxu0 %v7878_v51  ;;  %v3494_v4 = vmul.f32 %v3398_v47, %v3110_v9  ;;  %v10023_v13 = vadd.f32 %v2575_v59, %v9648_v26  ;;  %v11775_v57 = vld [vmem:[#allocation37_spill] sm:$0xff] }
 0x29f   : > { %11770 = vst [vmem:[#allocation69_spill] sm:$0xff] %v10012_v14  ;;  %v3498_v6 = vmul.f32 %v3402_v49, %v3114_v27  ;;  %8114 = verf.f32 %v3226_v43  ;;  %v2577_v18 = vpop.f32.mrf.mxu0  ;;  %v8103_v40 = vpop.eup %8102  ;;  %v10028_v60 = vadd.f32 %v11773_v48, %v2294_v44  ;;  %v3405_v24 = vadd.f32 1.0, %v8101_v54  ;;  %v7882_v54 = vld [vmem:[%s8834_s0 + $0x218] ss:$24 sps:$4 sm:$0xff]   ;;  %v7887_v48 = vld [vmem:[%s8834_s0 + $0x1ec] ss:$24 sps:$4 sm:$0xff]  }
 0x2a0   : > { %11771 = vst [vmem:[#allocation70_spill] sm:$0xff] %v10018_v19  ;;  %v10025_v32 = vpop.f32.mrf.mxu1  ;;  %8116 = verf.f32 %v3229_v50  ;;  %v10031_v51 = vadd.f32 %v2577_v18, %v11774_v15  ;;  %v10035_v34 = vadd.f32 %v11775_v57, %v9964_v17  ;;  %v3117_v26 = vmul.f32 0.5, %v9910_v25  ;;  %v11778_v25 = vld [vmem:[#allocation38_spill] sm:$0xff]  ;;  %v11779_v57 = vld [vmem:[#allocation39_spill] sm:$0xff] }
 0x2a1   : > { %11772 = vst [vmem:[#allocation71_spill] sm:$0xff] %v10025_v32  ;;  %v8105_v47 = vpop.eup %8104  ;;  %v3230_v9 = vmul.f32 0.70710677, %v10023_v13  ;;  %v2579_v27 = vpop.f32.mrf.mxu0  ;;  %v10041_v44 = vpack.c.bf16 %v3498_v6, %v3494_v4  ;;  %5214 = vmatpush2.bf16.msra.mxu0 %v7876_v61  ;;  %v3121_v43 = vmul.f32 0.5, %v9930_v33  ;;  %v10051_v15 = vadd.f32 %v11778_v25, %v9968_v3  ;;  %v7899_v14 = vld [vmem:[%s8834_s0 + $0x18c] ss:$24 sps:$4 sm:$0xff]  }
 0x2a2   : > { %v10039_v49 = vpop.f32.mrf.mxu1  ;;  %v3409_v59 = vadd.f32 1.0, %v8105_v47  ;;  %v3233_v50 = vmul.f32 0.70710677, %v10031_v51  ;;  %v10046_v18 = vadd.f32 %v2579_v27, %v2427_v11  ;;  %5215 = vmatprep.subr.bf16.mxu0 %v7884_v10  ;;  %v10055_v62 = vadd.f32 %v11779_v57, %v9964_v17  ;;  %v11781_v57 = vld [vmem:[#allocation30_spill] sm:$0xff] }
 0x2a3   : > { %11776 = vst [vmem:[#allocation35_spill] sm:$0xff] %v10039_v49  ;;  %11777 = vst [vmem:[#allocation29_spill] sm:$0xff] %v10041_v44  ;;  %v3406_v4 = vadd.f32 1.0, %v8103_v40  ;;  %8118 = verf.f32 %v3230_v9  ;;  %4977 = vmatprep.mubr.bf16.mxu0 %v10041_v44  ;;  %v2583_v33 = vpop.f32.mrf.mxu0  ;;  %v8107_v11 = vpop.eup %8106  ;;  %v3501_v6 = vmul.f32 %v3405_v24, %v3117_v26  ;;  %v3118_v25 = vmul.f32 0.5, %v9924_v28  ;;  %v7885_v24 = vld [vmem:[%s8834_s0 + $0x1e8] ss:$24 sps:$4 sm:$0xff]  }
 0x2a4   : > { %v10058_v61 = vpop.f32.mrf.mxu1  ;;  %v3505_v10 = vmul.f32 %v3409_v59, %v3121_v43  ;;  %8120 = verf.f32 %v3233_v50  ;;  %v3234_v47 = vmul.f32 0.70710677, %v10046_v18  ;;  %4978 = vmatmul.mubr.bf16.gmra.mxu0 %v10018_v19  ;;  %v3122_v40 = vmul.f32 0.5, %v9945_v21  ;;  %v11783_v26 = vld [vmem:[#allocation40_spill] sm:$0xff]  ;;  %v11785_v50 = vld [vmem:[#allocation31_spill] sm:$0xff] }
 0x2a5   : > { %11780 = vst [vmem:[#allocation37_spill] sm:$0xff] %v10058_v61  ;;  %v8109_v27 = vpop.eup %8108  ;;  %v3410_v9 = vadd.f32 1.0, %v8107_v11  ;;  %v10065_v44 = vadd.f32 %v2583_v33, %v11781_v57  ;;  %v2585_v58 = vpop.f32.mrf.mxu0  ;;  %5216 = vmatpush2.bf16.msra.mxu0 %v7882_v54  ;;  %v10072_v43 = vadd.f32 %v11783_v26, %v9968_v3  ;;  %v7893_v21 = vld [vmem:[%s8834_s0 + $0x1bc] ss:$24 sps:$4 sm:$0xff]   ;;  %v3502_v57 = vmul.f32 %v3406_v4, %v3118_v25 }
 0x2a6   : > { %v10067_v61 = vpop.f32.mrf.mxu1  ;;  %v10074_v59 = vpack.c.bf16 %v3505_v10, %v3501_v6  ;;  %8122 = verf.f32 %v3234_v47  ;;  %v10077_v28 = vadd.f32 %v2585_v58, %v11785_v50  ;;  %5217 = vmatprep.subr.bf16.mxu0 %v7887_v48  ;;  %v11786_v33 = vld [vmem:[#allocation41_spill] sm:$0xff]  ;;  %v11788_v10 = vld [vmem:[#allocation42_spill] sm:$0xff]  ;;  %v3413_v48 = vadd.f32 1.0, %v8109_v27  ;;  %v11789_v50 = vld [vmem:[#allocation32_spill] sm:$0xff] }
 0x2a7   : > { %11782 = vst [vmem:[#allocation38_spill] sm:$0xff] %v10067_v61  ;;  %v10082_v11 = vadd.f32 %v11786_v33, %v9964_v17  ;;  %v3506_v19 = vmul.f32 %v3410_v9, %v3122_v40  ;;  %v3237_v54 = vmul.f32 0.70710677, %v10065_v44  ;;  %v2587_v61 = vpop.f32.mrf.mxu0  ;;  %v10089_v58 = vadd.f32 %v11788_v10, %v9968_v3  ;;  %v11790_v25 = vld [vmem:[#allocation43_spill] sm:$0xff]  ;;  %v11791_v9 = vld [vmem:[#allocation44_spill] sm:$0xff] }
 0x2a8   : > { %11784 = vst [vmem:[#allocation39_spill] sm:$0xff] %v10074_v59  ;;  %v10085_v26 = vpop.f32.mrf.mxu1  ;;  %v8111_v6 = vpop.eup %8110  ;;  %v3238_v47 = vmul.f32 0.70710677, %v10077_v28  ;;  %v10093_v33 = vadd.f32 %v2587_v61, %v11789_v50  ;;  %v10097_v40 = vadd.f32 %v11790_v25, %v9964_v17  ;;  %v10101_v49 = vadd.f32 %v11791_v9, %v9968_v3  ;;  %v7891_v27 = vld [vmem:[%s8834_s0 + $0x1b8] ss:$24 sps:$4 sm:$0xff]  }
 0x2a9   : > { %11787 = vst [vmem:[#allocation30_spill] sm:$0xff] %v10085_v26  ;;  %v8113_v4 = vpop.eup %8112  ;;  %8124 = verf.f32 %v3237_v54  ;;  %v2589_v26 = vpop.f32.mrf.mxu0  ;;  %v10105_v10 = vpack.c.bf16 %v3506_v19, %v3502_v57  ;;  %5218 = vmatpush2.bf16.msra.mxu0 %v7885_v24  ;;  %v3125_v61 = vmul.f32 0.5, %v9951_v63  ;;  %v3129_v50 = vmul.f32 0.5, %v9981_v23  ;;  %v11794_v9 = vld [vmem:[#allocation45_spill] sm:$0xff] }
 0x2aa   : > { %v10103_v32 = vpop.f32.mrf.mxu1  ;;  %v3417_v2 = vadd.f32 1.0, %v8113_v4  ;;  %v3241_v25 = vmul.f32 0.70710677, %v10093_v33  ;;  %5219 = vmatprep.subr.bf16.mxu0 %v7893_v21  ;;  %v10114_v54 = vadd.f32 %v11794_v9, %v9964_v17  ;;  %v3414_v37 = vadd.f32 1.0, %v8111_v6  ;;  %v7897_v6 = vld [vmem:[%s8834_s0 + $0x188] ss:$24 sps:$4 sm:$0xff]  }
 0x2ab   : > { %11792 = vst [vmem:[#allocation40_spill] sm:$0xff] %v10103_v32  ;;  %11793 = vst [vmem:[#allocation31_spill] sm:$0xff] %v10105_v10  ;;  %8126 = verf.f32 %v3238_v47  ;;  %v10117_v19 = vadd.f32 %v2589_v26, %v10016_v7  ;;  %4987 = vmatprep.mubr.bf16.mxu0 %v10105_v10  ;;  %v2593_v24 = vpop.f32.mrf.mxu0  ;;  %v3509_v57 = vmul.f32 %v3413_v48, %v3125_v61  ;;  %v11796_v32 = vld [vmem:[#allocation33_spill] sm:$0xff]  ;;  %v3126_v7 = vmul.f32 0.5, %v9975_v30  ;;  %v11799_v48 = vld [vmem:[#allocation47_spill] sm:$0xff] }
 0x2ac   : > { %v10120_v63 = vpop.f32.mrf.mxu1  ;;  %v8115_v23 = vpop.eup %8114  ;;  %v3513_v4 = vmul.f32 %v3417_v2, %v3129_v50  ;;  %8128 = verf.f32 %v3241_v25  ;;  %v10123_v21 = vadd.f32 %v2593_v24, %v11796_v32  ;;  %4988 = vmatmul.mubr.bf16.gmra.mxu0 %v10074_v59  ;;  %v3130_v26 = vmul.f32 0.5, %v9999_v5  ;;  %v11798_v2 = vld [vmem:[#allocation46_spill] sm:$0xff] }
 0x2ad   : > { %11795 = vst [vmem:[#allocation41_spill] sm:$0xff] %v10120_v63  ;;  %v8117_v47 = vpop.eup %8116  ;;  %v3418_v9 = vadd.f32 1.0, %v8115_v23  ;;  %v3242_v10 = vmul.f32 0.70710677, %v10117_v19  ;;  %v2595_v63 = vpop.f32.mrf.mxu0  ;;  %5220 = vmatpush2.bf16.msra.mxu0 %v7891_v27  ;;  %v10134_v32 = vadd.f32 %v11798_v2, %v9968_v3  ;;  %v10138_v61 = vadd.f32 %v11799_v48, %v9964_v17  ;;  %v7920_v5 = vld [vmem:[%s8834_s0 + $0x164] ss:$24 sps:$4 sm:$0xff]  }
 0x2ae   : > { %v10130_v16 = vpop.f32.mrf.mxu1  ;;  %v10140_v50 = vpack.c.bf16 %v3513_v4, %v3509_v57  ;;  %v3245_v30 = vmul.f32 0.70710677, %v10123_v21  ;;  %5221 = vmatprep.subr.bf16.mxu0 %v7899_v14  ;;  %v3510_v25 = vmul.f32 %v3414_v37, %v3126_v7  ;;  %v11801_v23 = vld [vmem:[#allocation34_spill] sm:$0xff]  ;;  %v10151_v48 = vadd.f32 %v11802_v42, %v9968_v3  ;;  %v11803_v4 = vld [vmem:[#allocation36_spill] sm:$0xff] }
 0x2af   : > { %11797 = vst [vmem:[#allocation42_spill] sm:$0xff] %v10130_v16  ;;  %v3514_v24 = vmul.f32 %v3418_v9, %v3130_v26  ;;  %8130 = verf.f32 %v3242_v10  ;;  %v10145_v59 = vadd.f32 %v2595_v63, %v11801_v23  ;;  %v2597_v27 = vpop.f32.mrf.mxu0  ;;  %v3421_v57 = vadd.f32 1.0, %v8117_v47 }
 0x2b0   : > { %11800 = vst [vmem:[#allocation32_spill] sm:$0xff] %v10140_v50  ;;  %v10147_v16 = vpop.f32.mrf.mxu1  ;;  %v8119_v2 = vpop.eup %8118  ;;  %8132 = verf.f32 %v3245_v30  ;;  %v10154_v29 = vadd.f32 %v2597_v27, %v11803_v4  ;;  %v3133_v37 = vmul.f32 0.5, %v10005_v46  ;;  %v3137_v10 = vmul.f32 0.5, %v10031_v51  ;;  %v11805_v46 = vld [vmem:[#allocation49_spill] sm:$0xff] }
 0x2b1   : > { %v8121_v14 = vpop.eup %8120  ;;  %v3246_v63 = vmul.f32 0.70710677, %v10145_v59  ;;  %v2599_v7 = vpop.f32.mrf.mxu0  ;;  %v10161_v9 = vpack.c.bf16 %v3514_v24, %v3510_v25  ;;  %5222 = vmatpush2.bf16.msra.mxu0 %v7897_v6  ;;  %v3422_v42 = vadd.f32 1.0, %v8119_v2  ;;  %v10169_v51 = vadd.f32 %v11805_v46, %v9964_v17 }
 0x2b2   : > { %v10159_v26 = vpop.f32.mrf.mxu1  ;;  %v3425_v23 = vadd.f32 1.0, %v8121_v14  ;;  %v3249_v47 = vmul.f32 0.70710677, %v10154_v29  ;;  %v10165_v30 = vadd.f32 %v2599_v7, %v10028_v60  ;;  %5497 = vmatprep.subr.bf16.mxu0 %v7920_v5  ;;  %v3134_v4 = vmul.f32 0.5, %v10023_v13  ;;  %v11806_v5 = vld [vmem:[#allocation51_spill] sm:$0xff] }
 0x2b3   : > { %11804 = vst [vmem:[#allocation43_spill] sm:$0xff] %v10159_v26  ;;  %v8123_v27 = vpop.eup %8122  ;;  %v3138_v26 = vmul.f32 0.5, %v10046_v18  ;;  %8134 = verf.f32 %v3246_v63  ;;  %4997 = vmatprep.mubr.bf16.mxu0 %v10161_v9  ;;  %v2789_v6 = vpop.f32.mrf.mxu0  ;;  %v3517_v24 = vmul.f32 %v3421_v57, %v3133_v37  ;;  %v10177_v60 = vadd.f32 %v9764_v8, %v9968_v3 }
 0x2b4   : > { %v2942_v25 = vpop.f32.mrf.mxu1  ;;  %v3521_v2 = vmul.f32 %v3425_v23, %v3137_v10  ;;  %v3426_v14 = vadd.f32 1.0, %v8123_v27  ;;  %8136 = verf.f32 %v3249_v47  ;;  %4998 = vmatmul.mubr.bf16.gmra.mxu0 %v10140_v50  ;;  %v10181_v13 = vadd.f32 %v11806_v5, %v9964_v17 }
 0x2b5   : > { %v3250_v18 = vmul.f32 0.70710677, %v10165_v30  ;;  %v2790_v63 = vadd.f32 %v2789_v6, %v10035_v34  ;;  %v2791_v7 = vpop.f32.mrf.mxu0  ;;  %v3518_v37 = vmul.f32 %v3422_v42, %v3134_v4  ;;  %v10190_v8 = vadd.f32 %v9782_v35, %v9968_v3 }
 0x2b6   : > { %v2944_v46 = vpop.f32.mrf.mxu1  ;;  %v8125_v57 = vpop.eup %8124  ;;  %v10185_v10 = vpack.c.bf16 %v3521_v2, %v3517_v24  ;;  %v3522_v23 = vmul.f32 %v3426_v14, %v3138_v26  ;;  %v2792_v47 = vadd.f32 %v2791_v7, %v10051_v15  ;;  %v10194_v27 = vadd.f32 %v9794_v41, %v9964_v17 }
 0x2b7   : > { %8138 = verf.f32 %v3250_v18  ;;  %v10196_v5 = vadd.f32 %v2942_v25, %v2790_v63  ;;  %v2793_v34 = vpop.f32.mrf.mxu0  ;;  %v3429_v42 = vadd.f32 1.0, %v8125_v57  ;;  %v10205_v35 = vadd.f32 %v9801_v22, %v9968_v3 }
 0x2b8   : > { %v2946_v6 = vpop.f32.mrf.mxu1  ;;  %v8127_v50 = vpop.eup %8126  ;;  %v10198_v4 = vadd.f32 %v2944_v46, %v2792_v47  ;;  %v2794_v26 = vadd.f32 %v2793_v34, %v10055_v62  ;;  %v10201_v15 = vpack.c.bf16 %v3522_v23, %v3518_v37  ;;  %v10209_v41 = vadd.f32 %v9811_v55, %v9964_v17 }
 0x2b9   : > { %v8129_v24 = vpop.eup %8128  ;;  %v10213_v25 = vadd.f32 %v9820_v53, %v9968_v3  ;;  %v3159_v2 = vmul.f32 0.70710677, %v10196_v5  ;;  %v2795_v14 = vpop.f32.mrf.mxu0  ;;  %v3141_v62 = vmul.f32 0.5, %v10065_v44  ;;  %v3145_v63 = vmul.f32 0.5, %v10093_v33 }
 0x2ba   : > { %11807 = vst [vmem:[#allocation44_spill] sm:$0xff] %v10201_v15  ;;  %v2948_v18 = vpop.f32.mrf.mxu1  ;;  %v3433_v7 = vadd.f32 1.0, %v8129_v24  ;;  %v3160_v22 = vmul.f32 0.70710677, %v10198_v4  ;;  %5007 = vmatprep.mubr.bf16.mxu0 %v10201_v15  ;;  %v3430_v46 = vadd.f32 1.0, %v8127_v50  ;;  %v10220_v55 = vadd.f32 %v2946_v6, %v2794_v26 }
 0x2bb   : > { %8140 = verf.f32 %v3159_v2  ;;  %v2796_v53 = vadd.f32 %v2795_v14, %v10072_v43  ;;  %v2799_v57 = vpop.f32.mrf.mxu0  ;;  %v3525_v47 = vmul.f32 %v3429_v42, %v3141_v62  ;;  %v3142_v34 = vmul.f32 0.5, %v10077_v28 }
 0x2bc   : > { %v2952_v37 = vpop.f32.mrf.mxu1  ;;  %v8131_v23 = vpop.eup %8130  ;;  %v3529_v44 = vmul.f32 %v3433_v7, %v3145_v63  ;;  %v2800_v33 = vadd.f32 %v2799_v57, %v10082_v11  ;;  %5008 = vmatmul.mubr.bf16.gmra.mxu0 %v10185_v10  ;;  %v3146_v15 = vmul.f32 0.5, %v10117_v19  ;;  %v3163_v6 = vmul.f32 0.70710677, %v10220_v55 }
 0x2bd   : > { %v8133_v24 = vpop.eup %8132  ;;  %v3434_v50 = vadd.f32 1.0, %v8131_v23  ;;  %v10228_v26 = vadd.f32 %v2948_v18, %v2796_v53  ;;  %v2801_v43 = vpop.f32.mrf.mxu0  ;;  %8142 = verf.f32 %v3160_v22  ;;  %v3526_v11 = vmul.f32 %v3430_v46, %v3142_v34 }
 0x2be   : > { %v2954_v2 = vpop.f32.mrf.mxu1  ;;  %v10230_v14 = vpack.c.bf16 %v3529_v44, %v3525_v47  ;;  %v10232_v42 = vadd.f32 %v2952_v37, %v2800_v33  ;;  %v2802_v28 = vadd.f32 %v2801_v43, %v10089_v58  ;;  %8144 = verf.f32 %v3163_v6 }
 0x2bf   : > { %v3530_v62 = vmul.f32 %v3434_v50, %v3146_v15  ;;  %v3164_v63 = vmul.f32 0.70710677, %v10228_v26  ;;  %v2803_v19 = vpop.f32.mrf.mxu0  ;;  %v10238_v18 = vadd.f32 %v9830_v36, %v9964_v17  ;;  %v3437_v53 = vadd.f32 1.0, %v8133_v24 }
 0x2c0   : > { %v2956_v7 = vpop.f32.mrf.mxu1  ;;  %v8135_v57 = vpop.eup %8134  ;;  %v3167_v23 = vmul.f32 0.70710677, %v10232_v42  ;;  %v10241_v22 = vadd.f32 %v2954_v2, %v2802_v28  ;;  %v3149_v58 = vmul.f32 0.5, %v10123_v21  ;;  %v2804_v15 = vadd.f32 %v2803_v19, %v10097_v40 }
 0x2c1   : > { %v8137_v37 = vpop.eup %8136  ;;  %8146 = verf.f32 %v3164_v63  ;;  %v2805_v46 = vpop.f32.mrf.mxu0  ;;  %v10245_v34 = vpack.c.bf16 %v3530_v62, %v3526_v11  ;;  %v3150_v44 = vmul.f32 0.5, %v10145_v59  ;;  %v3153_v36 = vmul.f32 0.5, %v10154_v29 }
 0x2c2   : > { %v2958_v47 = vpop.f32.mrf.mxu1  ;;  %v3441_v33 = vadd.f32 1.0, %v8137_v37  ;;  %v3168_v24 = vmul.f32 0.70710677, %v10241_v22  ;;  %v3438_v50 = vadd.f32 1.0, %v8135_v57  ;;  %8148 = verf.f32 %v3167_v23 }
 0x2c3   : > { %v10250_v6 = vadd.f32 %v2956_v7, %v2804_v15  ;;  %v2806_v21 = vadd.f32 %v2805_v46, %v10101_v49  ;;  %5017 = vmatprep.mubr.bf16.mxu0 %v10245_v34  ;;  %v2809_v40 = vpop.f32.mrf.mxu0  ;;  %v3533_v28 = vmul.f32 %v3437_v53, %v3149_v58  ;;  %v3154_v29 = vmul.f32 0.5, %v10165_v30 }
 0x2c4   : > { %v2962_v43 = vpop.f32.mrf.mxu1  ;;  %v8139_v2 = vpop.eup %8138  ;;  %v3537_v11 = vmul.f32 %v3441_v33, %v3153_v36  ;;  %8150 = verf.f32 %v3168_v24  ;;  %v2810_v59 = vadd.f32 %v2809_v40, %v10114_v54  ;;  %5018 = vmatmul.mubr.bf16.gmra.mxu0 %v10230_v14  ;;  %v10262_v57 = vadd.f32 %v9839_v20, %v9968_v3 }
 0x2c5   : > { %v3442_v62 = vadd.f32 1.0, %v8139_v2  ;;  %v3171_v63 = vmul.f32 0.70710677, %v10250_v6  ;;  %v10258_v19 = vadd.f32 %v2958_v47, %v2806_v21  ;;  %v2811_v49 = vpop.f32.mrf.mxu0  ;;  %v3534_v37 = vmul.f32 %v3438_v50, %v3150_v44 }
 0x2c6   : > { %v2964_v7 = vpop.f32.mrf.mxu1  ;;  %v10264_v53 = vpack.c.bf16 %v3537_v11, %v3533_v28  ;;  %v10266_v23 = vadd.f32 %v2962_v43, %v2810_v59  ;;  %v2812_v54 = vadd.f32 %v2811_v49, %v10134_v32  ;;  %v10272_v36 = vadd.f32 %v9849_v38, %v9964_v17  ;;  %v11808_v43 = vld [vmem:[#allocation58_spill] sm:$0xff] }
 0x2c7   : > { %v3538_v58 = vmul.f32 %v3442_v62, %v3154_v29  ;;  %8152 = verf.f32 %v3171_v63  ;;  %v3172_v30 = vmul.f32 0.70710677, %v10258_v19  ;;  %v2813_v15 = vpop.f32.mrf.mxu0  ;;  %v10280_v32 = vadd.f32 %v9855_v56, %v9968_v3 }
 0x2c8   : > { %v2966_v46 = vpop.f32.mrf.mxu1  ;;  %v8141_v47 = vpop.eup %8140  ;;  %v3175_v20 = vmul.f32 0.70710677, %v10266_v23  ;;  %v10275_v33 = vadd.f32 %v2964_v7, %v2812_v54  ;;  %v2814_v24 = vadd.f32 %v2813_v15, %v10138_v61  ;;  %v10284_v44 = vadd.f32 %v9868_v31, %v9964_v17 }
 0x2c9   : > { %8154 = verf.f32 %v3172_v30  ;;  %v2815_v50 = vpop.f32.mrf.mxu0  ;;  %v10286_v40 = vpack.c.bf16 %v3538_v58, %v3534_v37  ;;  %v10290_v38 = vadd.f32 %v9878_v39, %v9968_v3  ;;  %v10294_v61 = vadd.f32 %v11808_v43, %v9964_v17  ;;  %v11809_v58 = vld [vmem:[#allocation52_spill] sm:$0xff] }
 0x2ca   : > { %v2968_v21 = vpop.f32.mrf.mxu1  ;;  %8156 = verf.f32 %v3175_v20  ;;  %v3176_v56 = vmul.f32 0.70710677, %v10275_v33  ;;  %v8143_v2 = vpop.eup %8142  ;;  %v10299_v31 = vadd.f32 %v9894_v45, %v9968_v3  ;;  %v3351_v28 = vadd.f32 1.0, %v8141_v47 }
 0x2cb   : > { %v10301_v11 = vadd.f32 %v2966_v46, %v2814_v24  ;;  %v2816_v59 = vadd.f32 %v2815_v50, %v10151_v48  ;;  %5027 = vmatprep.mubr.bf16.mxu0 %v10286_v40  ;;  %v2819_v39 = vpop.f32.mrf.mxu0  ;;  %v8145_v62 = vpop.eup %8144  ;;  %v10307_v63 = vadd.f32 %v9907_v0, %v9964_v17  ;;  %v3063_v49 = vmul.f32 0.5, %v10196_v5 }
 0x2cc   : > { %v2972_v29 = vpop.f32.mrf.mxu1  ;;  %v3067_v7 = vmul.f32 0.5, %v10220_v55  ;;  %v2820_v45 = vadd.f32 %v2819_v39, %v10169_v51  ;;  %5028 = vmatmul.mubr.bf16.gmra.mxu0 %v10264_v53  ;;  %v3355_v54 = vadd.f32 1.0, %v8145_v62  ;;  %8158 = verf.f32 %v3176_v56 }
 0x2cd   : > { %v3179_v48 = vmul.f32 0.70710677, %v10301_v11  ;;  %v10314_v37 = vadd.f32 %v2968_v21, %v2816_v59  ;;  %5223 = vmatprep.mubr.bf16.mxu0 %v11809_v58  ;;  %v2821_v30 = vpop.f32.mrf.mxu0  ;;  %v3352_v46 = vadd.f32 1.0, %v8143_v2  ;;  %v3068_v5 = vmul.f32 0.5, %v10228_v26 }
 0x2ce   : > { %v2974_v15 = vpop.f32.mrf.mxu1  ;;  %v8147_v0 = vpop.eup %8146  ;;  %v10318_v47 = vadd.f32 %v2972_v29, %v2820_v45  ;;  %v2822_v51 = vadd.f32 %v2821_v30, %v10177_v60  ;;  %v3447_v55 = vmul.f32 %v3351_v28, %v3063_v49  ;;  %v3451_v20 = vmul.f32 %v3355_v54, %v3067_v7  ;;  %v7918_v45 = vld [vmem:[%s8834_s0 + $0x160] ss:$24 sps:$4 sm:$0xff]  }
 0x2cf   : > { %v3356_v24 = vadd.f32 1.0, %v8147_v0  ;;  %8160 = verf.f32 %v3179_v48  ;;  %v2823_v50 = vpop.f32.mrf.mxu0  ;;  %v8149_v43 = vpop.eup %8148  ;;  %v3064_v56 = vmul.f32 0.5, %v10198_v4  ;;  %v3071_v59 = vmul.f32 0.5, %v10232_v42  ;;  %v7923_v48 = vld [vmem:[%s8834_s0 + $0x134] ss:$24 sps:$4 sm:$0xff]  }
 0x2d0   : > { %v2976_v21 = vpop.f32.mrf.mxu1  ;;  %v3180_v2 = vmul.f32 0.70710677, %v10314_v37  ;;  %v3183_v26 = vmul.f32 0.70710677, %v10318_v47  ;;  %v10325_v29 = vpack.c.bf16 %v3451_v20, %v3447_v55  ;;  %v10327_v28 = vadd.f32 %v2974_v15, %v2822_v51 }
 0x2d1   : > { %v8151_v39 = vpop.eup %8150  ;;  %v3452_v60 = vmul.f32 %v3356_v24, %v3068_v5  ;;  %v2824_v62 = vadd.f32 %v2823_v50, %v10181_v13  ;;  %v2825_v49 = vpop.f32.mrf.mxu0  ;;  %v3448_v54 = vmul.f32 %v3352_v46, %v3064_v56  ;;  %v3072_v4 = vmul.f32 0.5, %v10241_v22  ;;  %v11810_v46 = vld [vmem:[#allocation50_spill] sm:$0xff] }
 0x2d2   : > { %v2978_v7 = vpop.f32.mrf.mxu1  ;;  %8162 = verf.f32 %v3180_v2  ;;  %v2826_v42 = vadd.f32 %v2825_v49, %v10190_v8  ;;  %v3359_v30 = vadd.f32 1.0, %v8149_v43  ;;  %v3184_v0 = vmul.f32 0.70710677, %v10327_v28  ;;  %v7900_v8 = vld [vmem:[%s8834_s0 + $0x458] ss:$24 sps:$4 sm:$0xff]  }
 0x2d3   : > { %8164 = verf.f32 %v3183_v26  ;;  %v10335_v5 = vadd.f32 %v2976_v21, %v2824_v62  ;;  %v2829_v15 = vpop.f32.mrf.mxu0  ;;  %v3360_v55 = vadd.f32 1.0, %v8151_v39  ;;  %v10341_v24 = vpack.c.bf16 %v3452_v60, %v3448_v54  ;;  %v11811_v56 = vld [vmem:[#allocation54_spill] sm:$0xff]  ;;  %v7905_v39 = vld [vmem:[%s8834_s0 + $0x42c] ss:$24 sps:$4 sm:$0xff]  }
 0x2d4   : > { %v2982_v13 = vpop.f32.mrf.mxu1  ;;  %v8153_v51 = vpop.eup %8152  ;;  %v10337_v20 = vadd.f32 %v2978_v7, %v2826_v42  ;;  %v2830_v22 = vadd.f32 %v2829_v15, %v10194_v27  ;;  %5224 = vmatmul.mubr.bf16.vlgmr.msra.gmra.mxu0 %v11810_v46  ;;  %v3075_v50 = vmul.f32 0.5, %v10250_v6  ;;  %8166 = verf.f32 %v3184_v0  ;;  %v7921_v7 = vld [vmem:[%s8834_s0 + $0x130] ss:$24 sps:$4 sm:$0xff]  }
 0x2d5   : > { %v3363_v43 = vadd.f32 1.0, %v8153_v51  ;;  %v3187_v21 = vmul.f32 0.70710677, %v10335_v5  ;;  %5233 = vmatprep.mubr.bf16.mxu0 %v11811_v56  ;;  %v2831_v2 = vpop.f32.mrf.mxu0  ;;  %5498 = vmatpush1.bf16.msra.mxu0 %v7918_v45  ;;  %v3076_v27 = vmul.f32 0.5, %v10258_v19  ;;  %v3455_v42 = vmul.f32 %v3359_v30, %v3071_v59  ;;  %v7929_v51 = vld [vmem:[%s8834_s0 + $0x104] ss:$24 sps:$4 sm:$0xff]  }
 0x2d6   : > { %v2984_v26 = vpop.f32.mrf.mxu1  ;;  %v8155_v62 = vpop.eup %8154  ;;  %v3188_v60 = vmul.f32 0.70710677, %v10337_v20  ;;  %v10350_v49 = vadd.f32 %v2982_v13, %v2830_v22  ;;  %5070 = vmatprep.mubr.bf16.mxu1 %v10341_v24  ;;  %v2832_v6 = vadd.f32 %v2831_v2, %v10205_v35  ;;  %5499 = vmatprep.subr.bf16.mxu0 %v7923_v48  ;;  %v10359_v13 = vadd.f32 %v9915_v1, %v9968_v3  ;;  %v7903_v59 = vld [vmem:[%s8834_s0 + $0x428] ss:$24 sps:$4 sm:$0xff]  }
 0x2d7   : > { %v8157_v54 = vpop.eup %8156  ;;  %v3459_v0 = vmul.f32 %v3363_v43, %v3075_v50  ;;  %v3364_v15 = vadd.f32 1.0, %v8155_v62  ;;  %8168 = verf.f32 %v3187_v21  ;;  %5071 = vmatmul.mubr.bf16.vlgmr.msra.gmra.mxu1 %v10325_v29  ;;  %v2833_v45 = vpop.f32.mrf.mxu0  ;;  %v3456_v22 = vmul.f32 %v3360_v55, %v3072_v4 }
 0x2d8   : > { %v2986_v19 = vpop.f32.mrf.mxu1  ;;  %8170 = verf.f32 %v3188_v60  ;;  %v3191_v35 = vmul.f32 0.70710677, %v10350_v49  ;;  %5345 = vmatpush1.bf16.msra.mxu1 %v7900_v8  ;;  %v10365_v50 = vadd.f32 %v2984_v26, %v2832_v6  ;;  %v2834_v43 = vadd.f32 %v2833_v45, %v10209_v41  ;;  %v7908_v26 = vld [vmem:[%s8834_s0 + $0x3fc] ss:$24 sps:$4 sm:$0xff]  }
 0x2d9   : > { %v10363_v48 = vpack.c.bf16 %v3459_v0, %v3455_v42  ;;  %v3460_v30 = vmul.f32 %v3364_v15, %v3076_v27  ;;  %v2835_v21 = vpop.f32.mrf.mxu0  ;;  %5346 = vmatprep.subr.bf16.mxu1 %v7905_v39  ;;  %v8159_v1 = vpop.eup %8158  ;;  %v10370_v4 = vadd.f32 %v9926_v52, %v9964_v17  ;;  %v10374_v55 = vadd.f32 %v9933_v12, %v9968_v3  ;;  %v7927_v27 = vld [vmem:[%s8834_s0 + $0x100] ss:$24 sps:$4 sm:$0xff]   ;;  %v7935_v12 = vld [vmem:[%s8834_s0 + $0xd4] ss:$24 sps:$4 sm:$0xff]  }
 0x2da   : > { %v2988_v2 = vpop.f32.mrf.mxu1  ;;  %v3367_v8 = vadd.f32 1.0, %v8157_v54  ;;  %v2836_v62 = vadd.f32 %v2835_v21, %v10213_v25  ;;  %5500 = vmatpush1.bf16.msra.mxu0 %v7921_v7  ;;  %8172 = verf.f32 %v3191_v35  ;;  %v3192_v41 = vmul.f32 0.70710677, %v10365_v50  ;;  %v11813_v54 = vld [vmem:[#allocation62_spill] sm:$0xff]  ;;  %v11814_v45 = vld [vmem:[#allocation53_spill] sm:$0xff]  ;;  %v11815_v21 = vld [vmem:[#allocation56_spill] sm:$0xff] }
 0x2db   : > { %11812 = vst [vmem:[#allocation45_spill] sm:$0xff] %v10363_v48  ;;  %v10380_v39 = vadd.f32 %v2986_v19, %v2834_v43  ;;  %v2839_v60 = vpop.f32.mrf.mxu0  ;;  %v10382_v6 = vpack.c.bf16 %v3460_v30, %v3456_v22  ;;  %5501 = vmatprep.subr.bf16.mxu0 %v7929_v51  ;;  %v10387_v25 = vadd.f32 %v11813_v54, %v9964_v17  ;;  %v3079_v7 = vmul.f32 0.5, %v10266_v23  ;;  %v7906_v19 = vld [vmem:[%s8834_s0 + $0x3f8] ss:$24 sps:$4 sm:$0xff]   ;;  %v7911_v22 = vld [vmem:[%s8834_s0 + $0x3cc] ss:$24 sps:$4 sm:$0xff]  }
 0x2dc   : > { %v2992_v52 = vpop.f32.mrf.mxu1  ;;  %v8161_v42 = vpop.eup %8160  ;;  %v10390_v0 = vadd.f32 %v2988_v2, %v2836_v62  ;;  %v2840_v15 = vadd.f32 %v2839_v60, %v10238_v18  ;;  %5234 = vmatmul.mubr.bf16.gmra.mxu0 %v11814_v45  ;;  %5347 = vmatpush1.bf16.msra.mxu1 %v7903_v59  ;;  %v3368_v35 = vadd.f32 1.0, %v8159_v1  ;;  %v3083_v51 = vmul.f32 0.5, %v10301_v11  ;;  %v7933_v11 = vld [vmem:[%s8834_s0 + $0xd0] ss:$24 sps:$4 sm:$0xff]   ;;  %v7938_v45 = vld [vmem:[%s8834_s0 + $0xa4] ss:$24 sps:$4 sm:$0xff]  }
 0x2dd   : > { %v3371_v30 = vadd.f32 1.0, %v8161_v42  ;;  %v3195_v43 = vmul.f32 0.70710677, %v10380_v39  ;;  %5080 = vmatprep.mubr.bf16.mxu1 %v10382_v6  ;;  %5243 = vmatprep.mubr.bf16.mxu0 %v11815_v21  ;;  %v2841_v23 = vpop.f32.mrf.mxu0  ;;  %8174 = verf.f32 %v3192_v41  ;;  %v3463_v60 = vmul.f32 %v3367_v8, %v3079_v7 }
 0x2de   : > { %v2994_v2 = vpop.f32.mrf.mxu1  ;;  %v3196_v18 = vmul.f32 0.70710677, %v10390_v0  ;;  %v10401_v59 = vadd.f32 %v2992_v52, %v2840_v15  ;;  %v2842_v62 = vadd.f32 %v2841_v23, %v10262_v57  ;;  %5348 = vmatprep.subr.bf16.mxu1 %v7908_v26  ;;  %5502 = vmatpush1.bf16.msra.mxu0 %v7927_v27  ;;  %v3080_v42 = vmul.f32 0.5, %v10275_v33  ;;  %v11816_v33 = vld [vmem:[#allocation63_spill] sm:$0xff] }
 0x2df   : > { %v8163_v1 = vpop.eup %8162  ;;  %v3467_v54 = vmul.f32 %v3371_v30, %v3083_v51  ;;  %8176 = verf.f32 %v3195_v43  ;;  %5081 = vmatmul.mubr.bf16.gmra.mxu1 %v10363_v48  ;;  %v2843_v21 = vpop.f32.mrf.mxu0  ;;  %5503 = vmatprep.subr.bf16.mxu0 %v7935_v12  ;;  %v3084_v15 = vmul.f32 0.5, %v10314_v37  ;;  %v10412_v8 = vadd.f32 %v11816_v33, %v9968_v3  ;;  %v7909_v37 = vld [vmem:[%s8834_s0 + $0x3c8] ss:$24 sps:$4 sm:$0xff]   ;;  %v7914_v48 = vld [vmem:[%s8834_s0 + $0x39c] ss:$24 sps:$4 sm:$0xff]  }
 0x2e0   : > { %v2996_v41 = vpop.f32.mrf.mxu1  ;;  %v8165_v52 = vpop.eup %8164  ;;  %v3372_v57 = vadd.f32 1.0, %v8163_v1  ;;  %8178 = verf.f32 %v3196_v18  ;;  %v3199_v26 = vmul.f32 0.70710677, %v10401_v59  ;;  %5349 = vmatpush1.bf16.msra.mxu1 %v7906_v19  ;;  %v10416_v7 = vadd.f32 %v2994_v2, %v2842_v62  ;;  %v11819_v33 = vld [vmem:[#allocation59_spill] sm:$0xff] }
 0x2e1   : > { %v10414_v27 = vpack.c.bf16 %v3467_v54, %v3463_v60  ;;  %v2844_v12 = vadd.f32 %v2843_v21, %v10272_v36  ;;  %v2845_v51 = vpop.f32.mrf.mxu0  ;;  %5350 = vmatprep.subr.bf16.mxu1 %v7911_v22  ;;  %v8167_v43 = vpop.eup %8166  ;;  %v3464_v23 = vmul.f32 %v3368_v35, %v3080_v42  ;;  %v3375_v1 = vadd.f32 1.0, %v8165_v52  ;;  %v7936_v54 = vld [vmem:[%s8834_s0 + $0xa0] ss:$24 sps:$4 sm:$0xff]  }
 0x2e2   : > { %v2998_v30 = vpop.f32.mrf.mxu1  ;;  %v3468_v18 = vmul.f32 %v3372_v57, %v3084_v15  ;;  %v2846_v19 = vadd.f32 %v2845_v51, %v10280_v32  ;;  %5504 = vmatpush1.bf16.msra.mxu0 %v7933_v11  ;;  %v3087_v60 = vmul.f32 0.5, %v10318_v47  ;;  %v3088_v2 = vmul.f32 0.5, %v10327_v28  ;;  %v11818_v11 = vld [vmem:[#allocation55_spill] sm:$0xff]  ;;  %v7944_v28 = vld [vmem:[%s8834_s0 + $0x74] ss:$24 sps:$4 sm:$0xff]  }
 0x2e3   : > { %11817 = vst [vmem:[#allocation33_spill] sm:$0xff] %v10414_v27  ;;  %8180 = verf.f32 %v3199_v26  ;;  %v3200_v36 = vmul.f32 0.70710677, %v10416_v7  ;;  %v2849_v21 = vpop.f32.mrf.mxu0  ;;  %5505 = vmatprep.subr.bf16.mxu0 %v7938_v45  ;;  %v10426_v35 = vadd.f32 %v2996_v41, %v2844_v12  ;;  %v3376_v15 = vadd.f32 1.0, %v8167_v43  ;;  %v7912_v51 = vld [vmem:[%s8834_s0 + $0x398] ss:$24 sps:$4 sm:$0xff]  }
 0x2e4   : > { %v3002_v62 = vpop.f32.mrf.mxu1  ;;  %v8169_v22 = vpop.eup %8168  ;;  %v10428_v42 = vadd.f32 %v2998_v30, %v2846_v19  ;;  %v2850_v32 = vadd.f32 %v2849_v21, %v10284_v44  ;;  %5244 = vmatmul.mubr.bf16.gmra.mxu0 %v11818_v11  ;;  %v10432_v47 = vpack.c.bf16 %v3468_v18, %v3464_v23  ;;  %v3091_v57 = vmul.f32 0.5, %v10335_v5  ;;  %5351 = vmatpush1.bf16.msra.mxu1 %v7909_v37  ;;  %v7917_v43 = vld [vmem:[%s8834_s0 + $0x36c] ss:$24 sps:$4 sm:$0xff]  }
 0x2e5   : > { %v8171_v52 = vpop.eup %8170  ;;  %v3379_v26 = vadd.f32 1.0, %v8169_v22  ;;  %v3092_v45 = vmul.f32 0.5, %v10337_v20  ;;  %5253 = vmatprep.mubr.bf16.mxu0 %v11819_v33  ;;  %v2851_v41 = vpop.f32.mrf.mxu0  ;;  %v3471_v44 = vmul.f32 %v3375_v1, %v3087_v60  ;;  %8182 = verf.f32 %v3200_v36  ;;  %5352 = vmatprep.subr.bf16.mxu1 %v7914_v48  ;;  %v7942_v60 = vld [vmem:[%s8834_s0 + $0x70] ss:$24 sps:$4 sm:$0xff]  }
 0x2e6   : > { %v3004_v12 = vpop.f32.mrf.mxu1  ;;  %v3380_v30 = vadd.f32 1.0, %v8171_v52  ;;  %v3203_v23 = vmul.f32 0.70710677, %v10426_v35  ;;  %5090 = vmatprep.mubr.bf16.mxu1 %v10432_v47  ;;  %v3204_v20 = vmul.f32 0.70710677, %v10428_v42  ;;  %v10443_v18 = vadd.f32 %v3002_v62, %v2850_v32  ;;  %5506 = vmatpush1.bf16.msra.mxu0 %v7936_v54  ;;  %v11820_v21 = vld [vmem:[#allocation65_spill] sm:$0xff] }
 0x2e7   : > { %v3475_v5 = vmul.f32 %v3379_v26, %v3091_v57  ;;  %v2852_v19 = vadd.f32 %v2851_v41, %v10290_v38  ;;  %5091 = vmatmul.mubr.bf16.gmra.mxu1 %v10414_v27  ;;  %v2853_v37 = vpop.f32.mrf.mxu0  ;;  %v8173_v36 = vpop.eup %8172  ;;  %v10450_v22 = vadd.f32 %v11820_v21, %v9964_v17  ;;  %5507 = vmatprep.subr.bf16.mxu0 %v7944_v28  ;;  %v7950_v62 = vld [vmem:[%s8834_s0 + $0x44] ss:$24 sps:$4 sm:$0xff]   ;;  %v7915_v28 = vld [vmem:[%s8834_s0 + $0x368] ss:$24 sps:$4 sm:$0xff]  }
 0x2e8   : > { %v3006_v1 = vpop.f32.mrf.mxu1  ;;  %v3476_v48 = vmul.f32 %v3380_v30, %v3092_v45  ;;  %8184 = verf.f32 %v3203_v23  ;;  %v2854_v52 = vadd.f32 %v2853_v37, %v10294_v61  ;;  %v3472_v32 = vmul.f32 %v3376_v15, %v3088_v2  ;;  %5353 = vmatpush1.bf16.msra.mxu1 %v7912_v51  ;;  %v11822_v41 = vld [vmem:[#allocation66_spill] sm:$0xff] }
 0x2e9   : > { %v10454_v38 = vpack.c.bf16 %v3475_v5, %v3471_v44  ;;  %8186 = verf.f32 %v3204_v20  ;;  %v3207_v57 = vmul.f32 0.70710677, %v10443_v18  ;;  %v2855_v54 = vpop.f32.mrf.mxu0  ;;  %v10459_v45 = vadd.f32 %v11822_v41, %v9968_v3  ;;  %5354 = vmatprep.subr.bf16.mxu1 %v7917_v43  ;;  %v11823_v44 = vld [vmem:[#allocation68_spill] sm:$0xff]  ;;  %v7926_v21 = vld [vmem:[%s8834_s0 + $0x33c] ss:$24 sps:$4 sm:$0xff]  }
 0x2ea   : > { %v3008_v26 = vpop.f32.mrf.mxu1  ;;  %v10461_v30 = vadd.f32 %v3004_v12, %v2852_v19  ;;  %v10463_v61 = vadd.f32 %v3006_v1, %v2854_v52  ;;  %v2856_v2 = vadd.f32 %v2855_v54, %v10299_v31  ;;  %v8175_v15 = vpop.eup %8174  ;;  %v10469_v23 = vadd.f32 %v11823_v44, %v9964_v17  ;;  %5508 = vmatpush1.bf16.msra.mxu0 %v7942_v60  ;;  %v7948_v12 = vld [vmem:[%s8834_s0 + $0x40] ss:$24 sps:$4 sm:$0xff]   ;;  %v11825_v54 = vld [vmem:[#allocation57_spill] sm:$0xff] }
 0x2eb   : > { %11821 = vst [vmem:[#allocation46_spill] sm:$0xff] %v10454_v38  ;;  %v3383_v5 = vadd.f32 1.0, %v8173_v36  ;;  %8188 = verf.f32 %v3207_v57  ;;  %v2859_v51 = vpop.f32.mrf.mxu0  ;;  %v10471_v37 = vpack.c.bf16 %v3476_v48, %v3472_v32  ;;  %v3095_v31 = vmul.f32 0.5, %v10350_v49  ;;  %5509 = vmatprep.subr.bf16.mxu0 %v7950_v62  ;;  %v11826_v49 = vld [vmem:[#allocation61_spill] sm:$0xff] }
 0x2ec   : > { %v3012_v20 = vpop.f32.mrf.mxu1  ;;  %v8177_v19 = vpop.eup %8176  ;;  %v3099_v43 = vmul.f32 0.5, %v10380_v39  ;;  %v3208_v1 = vmul.f32 0.70710677, %v10461_v30  ;;  %v3211_v52 = vmul.f32 0.70710677, %v10463_v61  ;;  %5254 = vmatmul.mubr.bf16.gmra.mxu0 %v11825_v54  ;;  %v3100_v32 = vmul.f32 0.5, %v10390_v0  ;;  %5355 = vmatpush1.bf16.msra.mxu1 %v7915_v28 }
 0x2ed   : > { %11824 = vst [vmem:[#allocation47_spill] sm:$0xff] %v10471_v37  ;;  %v8179_v36 = vpop.eup %8178  ;;  %v3387_v48 = vadd.f32 1.0, %v8177_v19  ;;  %v10481_v60 = vadd.f32 %v3008_v26, %v2856_v2  ;;  %v2860_v57 = vadd.f32 %v2859_v51, %v10307_v63  ;;  %5100 = vmatprep.mubr.bf16.mxu1 %v10471_v37  ;;  %5263 = vmatprep.mubr.bf16.mxu0 %v11826_v49  ;;  %v2861_v39 = vpop.f32.mrf.mxu0  ;;  %v7953_v44 = vld [vmem:[%s8834_s0 + $0x14] ss:$24 sps:$4 sm:$0xff]   ;;  %v3384_v27 = vadd.f32 1.0, %v8175_v15 }
 0x2ee   : > { %v3014_v41 = vpop.f32.mrf.mxu1  ;;  %v3388_v54 = vadd.f32 1.0, %v8179_v36  ;;  %8190 = verf.f32 %v3208_v1  ;;  %v2862_v62 = vadd.f32 %v2861_v39, %v10359_v13  ;;  %v7924_v19 = vld [vmem:[%s8834_s0 + $0x338] ss:$24 sps:$4 sm:$0xff]   ;;  %v3479_v0 = vmul.f32 %v3383_v5, %v3095_v31  ;;  %5356 = vmatprep.subr.bf16.mxu1 %v7926_v21  ;;  %v7932_v49 = vld [vmem:[%s8834_s0 + $0x30c] ss:$24 sps:$4 sm:$0xff]   ;;  %5510 = vmatpush1.bf16.msra.mxu0 %v7948_v12 }
 0x2ef   : > { %v3483_v26 = vmul.f32 %v3387_v48, %v3099_v43  ;;  %8192 = verf.f32 %v3211_v52  ;;  %v3212_v63 = vmul.f32 0.70710677, %v10481_v60  ;;  %5101 = vmatmul.mubr.bf16.gmra.mxu1 %v10454_v38  ;;  %v2863_v2 = vpop.f32.mrf.mxu0  ;;  %v3096_v15 = vmul.f32 0.5, %v10365_v50  ;;  %v11827_v28 = vld [vmem:[#allocation69_spill] sm:$0xff]  ;;  %5511 = vmatprep.subr.bf16.mxu0 %v7953_v44  ;;  %v11829_v50 = vld [vmem:[#allocation71_spill] sm:$0xff] }
 0x2f0   : > { %v3016_v51 = vpop.f32.mrf.mxu1  ;;  %v8181_v37 = vpop.eup %8180  ;;  %v3484_v1 = vmul.f32 %v3388_v54, %v3100_v32  ;;  %v10493_v36 = vadd.f32 %v3012_v20, %v2860_v57  ;;  %v10495_v13 = vadd.f32 %v3014_v41, %v2862_v62  ;;  %v10499_v5 = vadd.f32 %v11827_v28, %v9968_v3  ;;  %v7951_v48 = vld [vmem:[%s8834_s0 + $0x10] ss:$24 sps:$4 sm:$0xff]   ;;  %v11830_v12 = vld [vmem:[#allocation35_spill] sm:$0xff]  ;;  %5357 = vmatpush1.bf16.msra.mxu1 %v7924_v19 }
 0x2f1   : > { %v10501_v31 = vpack.c.bf16 %v3483_v26, %v3479_v0  ;;  %8194 = verf.f32 %v3212_v63  ;;  %v2864_v21 = vadd.f32 %v2863_v2, %v10370_v4  ;;  %v2865_v43 = vpop.f32.mrf.mxu0  ;;  %v10507_v20 = vadd.f32 %v11829_v50, %v9964_v17  ;;  %v7930_v39 = vld [vmem:[%s8834_s0 + $0x308] ss:$24 sps:$4 sm:$0xff]   ;;  %v11831_v41 = vld [vmem:[#allocation37_spill] sm:$0xff]  ;;  %5358 = vmatprep.subr.bf16.mxu1 %v7932_v49 }
 0x2f2   : > { %v3018_v52 = vpop.f32.mrf.mxu1  ;;  %v10511_v54 = vadd.f32 %v11830_v12, %v9968_v3  ;;  %v3480_v32 = vmul.f32 %v3384_v27, %v3096_v15  ;;  %v3215_v57 = vmul.f32 0.70710677, %v10493_v36  ;;  %v8183_v4 = vpop.eup %8182  ;;  %v10517_v62 = vadd.f32 %v11831_v41, %v9964_v17  ;;  %v7941_v27 = vld [vmem:[%s8834_s0 + $0x5dc] ss:$24 sps:$4 sm:$0xff]   ;;  %v11832_v28 = vld [vmem:[#allocation60_spill] sm:$0xff]  ;;  %5512 = vmatpush1.bf16.msra.mxu0 %v7951_v48 }
 0x2f3   : > { %11828 = vst [vmem:[#allocation34_spill] sm:$0xff] %v10501_v31  ;;  %v3216_v44 = vmul.f32 0.70710677, %v10495_v13  ;;  %v10520_v0 = vadd.f32 %v3016_v51, %v2864_v21  ;;  %v2866_v26 = vadd.f32 %v2865_v43, %v10374_v55  ;;  %v2869_v63 = vpop.f32.mrf.mxu0  ;;  %v3391_v15 = vadd.f32 1.0, %v8181_v37  ;;  %v7959_v12 = vld [vmem:[%s8834_s0 + $0x2e4] ss:$24 sps:$4 sm:$0xff]  }
 0x2f4   : > { %v3022_v2 = vpop.f32.mrf.mxu1  ;;  %8196 = verf.f32 %v3215_v57  ;;  %v2870_v19 = vadd.f32 %v2869_v63, %v10387_v25  ;;  %5264 = vmatmul.mubr.bf16.gmra.mxu0 %v11832_v28  ;;  %v10526_v50 = vpack.c.bf16 %v3484_v1, %v3480_v32  ;;  %v3103_v51 = vmul.f32 0.5, %v10401_v59  ;;  %v11834_v21 = vld [vmem:[#allocation67_spill] sm:$0xff]  ;;  %5359 = vmatpush1.bf16.msra.mxu1 %v7930_v39 }
 0x2f5   : > { %v8185_v41 = vpop.eup %8184  ;;  %v3107_v55 = vmul.f32 0.5, %v10426_v35  ;;  %8198 = verf.f32 %v3216_v44  ;;  %v3219_v49 = vmul.f32 0.70710677, %v10520_v0  ;;  %5273 = vmatprep.mubr.bf16.mxu0 %v11834_v21  ;;  %v2871_v37 = vpop.f32.mrf.mxu0  ;;  %v7957_v25 = vld [vmem:[%s8834_s0 + $0x2e0] ss:$24 sps:$4 sm:$0xff]   ;;  %v10534_v32 = vadd.f32 %v3018_v52, %v2866_v26  ;;  %5360 = vmatprep.subr.bf16.mxu1 %v7941_v27 }
 0x2f6   : > { %11833 = vst [vmem:[#allocation48_spill] sm:$0xff] %v10526_v50  ;;  %v3024_v43 = vpop.f32.mrf.mxu1  ;;  %v8187_v57 = vpop.eup %8186  ;;  %v3395_v1 = vadd.f32 1.0, %v8185_v41  ;;  %v10536_v63 = vadd.f32 %v3022_v2, %v2870_v19  ;;  %5110 = vmatprep.mubr.bf16.mxu1 %v10526_v50  ;;  %v2872_v59 = vadd.f32 %v2871_v37, %v10412_v8  ;;  %v7939_v35 = vld [vmem:[%s8834_s0 + $0x5d8] ss:$24 sps:$4 sm:$0xff]   ;;  %v7965_v44 = vld [vmem:[%s8834_s0 + $0x2b4] ss:$24 sps:$4 sm:$0xff]   ;;  %v3487_v2 = vmul.f32 %v3391_v15, %v3103_v51 }
 0x2f7   : > { %v3392_v28 = vadd.f32 1.0, %v8183_v4  ;;  %v3108_v21 = vmul.f32 0.5, %v10428_v42  ;;  %v3396_v38 = vadd.f32 1.0, %v8187_v57  ;;  %8200 = verf.f32 %v3219_v49  ;;  %5111 = vmatmul.mubr.bf16.gmra.mxu1 %v10501_v31  ;;  %v2873_v48 = vpop.f32.mrf.mxu0  ;;  %v7947_v52 = vld [vmem:[%s8834_s0 + $0x5ac] ss:$24 sps:$4 sm:$0xff]   ;;  %5513 = vmatprep.subr.bf16.mxu0 %v7959_v12 }
 0x2f8   : > { %v3026_v41 = vpop.f32.mrf.mxu1  ;;  %v8189_v26 = vpop.eup %8188  ;;  %v3104_v19 = vmul.f32 0.5, %v10416_v7  ;;  %v3491_v8 = vmul.f32 %v3395_v1, %v3107_v55  ;;  %v3220_v39 = vmul.f32 0.70710677, %v10534_v32  ;;  %v3223_v49 = vmul.f32 0.70710677, %v10536_v63  ;;  %5514 = vmatpush2.bf16.msra.mxu0 %v7957_v25  ;;  %5361 = vmatpush2.bf16.msra.mxu1 %v7939_v35 }
 0x2f9   : > { %v3492_v42 = vmul.f32 %v3396_v38, %v3108_v21  ;;  %v3399_v4 = vadd.f32 1.0, %v8189_v26  ;;  %v10548_v37 = vadd.f32 %v3024_v43, %v2872_v59  ;;  %v2875_v57 = vpop.f32.mrf.mxu0  ;;  %v7963_v27 = vld [vmem:[%s8834_s0 + $0x2b0] ss:$24 sps:$4 sm:$0xff]   ;;  %v2874_v7 = vadd.f32 %v2873_v48, %v10450_v22  ;;  %5515 = vmatprep.subr.bf16.mxu0 %v7965_v44  ;;  %v7968_v38 = vld [vmem:[%s8834_s0 + $0x284] ss:$24 sps:$4 sm:$0xff]   ;;  %5362 = vmatprep.subr.bf16.mxu1 %v7947_v52 }
 0x2fa   : > { %v3028_v31 = vpop.f32.mrf.mxu1  ;;  %v10551_v50 = vpack.c.bf16 %v3491_v8, %v3487_v2  ;;  %8202 = verf.f32 %v3220_v39  ;;  %v2876_v15 = vadd.f32 %v2875_v57, %v10459_v45  ;;  %v7945_v12 = vld [vmem:[%s8834_s0 + $0x5a8] ss:$24 sps:$4 sm:$0xff]   ;;  %v3488_v55 = vmul.f32 %v3392_v28, %v3104_v19  ;;  %v7956_v59 = vld [vmem:[%s8834_s0 + $0x57c] ss:$24 sps:$4 sm:$0xff]   ;;  %v7954_v39 = vld [vmem:[%s8834_s0 + $0x578] ss:$24 sps:$4 sm:$0xff]  }
 0x2fb   : > { %v8191_v51 = vpop.eup %8190  ;;  %v3111_v21 = vmul.f32 0.5, %v10443_v18  ;;  %8204 = verf.f32 %v3223_v49  ;;  %v3224_v43 = vmul.f32 0.70710677, %v10548_v37  ;;  %v2879_v25 = vpop.f32.mrf.mxu0  ;;  %v3115_v45 = vmul.f32 0.5, %v10463_v61  ;;  %v11836_v48 = vld [vmem:[#allocation64_spill] sm:$0xff]  ;;  %v11837_v52 = vld [vmem:[#allocation29_spill] sm:$0xff] }
 0x2fc   : > { %11835 = vst [vmem:[#allocation36_spill] sm:$0xff] %v10551_v50  ;;  %v3032_v1 = vpop.f32.mrf.mxu1  ;;  %v8193_v22 = vpop.eup %8192  ;;  %v10561_v35 = vadd.f32 %v3026_v41, %v2874_v7  ;;  %v10563_v44 = vadd.f32 %v3028_v31, %v2876_v15  ;;  %v2880_v28 = vadd.f32 %v2879_v25, %v10469_v23  ;;  %5274 = vmatmul.mubr.bf16.gmra.mxu0 %v11836_v48  ;;  %v3400_v18 = vadd.f32 1.0, %v8191_v51  ;;  %v7966_v61 = vld [vmem:[%s8834_s0 + $0x280] ss:$24 sps:$4 sm:$0xff]  }
 0x2fd   : > { %v3403_v26 = vadd.f32 1.0, %v8193_v22  ;;  %8206 = verf.f32 %v3224_v43  ;;  %v10567_v2 = vpack.c.bf16 %v3492_v42, %v3488_v55  ;;  %5283 = vmatprep.mubr.bf16.mxu0 %v11837_v52  ;;  %v2881_v19 = vpop.f32.mrf.mxu0  ;;  %5516 = vmatpush2.bf16.msra.mxu0 %v7963_v27  ;;  %v3495_v31 = vmul.f32 %v3399_v4, %v3111_v21  ;;  %v7974_v42 = vld [vmem:[%s8834_s0 + $0x254] ss:$24 sps:$4 sm:$0xff]  }
 0x2fe   : > { %v3034_v8 = vpop.f32.mrf.mxu1  ;;  %v8195_v41 = vpop.eup %8194  ;;  %v3112_v23 = vmul.f32 0.5, %v10461_v30  ;;  %v3116_v49 = vmul.f32 0.5, %v10481_v60  ;;  %v3227_v57 = vmul.f32 0.70710677, %v10561_v35  ;;  %5363 = vmatpush2.bf16.msra.mxu1 %v7945_v12  ;;  %5517 = vmatprep.subr.bf16.mxu0 %v7968_v38  ;;  %v3228_v51 = vmul.f32 0.70710677, %v10563_v44 }
 0x2ff   : > { %v3499_v7 = vmul.f32 %v3403_v26, %v3115_v45  ;;  %v3404_v15 = vadd.f32 1.0, %v8195_v41  ;;  %v10577_v55 = vadd.f32 %v3032_v1, %v2880_v28  ;;  %5120 = vmatprep.mubr.bf16.mxu1 %v10567_v2  ;;  %v2883_v27 = vpop.f32.mrf.mxu0  ;;  %5364 = vmatprep.subr.bf16.mxu1 %v7956_v59  ;;  %v7962_v4 = vld [vmem:[%s8834_s0 + $0x54c] ss:$24 sps:$4 sm:$0xff]   ;;  %v11838_v30 = vld [vmem:[#allocation38_spill] sm:$0xff]  ;;  %v2882_v12 = vadd.f32 %v2881_v19, %v10499_v5 }
 0x300   : > { %v3036_v43 = vpop.f32.mrf.mxu1  ;;  %v2739_v60 = vadd.f32 %v11838_v30, %v9968_v3  ;;  %8208 = verf.f32 %v3227_v57  ;;  %5121 = vmatmul.mubr.bf16.gmra.mxu1 %v10551_v50  ;;  %v2884_v38 = vadd.f32 %v2883_v27, %v10507_v20  ;;  %v3496_v25 = vmul.f32 %v3400_v18, %v3112_v23  ;;  %v11839_v26 = vld [vmem:[#allocation30_spill] sm:$0xff]  ;;  %v7960_v18 = vld [vmem:[%s8834_s0 + $0x548] ss:$24 sps:$4 sm:$0xff]  }
 0x301   : > { %v8197_v21 = vpop.eup %8196  ;;  %v10586_v1 = vpack.c.bf16 %v3499_v7, %v3495_v31  ;;  %v3500_v22 = vmul.f32 %v3404_v15, %v3116_v49  ;;  %8210 = verf.f32 %v3228_v51  ;;  %v2885_v59 = vpop.f32.mrf.mxu0  ;;  %5518 = vmatpush2.bf16.msra.mxu0 %v7966_v61  ;;  %v2741_v5 = vadd.f32 %v11839_v26, %v9964_v17  ;;  %v7972_v31 = vld [vmem:[%s8834_s0 + $0x250] ss:$24 sps:$4 sm:$0xff]   ;;  %v7980_v27 = vld [vmem:[%s8834_s0 + $0x224] ss:$24 sps:$4 sm:$0xff]  }
 0x302   : > { %v3038_v45 = vpop.f32.mrf.mxu1  ;;  %v8199_v28 = vpop.eup %8198  ;;  %v3231_v19 = vmul.f32 0.70710677, %v10577_v55  ;;  %v10591_v41 = vadd.f32 %v3034_v8, %v2882_v12  ;;  %v10593_v20 = vadd.f32 %v3036_v43, %v2884_v38  ;;  %5365 = vmatpush2.bf16.msra.mxu1 %v7954_v39  ;;  %5519 = vmatprep.subr.bf16.mxu0 %v7974_v42  ;;  %v11840_v23 = vld [vmem:[#allocation40_spill] sm:$0xff]  ;;  %v3407_v61 = vadd.f32 1.0, %v8197_v21  ;;  %v7971_v8 = vld [vmem:[%s8834_s0 + $0x51c] ss:$24 sps:$4 sm:$0xff]  }
 0x303   : > { %v10599_v49 = vadd.f32 %v11840_v23, %v9968_v3  ;;  %v2886_v57 = vadd.f32 %v2885_v59, %v10511_v54  ;;  %v2889_v7 = vpop.f32.mrf.mxu0  ;;  %v10602_v51 = vpack.c.bf16 %v3500_v22, %v3496_v25  ;;  %5366 = vmatprep.subr.bf16.mxu1 %v7962_v4  ;;  %v11842_v39 = vld [vmem:[#allocation41_spill] sm:$0xff]  ;;  %v11843_v42 = vld [vmem:[#allocation42_spill] sm:$0xff]  ;;  %v3119_v4 = vmul.f32 0.5, %v10493_v36  ;;  %v11845_v59 = vld [vmem:[#allocation31_spill] sm:$0xff] }
 0x304   : > { %v3042_v15 = vpop.f32.mrf.mxu1  ;;  %v8201_v43 = vpop.eup %8200  ;;  %v10608_v30 = vadd.f32 %v11842_v39, %v9964_v17  ;;  %v10612_v12 = vadd.f32 %v11843_v42, %v9968_v3  ;;  %8212 = verf.f32 %v3231_v19  ;;  %v3232_v54 = vmul.f32 0.70710677, %v10591_v41  ;;  %v11844_v38 = vld [vmem:[#allocation70_spill] sm:$0xff] }
 0x305   : > { %11841 = vst [vmem:[#allocation49_spill] sm:$0xff] %v10602_v51  ;;  %5284 = vmatmul.mubr.bf16.gmra.mxu0 %v11844_v38  ;;  %v3123_v21 = vmul.f32 0.5, %v10520_v0  ;;  %v3411_v25 = vadd.f32 1.0, %v8201_v43  ;;  %v3235_v22 = vmul.f32 0.70710677, %v10593_v20  ;;  %5130 = vmatprep.mubr.bf16.mxu1 %v10602_v51  ;;  %v2891_v26 = vpop.f32.mrf.mxu0  ;;  %v10621_v19 = vadd.f32 %v3038_v45, %v2886_v57 }
 0x306   : > { %5293 = vmatprep.mubr.bf16.mxu0 %v11845_v59  ;;  %v3044_v23 = vpop.f32.mrf.mxu1  ;;  %8214 = verf.f32 %v3232_v54  ;;  %v2890_v39 = vadd.f32 %v2889_v7, %v10517_v62  ;;  %v2892_v42 = vadd.f32 %v2891_v26, %v2739_v60  ;;  %5367 = vmatpush2.bf16.msra.mxu1 %v7960_v18  ;;  %v7969_v36 = vld [vmem:[%s8834_s0 + $0x518] ss:$24 sps:$4 sm:$0xff]   ;;  %v3503_v38 = vmul.f32 %v3407_v61, %v3119_v4  ;;  %v7977_v54 = vld [vmem:[%s8834_s0 + $0x4ec] ss:$24 sps:$4 sm:$0xff]  }
 0x307   : > { %5520 = vmatpush2.bf16.msra.mxu0 %v7972_v31  ;;  %v7978_v0 = vld [vmem:[%s8834_s0 + $0x220] ss:$24 sps:$4 sm:$0xff]   ;;  %v8203_v43 = vpop.eup %8202  ;;  %v3408_v50 = vadd.f32 1.0, %v8199_v28  ;;  %v3507_v51 = vmul.f32 %v3411_v25, %v3123_v21  ;;  %8216 = verf.f32 %v3235_v22  ;;  %v2893_v59 = vpop.f32.mrf.mxu0  ;;  %5368 = vmatprep.subr.bf16.mxu1 %v7971_v8  ;;  %v7983_v45 = vld [vmem:[%s8834_s0 + $0x1f4] ss:$24 sps:$4 sm:$0xff]   ;;  %v3124_v62 = vmul.f32 0.5, %v10534_v32 }
 0x308   : > { %v3046_v52 = vpop.f32.mrf.mxu1  ;;  %5521 = vmatprep.subr.bf16.mxu0 %v7980_v27  ;;  %v8205_v57 = vpop.eup %8204  ;;  %v3412_v7 = vadd.f32 1.0, %v8203_v43  ;;  %v3236_v60 = vmul.f32 0.70710677, %v10621_v19  ;;  %v10630_v18 = vadd.f32 %v3042_v15, %v2890_v39  ;;  %5131 = vmatmul.mubr.bf16.gmra.mxu1 %v10586_v1  ;;  %v3120_v28 = vmul.f32 0.5, %v10495_v13  ;;  %v7975_v22 = vld [vmem:[%s8834_s0 + $0x4e8] ss:$24 sps:$4 sm:$0xff]  }
 0x309   : > { %v10634_v31 = vpack.c.bf16 %v3507_v51, %v3503_v38  ;;  %v10636_v61 = vadd.f32 %v3044_v23, %v2892_v42  ;;  %v2894_v8 = vadd.f32 %v2893_v59, %v2741_v5  ;;  %v2895_v27 = vpop.f32.mrf.mxu0  ;;  %v10640_v32 = vadd.f32 %v10147_v16, %v9964_v17  ;;  %v7981_v13 = vld [vmem:[%s8834_s0 + $0x1f0] ss:$24 sps:$4 sm:$0xff]   ;;  %v7986_v17 = vld [vmem:[%s8834_s0 + $0x4bc] ss:$24 sps:$4 sm:$0xff]  }
 0x30a   : > { %v3048_v4 = vpop.f32.mrf.mxu1  ;;  %v8207_v21 = vpop.eup %8206  ;;  %v3508_v15 = vmul.f32 %v3412_v7, %v3124_v62  ;;  %8218 = verf.f32 %v3236_v60  ;;  %v3239_v25 = vmul.f32 0.70710677, %v10630_v18  ;;  %5369 = vmatpush2.bf16.msra.mxu1 %v7969_v36  ;;  %v3504_v51 = vmul.f32 %v3408_v50, %v3120_v28  ;;  %v11846_v36 = vld [vmem:[#allocation39_spill] sm:$0xff]  ;;  %v7984_v62 = vld [vmem:[%s8834_s0 + $0x4b8] ss:$24 sps:$4 sm:$0xff]  }
 0x30b   : > { %5522 = vmatpush2.bf16.msra.mxu0 %v7978_v0  ;;  %v3127_v5 = vmul.f32 0.5, %v10536_v63  ;;  %v3415_v38 = vadd.f32 1.0, %v8205_v57  ;;  %v3240_v59 = vmul.f32 0.70710677, %v10636_v61  ;;  %v2899_v26 = vpop.f32.mrf.mxu0  ;;  %5370 = vmatprep.subr.bf16.mxu1 %v7977_v54  ;;  %v10648_v16 = vadd.f32 %v3046_v52, %v2894_v8  ;;  %v7989_v50 = vld [vmem:[%s8834_s0 + $0x1c4] ss:$24 sps:$4 sm:$0xff]  }
 0x30c   : > { %v3052_v23 = vpop.f32.mrf.mxu1  ;;  %5523 = vmatprep.subr.bf16.mxu0 %v7983_v45  ;;  %8220 = verf.f32 %v3239_v25  ;;  %v2896_v39 = vadd.f32 %v2895_v27, %v10599_v49  ;;  %v2900_v42 = vadd.f32 %v2899_v26, %v10608_v30  ;;  %v3128_v0 = vmul.f32 0.5, %v10548_v37  ;;  %v7987_v37 = vld [vmem:[%s8834_s0 + $0x1c0] ss:$24 sps:$4 sm:$0xff]   ;;  %v7995_v25 = vld [vmem:[%s8834_s0 + $0x194] ss:$24 sps:$4 sm:$0xff]  }
 0x30d   : > { %5294 = vmatmul.mubr.bf16.gmra.mxu0 %v11846_v36  ;;  %v8209_v63 = vpop.eup %8208  ;;  %v3416_v43 = vadd.f32 1.0, %v8207_v21  ;;  %v3131_v54 = vmul.f32 0.5, %v10561_v35  ;;  %v10656_v45 = vpack.c.bf16 %v3508_v15, %v3504_v51  ;;  %v2901_v52 = vpop.f32.mrf.mxu0  ;;  %8222 = verf.f32 %v3240_v59  ;;  %v7992_v15 = vld [vmem:[%s8834_s0 + $0x48c] ss:$24 sps:$4 sm:$0xff]  }
 0x30e   : > { %5303 = vmatprep.mubr.bf16.mxu0 %v10161_v9  ;;  %v3054_v57 = vpop.f32.mrf.mxu1  ;;  %v8211_v49 = vpop.eup %8210  ;;  %v3419_v30 = vadd.f32 1.0, %v8209_v63  ;;  %v3243_v7 = vmul.f32 0.70710677, %v10648_v16  ;;  %v10661_v60 = vadd.f32 %v3048_v4, %v2896_v39  ;;  %5371 = vmatpush2.bf16.msra.mxu1 %v7975_v22  ;;  %v3132_v35 = vmul.f32 0.5, %v10563_v44  ;;  %v7993_v63 = vld [vmem:[%s8834_s0 + $0x190] ss:$24 sps:$4 sm:$0xff]  }
 0x30f   : > { %5524 = vmatpush2.bf16.msra.mxu0 %v7981_v13  ;;  %v3420_v28 = vadd.f32 1.0, %v8211_v49  ;;  %v10665_v8 = vadd.f32 %v3052_v23, %v2900_v42  ;;  %5140 = vmatprep.mubr.bf16.mxu1 %v10656_v45  ;;  %v2902_v27 = vadd.f32 %v2901_v52, %v10612_v12  ;;  %v2903_v21 = vpop.f32.mrf.mxu0  ;;  %v3511_v51 = vmul.f32 %v3415_v38, %v3127_v5  ;;  %v11847_v13 = vld [vmem:[#allocation43_spill] sm:$0xff] }
 0x310   : > { %5372 = vmatprep.subr.bf16.mxu1 %v7986_v17  ;;  %v3515_v59 = vmul.f32 %v3419_v30, %v3131_v54  ;;  %8224 = verf.f32 %v3243_v7  ;;  %v3244_v4 = vmul.f32 0.70710677, %v10661_v60  ;;  %5141 = vmatmul.mubr.bf16.gmra.mxu1 %v10634_v31  ;;  %v3056_v44 = vpop.f32.mrf.mxu1  ;;  %v2753_v26 = vadd.f32 %v11847_v13, %v9968_v3 }
 0x311   : > { %5525 = vmatprep.subr.bf16.mxu0 %v7989_v50  ;;  %v8213_v22 = vpop.eup %8212  ;;  %v3516_v12 = vmul.f32 %v3420_v28, %v3132_v35  ;;  %v3247_v23 = vmul.f32 0.70710677, %v10665_v8  ;;  %v10676_v17 = vadd.f32 %v3054_v57, %v2902_v27  ;;  %v2905_v5 = vpop.f32.mrf.mxu0  ;;  %v3512_v38 = vmul.f32 %v3416_v43, %v3128_v0  ;;  %v7990_v50 = vld [vmem:[%s8834_s0 + $0x488] ss:$24 sps:$4 sm:$0xff]   ;;  %v7998_v57 = vld [vmem:[%s8834_s0 + $0x464] ss:$24 sps:$4 sm:$0xff]  }
 0x312   : > { %v10678_v39 = vpack.c.bf16 %v3515_v59, %v3511_v51  ;;  %8226 = verf.f32 %v3244_v4  ;;  %v2904_v42 = vadd.f32 %v2903_v21, %v10640_v32  ;;  %5373 = vmatpush2.bf16.msra.mxu1 %v7984_v62  ;;  %v3423_v52 = vadd.f32 1.0, %v8213_v22  ;;  %v3058_v7 = vpop.f32.mrf.mxu1  ;;  %v11848_v35 = vld [vmem:[#allocation32_spill] sm:$0xff] }
 0x313   : > { %5526 = vmatpush2.bf16.msra.mxu0 %v7987_v37  ;;  %v8215_v54 = vpop.eup %8214  ;;  %v3248_v3 = vmul.f32 0.70710677, %v10676_v17  ;;  %v2906_v49 = vadd.f32 %v2905_v5, %v2753_v26  ;;  %5374 = vmatprep.subr.bf16.mxu1 %v7992_v15  ;;  %v3135_v0 = vmul.f32 0.5, %v10577_v55  ;;  %8228 = verf.f32 %v3247_v23  ;;  %v11849_v27 = vld [vmem:[#allocation44_spill] sm:$0xff] }
 0x314   : > { %5527 = vmatprep.subr.bf16.mxu0 %v7995_v25  ;;  %v8217_v30 = vpop.eup %8216  ;;  %v3057_v43 = vadd.f32 %v3056_v44, %v2904_v42  ;;  %v10687_v32 = vpack.c.bf16 %v3516_v12, %v3512_v38  ;;  %v3139_v62 = vmul.f32 0.5, %v10593_v20  ;;  %v3424_v21 = vadd.f32 1.0, %v8215_v54 }
 0x315   : > { %5304 = vmatmul.mubr.bf16.gmra.mxu0 %v11848_v35  ;;  %v3427_v37 = vadd.f32 1.0, %v8217_v30  ;;  %8230 = verf.f32 %v3248_v3  ;;  %v3059_v28 = vadd.f32 %v3058_v7, %v2906_v49  ;;  %v3519_v25 = vmul.f32 %v3423_v52, %v3135_v0 }
 0x316   : > { %5313 = vmatprep.mubr.bf16.mxu0 %v11849_v27  ;;  %v3251_v15 = vmul.f32 0.70710677, %v3057_v43  ;;  %5150 = vmatprep.mubr.bf16.mxu1 %v10687_v32  ;;  %v3136_v4 = vmul.f32 0.5, %v10591_v41  ;;  %v3140_v20 = vmul.f32 0.5, %v10621_v19  ;;  %v3143_v41 = vmul.f32 0.5, %v10630_v18 }
 0x317   : > { %5375 = vmatpush2.bf16.msra.mxu1 %v7990_v50  ;;  %v8219_v55 = vpop.eup %8218  ;;  %v3523_v51 = vmul.f32 %v3427_v37, %v3139_v62  ;;  %v3252_v59 = vmul.f32 0.70710677, %v3059_v28  ;;  %5528 = vmatpush2.bf16.msra.mxu0 %v7993_v63  ;;  %v3147_v50 = vmul.f32 0.5, %v10648_v16  ;;  %v3144_v52 = vmul.f32 0.5, %v10636_v61 }
 0x318   : > { %5650 = vmatprep.subr.bf16.mxu1 %v7998_v57  ;;  %v3428_v44 = vadd.f32 1.0, %v8219_v55  ;;  %8232 = verf.f32 %v3251_v15  ;;  %5151 = vmatmul.mubr.bf16.gmra.mxu1 %v10678_v39  ;;  %v3520_v26 = vmul.f32 %v3424_v21, %v3136_v4  ;;  %v3148_v57 = vmul.f32 0.5, %v10661_v60 }
 0x319   : > { %v8221_v22 = vpop.eup %8220  ;;  %v10695_v13 = vpack.c.bf16 %v3523_v51, %v3519_v25  ;;  %8234 = verf.f32 %v3252_v59  ;;  %v3151_v60 = vmul.f32 0.5, %v10665_v8  ;;  %v3155_v25 = vmul.f32 0.5, %v3057_v43 }
 0x31a   : > { %v3524_v12 = vmul.f32 %v3428_v44, %v3140_v20  ;;  %v8223_v23 = vpop.eup %8222  ;;  %v3431_v5 = vadd.f32 1.0, %v8221_v22  ;;  %v3152_v59 = vmul.f32 0.5, %v10676_v17  ;;  %v3156_v4 = vmul.f32 0.5, %v3059_v28  ;;  %v7996_v17 = vld [vmem:[%s8834_s0 + $0x460] ss:$24 sps:$4 sm:$0xff]  }
 0x31b   : > { %v3432_v19 = vadd.f32 1.0, %v8223_v23  ;;  %v8001_v28 = vld [vmem:[%s8834_s0 + $0x434] ss:$24 sps:$4 sm:$0xff]  }
 0x31c   : > { %v10698_v38 = vpack.c.bf16 %v3524_v12, %v3520_v26  ;;  %v3527_v3 = vmul.f32 %v3431_v5, %v3143_v41 }
 0x31d   : > { %5314 = vmatmul.mubr.bf16.gmra.mxu0 %v10185_v10  ;;  %v8225_v42 = vpop.eup %8224  ;;  %v3528_v62 = vmul.f32 %v3432_v19, %v3144_v52  ;;  %v11853_v19 = vld [vmem:[#allocation53_spill] sm:$0xff] }
 0x31e   : > { %5323 = vmatprep.mubr.bf16.mxu0 %v10245_v34  ;;  %v3435_v63 = vadd.f32 1.0, %v8225_v42  ;;  %5160 = vmatprep.mubr.bf16.mxu1 %v10698_v38  ;;  %v7999_v42 = vld [vmem:[%s8834_s0 + $0x430] ss:$24 sps:$4 sm:$0xff]   ;;  %v8007_v52 = vld [vmem:[%s8834_s0 + $0x3d4] ss:$24 sps:$4 sm:$0xff]  }
 0x31f   : > { %v8227_v54 = vpop.eup %8226 }
 0x320   : > { %v3531_v49 = vmul.f32 %v3435_v63, %v3147_v50  ;;  %v3436_v30 = vadd.f32 1.0, %v8227_v54  ;;  %5161 = vmatmul.mubr.bf16.gmra.mxu1 %v10695_v13  ;;  %v8229_v0 = vpop.eup %8228  ;;  %v11854_v50 = vld [vmem:[#allocation56_spill] sm:$0xff]  ;;  %v8002_v63 = vld [vmem:[%s8834_s0 + $0x400] ss:$24 sps:$4 sm:$0xff]  }
 0x321   : > { %v3439_v16 = vadd.f32 1.0, %v8229_v0  ;;  %v8010_v0 = vld [vmem:[%s8834_s0 + $0x3a4] ss:$24 sps:$4 sm:$0xff]  }
 0x322   : > { %v8231_v7 = vpop.eup %8230  ;;  %v10707_v18 = vpack.c.bf16 %v3531_v49, %v3527_v3  ;;  %v3532_v37 = vmul.f32 %v3436_v30, %v3148_v57  ;;  %v11855_v3 = vld [vmem:[#allocation45_spill] sm:$0xff] }
 0x323   : > { %v3440_v61 = vadd.f32 1.0, %v8231_v7  ;;  %v3535_v44 = vmul.f32 %v3439_v16, %v3151_v60  ;;  %v8005_v57 = vld [vmem:[%s8834_s0 + $0x3d0] ss:$24 sps:$4 sm:$0xff]   ;;  %v8013_v16 = vld [vmem:[%s8834_s0 + $0x374] ss:$24 sps:$4 sm:$0xff]  }
 0x324   : > { %11850 = vst [vmem:[#allocation51_spill] sm:$0xff] %v10707_v18  ;;  %v10710_v21 = vpack.c.bf16 %v3532_v37, %v3528_v62  ;;  %v8008_v62 = vld [vmem:[%s8834_s0 + $0x3a0] ss:$24 sps:$4 sm:$0xff]   ;;  %v8011_v60 = vld [vmem:[%s8834_s0 + $0x370] ss:$24 sps:$4 sm:$0xff]  }
 0x325   : > { %5324 = vmatmul.mubr.bf16.gmra.mxu0 %v10230_v14  ;;  %v8233_v15 = vpop.eup %8232  ;;  %v3536_v26 = vmul.f32 %v3440_v61, %v3152_v59  ;;  %v11859_v59 = vld [vmem:[#allocation61_spill] sm:$0xff] }
 0x326   : > { %5333 = vmatprep.mubr.bf16.mxu0 %v10286_v40  ;;  %v8235_v55 = vpop.eup %8234  ;;  %v3443_v51 = vadd.f32 1.0, %v8233_v15  ;;  %5170 = vmatprep.mubr.bf16.mxu1 %v10710_v21  ;;  %v11856_v15 = vld [vmem:[#allocation33_spill] sm:$0xff] }
 0x327   : > { %v3444_v20 = vadd.f32 1.0, %v8235_v55  ;;  %v11857_v55 = vld [vmem:[#allocation47_spill] sm:$0xff] }
 0x328   : > { %v3539_v22 = vmul.f32 %v3443_v51, %v3155_v25  ;;  %5171 = vmatmul.mubr.bf16.gmra.mxu1 %v10707_v18  ;;  %v11858_v51 = vld [vmem:[#allocation57_spill] sm:$0xff] }
 0x329   : > { %v3540_v12 = vmul.f32 %v3444_v20, %v3156_v4  ;;  %v8014_v4 = vld [vmem:[%s8834_s0 + $0x340] ss:$24 sps:$4 sm:$0xff]  }
 0x32a   : > { %v10717_v23 = vpack.c.bf16 %v3539_v22, %v3535_v44  ;;  %v8019_v44 = vld [vmem:[%s8834_s0 + $0x314] ss:$24 sps:$4 sm:$0xff]  }
 0x32b   : > { %v10719_v5 = vpack.c.bf16 %v3540_v12, %v3536_v26  ;;  %v11860_v22 = vld [vmem:[#allocation46_spill] sm:$0xff]  ;;  %v11861_v12 = vld [vmem:[#allocation48_spill] sm:$0xff] }
 0x32c   : > { %11851 = vst [vmem:[#allocation58_spill] sm:$0xff] %v10717_v23 }
 0x32d   : > { %11852 = vst [vmem:[#allocation52_spill] sm:$0xff] %v10719_v5  ;;  %5334 = vmatmul.mubr.bf16.gmra.mxu0 %v10264_v53  ;;  %5180 = vmatprep.mubr.bf16.mxu1 %v10719_v5 }
 0x32e   : > { %5529 = vmatprep.mubr.bf16.mxu0 %v11809_v58 }
 0x330   : > { %5181 = vmatmul.mubr.bf16.gmra.mxu1 %v10717_v23 }
 0x331   : > { %5376 = vmatprep.mubr.bf16.mxu1 %v10341_v24 }
 0x333   : > { %v10726_v8 = vpop.f32.mrf.mxu0 }
 0x335   : > { %5530 = vmatmul.mubr.bf16.vlgmr.msra.gmra.mxu0 %v11810_v46  ;;  %v10731_v43 = vpop.f32.mrf.mxu0  ;;  %v8004_v46 = vld [vmem:[%s8834_s0 + $0x404] ss:$24 sps:$4 sm:$0xff]  }
 0x336   : > { %5539 = vmatprep.mubr.bf16.mxu0 %v11811_v56 }
 0x337   : > { %v10735_v58 = vpop.f32.mrf.mxu0 }
 0x338   : > { %5377 = vmatmul.mubr.bf16.vlgmr.msra.gmra.mxu1 %v10325_v29 }
 0x339   : > { %5386 = vmatprep.mubr.bf16.mxu1 %v10382_v6  ;;  %5651 = vmatpush1.bf16.msra.mxu1 %v7996_v17  ;;  %v10739_v41 = vpop.f32.mrf.mxu0  ;;  %v8017_v17 = vld [vmem:[%s8834_s0 + $0x310] ss:$24 sps:$4 sm:$0xff]  }
 0x33a   : > { %5652 = vmatprep.subr.bf16.mxu1 %v8001_v28 }
 0x33b   : > { %v10742_v56 = vpop.f32.mrf.mxu0 }
 0x33d   : > { %5540 = vmatmul.mubr.bf16.gmra.mxu0 %v11853_v19  ;;  %5653 = vmatpush1.bf16.msra.mxu1 %v7999_v42  ;;  %v10747_v54 = vpop.f32.mrf.mxu0  ;;  %v8022_v42 = vld [vmem:[%s8834_s0 + $0x5e4] ss:$24 sps:$4 sm:$0xff]  }
 0x33e   : > { %5549 = vmatprep.mubr.bf16.mxu0 %v11854_v50  ;;  %5654 = vmatprep.subr.bf16.mxu1 %v8004_v46  ;;  %v11862_v19 = vld [vmem:[#allocation60_spill] sm:$0xff]  ;;  %v11863_v50 = vld [vmem:[#allocation67_spill] sm:$0xff] }
 0x33f   : > { %v10751_v49 = vpop.f32.mrf.mxu0 }
 0x340   : > { %5387 = vmatmul.mubr.bf16.gmra.mxu1 %v11855_v3 }
 0x341   : > { %5396 = vmatprep.mubr.bf16.mxu1 %v10432_v47  ;;  %5655 = vmatpush1.bf16.msra.mxu1 %v8002_v63  ;;  %v10755_v30 = vpop.f32.mrf.mxu0  ;;  %v8020_v63 = vld [vmem:[%s8834_s0 + $0x5e0] ss:$24 sps:$4 sm:$0xff]  }
 0x342   : > { %5656 = vmatprep.subr.bf16.mxu1 %v8007_v52 }
 0x344   : > { %v10758_v7 = vpop.f32.mrf.mxu0 }
 0x345   : > { %5550 = vmatmul.mubr.bf16.gmra.mxu0 %v11818_v11  ;;  %5657 = vmatpush1.bf16.msra.mxu1 %v8005_v57  ;;  %v8025_v57 = vld [vmem:[%s8834_s0 + $0x5b4] ss:$24 sps:$4 sm:$0xff]  }
 0x346   : > { %5559 = vmatprep.mubr.bf16.mxu0 %v11819_v33  ;;  %v10763_v37 = vpop.f32.mrf.mxu0  ;;  %5658 = vmatprep.subr.bf16.mxu1 %v8010_v0  ;;  %v8016_v33 = vld [vmem:[%s8834_s0 + $0x344] ss:$24 sps:$4 sm:$0xff]  }
 0x347   : > { %v11864_v0 = vld [vmem:[#allocation34_spill] sm:$0xff] }
 0x348   : > { %5397 = vmatmul.mubr.bf16.gmra.mxu1 %v11856_v15  ;;  %v10767_v61 = vpop.f32.mrf.mxu0 }
 0x349   : > { %5406 = vmatprep.mubr.bf16.mxu1 %v11857_v55  ;;  %5659 = vmatpush1.bf16.msra.mxu1 %v8008_v62 }
 0x34a   : > { %v10771_v11 = vpop.f32.mrf.mxu0  ;;  %5660 = vmatprep.subr.bf16.mxu1 %v8013_v16  ;;  %v8023_v16 = vld [vmem:[%s8834_s0 + $0x5b0] ss:$24 sps:$4 sm:$0xff]  }
 0x34c   : > { %v10774_v25 = vpop.f32.mrf.mxu0 }
 0x34d   : > { %5560 = vmatmul.mubr.bf16.gmra.mxu0 %v11858_v51  ;;  %5661 = vmatpush1.bf16.msra.mxu1 %v8011_v60 }
 0x34e   : > { %5569 = vmatprep.mubr.bf16.mxu0 %v11859_v59  ;;  %v10779_v20 = vpop.f32.mrf.mxu0  ;;  %5662 = vmatprep.subr.bf16.mxu1 %v8016_v33  ;;  %v8028_v33 = vld [vmem:[%s8834_s0 + $0x584] ss:$24 sps:$4 sm:$0xff]   ;;  %v11865_v59 = vld [vmem:[#allocation29_spill] sm:$0xff] }
 0x350   : > { %5407 = vmatmul.mubr.bf16.gmra.mxu1 %v11860_v22  ;;  %v10783_v26 = vpop.f32.mrf.mxu0 }
 0x351   : > { %5416 = vmatprep.mubr.bf16.mxu1 %v11861_v12  ;;  %5663 = vmatpush1.bf16.msra.mxu1 %v8014_v4  ;;  %v8026_v4 = vld [vmem:[%s8834_s0 + $0x580] ss:$24 sps:$4 sm:$0xff]  }
 0x352   : > { %v10787_v28 = vpop.f32.mrf.mxu0  ;;  %5664 = vmatprep.subr.bf16.mxu1 %v8019_v44 }
 0x354   : > { %v10790_v46 = vpop.f32.mrf.mxu0 }
 0x355   : > { %5570 = vmatmul.mubr.bf16.gmra.mxu0 %v11862_v19  ;;  %5665 = vmatpush1.bf16.msra.mxu1 %v8017_v17  ;;  %v8031_v17 = vld [vmem:[%s8834_s0 + $0x554] ss:$24 sps:$4 sm:$0xff]  }
 0x356   : > { %5579 = vmatprep.mubr.bf16.mxu0 %v11863_v50  ;;  %v10795_v52 = vpop.f32.mrf.mxu0  ;;  %5666 = vmatprep.subr.bf16.mxu1 %v8022_v42  ;;  %v11867_v42 = vld [vmem:[#allocation36_spill] sm:$0xff]  ;;  %v11869_v50 = vld [vmem:[#allocation49_spill] sm:$0xff] }
 0x358   : > { %5417 = vmatmul.mubr.bf16.gmra.mxu1 %v11864_v0  ;;  %v10799_v62 = vpop.f32.mrf.mxu0 }
 0x359   : > { %5426 = vmatprep.mubr.bf16.mxu1 %v10567_v2  ;;  %5667 = vmatpush2.bf16.msra.mxu1 %v8020_v63  ;;  %v8029_v63 = vld [vmem:[%s8834_s0 + $0x550] ss:$24 sps:$4 sm:$0xff]  }
 0x35a   : > { %v10803_v60 = vpop.f32.mrf.mxu0  ;;  %5668 = vmatprep.subr.bf16.mxu1 %v8025_v57  ;;  %v8034_v57 = vld [vmem:[%s8834_s0 + $0x524] ss:$24 sps:$4 sm:$0xff]  }
 0x35c   : > { %v10806_v51 = vpop.f32.mrf.mxu0 }
 0x35d   : > { %5580 = vmatmul.mubr.bf16.gmra.mxu0 %v11836_v48  ;;  %5669 = vmatpush2.bf16.msra.mxu1 %v8023_v16 }
 0x35e   : > { %5589 = vmatprep.mubr.bf16.mxu0 %v11865_v59  ;;  %v10811_v44 = vpop.f32.mrf.mxu0  ;;  %5670 = vmatprep.subr.bf16.mxu1 %v8028_v33  ;;  %v11871_v59 = vld [vmem:[#allocation70_spill] sm:$0xff]  ;;  %v11872_v33 = vld [vmem:[#allocation31_spill] sm:$0xff] }
 0x35f   : > { %11866 = vst [vmem:[#allocation50_spill] sm:$0xff] %v10811_v44  ;;  %v8032_v44 = vld [vmem:[%s8834_s0 + $0x520] ss:$24 sps:$4 sm:$0xff]  }
 0x360   : > { %5427 = vmatmul.mubr.bf16.gmra.mxu1 %v11867_v42  ;;  %v10815_v19 = vpop.f32.mrf.mxu0 }
 0x361   : > { %11868 = vst [vmem:[#allocation54_spill] sm:$0xff] %v10815_v19  ;;  %5436 = vmatprep.mubr.bf16.mxu1 %v11869_v50  ;;  %5671 = vmatpush2.bf16.msra.mxu1 %v8026_v4  ;;  %v8037_v4 = vld [vmem:[%s8834_s0 + $0x4f4] ss:$24 sps:$4 sm:$0xff]  }
 0x362   : > { %v10819_v48 = vpop.f32.mrf.mxu0  ;;  %5672 = vmatprep.subr.bf16.mxu1 %v8031_v17  ;;  %v8035_v17 = vld [vmem:[%s8834_s0 + $0x4f0] ss:$24 sps:$4 sm:$0xff]  }
 0x363   : > { %11870 = vst [vmem:[#allocation62_spill] sm:$0xff] %v10819_v48 }
 0x364   : > { %v10822_v16 = vpop.f32.mrf.mxu0 }
 0x365   : > { %5590 = vmatmul.mubr.bf16.gmra.mxu0 %v11871_v59  ;;  %5673 = vmatpush2.bf16.msra.mxu1 %v8029_v63  ;;  %v8040_v63 = vld [vmem:[%s8834_s0 + $0x4c4] ss:$24 sps:$4 sm:$0xff]  }
 0x366   : > { %5599 = vmatprep.mubr.bf16.mxu0 %v11872_v33  ;;  %v10827_v19 = vpop.f32.mrf.mxu0  ;;  %5674 = vmatprep.subr.bf16.mxu1 %v8034_v57  ;;  %v8038_v57 = vld [vmem:[%s8834_s0 + $0x4c0] ss:$24 sps:$4 sm:$0xff]  }
 0x367   : > { %11873 = vst [vmem:[#allocation63_spill] sm:$0xff] %v10827_v19 }
 0x368   : > { %5437 = vmatmul.mubr.bf16.gmra.mxu1 %v10586_v1  ;;  %v10831_v48 = vpop.f32.mrf.mxu0 }
 0x369   : > { %11874 = vst [vmem:[#allocation55_spill] sm:$0xff] %v10831_v48  ;;  %5446 = vmatprep.mubr.bf16.mxu1 %v10656_v45  ;;  %5675 = vmatpush2.bf16.msra.mxu1 %v8032_v44  ;;  %v8043_v48 = vld [vmem:[%s8834_s0 + $0x494] ss:$24 sps:$4 sm:$0xff]  }
 0x36a   : > { %v10835_v59 = vpop.f32.mrf.mxu0  ;;  %5676 = vmatprep.subr.bf16.mxu1 %v8037_v4  ;;  %v8041_v4 = vld [vmem:[%s8834_s0 + $0x490] ss:$24 sps:$4 sm:$0xff]  }
 0x36b   : > { %11875 = vst [vmem:[#allocation59_spill] sm:$0xff] %v10835_v59 }
 0x36c   : > { %v10838_v33 = vpop.f32.mrf.mxu0 }
 0x36d   : > { %5600 = vmatmul.mubr.bf16.gmra.mxu0 %v11846_v36  ;;  %5677 = vmatpush2.bf16.msra.mxu1 %v8035_v17 }
 0x36e   : > { %5609 = vmatprep.mubr.bf16.mxu0 %v10161_v9  ;;  %v10843_v19 = vpop.f32.mrf.mxu0  ;;  %5678 = vmatprep.subr.bf16.mxu1 %v8040_v63 }
 0x370   : > { %5447 = vmatmul.mubr.bf16.gmra.mxu1 %v10634_v31  ;;  %v10847_v44 = vpop.f32.mrf.mxu0 }
 0x371   : > { %5456 = vmatprep.mubr.bf16.mxu1 %v10687_v32  ;;  %5679 = vmatpush2.bf16.msra.mxu1 %v8038_v57 }
 0x372   : > { %v10851_v59 = vpop.f32.mrf.mxu0  ;;  %5680 = vmatprep.subr.bf16.mxu1 %v8043_v48 }
 0x374   : > { %v10853_v36 = vpop.f32.mrf.mxu0 }
 0x375   : > { %5610 = vmatmul.mubr.bf16.gmra.mxu0 %v11848_v35  ;;  %5681 = vmatpush2.bf16.msra.mxu1 %v8041_v4 }
 0x376   : > { %5619 = vmatprep.mubr.bf16.mxu0 %v11849_v27  ;;  %v10857_v9 = vpop.f32.mrf.mxu0 }
 0x378   : > { %5457 = vmatmul.mubr.bf16.gmra.mxu1 %v10678_v39  ;;  %v10860_v17 = vpop.f32.mrf.mxu0 }
 0x379   : > { %5466 = vmatprep.mubr.bf16.mxu1 %v10698_v38 }
 0x37a   : > { %v10863_v63 = vpop.f32.mrf.mxu0 }
 0x37c   : > { %v10865_v57 = vpop.f32.mrf.mxu0 }
 0x37d   : > { %11876 = vst [vmem:[#allocation65_spill] sm:$0xff] %v10865_v57  ;;  %5620 = vmatmul.mubr.bf16.gmra.mxu0 %v10185_v10 }
 0x37e   : > { %5629 = vmatprep.mubr.bf16.mxu0 %v10245_v34  ;;  %v10869_v35 = vpop.f32.mrf.mxu0 }
 0x37f   : > { %11877 = vst [vmem:[#allocation66_spill] sm:$0xff] %v10869_v35 }
 0x380   : > { %5467 = vmatmul.mubr.bf16.gmra.mxu1 %v10695_v13  ;;  %v10872_v27 = vpop.f32.mrf.mxu0 }
 0x381   : > { %11878 = vst [vmem:[#allocation68_spill] sm:$0xff] %v10872_v27  ;;  %5476 = vmatprep.mubr.bf16.mxu1 %v10710_v21 }
 0x382   : > { %v10875_v48 = vpop.f32.mrf.mxu0 }
 0x383   : > { %11879 = vst [vmem:[#allocation69_spill] sm:$0xff] %v10875_v48 }
 0x384   : > { %v10877_v4 = vpop.f32.mrf.mxu0 }
 0x385   : > { %11880 = vst [vmem:[#allocation71_spill] sm:$0xff] %v10877_v4  ;;  %5630 = vmatmul.mubr.bf16.gmra.mxu0 %v10230_v14 }
 0x386   : > { %5639 = vmatprep.mubr.bf16.mxu0 %v10286_v40  ;;  %v10881_v57 = vpop.f32.mrf.mxu0 }
 0x387   : > { %11881 = vst [vmem:[#allocation35_spill] sm:$0xff] %v10881_v57 }
 0x388   : > { %5477 = vmatmul.mubr.bf16.gmra.mxu1 %v10707_v18  ;;  %v10884_v10 = vpop.f32.mrf.mxu0 }
 0x389   : > { %11882 = vst [vmem:[#allocation37_spill] sm:$0xff] %v10884_v10  ;;  %5486 = vmatprep.mubr.bf16.mxu1 %v10719_v5  ;;  %v3541_v5 = vld [vmem:[#allocation2 + $0x2b0] sm:$0xff] }
 0x38a   : > { %v10887_v34 = vpop.f32.mrf.mxu0 }
 0x38b   : > { %11883 = vst [vmem:[#allocation64_spill] sm:$0xff] %v10887_v34 }
 0x38c   : > { %v10889_v27 = vpop.f32.mrf.mxu0 }
 0x38d   : > { %11884 = vst [vmem:[#allocation38_spill] sm:$0xff] %v10889_v27  ;;  %5640 = vmatmul.mubr.bf16.gmra.mxu0 %v10264_v53 }
 0x38e   : > { %v10892_v48 = vpop.f32.mrf.mxu0 }
 0x38f   : > { %11885 = vst [vmem:[#allocation30_spill] sm:$0xff] %v10892_v48  ;;  %v3542_v48 = vld [vmem:[#allocation2 + $0x3b0] sm:$0xff] }
 0x390   : > { %5487 = vmatmul.mubr.bf16.gmra.mxu1 %v10717_v23  ;;  %v10895_v14 = vpop.f32.mrf.mxu0 }
 0x391   : > { %11886 = vst [vmem:[#allocation40_spill] sm:$0xff] %v10895_v14  ;;  %5682 = vmatprep.mubr.bf16.mxu1 %v10341_v24 }
 0x392   : > { %v10898_v40 = vpop.f32.mrf.mxu0 }
 0x393   : > { %11887 = vst [vmem:[#allocation41_spill] sm:$0xff] %v10898_v40 }
 0x394   : > { %v10900_v57 = vpop.f32.mrf.mxu0 }
 0x395   : > { %11888 = vst [vmem:[#allocation42_spill] sm:$0xff] %v10900_v57  ;;  %v3547_v57 = vld [vmem:[#allocation2 + $0x370] sm:$0xff] }
 0x396   : > { %v10902_v10 = vpop.f32.mrf.mxu0 }
 0x397   : > { %11889 = vst [vmem:[#allocation39_spill] sm:$0xff] %v10902_v10  ;;  %v5072_v34 = vpop.f32.mrf.mxu1 }
 0x398   : > { %v5073_v27 = vadd.f32 %v5072_v34, %v10726_v8  ;;  %5683 = vmatmul.mubr.bf16.vlgmr.msra.gmra.mxu1 %v10325_v29  ;;  %v10906_v53 = vpop.f32.mrf.mxu0  ;;  %v3548_v29 = vld [vmem:[#allocation2 + $0x100] sm:$0xff] }
 0x399   : > { %11890 = vst [vmem:[#allocation43_spill] sm:$0xff] %v10906_v53  ;;  %5692 = vmatprep.mubr.bf16.mxu1 %v10382_v6  ;;  %v5074_v14 = vpop.f32.mrf.mxu1 }
 0x39a   : > { %v5803_v23 = vadd.f32 %v5073_v27, %v3541_v5  ;;  %v5075_v24 = vadd.f32 %v5074_v14, %v10731_v43  ;;  %v10910_v40 = vpop.f32.mrf.mxu0  ;;  %v3553_v5 = vld [vmem:[#allocation2 + $0x48] sm:$0xff] }
 0x39b   : > { %v5076_v4 = vpop.f32.mrf.mxu1 }
 0x39c   : > { %5947 = vst [vmem:[#allocation2 + $0x2b0] sm:$0xff] %v5803_v23  ;;  %v5804_v10 = vadd.f32 %v5075_v24, %v3542_v48  ;;  %v5077_v18 = vadd.f32 %v5076_v4, %v10735_v58  ;;  %v10913_v8 = vpop.f32.mrf.mxu0  ;;  %v3554_v58 = vld [vmem:[#allocation2 + $0xc0] sm:$0xff]  ;;  %v3559_v4 = vld [vmem:[#allocation2 + $0x348] sm:$0xff] }
 0x39d   : > { %v5078_v34 = vpop.f32.mrf.mxu1 }
 0x39e   : > { %5948 = vst [vmem:[#allocation2 + $0x3b0] sm:$0xff] %v5804_v10  ;;  %v5809_v53 = vadd.f32 %v5077_v18, %v3547_v57  ;;  %v5079_v6 = vadd.f32 %v5078_v34, %v10739_v41  ;;  %v10916_v35 = vpop.f32.mrf.mxu0 }
 0x39f   : > { %v5082_v43 = vpop.f32.mrf.mxu1 }
 0x3a0   : > { %5953 = vst [vmem:[#allocation2 + $0x370] sm:$0xff] %v5809_v53  ;;  %v5810_v27 = vadd.f32 %v5079_v6, %v3548_v29  ;;  %v5083_v14 = vadd.f32 %v5082_v43, %v10742_v56  ;;  %5693 = vmatmul.mubr.bf16.gmra.mxu1 %v11855_v3  ;;  %v10920_v23 = vpop.f32.mrf.mxu0  ;;  %v3560_v3 = vld [vmem:[#allocation2 + $0xe0] sm:$0xff] }
 0x3a1   : > { %5702 = vmatprep.mubr.bf16.mxu1 %v10432_v47  ;;  %v5084_v48 = vpop.f32.mrf.mxu1 }
 0x3a2   : > { %5954 = vst [vmem:[#allocation2 + $0x100] sm:$0xff] %v5810_v27  ;;  %v5815_v18 = vadd.f32 %v5083_v14, %v3553_v5  ;;  %v5085_v41 = vadd.f32 %v5084_v48, %v10747_v54  ;;  %v10924_v57 = vpop.f32.mrf.mxu0  ;;  %v3565_v5 = vld [vmem:[#allocation2 + $0x420] sm:$0xff] }
 0x3a3   : > { %v5086_v10 = vpop.f32.mrf.mxu1 }
 0x3a4   : > { %5959 = vst [vmem:[#allocation2 + $0x48] sm:$0xff] %v5815_v18  ;;  %v5816_v53 = vadd.f32 %v5085_v41, %v3554_v58  ;;  %v5087_v56 = vadd.f32 %v5086_v10, %v10751_v49  ;;  %v10927_v24 = vpop.f32.mrf.mxu0  ;;  %v3566_v49 = vld [vmem:[#allocation2 + $0x398] sm:$0xff] }
 0x3a5   : > { %v5088_v29 = vpop.f32.mrf.mxu1  ;;  %v3571_v41 = vld [vmem:[#allocation2 + $0x458] sm:$0xff] }
 0x3a6   : > { %5960 = vst [vmem:[#allocation2 + $0xc0] sm:$0xff] %v5816_v53  ;;  %v5821_v47 = vadd.f32 %v5087_v56, %v3559_v4  ;;  %v5089_v34 = vadd.f32 %v5088_v29, %v10755_v30  ;;  %v10930_v6 = vpop.f32.mrf.mxu0 }
 0x3a7   : > { %v5092_v54 = vpop.f32.mrf.mxu1 }
 0x3a8   : > { %5965 = vst [vmem:[#allocation2 + $0x348] sm:$0xff] %v5821_v47  ;;  %v5822_v43 = vadd.f32 %v5089_v34, %v3560_v3  ;;  %v5093_v27 = vadd.f32 %v5092_v54, %v10758_v7  ;;  %5703 = vmatmul.mubr.bf16.gmra.mxu1 %v11856_v15  ;;  %v10934_v14 = vpop.f32.mrf.mxu0  ;;  %v3572_v15 = vld [vmem:[#allocation2 + $0x68] sm:$0xff]  ;;  %v3577_v47 = vld [vmem:[#allocation2 + $0x198] sm:$0xff] }
 0x3a9   : > { %5712 = vmatprep.mubr.bf16.mxu1 %v11857_v55  ;;  %v5094_v58 = vpop.f32.mrf.mxu1 }
 0x3aa   : > { %5966 = vst [vmem:[#allocation2 + $0xe0] sm:$0xff] %v5822_v43  ;;  %v5827_v48 = vadd.f32 %v5093_v27, %v3565_v5  ;;  %v5095_v30 = vadd.f32 %v5094_v58, %v10763_v37  ;;  %v10938_v18 = vpop.f32.mrf.mxu0  ;;  %v3583_v58 = vld [vmem:[#allocation2 + $0x3c8] sm:$0xff] }
 0x3ab   : > { %v5096_v4 = vpop.f32.mrf.mxu1 }
 0x3ac   : > { %5971 = vst [vmem:[#allocation2 + $0x420] sm:$0xff] %v5827_v48  ;;  %v5828_v10 = vadd.f32 %v5095_v30, %v3566_v49  ;;  %v5097_v7 = vadd.f32 %v5096_v4, %v10767_v61  ;;  %v10941_v53 = vpop.f32.mrf.mxu0  ;;  %v3578_v61 = vld [vmem:[#allocation2 + $0xb0] sm:$0xff] }
 0x3ad   : > { %v5098_v56 = vpop.f32.mrf.mxu1 }
 0x3ae   : > { %5972 = vst [vmem:[#allocation2 + $0x398] sm:$0xff] %v5828_v10  ;;  %v5833_v55 = vadd.f32 %v5097_v7, %v3571_v41  ;;  %v5099_v3 = vadd.f32 %v5098_v56, %v10771_v11  ;;  %v10944_v29 = vpop.f32.mrf.mxu0 }
 0x3af   : > { %v5102_v37 = vpop.f32.mrf.mxu1 }
 0x3b0   : > { %5977 = vst [vmem:[#allocation2 + $0x458] sm:$0xff] %v5833_v55  ;;  %v5834_v34 = vadd.f32 %v5099_v3, %v3572_v15  ;;  %v5103_v5 = vadd.f32 %v5102_v37, %v10774_v25  ;;  %5713 = vmatmul.mubr.bf16.gmra.mxu1 %v11860_v22  ;;  %v10948_v54 = vpop.f32.mrf.mxu0  ;;  %v3584_v22 = vld [vmem:[#allocation2 + $0x18] sm:$0xff]  ;;  %v3589_v15 = vld [vmem:[#allocation2 + $0x408] sm:$0xff] }
 0x3b1   : > { %5722 = vmatprep.mubr.bf16.mxu1 %v11861_v12  ;;  %v5104_v43 = vpop.f32.mrf.mxu1 }
 0x3b2   : > { %5978 = vst [vmem:[#allocation2 + $0x68] sm:$0xff] %v5834_v34  ;;  %v5839_v27 = vadd.f32 %v5103_v5, %v3577_v47  ;;  %v5105_v11 = vadd.f32 %v5104_v43, %v10779_v20  ;;  %v10952_v49 = vpop.f32.mrf.mxu0  ;;  %v3595_v5 = vld [vmem:[#allocation2 + $0x330] sm:$0xff] }
 0x3b3   : > { %v5106_v48 = vpop.f32.mrf.mxu1 }
 0x3b4   : > { %5983 = vst [vmem:[#allocation2 + $0x198] sm:$0xff] %v5839_v27  ;;  %v5840_v30 = vadd.f32 %v5105_v11, %v3578_v61  ;;  %v5107_v25 = vadd.f32 %v5106_v48, %v10783_v26  ;;  %v10955_v41 = vpop.f32.mrf.mxu0  ;;  %v3590_v26 = vld [vmem:[#allocation2 + $0x2c0] sm:$0xff] }
 0x3b5   : > { %v5108_v4 = vpop.f32.mrf.mxu1 }
 0x3b6   : > { %5984 = vst [vmem:[#allocation2 + $0xb0] sm:$0xff] %v5840_v30  ;;  %v5845_v12 = vadd.f32 %v5107_v25, %v3583_v58  ;;  %v5109_v10 = vadd.f32 %v5108_v4, %v10787_v28  ;;  %v10958_v7 = vpop.f32.mrf.mxu0  ;;  %v3601_v30 = vld [vmem:[#allocation2 + $0x2e8] sm:$0xff]  ;;  %v3602_v4 = vld [vmem:[#allocation2 + $0x120] sm:$0xff] }
 0x3b7   : > { %v5112_v20 = vpop.f32.mrf.mxu1 }
 0x3b8   : > { %5989 = vst [vmem:[#allocation2 + $0x3c8] sm:$0xff] %v5845_v12  ;;  %v5846_v56 = vadd.f32 %v5109_v10, %v3584_v22  ;;  %v5113_v55 = vadd.f32 %v5112_v20, %v10790_v46  ;;  %5723 = vmatmul.mubr.bf16.gmra.mxu1 %v11864_v0  ;;  %v10962_v3 = vpop.f32.mrf.mxu0  ;;  %v3596_v0 = vld [vmem:[#allocation2 + $0x220] sm:$0xff] }
 0x3b9   : > { %5732 = vmatprep.mubr.bf16.mxu1 %v10567_v2  ;;  %v5114_v47 = vpop.f32.mrf.mxu1 }
 0x3ba   : > { %5990 = vst [vmem:[#allocation2 + $0x18] sm:$0xff] %v5846_v56  ;;  %v5851_v37 = vadd.f32 %v5113_v55, %v3589_v15  ;;  %v5115_v28 = vadd.f32 %v5114_v47, %v10795_v52  ;;  %v10966_v34 = vpop.f32.mrf.mxu0  ;;  %v11891_v15 = vld [vmem:[#allocation50_spill] sm:$0xff]  ;;  %v3607_v56 = vld [vmem:[#allocation2 + $0x270] sm:$0xff] }
 0x3bb   : > { %v5116_v61 = vpop.f32.mrf.mxu1  ;;  %v11892_v47 = vld [vmem:[#allocation54_spill] sm:$0xff] }
 0x3bc   : > { %5995 = vst [vmem:[#allocation2 + $0x408] sm:$0xff] %v5851_v37  ;;  %v5852_v43 = vadd.f32 %v5115_v28, %v3590_v26  ;;  %v5117_v46 = vadd.f32 %v5116_v61, %v10799_v62  ;;  %v10969_v27 = vpop.f32.mrf.mxu0  ;;  %v3608_v28 = vld [vmem:[#allocation2 + $0x200] sm:$0xff] }
 0x3bd   : > { %v5118_v11 = vpop.f32.mrf.mxu1  ;;  %v11893_v61 = vld [vmem:[#allocation62_spill] sm:$0xff] }
 0x3be   : > { %5996 = vst [vmem:[#allocation2 + $0x2c0] sm:$0xff] %v5852_v43  ;;  %v5857_v2 = vadd.f32 %v5117_v46, %v3595_v5  ;;  %v5119_v58 = vadd.f32 %v5118_v11, %v10803_v60  ;;  %v10972_v48 = vpop.f32.mrf.mxu0  ;;  %v3613_v46 = vld [vmem:[#allocation2 + $0x128] sm:$0xff] }
 0x3c0   : > { %6001 = vst [vmem:[#allocation2 + $0x330] sm:$0xff] %v5857_v2  ;;  %v5858_v52 = vadd.f32 %v5119_v58, %v3596_v0  ;;  %v5122_v25 = vpop.f32.mrf.mxu1  ;;  %5733 = vmatmul.mubr.bf16.gmra.mxu1 %v11867_v42  ;;  %v10975_v22 = vpop.f32.mrf.mxu0 }
 0x3c1   : > { %v5123_v62 = vadd.f32 %v5122_v25, %v10806_v51  ;;  %5742 = vmatprep.mubr.bf16.mxu1 %v11869_v50 }
 0x3c2   : > { %6002 = vst [vmem:[#allocation2 + $0x220] sm:$0xff] %v5858_v52  ;;  %v5124_v12 = vpop.f32.mrf.mxu1  ;;  %v10979_v10 = vpop.f32.mrf.mxu0  ;;  %v3614_v52 = vld [vmem:[#allocation2 + $0x160] sm:$0xff] }
 0x3c3   : > { %v5863_v60 = vadd.f32 %v5123_v62, %v3601_v30  ;;  %v5125_v20 = vadd.f32 %v5124_v12, %v11891_v15 }
 0x3c4   : > { %v5126_v55 = vpop.f32.mrf.mxu1 }
 0x3c5   : > { %v10982_v26 = vpop.f32.mrf.mxu0  ;;  %6007 = vst [vmem:[#allocation2 + $0x2e8] sm:$0xff] %v5863_v60  ;;  %v5864_v42 = vadd.f32 %v5125_v20, %v3602_v4  ;;  %v5127_v37 = vadd.f32 %v5126_v55, %v11892_v47  ;;  %v11894_v4 = vld [vmem:[#allocation63_spill] sm:$0xff] }
 0x3c6   : > { %v5128_v51 = vpop.f32.mrf.mxu1  ;;  %v3619_v60 = vld [vmem:[#allocation2 + $0x228] sm:$0xff] }
 0x3c7   : > { %v10985_v5 = vpop.f32.mrf.mxu0  ;;  %6008 = vst [vmem:[#allocation2 + $0x120] sm:$0xff] %v5864_v42  ;;  %v5869_v50 = vadd.f32 %v5127_v37, %v3607_v56  ;;  %v5129_v43 = vadd.f32 %v5128_v51, %v11893_v61  ;;  %v11895_v56 = vld [vmem:[#allocation55_spill] sm:$0xff]  ;;  %v3620_v42 = vld [vmem:[#allocation2 + $0x410] sm:$0xff] }
 0x3c8   : > { %v5132_v0 = vpop.f32.mrf.mxu1  ;;  %5743 = vmatmul.mubr.bf16.gmra.mxu1 %v10586_v1  ;;  %v11896_v37 = vld [vmem:[#allocation59_spill] sm:$0xff] }
 0x3c9   : > { %v10989_v11 = vpop.f32.mrf.mxu0  ;;  %6013 = vst [vmem:[#allocation2 + $0x270] sm:$0xff] %v5869_v50  ;;  %v5870_v2 = vadd.f32 %v5129_v43, %v3608_v28  ;;  %v5133_v58 = vadd.f32 %v5132_v0, %v10822_v16  ;;  %5752 = vmatprep.mubr.bf16.mxu1 %v10656_v45  ;;  %v3625_v51 = vld [vmem:[#allocation2 + $0x400] sm:$0xff]  ;;  %v3626_v0 = vld [vmem:[#allocation2 + $0x1b0] sm:$0xff] }
 0x3ca   : > { %v5134_v30 = vpop.f32.mrf.mxu1 }
 0x3cb   : > { %v10993_v25 = vpop.f32.mrf.mxu0  ;;  %6014 = vst [vmem:[#allocation2 + $0x200] sm:$0xff] %v5870_v2  ;;  %v5875_v62 = vadd.f32 %v5133_v58, %v3613_v46  ;;  %v5135_v12 = vadd.f32 %v5134_v30, %v11894_v4 }
 0x3cc   : > { %v5136_v15 = vpop.f32.mrf.mxu1 }
 0x3cd   : > { %v10996_v20 = vpop.f32.mrf.mxu0  ;;  %6019 = vst [vmem:[#allocation2 + $0x128] sm:$0xff] %v5875_v62  ;;  %v5876_v1 = vadd.f32 %v5135_v12, %v3614_v52  ;;  %v5137_v55 = vadd.f32 %v5136_v15, %v11895_v56  ;;  %v3631_v62 = vld [vmem:[#allocation2 + $0x2d0] sm:$0xff]  ;;  %v3632_v15 = vld [vmem:[#allocation2 + $0x78] sm:$0xff] }
 0x3ce   : > { %v5138_v16 = vpop.f32.mrf.mxu1 }
 0x3cf   : > { %v10999_v47 = vpop.f32.mrf.mxu0  ;;  %6020 = vst [vmem:[#allocation2 + $0x160] sm:$0xff] %v5876_v1  ;;  %v5881_v45 = vadd.f32 %v5137_v55, %v3619_v60  ;;  %v5139_v28 = vadd.f32 %v5138_v16, %v11896_v37  ;;  %v3637_v55 = vld [vmem:[#allocation2 + $0x110] sm:$0xff] }
 0x3d0   : > { %v5142_v50 = vpop.f32.mrf.mxu1  ;;  %5753 = vmatmul.mubr.bf16.gmra.mxu1 %v10634_v31 }
 0x3d1   : > { %v11003_v61 = vpop.f32.mrf.mxu0  ;;  %6025 = vst [vmem:[#allocation2 + $0x228] sm:$0xff] %v5881_v45  ;;  %v5882_v43 = vadd.f32 %v5139_v28, %v3620_v42  ;;  %v5143_v46 = vadd.f32 %v5142_v50, %v10838_v33  ;;  %5762 = vmatprep.mubr.bf16.mxu1 %v10687_v32  ;;  %v3643_v50 = vld [vmem:[#allocation2 + $0x118] sm:$0xff] }
 0x3d2   : > { %v5144_v2 = vpop.f32.mrf.mxu1 }
 0x3d3   : > { %v11007_v58 = vpop.f32.mrf.mxu0  ;;  %6026 = vst [vmem:[#allocation2 + $0x410] sm:$0xff] %v5882_v43  ;;  %v5887_v52 = vadd.f32 %v5143_v46, %v3625_v51  ;;  %v5145_v30 = vadd.f32 %v5144_v2, %v10843_v19  ;;  %v3644_v2 = vld [vmem:[#allocation2] sm:$0xff] }
 0x3d4   : > { %v5146_v4 = vpop.f32.mrf.mxu1 }
 0x3d5   : > { %v11010_v12 = vpop.f32.mrf.mxu0  ;;  %6031 = vst [vmem:[#allocation2 + $0x400] sm:$0xff] %v5887_v52  ;;  %v5888_v31 = vadd.f32 %v5145_v30, %v3626_v0  ;;  %v5147_v60 = vadd.f32 %v5146_v4, %v10847_v44  ;;  %v3638_v44 = vld [vmem:[#allocation2 + $0x460] sm:$0xff] }
 0x3d6   : > { %v5148_v33 = vpop.f32.mrf.mxu1 }
 0x3d7   : > { %v11013_v1 = vpop.f32.mrf.mxu0  ;;  %6032 = vst [vmem:[#allocation2 + $0x1b0] sm:$0xff] %v5888_v31  ;;  %v5893_v32 = vadd.f32 %v5147_v60, %v3631_v62  ;;  %v5149_v56 = vadd.f32 %v5148_v33, %v10851_v59  ;;  %v3649_v62 = vld [vmem:[#allocation2 + $0x260] sm:$0xff]  ;;  %v11897_v60 = vld [vmem:[#allocation65_spill] sm:$0xff] }
 0x3d8   : > { %v5152_v42 = vpop.f32.mrf.mxu1  ;;  %5763 = vmatmul.mubr.bf16.gmra.mxu1 %v10678_v39 }
 0x3d9   : > { %v11017_v19 = vpop.f32.mrf.mxu0  ;;  %6037 = vst [vmem:[#allocation2 + $0x2d0] sm:$0xff] %v5893_v32  ;;  %v5894_v16 = vadd.f32 %v5149_v56, %v3632_v15  ;;  %v5153_v45 = vadd.f32 %v5152_v42, %v10853_v36  ;;  %5772 = vmatprep.mubr.bf16.mxu1 %v10698_v38  ;;  %v3655_v42 = vld [vmem:[#allocation2 + $0x440] sm:$0xff] }
 0x3da   : > { %v5154_v37 = vpop.f32.mrf.mxu1 }
 0x3db   : > { %v11021_v28 = vpop.f32.mrf.mxu0  ;;  %6038 = vst [vmem:[#allocation2 + $0x78] sm:$0xff] %v5894_v16  ;;  %v5899_v51 = vadd.f32 %v5153_v45, %v3637_v55  ;;  %v5155_v59 = vadd.f32 %v5154_v37, %v10857_v9  ;;  %v11898_v55 = vld [vmem:[#allocation66_spill] sm:$0xff] }
 0x3dc   : > { %v5156_v43 = vpop.f32.mrf.mxu1 }
 0x3dd   : > { %v11024_v46 = vpop.f32.mrf.mxu0  ;;  %6043 = vst [vmem:[#allocation2 + $0x110] sm:$0xff] %v5899_v51  ;;  %v5900_v39 = vadd.f32 %v5155_v59, %v3638_v44  ;;  %v5157_v0 = vadd.f32 %v5156_v43, %v10860_v17  ;;  %v3650_v17 = vld [vmem:[#allocation2 + $0x3b8] sm:$0xff]  ;;  %v11899_v44 = vld [vmem:[#allocation68_spill] sm:$0xff] }
 0x3de   : > { %v5158_v36 = vpop.f32.mrf.mxu1  ;;  %v3656_v51 = vld [vmem:[#allocation2 + $0x158] sm:$0xff] }
 0x3df   : > { %v11027_v52 = vpop.f32.mrf.mxu0  ;;  %6044 = vst [vmem:[#allocation2 + $0x460] sm:$0xff] %v5900_v39  ;;  %v5905_v38 = vadd.f32 %v5157_v0, %v3643_v50  ;;  %v5159_v30 = vadd.f32 %v5158_v36, %v10863_v63  ;;  %v11900_v43 = vld [vmem:[#allocation69_spill] sm:$0xff]  ;;  %v3661_v0 = vld [vmem:[#allocation2 + $0x2e0] sm:$0xff] }
 0x3e0   : > { %v5162_v4 = vpop.f32.mrf.mxu1  ;;  %5773 = vmatmul.mubr.bf16.gmra.mxu1 %v10695_v13  ;;  %v11901_v36 = vld [vmem:[#allocation51_spill] sm:$0xff] }
 0x3e1   : > { %v11031_v9 = vpop.f32.mrf.mxu0  ;;  %6049 = vst [vmem:[#allocation2 + $0x118] sm:$0xff] %v5905_v38  ;;  %v5906_v31 = vadd.f32 %v5159_v30, %v3644_v2  ;;  %v5163_v15 = vadd.f32 %v5162_v4, %v11897_v60  ;;  %5782 = vmatprep.mubr.bf16.mxu1 %v10710_v21  ;;  %v3662_v60 = vld [vmem:[#allocation2 + $0x3e8] sm:$0xff] }
 0x3e2   : > { %v5164_v33 = vpop.f32.mrf.mxu1 }
 0x3e3   : > { %v11035_v32 = vpop.f32.mrf.mxu0  ;;  %6050 = vst [vmem:[#allocation2] sm:$0xff] %v5906_v31  ;;  %v5911_v56 = vadd.f32 %v5163_v15, %v3649_v62  ;;  %v5165_v63 = vadd.f32 %v5164_v33, %v11898_v55  ;;  %v11902_v62 = vld [vmem:[#allocation71_spill] sm:$0xff]  ;;  %v11903_v31 = vld [vmem:[#allocation52_spill] sm:$0xff] }
 0x3e4   : > { %v5166_v16 = vpop.f32.mrf.mxu1 }
 0x3e5   : > { %v11038_v45 = vpop.f32.mrf.mxu0  ;;  %6055 = vst [vmem:[#allocation2 + $0x260] sm:$0xff] %v5911_v56  ;;  %v5912_v13 = vadd.f32 %v5165_v63, %v3650_v17  ;;  %v5167_v37 = vadd.f32 %v5166_v16, %v11899_v44  ;;  %v11904_v56 = vld [vmem:[#allocation35_spill] sm:$0xff]  ;;  %v11905_v44 = vld [vmem:[#allocation37_spill] sm:$0xff] }
 0x3e6   : > { %v5168_v59 = vpop.f32.mrf.mxu1  ;;  %v3667_v63 = vld [vmem:[#allocation2 + $0xe8] sm:$0xff] }
 0x3e7   : > { %v11041_v50 = vpop.f32.mrf.mxu0  ;;  %6056 = vst [vmem:[#allocation2 + $0x3b8] sm:$0xff] %v5912_v13  ;;  %v5917_v21 = vadd.f32 %v5167_v37, %v3655_v42  ;;  %v5169_v39 = vadd.f32 %v5168_v59, %v11900_v43 }
 0x3e8   : > { %v5172_v2 = vpop.f32.mrf.mxu1  ;;  %5783 = vmatmul.mubr.bf16.gmra.mxu1 %v11901_v36  ;;  %v3673_v36 = vld [vmem:[#allocation2 + $0x388] sm:$0xff] }
 0x3e9   : > { %v11045_v38 = vpop.f32.mrf.mxu0  ;;  %6061 = vst [vmem:[#allocation2 + $0x440] sm:$0xff] %v5917_v21  ;;  %v5918_v30 = vadd.f32 %v5169_v39, %v3656_v51  ;;  %v5173_v4 = vadd.f32 %v5172_v2, %v11902_v62  ;;  %5792 = vmatprep.mubr.bf16.mxu1 %v11903_v31  ;;  %v3668_v51 = vld [vmem:[#allocation2 + $0xf0] sm:$0xff] }
 0x3ea   : > { %v5174_v15 = vpop.f32.mrf.mxu1  ;;  %v11906_v39 = vld [vmem:[#allocation64_spill] sm:$0xff] }
 0x3eb   : > { %v11049_v17 = vpop.f32.mrf.mxu0  ;;  %6062 = vst [vmem:[#allocation2 + $0x158] sm:$0xff] %v5918_v30  ;;  %v5923_v33 = vadd.f32 %v5173_v4, %v3661_v0  ;;  %v5175_v55 = vadd.f32 %v5174_v15, %v11904_v56  ;;  %v11907_v30 = vld [vmem:[#allocation58_spill] sm:$0xff]  ;;  %v3674_v15 = vld [vmem:[#allocation2 + $0x430] sm:$0xff] }
 0x3ec   : > { %v5176_v42 = vpop.f32.mrf.mxu1  ;;  %v11908_v4 = vld [vmem:[#allocation38_spill] sm:$0xff] }
 0x3ed   : > { %v11052_v16 = vpop.f32.mrf.mxu0  ;;  %6067 = vst [vmem:[#allocation2 + $0x2e0] sm:$0xff] %v5923_v33  ;;  %v5924_v13 = vadd.f32 %v5175_v55, %v3662_v60  ;;  %v5177_v37 = vadd.f32 %v5176_v42, %v11905_v44  ;;  %v11910_v55 = vld [vmem:[#allocation30_spill] sm:$0xff] }
 0x3ee   : > { %v5178_v59 = vpop.f32.mrf.mxu1 }
 0x3ef   : > { %v11055_v21 = vpop.f32.mrf.mxu0  ;;  %6068 = vst [vmem:[#allocation2 + $0x3e8] sm:$0xff] %v5924_v13  ;;  %v5929_v43 = vadd.f32 %v5177_v37, %v3667_v63  ;;  %v5179_v2 = vadd.f32 %v5178_v59, %v11906_v39  ;;  %v3679_v13 = vld [vmem:[#allocation2 + $0x40] sm:$0xff]  ;;  %v11911_v37 = vld [vmem:[#allocation40_spill] sm:$0xff] }
 0x3f0   : > { %v5182_v0 = vpop.f32.mrf.mxu1  ;;  %5793 = vmatmul.mubr.bf16.gmra.mxu1 %v11907_v30 }
 0x3f1   : > { %6073 = vst [vmem:[#allocation2 + $0xe8] sm:$0xff] %v5929_v43  ;;  %v5930_v62 = vadd.f32 %v5179_v2, %v3668_v51  ;;  %v5183_v31 = vadd.f32 %v5182_v0, %v11908_v4  ;;  %v11060_v33 = vpop.f32.mrf.mxu0  ;;  %v3680_v43 = vld [vmem:[#allocation2 + $0x150] sm:$0xff] }
 0x3f2   : > { %v5184_v60 = vpop.f32.mrf.mxu1  ;;  %11909 = vst [vmem:[#allocation32_spill] sm:$0xff] %v11060_v33  ;;  %v11913_v0 = vld [vmem:[#allocation41_spill] sm:$0xff] }
 0x3f3   : > { %6074 = vst [vmem:[#allocation2 + $0xf0] sm:$0xff] %v5930_v62  ;;  %v5935_v56 = vadd.f32 %v5183_v31, %v3673_v36  ;;  %v5185_v42 = vadd.f32 %v5184_v60, %v11910_v55  ;;  %v11064_v39 = vpop.f32.mrf.mxu0  ;;  %v3543_v4 = vld [vmem:[#allocation2 + $0x10] sm:$0xff]  ;;  %v11914_v62 = vld [vmem:[#allocation42_spill] sm:$0xff] }
 0x3f4   : > { %v5186_v63 = vpop.f32.mrf.mxu1  ;;  %11912 = vst [vmem:[#allocation44_spill] sm:$0xff] %v11064_v39 }
 0x3f5   : > { %6079 = vst [vmem:[#allocation2 + $0x388] sm:$0xff] %v5935_v56  ;;  %v5936_v44 = vadd.f32 %v5185_v42, %v3674_v15  ;;  %v5187_v59 = vadd.f32 %v5186_v63, %v11911_v37  ;;  %v11068_v60 = vpop.f32.mrf.mxu0  ;;  %v3544_v56 = vld [vmem:[#allocation2 + $0x448] sm:$0xff]  ;;  %v3549_v37 = vld [vmem:[#allocation2 + $0x300] sm:$0xff] }
 0x3f6   : > { %v5188_v51 = vpop.f32.mrf.mxu1  ;;  %v11915_v42 = vld [vmem:[#allocation39_spill] sm:$0xff] }
 0x3f7   : > { %6080 = vst [vmem:[#allocation2 + $0x430] sm:$0xff] %v5936_v44  ;;  %v5941_v2 = vadd.f32 %v5187_v59, %v3679_v13  ;;  %v5189_v30 = vadd.f32 %v5188_v51, %v11913_v0  ;;  %v11916_v44 = vld [vmem:[#allocation43_spill] sm:$0xff]  ;;  %v11072_v51 = vpop.f32.mrf.mxu0 }
 0x3f8   : > { %v5378_v33 = vpop.f32.mrf.mxu1 }
 0x3f9   : > { %6085 = vst [vmem:[#allocation2 + $0x40] sm:$0xff] %v5941_v2  ;;  %v5942_v36 = vadd.f32 %v5189_v30, %v3680_v43  ;;  %v5379_v31 = vadd.f32 %v5378_v33, %v11914_v62  ;;  %v3550_v2 = vld [vmem:[#allocation2 + $0x2f0] sm:$0xff] }
 0x3fa   : > { %v5380_v15 = vpop.f32.mrf.mxu1  ;;  %v3555_v30 = vld [vmem:[#allocation2 + $0x30] sm:$0xff] }
 0x3fb   : > { %6086 = vst [vmem:[#allocation2 + $0x150] sm:$0xff] %v5942_v36  ;;  %v5805_v55 = vadd.f32 %v5379_v31, %v3543_v4  ;;  %v5381_v63 = vadd.f32 %v5380_v15, %v11915_v42  ;;  %v11076_v31 = vpop.f32.mrf.mxu0  ;;  %v3556_v15 = vld [vmem:[#allocation2 + $0x148] sm:$0xff] }
 0x3fc   : > { %v5382_v39 = vpop.f32.mrf.mxu1  ;;  %v3561_v42 = vld [vmem:[#allocation2 + $0x368] sm:$0xff] }
 0x3fd   : > { %5949 = vst [vmem:[#allocation2 + $0x10] sm:$0xff] %v5805_v55  ;;  %v5806_v13 = vadd.f32 %v5381_v63, %v3544_v56  ;;  %v5383_v59 = vadd.f32 %v5382_v39, %v11916_v44  ;;  %v3562_v44 = vld [vmem:[#allocation2 + $0x3e0] sm:$0xff] }
 0x3fe   : > { %v5384_v43 = vpop.f32.mrf.mxu1 }
 0x3ff   : > { %5950 = vst [vmem:[#allocation2 + $0x448] sm:$0xff] %v5806_v13  ;;  %v5811_v33 = vadd.f32 %v5383_v59, %v3549_v37  ;;  %v5385_v0 = vadd.f32 %v5384_v43, %v10910_v40  ;;  %v11080_v13 = vpop.f32.mrf.mxu0  ;;  %v3567_v43 = vld [vmem:[#allocation2 + $0x350] sm:$0xff] }
 0x400   : > { %v5388_v62 = vpop.f32.mrf.mxu1 }
 0x401   : > { %5955 = vst [vmem:[#allocation2 + $0x300] sm:$0xff] %v5811_v33  ;;  %v5812_v4 = vadd.f32 %v5385_v0, %v3550_v2  ;;  %v5389_v36 = vadd.f32 %v5388_v62, %v10913_v8  ;;  %v3568_v62 = vld [vmem:[#allocation2 + $0xc8] sm:$0xff] }
 0x402   : > { %v5390_v56 = vpop.f32.mrf.mxu1 }
 0x403   : > { %5956 = vst [vmem:[#allocation2 + $0x2f0] sm:$0xff] %v5812_v4  ;;  %v5817_v39 = vadd.f32 %v5389_v36, %v3555_v30  ;;  %v5391_v55 = vadd.f32 %v5390_v56, %v10916_v35  ;;  %v11084_v30 = vpop.f32.mrf.mxu0 }
 0x404   : > { %v5392_v63 = vpop.f32.mrf.mxu1 }
 0x405   : > { %5961 = vst [vmem:[#allocation2 + $0x30] sm:$0xff] %v5817_v39  ;;  %v5818_v37 = vadd.f32 %v5391_v55, %v3556_v15  ;;  %v5393_v40 = vadd.f32 %v5392_v63, %v10920_v23  ;;  %v3573_v15 = vld [vmem:[#allocation2 + $0x470] sm:$0xff]  ;;  %v11088_v55 = vpop.f32.mrf.mxu0 }
 0x406   : > { %v5394_v59 = vpop.f32.mrf.mxu1 }
 0x407   : > { %5962 = vst [vmem:[#allocation2 + $0x148] sm:$0xff] %v5818_v37  ;;  %v5823_v8 = vadd.f32 %v5393_v40, %v3561_v42  ;;  %v5395_v2 = vadd.f32 %v5394_v59, %v10924_v57  ;;  %v3574_v42 = vld [vmem:[#allocation2 + $0x298] sm:$0xff]  ;;  %v3579_v40 = vld [vmem:[#allocation2 + $0x20] sm:$0xff] }
 0x408   : > { %v5398_v33 = vpop.f32.mrf.mxu1 }
 0x409   : > { %5967 = vst [vmem:[#allocation2 + $0x368] sm:$0xff] %v5823_v8  ;;  %v5824_v0 = vadd.f32 %v5395_v2, %v3562_v44  ;;  %v5399_v35 = vadd.f32 %v5398_v33, %v10927_v24  ;;  %v11092_v8 = vpop.f32.mrf.mxu0  ;;  %v3580_v2 = vld [vmem:[#allocation2 + $0x1e8] sm:$0xff] }
 0x40a   : > { %v5400_v4 = vpop.f32.mrf.mxu1 }
 0x40b   : > { %5968 = vst [vmem:[#allocation2 + $0x3e0] sm:$0xff] %v5824_v0  ;;  %v5829_v23 = vadd.f32 %v5399_v35, %v3567_v43  ;;  %v5401_v36 = vadd.f32 %v5400_v4, %v10930_v6  ;;  %v3585_v0 = vld [vmem:[#allocation2 + $0xa0] sm:$0xff]  ;;  %v11096_v4 = vpop.f32.mrf.mxu0 }
 0x40c   : > { %v5402_v56 = vpop.f32.mrf.mxu1 }
 0x40d   : > { %5973 = vst [vmem:[#allocation2 + $0x350] sm:$0xff] %v5829_v23  ;;  %v5830_v39 = vadd.f32 %v5401_v36, %v3568_v62  ;;  %v5403_v57 = vadd.f32 %v5402_v56, %v10934_v14  ;;  %v3586_v23 = vld [vmem:[#allocation2 + $0x1d0] sm:$0xff]  ;;  %v3591_v56 = vld [vmem:[#allocation2 + $0x3f8] sm:$0xff] }
 0x40e   : > { %v5404_v63 = vpop.f32.mrf.mxu1 }
 0x40f   : > { %5974 = vst [vmem:[#allocation2 + $0xc8] sm:$0xff] %v5830_v39  ;;  %v5835_v24 = vadd.f32 %v5403_v57, %v3573_v15  ;;  %v5405_v37 = vadd.f32 %v5404_v63, %v10938_v18  ;;  %v3592_v63 = vld [vmem:[#allocation2 + $0x3f0] sm:$0xff] }
 0x410   : > { %v5408_v44 = vpop.f32.mrf.mxu1 }
 0x411   : > { %5979 = vst [vmem:[#allocation2 + $0x470] sm:$0xff] %v5835_v24  ;;  %v5836_v59 = vadd.f32 %v5405_v37, %v3574_v42  ;;  %v5409_v6 = vadd.f32 %v5408_v44, %v10941_v53  ;;  %v11100_v42 = vpop.f32.mrf.mxu0 }
 0x412   : > { %v5410_v43 = vpop.f32.mrf.mxu1 }
 0x413   : > { %5980 = vst [vmem:[#allocation2 + $0x298] sm:$0xff] %v5836_v59  ;;  %v5841_v14 = vadd.f32 %v5409_v6, %v3579_v40  ;;  %v5411_v33 = vadd.f32 %v5410_v43, %v10944_v29  ;;  %v3597_v40 = vld [vmem:[#allocation2 + $0x1b8] sm:$0xff]  ;;  %v11104_v6 = vpop.f32.mrf.mxu0 }
 0x414   : > { %v5412_v35 = vpop.f32.mrf.mxu1 }
 0x415   : > { %5985 = vst [vmem:[#allocation2 + $0x20] sm:$0xff] %v5841_v14  ;;  %v5842_v62 = vadd.f32 %v5411_v33, %v3580_v2  ;;  %v5413_v18 = vadd.f32 %v5412_v35, %v10948_v54  ;;  %v3598_v2 = vld [vmem:[#allocation2 + $0x310] sm:$0xff]  ;;  %v3603_v33 = vld [vmem:[#allocation2 + $0x2c8] sm:$0xff] }
 0x416   : > { %v5414_v36 = vpop.f32.mrf.mxu1 }
 0x417   : > { %5986 = vst [vmem:[#allocation2 + $0x1e8] sm:$0xff] %v5842_v62  ;;  %v5847_v53 = vadd.f32 %v5413_v18, %v3585_v0  ;;  %v5415_v15 = vadd.f32 %v5414_v36, %v10952_v49  ;;  %v11108_v62 = vpop.f32.mrf.mxu0  ;;  %v3604_v18 = vld [vmem:[#allocation2 + $0x3c0] sm:$0xff] }
 0x418   : > { %v5418_v39 = vpop.f32.mrf.mxu1 }
 0x419   : > { %5991 = vst [vmem:[#allocation2 + $0xa0] sm:$0xff] %v5847_v53  ;;  %v5848_v57 = vadd.f32 %v5415_v15, %v3586_v23  ;;  %v5419_v29 = vadd.f32 %v5418_v39, %v10955_v41  ;;  %v3609_v53 = vld [vmem:[#allocation2 + $0x1a0] sm:$0xff]  ;;  %v11112_v39 = vpop.f32.mrf.mxu0 }
 0x41a   : > { %v5420_v24 = vpop.f32.mrf.mxu1 }
 0x41b   : > { %5992 = vst [vmem:[#allocation2 + $0x1d0] sm:$0xff] %v5848_v57  ;;  %v5853_v54 = vadd.f32 %v5419_v29, %v3591_v56  ;;  %v5421_v37 = vadd.f32 %v5420_v24, %v10958_v7  ;;  %v3610_v57 = vld [vmem:[#allocation2 + $0x140] sm:$0xff]  ;;  %v3615_v24 = vld [vmem:[#allocation2 + $0x2a8] sm:$0xff] }
 0x41c   : > { %v5422_v44 = vpop.f32.mrf.mxu1 }
 0x41d   : > { %5997 = vst [vmem:[#allocation2 + $0x3f8] sm:$0xff] %v5853_v54  ;;  %v5854_v59 = vadd.f32 %v5421_v37, %v3592_v63  ;;  %v5423_v49 = vadd.f32 %v5422_v44, %v10962_v3  ;;  %v3616_v44 = vld [vmem:[#allocation2 + $0x130] sm:$0xff] }
 0x41e   : > { %v5424_v43 = vpop.f32.mrf.mxu1 }
 0x41f   : > { %5998 = vst [vmem:[#allocation2 + $0x3f0] sm:$0xff] %v5854_v59  ;;  %v5859_v41 = vadd.f32 %v5423_v49, %v3597_v40  ;;  %v5425_v14 = vadd.f32 %v5424_v43, %v10966_v34  ;;  %v11116_v40 = vpop.f32.mrf.mxu0 }
 0x420   : > { %v5428_v0 = vpop.f32.mrf.mxu1 }
 0x421   : > { %6003 = vst [vmem:[#allocation2 + $0x1b8] sm:$0xff] %v5859_v41  ;;  %v5860_v35 = vadd.f32 %v5425_v14, %v3598_v2  ;;  %v5429_v7 = vadd.f32 %v5428_v0, %v10969_v27  ;;  %v3621_v2 = vld [vmem:[#allocation2 + $0x210] sm:$0xff]  ;;  %v11120_v14 = vpop.f32.mrf.mxu0 }
 0x422   : > { %v5430_v23 = vpop.f32.mrf.mxu1 }
 0x423   : > { %6004 = vst [vmem:[#allocation2 + $0x310] sm:$0xff] %v5860_v35  ;;  %v5865_v3 = vadd.f32 %v5429_v7, %v3603_v33  ;;  %v5431_v36 = vadd.f32 %v5430_v23, %v10972_v48  ;;  %v3622_v33 = vld [vmem:[#allocation2 + $0x1c0] sm:$0xff]  ;;  %v3627_v7 = vld [vmem:[#allocation2 + $0x328] sm:$0xff] }
 0x424   : > { %v5432_v15 = vpop.f32.mrf.mxu1 }
 0x425   : > { %6009 = vst [vmem:[#allocation2 + $0x2c8] sm:$0xff] %v5865_v3  ;;  %v5866_v56 = vadd.f32 %v5431_v36, %v3604_v18  ;;  %v5433_v34 = vadd.f32 %v5432_v15, %v10975_v22  ;;  %v11124_v3 = vpop.f32.mrf.mxu0  ;;  %v3628_v36 = vld [vmem:[#allocation2 + $0x230] sm:$0xff] }
 0x426   : > { %v5434_v29 = vpop.f32.mrf.mxu1 }
 0x427   : > { %6010 = vst [vmem:[#allocation2 + $0x3c0] sm:$0xff] %v5866_v56  ;;  %v5871_v27 = vadd.f32 %v5433_v34, %v3609_v53  ;;  %v5435_v63 = vadd.f32 %v5434_v29, %v10979_v10  ;;  %v3633_v56 = vld [vmem:[#allocation2 + $0x2f8] sm:$0xff]  ;;  %v11128_v29 = vpop.f32.mrf.mxu0 }
 0x428   : > { %v5438_v54 = vpop.f32.mrf.mxu1 }
 0x429   : > { %6015 = vst [vmem:[#allocation2 + $0x1a0] sm:$0xff] %v5871_v27  ;;  %v5872_v37 = vadd.f32 %v5435_v63, %v3610_v57  ;;  %v5439_v48 = vadd.f32 %v5438_v54, %v10982_v26  ;;  %v3634_v27 = vld [vmem:[#allocation2 + $0x218] sm:$0xff]  ;;  %v3639_v54 = vld [vmem:[#allocation2 + $0x2a0] sm:$0xff] }
 0x42a   : > { %v5440_v59 = vpop.f32.mrf.mxu1 }
 0x42b   : > { %6016 = vst [vmem:[#allocation2 + $0x140] sm:$0xff] %v5872_v37  ;;  %v5877_v22 = vadd.f32 %v5439_v48, %v3615_v24  ;;  %v5441_v49 = vadd.f32 %v5440_v59, %v10985_v5  ;;  %v3640_v59 = vld [vmem:[#allocation2 + $0x3d8] sm:$0xff] }
 0x42c   : > { %v5442_v43 = vpop.f32.mrf.mxu1 }
 0x42d   : > { %6021 = vst [vmem:[#allocation2 + $0x2a8] sm:$0xff] %v5877_v22  ;;  %v5878_v41 = vadd.f32 %v5441_v49, %v3616_v44  ;;  %v5443_v10 = vadd.f32 %v5442_v43, %v10989_v11  ;;  %v11132_v44 = vpop.f32.mrf.mxu0 }
 0x42e   : > { %v5444_v0 = vpop.f32.mrf.mxu1 }
 0x42f   : > { %6022 = vst [vmem:[#allocation2 + $0x130] sm:$0xff] %v5878_v41  ;;  %v5883_v26 = vadd.f32 %v5443_v10, %v3621_v2  ;;  %v5445_v35 = vadd.f32 %v5444_v0, %v10993_v25  ;;  %v3645_v2 = vld [vmem:[#allocation2 + $0x478] sm:$0xff]  ;;  %v11136_v10 = vpop.f32.mrf.mxu0 }
 0x430   : > { %v5448_v18 = vpop.f32.mrf.mxu1 }
 0x431   : > { %6027 = vst [vmem:[#allocation2 + $0x210] sm:$0xff] %v5883_v26  ;;  %v5884_v23 = vadd.f32 %v5445_v35, %v3622_v33  ;;  %v5449_v5 = vadd.f32 %v5448_v18, %v10996_v20  ;;  %v3646_v33 = vld [vmem:[#allocation2 + $0x138] sm:$0xff]  ;;  %v3651_v35 = vld [vmem:[#allocation2 + $0x180] sm:$0xff] }
 0x432   : > { %v5450_v53 = vpop.f32.mrf.mxu1 }
 0x433   : > { %6028 = vst [vmem:[#allocation2 + $0x1c0] sm:$0xff] %v5884_v23  ;;  %v5889_v11 = vadd.f32 %v5449_v5, %v3627_v7  ;;  %v5451_v15 = vadd.f32 %v5450_v53, %v10999_v47  ;;  %v11140_v23 = vpop.f32.mrf.mxu0  ;;  %v3652_v5 = vld [vmem:[#allocation2 + $0x28] sm:$0xff] }
 0x434   : > { %v5452_v34 = vpop.f32.mrf.mxu1 }
 0x435   : > { %6033 = vst [vmem:[#allocation2 + $0x328] sm:$0xff] %v5889_v11  ;;  %v5890_v57 = vadd.f32 %v5451_v15, %v3628_v36  ;;  %v5453_v25 = vadd.f32 %v5452_v34, %v11003_v61  ;;  %v3657_v11 = vld [vmem:[#allocation2 + $0x360] sm:$0xff]  ;;  %v11144_v34 = vpop.f32.mrf.mxu0 }
 0x436   : > { %v5454_v63 = vpop.f32.mrf.mxu1 }
 0x437   : > { %6034 = vst [vmem:[#allocation2 + $0x230] sm:$0xff] %v5890_v57  ;;  %v5895_v20 = vadd.f32 %v5453_v25, %v3633_v56  ;;  %v5455_v24 = vadd.f32 %v5454_v63, %v11007_v58  ;;  %v3658_v57 = vld [vmem:[#allocation2 + $0x50] sm:$0xff] }
 0x438   : > { %v5458_v37 = vpop.f32.mrf.mxu1  ;;  %v3663_v63 = vld [vmem:[#allocation2 + $0x250] sm:$0xff] }
 0x439   : > { %6039 = vst [vmem:[#allocation2 + $0x2f8] sm:$0xff] %v5895_v20  ;;  %v5896_v48 = vadd.f32 %v5455_v24, %v3634_v27  ;;  %v5459_v47 = vadd.f32 %v5458_v37, %v11010_v12  ;;  %v3664_v37 = vld [vmem:[#allocation2 + $0x1c8] sm:$0xff] }
 0x43a   : > { %v5460_v22 = vpop.f32.mrf.mxu1 }
 0x43b   : > { %6040 = vst [vmem:[#allocation2 + $0x218] sm:$0xff] %v5896_v48  ;;  %v5901_v61 = vadd.f32 %v5459_v47, %v3639_v54  ;;  %v5461_v49 = vadd.f32 %v5460_v22, %v11013_v1  ;;  %v11148_v54 = vpop.f32.mrf.mxu0 }
 0x43c   : > { %v5462_v43 = vpop.f32.mrf.mxu1 }
 0x43d   : > { %6045 = vst [vmem:[#allocation2 + $0x2a0] sm:$0xff] %v5901_v61  ;;  %v5902_v41 = vadd.f32 %v5461_v49, %v3640_v59  ;;  %v5463_v58 = vadd.f32 %v5462_v43, %v11017_v19  ;;  %v3669_v59 = vld [vmem:[#allocation2 + $0x168] sm:$0xff]  ;;  %v11152_v49 = vpop.f32.mrf.mxu0 }
 0x43e   : > { %v5464_v0 = vpop.f32.mrf.mxu1 }
 0x43f   : > { %6046 = vst [vmem:[#allocation2 + $0x3d8] sm:$0xff] %v5902_v41  ;;  %v5907_v12 = vadd.f32 %v5463_v58, %v3645_v2  ;;  %v5465_v26 = vadd.f32 %v5464_v0, %v11021_v28  ;;  %v3670_v2 = vld [vmem:[#allocation2 + $0x90] sm:$0xff]  ;;  %v3675_v58 = vld [vmem:[#allocation2 + $0x80] sm:$0xff] }
 0x440   : > { %v5468_v7 = vpop.f32.mrf.mxu1 }
 0x441   : > { %6051 = vst [vmem:[#allocation2 + $0x478] sm:$0xff] %v5907_v12  ;;  %v5908_v18 = vadd.f32 %v5465_v26, %v3646_v33  ;;  %v5469_v1 = vadd.f32 %v5468_v7, %v11024_v46  ;;  %v11156_v12 = vpop.f32.mrf.mxu0  ;;  %v3676_v26 = vld [vmem:[#allocation2 + $0x428] sm:$0xff] }
 0x442   : > { %v5470_v36 = vpop.f32.mrf.mxu1 }
 0x443   : > { %6052 = vst [vmem:[#allocation2 + $0x138] sm:$0xff] %v5908_v18  ;;  %v5913_v19 = vadd.f32 %v5469_v1, %v3651_v35  ;;  %v5471_v53 = vadd.f32 %v5470_v36, %v11027_v52  ;;  %v3681_v18 = vld [vmem:[#allocation2 + $0x3a8] sm:$0xff] }
 0x444   : > { %v5472_v15 = vpop.f32.mrf.mxu1  ;;  %v11917_v36 = vld [vmem:[#allocation32_spill] sm:$0xff] }
 0x445   : > { %6057 = vst [vmem:[#allocation2 + $0x180] sm:$0xff] %v5913_v19  ;;  %v5914_v56 = vadd.f32 %v5471_v53, %v3652_v5  ;;  %v5473_v28 = vadd.f32 %v5472_v15, %v11031_v9  ;;  %v11160_v19 = vpop.f32.mrf.mxu0  ;;  %v3682_v53 = vld [vmem:[#allocation2 + $0x98] sm:$0xff]  ;;  %v11918_v15 = vld [vmem:[#allocation44_spill] sm:$0xff] }
 0x446   : > { %v5474_v25 = vpop.f32.mrf.mxu1 }
 0x447   : > { %6058 = vst [vmem:[#allocation2 + $0x28] sm:$0xff] %v5914_v56  ;;  %v5919_v46 = vadd.f32 %v5473_v28, %v3657_v11  ;;  %v5475_v27 = vadd.f32 %v5474_v25, %v11035_v32  ;;  %v3545_v28 = vld [vmem:[#allocation2 + $0x320] sm:$0xff] }
 0x448   : > { %v5478_v20 = vpop.f32.mrf.mxu1 }
 0x449   : > { %6063 = vst [vmem:[#allocation2 + $0x360] sm:$0xff] %v5919_v46  ;;  %v5920_v24 = vadd.f32 %v5475_v27, %v3658_v57  ;;  %v5479_v52 = vadd.f32 %v5478_v20, %v11038_v45  ;;  %v11164_v46 = vpop.f32.mrf.mxu0  ;;  %v3546_v27 = vld [vmem:[#allocation2 + $0x438] sm:$0xff] }
 0x44a   : > { %v5480_v48 = vpop.f32.mrf.mxu1 }
 0x44b   : > { %6064 = vst [vmem:[#allocation2 + $0x50] sm:$0xff] %v5920_v24  ;;  %v5925_v9 = vadd.f32 %v5479_v52, %v3663_v63  ;;  %v5481_v47 = vadd.f32 %v5480_v48, %v11041_v50  ;;  %v3551_v52 = vld [vmem:[#allocation2 + $0x290] sm:$0xff] }
 0x44c   : > { %v5482_v22 = vpop.f32.mrf.mxu1 }
 0x44d   : > { %6069 = vst [vmem:[#allocation2 + $0x250] sm:$0xff] %v5925_v9  ;;  %v5926_v61 = vadd.f32 %v5481_v47, %v3664_v37  ;;  %v5483_v32 = vadd.f32 %v5482_v22, %v11045_v38  ;;  %v11168_v47 = vpop.f32.mrf.mxu0 }
 0x44e   : > { %v5484_v43 = vpop.f32.mrf.mxu1 }
 0x44f   : > { %6070 = vst [vmem:[#allocation2 + $0x1c8] sm:$0xff] %v5926_v61  ;;  %v5931_v45 = vadd.f32 %v5483_v32, %v3669_v59  ;;  %v5485_v41 = vadd.f32 %v5484_v43, %v11049_v17  ;;  %v3552_v59 = vld [vmem:[#allocation2 + $0x380] sm:$0xff]  ;;  %v3557_v32 = vld [vmem:[#allocation2 + $0x208] sm:$0xff] }
 0x450   : > { %v5488_v33 = vpop.f32.mrf.mxu1 }
 0x451   : > { %6075 = vst [vmem:[#allocation2 + $0x168] sm:$0xff] %v5931_v45  ;;  %v5932_v0 = vadd.f32 %v5485_v41, %v3670_v2  ;;  %v5489_v50 = vadd.f32 %v5488_v33, %v11052_v16  ;;  %v11172_v45 = vpop.f32.mrf.mxu0  ;;  %v3558_v41 = vld [vmem:[#allocation2 + $0x88] sm:$0xff] }
 0x452   : > { %v5490_v35 = vpop.f32.mrf.mxu1 }
 0x453   : > { %6076 = vst [vmem:[#allocation2 + $0x90] sm:$0xff] %v5932_v0  ;;  %v5937_v38 = vadd.f32 %v5489_v50, %v3675_v58  ;;  %v5491_v7 = vadd.f32 %v5490_v35, %v11055_v21  ;;  %v3563_v0 = vld [vmem:[#allocation2 + $0x1a8] sm:$0xff]  ;;  %v11176_v35 = vpop.f32.mrf.mxu0 }
 0x454   : > { %v5492_v1 = vpop.f32.mrf.mxu1 }
 0x455   : > { %6081 = vst [vmem:[#allocation2 + $0x80] sm:$0xff] %v5937_v38  ;;  %v5938_v5 = vadd.f32 %v5491_v7, %v3676_v26  ;;  %v5493_v17 = vadd.f32 %v5492_v1, %v11917_v36  ;;  %v3564_v38 = vld [vmem:[#allocation2 + $0x450] sm:$0xff]  ;;  %v3569_v1 = vld [vmem:[#allocation2 + $0x240] sm:$0xff] }
 0x456   : > { %v5494_v11 = vpop.f32.mrf.mxu1 }
 0x457   : > { %6082 = vst [vmem:[#allocation2 + $0x428] sm:$0xff] %v5938_v5  ;;  %v5943_v16 = vadd.f32 %v5493_v17, %v3681_v18  ;;  %v5495_v56 = vadd.f32 %v5494_v11, %v11918_v15  ;;  %v11180_v17 = vpop.f32.mrf.mxu0  ;;  %v3575_v15 = vld [vmem:[#allocation2 + $0x278] sm:$0xff] }
 0x458   : > { %v5684_v57 = vpop.f32.mrf.mxu1 }
 0x459   : > { %6087 = vst [vmem:[#allocation2 + $0x3a8] sm:$0xff] %v5943_v16  ;;  %v5944_v25 = vadd.f32 %v5495_v56, %v3682_v53  ;;  %v5685_v21 = vadd.f32 %v5684_v57, %v11068_v60  ;;  %v3570_v53 = vld [vmem:[#allocation2 + $0x390] sm:$0xff]  ;;  %v11184_v57 = vpop.f32.mrf.mxu0 }
 0x45a   : > { %v5686_v63 = vpop.f32.mrf.mxu1 }
 0x45b   : > { %6088 = vst [vmem:[#allocation2 + $0x98] sm:$0xff] %v5944_v25  ;;  %v5807_v20 = vadd.f32 %v5685_v21, %v3545_v28  ;;  %v5687_v24 = vadd.f32 %v5686_v63, %v11072_v51  ;;  %v3576_v25 = vld [vmem:[#allocation2 + $0x170] sm:$0xff]  ;;  %v3581_v63 = vld [vmem:[#allocation2 + $0x1f8] sm:$0xff] }
 0x45c   : > { %v5688_v37 = vpop.f32.mrf.mxu1 }
 0x45d   : > { %5951 = vst [vmem:[#allocation2 + $0x320] sm:$0xff] %v5807_v20  ;;  %v5808_v48 = vadd.f32 %v5687_v24, %v3546_v27  ;;  %v5689_v9 = vadd.f32 %v5688_v37, %v11076_v31  ;;  %v3582_v37 = vld [vmem:[#allocation2 + $0x60] sm:$0xff] }
 0x45e   : > { %v5690_v22 = vpop.f32.mrf.mxu1 }
 0x45f   : > { %5952 = vst [vmem:[#allocation2 + $0x438] sm:$0xff] %v5808_v48  ;;  %v5813_v60 = vadd.f32 %v5689_v9, %v3551_v52  ;;  %v5691_v61 = vadd.f32 %v5690_v22, %v11080_v13  ;;  %v11188_v52 = vpop.f32.mrf.mxu0 }
 0x460   : > { %v5694_v2 = vpop.f32.mrf.mxu1 }
 0x461   : > { %5957 = vst [vmem:[#allocation2 + $0x290] sm:$0xff] %v5813_v60  ;;  %v5814_v43 = vadd.f32 %v5691_v61, %v3552_v59  ;;  %v5695_v51 = vadd.f32 %v5694_v2, %v11084_v30  ;;  %v3587_v59 = vld [vmem:[#allocation2 + $0x258] sm:$0xff]  ;;  %v11192_v61 = vpop.f32.mrf.mxu0 }
 0x462   : > { %v5696_v58 = vpop.f32.mrf.mxu1 }
 0x463   : > { %5958 = vst [vmem:[#allocation2 + $0x380] sm:$0xff] %v5814_v43  ;;  %v5819_v31 = vadd.f32 %v5695_v51, %v3557_v32  ;;  %v5697_v33 = vadd.f32 %v5696_v58, %v11088_v55  ;;  %v3588_v32 = vld [vmem:[#allocation2 + $0xd0] sm:$0xff]  ;;  %v3593_v51 = vld [vmem:[#allocation2 + $0x338] sm:$0xff] }
 0x464   : > { %v5698_v50 = vpop.f32.mrf.mxu1 }
 0x465   : > { %5963 = vst [vmem:[#allocation2 + $0x208] sm:$0xff] %v5819_v31  ;;  %v5820_v26 = vadd.f32 %v5697_v33, %v3558_v41  ;;  %v5699_v13 = vadd.f32 %v5698_v50, %v11092_v8  ;;  %v11196_v31 = vpop.f32.mrf.mxu0  ;;  %v3594_v33 = vld [vmem:[#allocation2 + $0x248] sm:$0xff] }
 0x466   : > { %v5700_v7 = vpop.f32.mrf.mxu1 }
 0x467   : > { %5964 = vst [vmem:[#allocation2 + $0x88] sm:$0xff] %v5820_v26  ;;  %v5825_v30 = vadd.f32 %v5699_v13, %v3563_v0  ;;  %v5701_v18 = vadd.f32 %v5700_v7, %v11096_v4  ;;  %v3599_v26 = vld [vmem:[#allocation2 + $0x280] sm:$0xff]  ;;  %v11200_v7 = vpop.f32.mrf.mxu0 }
 0x468   : > { %v5704_v5 = vpop.f32.mrf.mxu1 }
 0x469   : > { %5969 = vst [vmem:[#allocation2 + $0x1a8] sm:$0xff] %v5825_v30  ;;  %v5826_v36 = vadd.f32 %v5701_v18, %v3564_v38  ;;  %v5705_v55 = vadd.f32 %v5704_v5, %v11100_v42  ;;  %v3600_v30 = vld [vmem:[#allocation2 + $0x288] sm:$0xff]  ;;  %v3605_v5 = vld [vmem:[#allocation2 + $0x418] sm:$0xff] }
 0x46a   : > { %v5706_v11 = vpop.f32.mrf.mxu1 }
 0x46b   : > { %5970 = vst [vmem:[#allocation2 + $0x450] sm:$0xff] %v5826_v36  ;;  %v5831_v8 = vadd.f32 %v5705_v55, %v3569_v1  ;;  %v5707_v16 = vadd.f32 %v5706_v11, %v11104_v6  ;;  %v3606_v11 = vld [vmem:[#allocation2 + $0x70] sm:$0xff] }
 0x46c   : > { %v5708_v56 = vpop.f32.mrf.mxu1 }
 0x46d   : > { %5975 = vst [vmem:[#allocation2 + $0x240] sm:$0xff] %v5831_v8  ;;  %v5832_v28 = vadd.f32 %v5707_v16, %v3570_v53  ;;  %v5709_v4 = vadd.f32 %v5708_v56, %v11108_v62  ;;  %v11204_v53 = vpop.f32.mrf.mxu0 }
 0x46e   : > { %v5710_v21 = vpop.f32.mrf.mxu1 }
 0x46f   : > { %5976 = vst [vmem:[#allocation2 + $0x390] sm:$0xff] %v5832_v28  ;;  %v5837_v42 = vadd.f32 %v5709_v4, %v3575_v15  ;;  %v5711_v27 = vadd.f32 %v5710_v21, %v11112_v39  ;;  %v3611_v15 = vld [vmem:[#allocation2 + $0x3a0] sm:$0xff]  ;;  %v11208_v4 = vpop.f32.mrf.mxu0 }
 0x470   : > { %v5714_v20 = vpop.f32.mrf.mxu1 }
 0x471   : > { %5981 = vst [vmem:[#allocation2 + $0x278] sm:$0xff] %v5837_v42  ;;  %v5838_v24 = vadd.f32 %v5711_v27, %v3576_v25  ;;  %v5715_v6 = vadd.f32 %v5714_v20, %v11116_v40  ;;  %v3612_v25 = vld [vmem:[#allocation2 + $0xf8] sm:$0xff] }
 0x472   : > { %v5716_v48 = vpop.f32.mrf.mxu1  ;;  %v3617_v27 = vld [vmem:[#allocation2 + $0x318] sm:$0xff] }
 0x473   : > { %5982 = vst [vmem:[#allocation2 + $0x170] sm:$0xff] %v5838_v24  ;;  %v5843_v62 = vadd.f32 %v5715_v6, %v3581_v63  ;;  %v5717_v9 = vadd.f32 %v5716_v48, %v11120_v14  ;;  %v11212_v24 = vpop.f32.mrf.mxu0  ;;  %v3618_v6 = vld [vmem:[#allocation2 + $0x268] sm:$0xff] }
 0x474   : > { %v5718_v22 = vpop.f32.mrf.mxu1 }
 0x475   : > { %5987 = vst [vmem:[#allocation2 + $0x1f8] sm:$0xff] %v5843_v62  ;;  %v5844_v60 = vadd.f32 %v5717_v9, %v3582_v37  ;;  %v5719_v39 = vadd.f32 %v5718_v22, %v11124_v3  ;;  %v3623_v62 = vld [vmem:[#allocation2 + $0x358] sm:$0xff]  ;;  %v5623_v22 = vpop.f32.mrf.mxu0 }
 0x476   : > { %v5720_v2 = vpop.f32.mrf.mxu1 }
 0x477   : > { %5988 = vst [vmem:[#allocation2 + $0x60] sm:$0xff] %v5844_v60  ;;  %v5849_v40 = vadd.f32 %v5719_v39, %v3587_v59  ;;  %v5721_v43 = vadd.f32 %v5720_v2, %v11128_v29  ;;  %v3624_v60 = vld [vmem:[#allocation2 + $0x8] sm:$0xff]  ;;  %v3629_v2 = vld [vmem:[#allocation2 + $0xb8] sm:$0xff] }
 0x478   : > { %v5724_v41 = vpop.f32.mrf.mxu1 }
 0x479   : > { %5993 = vst [vmem:[#allocation2 + $0x258] sm:$0xff] %v5849_v40  ;;  %v5850_v58 = vadd.f32 %v5721_v43, %v3588_v32  ;;  %v5725_v14 = vadd.f32 %v5724_v41, %v11132_v44  ;;  %v3630_v41 = vld [vmem:[#allocation2 + $0x468] sm:$0xff] }
 0x47a   : > { %v5726_v0 = vpop.f32.mrf.mxu1 }
 0x47b   : > { %5994 = vst [vmem:[#allocation2 + $0xd0] sm:$0xff] %v5850_v58  ;;  %v5855_v3 = vadd.f32 %v5725_v14, %v3593_v51  ;;  %v5727_v50 = vadd.f32 %v5726_v0, %v11136_v10 }
 0x47c   : > { %v5728_v13 = vpop.f32.mrf.mxu1 }
 0x47d   : > { %5999 = vst [vmem:[#allocation2 + $0x338] sm:$0xff] %v5855_v3  ;;  %v5856_v38 = vadd.f32 %v5727_v50, %v3594_v33  ;;  %v5729_v29 = vadd.f32 %v5728_v13, %v11140_v23  ;;  %v3635_v33 = vld [vmem:[#allocation2 + $0x1f0] sm:$0xff] }
 0x47e   : > { %v5730_v18 = vpop.f32.mrf.mxu1 }
 0x47f   : > { %6000 = vst [vmem:[#allocation2 + $0x248] sm:$0xff] %v5856_v38  ;;  %v5861_v44 = vadd.f32 %v5729_v29, %v3599_v26  ;;  %v5731_v1 = vadd.f32 %v5730_v18, %v11144_v34  ;;  %v3636_v26 = vld [vmem:[#allocation2 + $0x178] sm:$0xff]  ;;  %v3641_v29 = vld [vmem:[#allocation2 + $0xa8] sm:$0xff] }
 0x480   : > { %v5734_v36 = vpop.f32.mrf.mxu1 }
 0x481   : > { %6005 = vst [vmem:[#allocation2 + $0x280] sm:$0xff] %v5861_v44  ;;  %v5862_v55 = vadd.f32 %v5731_v1, %v3600_v30  ;;  %v5735_v10 = vadd.f32 %v5734_v36, %v11148_v54  ;;  %v3642_v1 = vld [vmem:[#allocation2 + $0x1d8] sm:$0xff] }
 0x482   : > { %v5736_v8 = vpop.f32.mrf.mxu1 }
 0x483   : > { %6006 = vst [vmem:[#allocation2 + $0x288] sm:$0xff] %v5862_v55  ;;  %v5867_v23 = vadd.f32 %v5735_v10, %v3605_v5  ;;  %v5737_v16 = vadd.f32 %v5736_v8, %v11152_v49  ;;  %v3647_v55 = vld [vmem:[#allocation2 + $0xd8] sm:$0xff] }
 0x484   : > { %v5738_v56 = vpop.f32.mrf.mxu1 }
 0x485   : > { %6011 = vst [vmem:[#allocation2 + $0x418] sm:$0xff] %v5867_v23  ;;  %v5868_v28 = vadd.f32 %v5737_v16, %v3606_v11  ;;  %v5739_v34 = vadd.f32 %v5738_v56, %v11156_v12  ;;  %v3648_v23 = vld [vmem:[#allocation2 + $0x2d8] sm:$0xff]  ;;  %v3653_v56 = vld [vmem:[#allocation2 + $0x108] sm:$0xff] }
 0x486   : > { %v5740_v21 = vpop.f32.mrf.mxu1 }
 0x487   : > { %6012 = vst [vmem:[#allocation2 + $0x70] sm:$0xff] %v5868_v28  ;;  %v5873_v54 = vadd.f32 %v5739_v34, %v3611_v15  ;;  %v5741_v42 = vadd.f32 %v5740_v21, %v11160_v19  ;;  %v3654_v21 = vld [vmem:[#allocation2 + $0x378] sm:$0xff] }
 0x488   : > { %v5744_v63 = vpop.f32.mrf.mxu1 }
 0x489   : > { %6017 = vst [vmem:[#allocation2 + $0x3a0] sm:$0xff] %v5873_v54  ;;  %v5874_v20 = vadd.f32 %v5741_v42, %v3612_v25  ;;  %v5745_v49 = vadd.f32 %v5744_v63, %v11164_v46 }
 0x48a   : > { %v5746_v37 = vpop.f32.mrf.mxu1 }
 0x48b   : > { %6018 = vst [vmem:[#allocation2 + $0xf8] sm:$0xff] %v5874_v20  ;;  %v5879_v12 = vadd.f32 %v5745_v49, %v3617_v27  ;;  %v5747_v48 = vadd.f32 %v5746_v37, %v11168_v47  ;;  %v5625_v47 = vpop.f32.mrf.mxu0  ;;  %v3660_v37 = vld [vmem:[#allocation2 + $0x340] sm:$0xff] }
 0x48c   : > { %v5748_v9 = vpop.f32.mrf.mxu1 }
 0x48d   : > { %6023 = vst [vmem:[#allocation2 + $0x318] sm:$0xff] %v5879_v12  ;;  %v5880_v59 = vadd.f32 %v5747_v48, %v3618_v6  ;;  %v5749_v19 = vadd.f32 %v5748_v9, %v11172_v45 }
 0x48e   : > { %v5750_v39 = vpop.f32.mrf.mxu1 }
 0x48f   : > { %6024 = vst [vmem:[#allocation2 + $0x268] sm:$0xff] %v5880_v59  ;;  %v5885_v32 = vadd.f32 %v5749_v19, %v3623_v62  ;;  %v5751_v46 = vadd.f32 %v5750_v39, %v11176_v35  ;;  %v5627_v35 = vpop.f32.mrf.mxu0  ;;  %v3665_v62 = vld [vmem:[#allocation2 + $0x190] sm:$0xff] }
 0x490   : > { %v5754_v40 = vpop.f32.mrf.mxu1 }
 0x491   : > { %6029 = vst [vmem:[#allocation2 + $0x358] sm:$0xff] %v5885_v32  ;;  %v5886_v43 = vadd.f32 %v5751_v46, %v3624_v60  ;;  %v5755_v51 = vadd.f32 %v5754_v40, %v11180_v17  ;;  %v3666_v60 = vld [vmem:[#allocation2 + $0x3d0] sm:$0xff]  ;;  %v3671_v46 = vld [vmem:[#allocation2 + $0x1e0] sm:$0xff] }
 0x492   : > { %v5756_v58 = vpop.f32.mrf.mxu1 }
 0x493   : > { %6030 = vst [vmem:[#allocation2 + $0x8] sm:$0xff] %v5886_v43  ;;  %v5891_v14 = vadd.f32 %v5755_v51, %v3629_v2  ;;  %v5757_v45 = vadd.f32 %v5756_v58, %v11184_v57  ;;  %v5631_v57 = vpop.f32.mrf.mxu0 }
 0x494   : > { %v5758_v0 = vpop.f32.mrf.mxu1 }
 0x495   : > { %6035 = vst [vmem:[#allocation2 + $0xb8] sm:$0xff] %v5891_v14  ;;  %v5892_v3 = vadd.f32 %v5757_v45, %v3630_v41  ;;  %v5759_v50 = vadd.f32 %v5758_v0, %v11188_v52  ;;  %v3677_v45 = vld [vmem:[#allocation2 + $0x238] sm:$0xff] }
 0x496   : > { %v5760_v13 = vpop.f32.mrf.mxu1 }
 0x497   : > { %6036 = vst [vmem:[#allocation2 + $0x468] sm:$0xff] %v5892_v3  ;;  %v5897_v38 = vadd.f32 %v5759_v50, %v3635_v33  ;;  %v5761_v17 = vadd.f32 %v5760_v13, %v11192_v61  ;;  %v5633_v61 = vpop.f32.mrf.mxu0 }
 0x498   : > { %v5764_v30 = vpop.f32.mrf.mxu1 }
 0x499   : > { %6041 = vst [vmem:[#allocation2 + $0x1f0] sm:$0xff] %v5897_v38  ;;  %v5898_v18 = vadd.f32 %v5761_v17, %v3636_v26  ;;  %v5765_v44 = vadd.f32 %v5764_v30, %v11196_v31  ;;  %v3683_v17 = vld [vmem:[#allocation2 + $0x58] sm:$0xff] }
 0x49a   : > { %v5766_v5 = vpop.f32.mrf.mxu1 }
 0x49b   : > { %6042 = vst [vmem:[#allocation2 + $0x178] sm:$0xff] %v5898_v18  ;;  %v5903_v36 = vadd.f32 %v5765_v44, %v3641_v29  ;;  %v5767_v52 = vadd.f32 %v5766_v5, %v11200_v7  ;;  %v5635_v7 = vpop.f32.mrf.mxu0 }
 0x49c   : > { %v5768_v10 = vpop.f32.mrf.mxu1 }
 0x49d   : > { %6047 = vst [vmem:[#allocation2 + $0xa8] sm:$0xff] %v5903_v36  ;;  %v5904_v11 = vadd.f32 %v5767_v52, %v3642_v1  ;;  %v5769_v8 = vadd.f32 %v5768_v10, %v11204_v53  ;;  %v3659_v53 = vld [vmem:[#allocation2 + $0x308] sm:$0xff]  ;;  %v5637_v6 = vpop.f32.mrf.mxu0 }
 0x49e   : > { %v5770_v16 = vpop.f32.mrf.mxu1 }
 0x49f   : > { %6048 = vst [vmem:[#allocation2 + $0x1d8] sm:$0xff] %v5904_v11  ;;  %v5909_v15 = vadd.f32 %v5769_v8, %v3647_v55  ;;  %v5771_v31 = vadd.f32 %v5770_v16, %v11208_v4  ;;  %v5641_v19 = vpop.f32.mrf.mxu0 }
 0x4a0   : > { %v5774_v28 = vpop.f32.mrf.mxu1 }
 0x4a1   : > { %6053 = vst [vmem:[#allocation2 + $0xd8] sm:$0xff] %v5909_v15  ;;  %v5910_v34 = vadd.f32 %v5771_v31, %v3648_v23  ;;  %v5775_v25 = vadd.f32 %v5774_v28, %v11212_v24  ;;  %v5643_v51 = vpop.f32.mrf.mxu0 }
 0x4a2   : > { %v5776_v54 = vpop.f32.mrf.mxu1 }
 0x4a3   : > { %6054 = vst [vmem:[#allocation2 + $0x2d8] sm:$0xff] %v5910_v34  ;;  %v5915_v42 = vadd.f32 %v5775_v25, %v3653_v56  ;;  %v5777_v27 = vadd.f32 %v5776_v54, %v5623_v22  ;;  %v5645_v50 = vpop.f32.mrf.mxu0 }
 0x4a4   : > { %v5778_v63 = vpop.f32.mrf.mxu1 }
 0x4a5   : > { %6059 = vst [vmem:[#allocation2 + $0x108] sm:$0xff] %v5915_v42  ;;  %v5916_v20 = vadd.f32 %v5777_v27, %v3654_v21  ;;  %v5779_v49 = vadd.f32 %v5778_v63, %v5625_v47  ;;  %v3672_v47 = vld [vmem:[#allocation2 + $0x38] sm:$0xff]  ;;  %v5647_v44 = vpop.f32.mrf.mxu0 }
 0x4a6   : > { %v5780_v4 = vpop.f32.mrf.mxu1 }
 0x4a7   : > { %6060 = vst [vmem:[#allocation2 + $0x378] sm:$0xff] %v5916_v20  ;;  %v5921_v12 = vadd.f32 %v5779_v49, %v3659_v53  ;;  %v5781_v48 = vadd.f32 %v5780_v4, %v5627_v35  ;;  %v3678_v35 = vld [vmem:[#allocation2 + $0x2b8] sm:$0xff] }
 0x4a8   : > { %v5784_v9 = vpop.f32.mrf.mxu1 }
 0x4a9   : > { %6065 = vst [vmem:[#allocation2 + $0x308] sm:$0xff] %v5921_v12  ;;  %v5922_v24 = vadd.f32 %v5781_v48, %v3660_v37  ;;  %v5785_v59 = vadd.f32 %v5784_v9, %v5631_v57  ;;  %v3684_v57 = vld [vmem:[#allocation2 + $0x188] sm:$0xff] }
 0x4aa   : > { %v5786_v39 = vpop.f32.mrf.mxu1 }
 0x4ab   : > { %6066 = vst [vmem:[#allocation2 + $0x340] sm:$0xff] %v5922_v24  ;;  %v5927_v22 = vadd.f32 %v5785_v59, %v3665_v62  ;;  %v5787_v32 = vadd.f32 %v5786_v39, %v5633_v61 }
 0x4ac   : > { %v5788_v2 = vpop.f32.mrf.mxu1 }
 0x4ad   : > { %6071 = vst [vmem:[#allocation2 + $0x190] sm:$0xff] %v5927_v22  ;;  %v5928_v40 = vadd.f32 %v5787_v32, %v3666_v60  ;;  %v5789_v43 = vadd.f32 %v5788_v2, %v5635_v7 }
 0x4ae   : > { %v5790_v41 = vpop.f32.mrf.mxu1 }
 0x4af   : > { %6072 = vst [vmem:[#allocation2 + $0x3d0] sm:$0xff] %v5928_v40  ;;  %v5933_v58 = vadd.f32 %v5789_v43, %v3671_v46  ;;  %v5791_v14 = vadd.f32 %v5790_v41, %v5637_v6 }
 0x4b0   : > { %v5794_v33 = vpop.f32.mrf.mxu1 }
 0x4b1   : > { %6077 = vst [vmem:[#allocation2 + $0x1e0] sm:$0xff] %v5933_v58  ;;  %v5934_v0 = vadd.f32 %v5791_v14, %v3672_v47  ;;  %v5795_v3 = vadd.f32 %v5794_v33, %v5641_v19 }
 0x4b2   : > { %v5796_v26 = vpop.f32.mrf.mxu1 }
 0x4b3   : > { %6078 = vst [vmem:[#allocation2 + $0x38] sm:$0xff] %v5934_v0  ;;  %v5939_v13 = vadd.f32 %v5795_v3, %v3677_v45  ;;  %v5797_v38 = vadd.f32 %v5796_v26, %v5643_v51 }
 0x4b4   : > { %v5798_v29 = vpop.f32.mrf.mxu1 }
 0x4b5   : > { %6083 = vst [vmem:[#allocation2 + $0x238] sm:$0xff] %v5939_v13  ;;  %v5940_v30 = vadd.f32 %v5797_v38, %v3678_v35  ;;  %v5799_v18 = vadd.f32 %v5798_v29, %v5645_v50 }
 0x4b6   : > { %v5800_v1 = vpop.f32.mrf.mxu1 }
 0x4b7   : > { %6084 = vst [vmem:[#allocation2 + $0x2b8] sm:$0xff] %v5940_v30  ;;  %v5945_v5 = vadd.f32 %v5799_v18, %v3683_v17  ;;  %v5801_v36 = vadd.f32 %v5800_v1, %v5647_v44  ;;  %6094 = sbr.rel (%p7207_p3) target bundleno = 1293 (0x50d), region = 68 }
 0x4b9   : > { %6089 = vst [vmem:[#allocation2 + $0x58] sm:$0xff] %v5945_v5  ;;  %v5946_v52 = vadd.f32 %v5801_v36, %v3684_v57 }
 0x4bb   : > { %6090 = vst [vmem:[#allocation2 + $0x188] sm:$0xff] %v5946_v52 }
 0x4bc   : > { %v6095_v55 = vld [vmem:[#allocation2 + $0x2b0] sm:$0xff]  ;;  %v6239_v10 = vld [vmem:[#allocation11] sm:$0x3f]  ;;  %v6099_v42 = vld [vmem:[#allocation2 + $0x320] sm:$0xff] }
 0x4bd   : > { %v6096_v11 = vld [vmem:[#allocation2 + $0x3b0] sm:$0xff]  ;;  %v6098_v7 = vld [vmem:[#allocation2 + $0x448] sm:$0xff]  ;;  %v6100_v53 = vld [vmem:[#allocation2 + $0x438] sm:$0xff] }
 0x4be   : > { %v11920_v8 = vld [vmem:[#allocation28_spill] sm:$0xff]  ;;  %v6102_v49 = vld [vmem:[#allocation2 + $0x100] sm:$0xff]  ;;  %v6120_v36 = vld [vmem:[#allocation2 + $0x398] sm:$0xff] }
 0x4bf   : > { %v6259_v61 = vsub.s32 4, %v11920_v8  ;;  %v6263_v23 = vsub.s32 5, %v11920_v8  ;;  %v11921_v16 = vsub.s32 0, %v11920_v8  ;;  %v11922_v31 = vsub.s32 1, %v11920_v8  ;;  %v6097_v28 = vld [vmem:[#allocation2 + $0x10] sm:$0xff]  ;;  %v6103_v48 = vld [vmem:[#allocation2 + $0x300] sm:$0xff] }
 0x4c0   : > { %v11923_v34 = vsub.s32 2, %v11920_v8  ;;  %v11924_v21 = vsub.s32 3, %v11920_v8  ;;  %v6101_v20 = vld [vmem:[#allocation2 + $0x370] sm:$0xff]  ;;  %v6106_v39 = vld [vmem:[#allocation2 + $0x380] sm:$0xff]  ;;  %v6107_v22 = vld [vmem:[#allocation2 + $0x48] sm:$0xff] }
 0x4c1   : > { %v11231_v15 = vrot.slane %v6239_v10, %v11921_v16  ;;  %v11235_v56 = vrot.slane %v6239_v10, %v11922_v31  ;;  %v11245_v27 = vrot.slane %v6239_v10, %v6259_v61  ;;  %v11247_v63 = vrot.slane %v6239_v10, %v6263_v23  ;;  %v6104_v62 = vld [vmem:[#allocation2 + $0x2f0] sm:$0xff]  ;;  %v6108_v32 = vld [vmem:[#allocation2 + $0xc0] sm:$0xff]  ;;  %v6110_v47 = vld [vmem:[#allocation2 + $0x148] sm:$0xff] }
 0x4c2   : > { %v11239_v25 = vrot.slane %v6239_v10, %v11923_v34  ;;  %v11243_v54 = vrot.slane %v6239_v10, %v11924_v21  ;;  %v6105_v9 = vld [vmem:[#allocation2 + $0x290] sm:$0xff]  ;;  %v6111_v41 = vld [vmem:[#allocation2 + $0x208] sm:$0xff]  ;;  %v6114_v50 = vld [vmem:[#allocation2 + $0xe0] sm:$0xff] }
 0x4c3   : > { %v6271_v6 = vadd.f32 %v11231_v15, %v6095_v55  ;;  %v6272_v37 = vadd.f32 %v11235_v56, %v6096_v11  ;;  %v6275_v24 = vadd.f32 %v11245_v27, %v6099_v42  ;;  %v6276_v59 = vadd.f32 %v11247_v63, %v6100_v53  ;;  %v6109_v51 = vld [vmem:[#allocation2 + $0x30] sm:$0xff]  ;;  %v6112_v0 = vld [vmem:[#allocation2 + $0x88] sm:$0xff]  ;;  %v6116_v29 = vld [vmem:[#allocation2 + $0x3e0] sm:$0xff] }
 0x4c4   : > { %v6273_v4 = vadd.f32 %v11239_v25, %v6097_v28  ;;  %v6274_v12 = vadd.f32 %v11243_v54, %v6098_v7  ;;  %v6277_v19 = vadd.f32 %v11231_v15, %v6101_v20  ;;  %v6278_v60 = vadd.f32 %v11235_v56, %v6102_v49  ;;  %v6113_v3 = vld [vmem:[#allocation2 + $0x348] sm:$0xff]  ;;  %v6118_v1 = vld [vmem:[#allocation2 + $0x450] sm:$0xff]  ;;  %v6119_v5 = vld [vmem:[#allocation2 + $0x420] sm:$0xff] }
 0x4c5   : > { %6415 = vst [vmem:[%s8845_s29] sm:$0xff] %v6271_v6  ;;  %6416 = vst [vmem:[%s8845_s29 + $0x8] sm:$0xff] %v6272_v37  ;;  %v6279_v46 = vadd.f32 %v11239_v25, %v6103_v48  ;;  %v6280_v2 = vadd.f32 %v11243_v54, %v6104_v62  ;;  %v6281_v40 = vadd.f32 %v11245_v27, %v6105_v9  ;;  %v6115_v17 = vld [vmem:[#allocation2 + $0x368] sm:$0xff]  ;;  %v6121_v11 = vld [vmem:[#allocation2 + $0x350] sm:$0xff] }
 0x4c6   : > { %6417 = vst [vmem:[%s8845_s29 + $0x10] sm:$0xff] %v6273_v4  ;;  %6418 = vst [vmem:[%s8845_s29 + $0x18] sm:$0xff] %v6274_v12  ;;  %v6282_v43 = vadd.f32 %v11247_v63, %v6106_v39  ;;  %v6283_v58 = vadd.f32 %v11231_v15, %v6107_v22  ;;  %v6284_v14 = vadd.f32 %v11235_v56, %v6108_v32  ;;  %v6117_v30 = vld [vmem:[#allocation2 + $0x1a8] sm:$0xff]  ;;  %v6123_v61 = vld [vmem:[#allocation2 + $0x240] sm:$0xff] }
 0x4c7   : > { %6419 = vst [vmem:[%s8845_s29 + $0x20] sm:$0xff] %v6275_v24  ;;  %6420 = vst [vmem:[%s8845_s29 + $0x28] sm:$0xff] %v6276_v59  ;;  %v6285_v45 = vadd.f32 %v11239_v25, %v6109_v51  ;;  %v6286_v33 = vadd.f32 %v11243_v54, %v6110_v47  ;;  %v6287_v35 = vadd.f32 %v11245_v27, %v6111_v41  ;;  %v6122_v8 = vld [vmem:[#allocation2 + $0xc8] sm:$0xff]  ;;  %v6124_v28 = vld [vmem:[#allocation2 + $0x390] sm:$0xff] }
 0x4c8   : > { %6421 = vst [vmem:[%s8845_s29 + $0x30] sm:$0xff] %v6277_v19  ;;  %6422 = vst [vmem:[%s8845_s29 + $0x38] sm:$0xff] %v6278_v60  ;;  %v6288_v26 = vadd.f32 %v11247_v63, %v6112_v0  ;;  %v6289_v13 = vadd.f32 %v11231_v15, %v6113_v3  ;;  %v6290_v38 = vadd.f32 %v11235_v56, %v6114_v50  ;;  %v6125_v34 = vld [vmem:[#allocation2 + $0x458] sm:$0xff]  ;;  %v6126_v7 = vld [vmem:[#allocation2 + $0x68] sm:$0xff] }
 0x4c9   : > { %6423 = vst [vmem:[%s8845_s29 + $0x40] sm:$0xff] %v6279_v46  ;;  %6424 = vst [vmem:[%s8845_s29 + $0x48] sm:$0xff] %v6280_v2  ;;  %v6291_v18 = vadd.f32 %v11239_v25, %v6115_v17  ;;  %v6292_v44 = vadd.f32 %v11243_v54, %v6116_v29  ;;  %v6293_v57 = vadd.f32 %v11245_v27, %v6117_v30  ;;  %v6127_v20 = vld [vmem:[#allocation2 + $0x470] sm:$0xff]  ;;  %v6128_v49 = vld [vmem:[#allocation2 + $0x298] sm:$0xff] }
 0x4ca   : > { %6425 = vst [vmem:[%s8845_s29 + $0x50] sm:$0xff] %v6281_v40  ;;  %6426 = vst [vmem:[%s8845_s29 + $0x58] sm:$0xff] %v6282_v43  ;;  %v6294_v52 = vadd.f32 %v11247_v63, %v6118_v1  ;;  %v6295_v55 = vadd.f32 %v11231_v15, %v6119_v5  ;;  %v6296_v10 = vadd.f32 %v11235_v56, %v6120_v36  ;;  %v6129_v6 = vld [vmem:[#allocation2 + $0x278] sm:$0xff]  ;;  %v6130_v48 = vld [vmem:[#allocation2 + $0x170] sm:$0xff] }
 0x4cb   : > { %6427 = vst [vmem:[%s8845_s29 + $0x60] sm:$0xff] %v6283_v58  ;;  %6428 = vst [vmem:[%s8845_s29 + $0x68] sm:$0xff] %v6284_v14  ;;  %v6297_v23 = vadd.f32 %v11239_v25, %v6121_v11  ;;  %v6298_v16 = vadd.f32 %v11243_v54, %v6122_v8  ;;  %v6299_v31 = vadd.f32 %v11245_v27, %v6123_v61  ;;  %v6131_v62 = vld [vmem:[#allocation2 + $0x198] sm:$0xff]  ;;  %v6132_v9 = vld [vmem:[#allocation2 + $0xb0] sm:$0xff] }
 0x4cc   : > { %6429 = vst [vmem:[%s8845_s29 + $0x70] sm:$0xff] %v6285_v45  ;;  %6430 = vst [vmem:[%s8845_s29 + $0x78] sm:$0xff] %v6286_v33  ;;  %v6300_v21 = vadd.f32 %v11247_v63, %v6124_v28  ;;  %v6301_v42 = vadd.f32 %v11231_v15, %v6125_v34  ;;  %v6302_v53 = vadd.f32 %v11235_v56, %v6126_v7  ;;  %v6133_v60 = vld [vmem:[#allocation2 + $0x20] sm:$0xff]  ;;  %v6134_v39 = vld [vmem:[#allocation2 + $0x1e8] sm:$0xff] }
 0x4cd   : > { %6431 = vst [vmem:[%s8845_s29 + $0x80] sm:$0xff] %v6287_v35  ;;  %6432 = vst [vmem:[%s8845_s29 + $0x88] sm:$0xff] %v6288_v26  ;;  %v6303_v37 = vadd.f32 %v11239_v25, %v6127_v20  ;;  %v6304_v4 = vadd.f32 %v11243_v54, %v6128_v49  ;;  %v6305_v12 = vadd.f32 %v11245_v27, %v6129_v6  ;;  %v6135_v22 = vld [vmem:[#allocation2 + $0x1f8] sm:$0xff]  ;;  %v6136_v40 = vld [vmem:[#allocation2 + $0x60] sm:$0xff] }
 0x4ce   : > { %6433 = vst [vmem:[%s8845_s29 + $0x90] sm:$0xff] %v6289_v13  ;;  %6434 = vst [vmem:[%s8845_s29 + $0x98] sm:$0xff] %v6290_v38  ;;  %v6306_v24 = vadd.f32 %v11247_v63, %v6130_v48  ;;  %v6307_v59 = vadd.f32 %v11231_v15, %v6131_v62  ;;  %v6308_v19 = vadd.f32 %v11235_v56, %v6132_v9  ;;  %v6137_v43 = vld [vmem:[#allocation2 + $0x3c8] sm:$0xff]  ;;  %v6138_v51 = vld [vmem:[#allocation2 + $0x18] sm:$0xff] }
 0x4cf   : > { %6435 = vst [vmem:[%s8845_s29 + $0xa0] sm:$0xff] %v6291_v18  ;;  %6436 = vst [vmem:[%s8845_s29 + $0xa8] sm:$0xff] %v6292_v44  ;;  %v6309_v32 = vadd.f32 %v11239_v25, %v6133_v60  ;;  %v6310_v46 = vadd.f32 %v11243_v54, %v6134_v39  ;;  %v6311_v2 = vadd.f32 %v11245_v27, %v6135_v22  ;;  %v6139_v14 = vld [vmem:[#allocation2 + $0xa0] sm:$0xff]  ;;  %v6140_v45 = vld [vmem:[#allocation2 + $0x1d0] sm:$0xff] }
 0x4d0   : > { %6437 = vst [vmem:[%s8845_s29 + $0xb0] sm:$0xff] %v6293_v57  ;;  %6438 = vst [vmem:[%s8845_s29 + $0xb8] sm:$0xff] %v6294_v52  ;;  %v6312_v47 = vadd.f32 %v11247_v63, %v6136_v40  ;;  %v6313_v41 = vadd.f32 %v11231_v15, %v6137_v43  ;;  %v6314_v58 = vadd.f32 %v11235_v56, %v6138_v51  ;;  %v6141_v33 = vld [vmem:[#allocation2 + $0x258] sm:$0xff]  ;;  %v6142_v35 = vld [vmem:[#allocation2 + $0xd0] sm:$0xff] }
 0x4d1   : > { %6439 = vst [vmem:[%s8845_s29 + $0xc0] sm:$0xff] %v6295_v55  ;;  %6440 = vst [vmem:[%s8845_s29 + $0xc8] sm:$0xff] %v6296_v10  ;;  %v6315_v0 = vadd.f32 %v11239_v25, %v6139_v14  ;;  %v6316_v3 = vadd.f32 %v11243_v54, %v6140_v45  ;;  %v6317_v50 = vadd.f32 %v11245_v27, %v6141_v33  ;;  %v6143_v26 = vld [vmem:[#allocation2 + $0x408] sm:$0xff]  ;;  %v6144_v13 = vld [vmem:[#allocation2 + $0x2c0] sm:$0xff] }
 0x4d2   : > { %6441 = vst [vmem:[%s8845_s29 + $0xd0] sm:$0xff] %v6297_v23  ;;  %6442 = vst [vmem:[%s8845_s29 + $0xd8] sm:$0xff] %v6298_v16  ;;  %v6318_v38 = vadd.f32 %v11247_v63, %v6142_v35  ;;  %v6319_v17 = vadd.f32 %v11231_v15, %v6143_v26  ;;  %v6320_v29 = vadd.f32 %v11235_v56, %v6144_v13  ;;  %v6145_v30 = vld [vmem:[#allocation2 + $0x3f8] sm:$0xff]  ;;  %v6146_v18 = vld [vmem:[#allocation2 + $0x3f0] sm:$0xff] }
 0x4d3   : > { %6443 = vst [vmem:[%s8845_s29 + $0xe0] sm:$0xff] %v6299_v31  ;;  %6444 = vst [vmem:[%s8845_s29 + $0xe8] sm:$0xff] %v6300_v21  ;;  %v6147_v44 = vld [vmem:[#allocation2 + $0x338] sm:$0xff]  ;;  %v6321_v57 = vadd.f32 %v11239_v25, %v6145_v30  ;;  %v6322_v1 = vadd.f32 %v11243_v54, %v6146_v18  ;;  %v6148_v36 = vld [vmem:[#allocation2 + $0x248] sm:$0xff] }
 0x4d4   : > { %6445 = vst [vmem:[%s8845_s29 + $0xf0] sm:$0xff] %v6301_v42  ;;  %6446 = vst [vmem:[%s8845_s29 + $0xf8] sm:$0xff] %v6302_v53  ;;  %v6323_v5 = vadd.f32 %v11245_v27, %v6147_v44  ;;  %v6149_v52 = vld [vmem:[#allocation2 + $0x330] sm:$0xff]  ;;  %v6150_v55 = vld [vmem:[#allocation2 + $0x220] sm:$0xff]  ;;  %v6324_v10 = vadd.f32 %v11247_v63, %v6148_v36 }
 0x4d5   : > { %6447 = vst [vmem:[%s8845_s29 + $0x100] sm:$0xff] %v6303_v37  ;;  %6448 = vst [vmem:[%s8845_s29 + $0x108] sm:$0xff] %v6304_v4  ;;  %v6325_v11 = vadd.f32 %v11231_v15, %v6149_v52  ;;  %v6326_v8 = vadd.f32 %v11235_v56, %v6150_v55  ;;  %v6151_v61 = vld [vmem:[#allocation2 + $0x1b8] sm:$0xff]  ;;  %v6152_v23 = vld [vmem:[#allocation2 + $0x310] sm:$0xff] }
 0x4d6   : > { %6449 = vst [vmem:[%s8845_s29 + $0x110] sm:$0xff] %v6305_v12  ;;  %6450 = vst [vmem:[%s8845_s29 + $0x118] sm:$0xff] %v6306_v24  ;;  %v6153_v16 = vld [vmem:[#allocation2 + $0x280] sm:$0xff]  ;;  %v6327_v31 = vadd.f32 %v11239_v25, %v6151_v61  ;;  %v6328_v28 = vadd.f32 %v11243_v54, %v6152_v23  ;;  %v6154_v7 = vld [vmem:[#allocation2 + $0x288] sm:$0xff] }
 0x4d7   : > { %6451 = vst [vmem:[%s8845_s29 + $0x120] sm:$0xff] %v6307_v59  ;;  %6452 = vst [vmem:[%s8845_s29 + $0x128] sm:$0xff] %v6308_v19  ;;  %v6329_v34 = vadd.f32 %v11245_v27, %v6153_v16  ;;  %v6155_v21 = vld [vmem:[#allocation2 + $0x2e8] sm:$0xff]  ;;  %v6156_v42 = vld [vmem:[#allocation2 + $0x120] sm:$0xff]  ;;  %v6330_v53 = vadd.f32 %v11247_v63, %v6154_v7 }
 0x4d8   : > { %6453 = vst [vmem:[%s8845_s29 + $0x130] sm:$0xff] %v6309_v32  ;;  %6454 = vst [vmem:[%s8845_s29 + $0x138] sm:$0xff] %v6310_v46  ;;  %v6331_v20 = vadd.f32 %v11231_v15, %v6155_v21  ;;  %v6332_v49 = vadd.f32 %v11235_v56, %v6156_v42  ;;  %v6157_v6 = vld [vmem:[#allocation2 + $0x2c8] sm:$0xff]  ;;  %v6158_v37 = vld [vmem:[#allocation2 + $0x3c0] sm:$0xff] }
 0x4d9   : > { %6455 = vst [vmem:[%s8845_s29 + $0x140] sm:$0xff] %v6311_v2  ;;  %6456 = vst [vmem:[%s8845_s29 + $0x148] sm:$0xff] %v6312_v47  ;;  %v6159_v4 = vld [vmem:[#allocation2 + $0x418] sm:$0xff]  ;;  %v6333_v12 = vadd.f32 %v11239_v25, %v6157_v6  ;;  %v6334_v48 = vadd.f32 %v11243_v54, %v6158_v37  ;;  %v6160_v9 = vld [vmem:[#allocation2 + $0x70] sm:$0xff] }
 0x4da   : > { %6457 = vst [vmem:[%s8845_s29 + $0x150] sm:$0xff] %v6313_v41  ;;  %6458 = vst [vmem:[%s8845_s29 + $0x158] sm:$0xff] %v6314_v58  ;;  %v6335_v62 = vadd.f32 %v11245_v27, %v6159_v4  ;;  %v6161_v24 = vld [vmem:[#allocation2 + $0x270] sm:$0xff]  ;;  %v6162_v59 = vld [vmem:[#allocation2 + $0x200] sm:$0xff]  ;;  %v6336_v19 = vadd.f32 %v11247_v63, %v6160_v9 }
 0x4db   : > { %6459 = vst [vmem:[%s8845_s29 + $0x160] sm:$0xff] %v6315_v0  ;;  %6460 = vst [vmem:[%s8845_s29 + $0x168] sm:$0xff] %v6316_v3  ;;  %v6337_v60 = vadd.f32 %v11231_v15, %v6161_v24  ;;  %v6338_v39 = vadd.f32 %v11235_v56, %v6162_v59  ;;  %v6163_v22 = vld [vmem:[#allocation2 + $0x1a0] sm:$0xff]  ;;  %v6166_v51 = vld [vmem:[#allocation2 + $0xf8] sm:$0xff] }
 0x4dc   : > { %6461 = vst [vmem:[%s8845_s29 + $0x170] sm:$0xff] %v6317_v50  ;;  %6462 = vst [vmem:[%s8845_s29 + $0x178] sm:$0xff] %v6318_v38  ;;  %v6164_v32 = vld [vmem:[#allocation2 + $0x140] sm:$0xff]  ;;  %v6339_v2 = vadd.f32 %v11239_v25, %v6163_v22  ;;  %v6167_v47 = vld [vmem:[#allocation2 + $0x128] sm:$0xff]  ;;  %v6342_v58 = vadd.f32 %v11247_v63, %v6166_v51 }
 0x4dd   : > { %6463 = vst [vmem:[%s8845_s29 + $0x180] sm:$0xff] %v6319_v17  ;;  %6464 = vst [vmem:[%s8845_s29 + $0x188] sm:$0xff] %v6320_v29  ;;  %v6165_v46 = vld [vmem:[#allocation2 + $0x3a0] sm:$0xff]  ;;  %v6340_v40 = vadd.f32 %v11243_v54, %v6164_v32  ;;  %v6343_v14 = vadd.f32 %v11231_v15, %v6167_v47  ;;  %v6169_v33 = vld [vmem:[#allocation2 + $0x2a8] sm:$0xff] }
 0x4de   : > { %6465 = vst [vmem:[%s8845_s29 + $0x190] sm:$0xff] %v6321_v57  ;;  %6466 = vst [vmem:[%s8845_s29 + $0x198] sm:$0xff] %v6322_v1  ;;  %v6341_v43 = vadd.f32 %v11245_v27, %v6165_v46  ;;  %v6168_v41 = vld [vmem:[#allocation2 + $0x160] sm:$0xff]  ;;  %v6170_v0 = vld [vmem:[#allocation2 + $0x130] sm:$0xff]  ;;  %v6345_v50 = vadd.f32 %v11239_v25, %v6169_v33 }
 0x4df   : > { %6467 = vst [vmem:[%s8845_s29 + $0x1a0] sm:$0xff] %v6323_v5  ;;  %6468 = vst [vmem:[%s8845_s29 + $0x1a8] sm:$0xff] %v6324_v10  ;;  %v6344_v45 = vadd.f32 %v11235_v56, %v6168_v41  ;;  %v6171_v3 = vld [vmem:[#allocation2 + $0x318] sm:$0xff]  ;;  %v6346_v35 = vadd.f32 %v11243_v54, %v6170_v0  ;;  %v6172_v13 = vld [vmem:[#allocation2 + $0x268] sm:$0xff] }
 0x4e0   : > { %6469 = vst [vmem:[%s8845_s29 + $0x1b0] sm:$0xff] %v6325_v11  ;;  %6470 = vst [vmem:[%s8845_s29 + $0x1b8] sm:$0xff] %v6326_v8  ;;  %v6347_v26 = vadd.f32 %v11245_v27, %v6171_v3  ;;  %v6173_v38 = vld [vmem:[#allocation2 + $0x228] sm:$0xff]  ;;  %v6174_v17 = vld [vmem:[#allocation2 + $0x410] sm:$0xff]  ;;  %v6348_v29 = vadd.f32 %v11247_v63, %v6172_v13 }
 0x4e1   : > { %6471 = vst [vmem:[%s8845_s29 + $0x1c0] sm:$0xff] %v6327_v31  ;;  %6472 = vst [vmem:[%s8845_s29 + $0x1c8] sm:$0xff] %v6328_v28  ;;  %v6349_v30 = vadd.f32 %v11231_v15, %v6173_v38  ;;  %v6350_v18 = vadd.f32 %v11235_v56, %v6174_v17  ;;  %v6175_v44 = vld [vmem:[#allocation2 + $0x210] sm:$0xff]  ;;  %v6176_v57 = vld [vmem:[#allocation2 + $0x1c0] sm:$0xff] }
 0x4e2   : > { %6473 = vst [vmem:[%s8845_s29 + $0x1d0] sm:$0xff] %v6329_v34  ;;  %6474 = vst [vmem:[%s8845_s29 + $0x1d8] sm:$0xff] %v6330_v53  ;;  %v6177_v1 = vld [vmem:[#allocation2 + $0x358] sm:$0xff]  ;;  %v6351_v5 = vadd.f32 %v11239_v25, %v6175_v44  ;;  %v6352_v36 = vadd.f32 %v11243_v54, %v6176_v57  ;;  %v6178_v55 = vld [vmem:[#allocation2 + $0x8] sm:$0xff] }
 0x4e3   : > { %6475 = vst [vmem:[%s8845_s29 + $0x1e0] sm:$0xff] %v6331_v20  ;;  %6476 = vst [vmem:[%s8845_s29 + $0x1e8] sm:$0xff] %v6332_v49  ;;  %v6353_v52 = vadd.f32 %v11245_v27, %v6177_v1  ;;  %v6179_v10 = vld [vmem:[#allocation2 + $0x400] sm:$0xff]  ;;  %v6180_v11 = vld [vmem:[#allocation2 + $0x1b0] sm:$0xff]  ;;  %v6354_v8 = vadd.f32 %v11247_v63, %v6178_v55 }
 0x4e4   : > { %6477 = vst [vmem:[%s8845_s29 + $0x1f0] sm:$0xff] %v6333_v12  ;;  %6478 = vst [vmem:[%s8845_s29 + $0x1f8] sm:$0xff] %v6334_v48  ;;  %v6355_v61 = vadd.f32 %v11231_v15, %v6179_v10  ;;  %v6356_v23 = vadd.f32 %v11235_v56, %v6180_v11  ;;  %v6181_v16 = vld [vmem:[#allocation2 + $0x328] sm:$0xff]  ;;  %v6182_v31 = vld [vmem:[#allocation2 + $0x230] sm:$0xff] }
 0x4e5   : > { %6479 = vst [vmem:[%s8845_s29 + $0x200] sm:$0xff] %v6335_v62  ;;  %6480 = vst [vmem:[%s8845_s29 + $0x208] sm:$0xff] %v6336_v19  ;;  %v6183_v28 = vld [vmem:[#allocation2 + $0xb8] sm:$0xff]  ;;  %v6357_v34 = vadd.f32 %v11239_v25, %v6181_v16  ;;  %v6358_v7 = vadd.f32 %v11243_v54, %v6182_v31  ;;  %v6184_v42 = vld [vmem:[#allocation2 + $0x468] sm:$0xff] }
 0x4e6   : > { %6481 = vst [vmem:[%s8845_s29 + $0x210] sm:$0xff] %v6337_v60  ;;  %6482 = vst [vmem:[%s8845_s29 + $0x218] sm:$0xff] %v6338_v39  ;;  %v6359_v21 = vadd.f32 %v11245_v27, %v6183_v28  ;;  %v6185_v53 = vld [vmem:[#allocation2 + $0x2d0] sm:$0xff]  ;;  %v6186_v20 = vld [vmem:[#allocation2 + $0x78] sm:$0xff]  ;;  %v6360_v49 = vadd.f32 %v11247_v63, %v6184_v42 }
 0x4e7   : > { %6483 = vst [vmem:[%s8845_s29 + $0x220] sm:$0xff] %v6339_v2  ;;  %6484 = vst [vmem:[%s8845_s29 + $0x228] sm:$0xff] %v6340_v40  ;;  %v6361_v6 = vadd.f32 %v11231_v15, %v6185_v53  ;;  %v6362_v37 = vadd.f32 %v11235_v56, %v6186_v20  ;;  %v6187_v4 = vld [vmem:[#allocation2 + $0x2f8] sm:$0xff]  ;;  %v6189_v48 = vld [vmem:[#allocation2 + $0x1f0] sm:$0xff] }
 0x4e8   : > { %6485 = vst [vmem:[%s8845_s29 + $0x230] sm:$0xff] %v6341_v43  ;;  %6486 = vst [vmem:[%s8845_s29 + $0x238] sm:$0xff] %v6342_v58  ;;  %v6188_v12 = vld [vmem:[#allocation2 + $0x218] sm:$0xff]  ;;  %v6363_v62 = vadd.f32 %v11239_v25, %v6187_v4  ;;  %v6365_v24 = vadd.f32 %v11245_v27, %v6189_v48  ;;  %v6191_v19 = vld [vmem:[#allocation2 + $0x110] sm:$0xff] }
 0x4e9   : > { %6487 = vst [vmem:[%s8845_s29 + $0x240] sm:$0xff] %v6343_v14  ;;  %6488 = vst [vmem:[%s8845_s29 + $0x248] sm:$0xff] %v6344_v45  ;;  %v6364_v9 = vadd.f32 %v11243_v54, %v6188_v12  ;;  %v6190_v59 = vld [vmem:[#allocation2 + $0x178] sm:$0xff]  ;;  %v6192_v60 = vld [vmem:[#allocation2 + $0x460] sm:$0xff]  ;;  %v6367_v22 = vadd.f32 %v11231_v15, %v6191_v19 }
 0x4ea   : > { %6489 = vst [vmem:[%s8845_s29 + $0x250] sm:$0xff] %v6345_v50  ;;  %6490 = vst [vmem:[%s8845_s29 + $0x258] sm:$0xff] %v6346_v35  ;;  %v6366_v39 = vadd.f32 %v11247_v63, %v6190_v59  ;;  %v6368_v32 = vadd.f32 %v11235_v56, %v6192_v60  ;;  %v6193_v46 = vld [vmem:[#allocation2 + $0x2a0] sm:$0xff]  ;;  %v6194_v2 = vld [vmem:[#allocation2 + $0x3d8] sm:$0xff] }
 0x4eb   : > { %6491 = vst [vmem:[%s8845_s29 + $0x260] sm:$0xff] %v6347_v26  ;;  %6492 = vst [vmem:[%s8845_s29 + $0x268] sm:$0xff] %v6348_v29  ;;  %v6195_v40 = vld [vmem:[#allocation2 + $0xa8] sm:$0xff]  ;;  %v6369_v43 = vadd.f32 %v11239_v25, %v6193_v46  ;;  %v6370_v51 = vadd.f32 %v11243_v54, %v6194_v2  ;;  %v6196_v41 = vld [vmem:[#allocation2 + $0x1d8] sm:$0xff] }
 0x4ec   : > { %6493 = vst [vmem:[%s8845_s29 + $0x270] sm:$0xff] %v6349_v30  ;;  %6494 = vst [vmem:[%s8845_s29 + $0x278] sm:$0xff] %v6350_v18  ;;  %v6371_v47 = vadd.f32 %v11245_v27, %v6195_v40  ;;  %v6197_v58 = vld [vmem:[#allocation2 + $0x118] sm:$0xff]  ;;  %v6198_v14 = vld [vmem:[#allocation2] sm:$0xff]  ;;  %v6372_v45 = vadd.f32 %v11247_v63, %v6196_v41 }
 0x4ed   : > { %6495 = vst [vmem:[%s8845_s29 + $0x280] sm:$0xff] %v6351_v5  ;;  %6496 = vst [vmem:[%s8845_s29 + $0x288] sm:$0xff] %v6352_v36  ;;  %v6373_v33 = vadd.f32 %v11231_v15, %v6197_v58  ;;  %v6374_v0 = vadd.f32 %v11235_v56, %v6198_v14  ;;  %v6199_v3 = vld [vmem:[#allocation2 + $0x478] sm:$0xff]  ;;  %v6203_v29 = vld [vmem:[#allocation2 + $0x260] sm:$0xff] }
 0x4ee   : > { %6497 = vst [vmem:[%s8845_s29 + $0x290] sm:$0xff] %v6353_v52  ;;  %6498 = vst [vmem:[%s8845_s29 + $0x298] sm:$0xff] %v6354_v8  ;;  %v6200_v50 = vld [vmem:[#allocation2 + $0x138] sm:$0xff]  ;;  %v6375_v26 = vadd.f32 %v11239_v25, %v6199_v3  ;;  %v6379_v44 = vadd.f32 %v11231_v15, %v6203_v29  ;;  %v6205_v1 = vld [vmem:[#allocation2 + $0x180] sm:$0xff] }
 0x4ef   : > { %6499 = vst [vmem:[%s8845_s29 + $0x2a0] sm:$0xff] %v6355_v61  ;;  %6500 = vst [vmem:[%s8845_s29 + $0x2a8] sm:$0xff] %v6356_v23  ;;  %v6201_v35 = vld [vmem:[#allocation2 + $0xd8] sm:$0xff]  ;;  %v6376_v13 = vadd.f32 %v11243_v54, %v6200_v50  ;;  %v6206_v5 = vld [vmem:[#allocation2 + $0x28] sm:$0xff]  ;;  %v6381_v52 = vadd.f32 %v11239_v25, %v6205_v1 }
 0x4f0   : > { %6501 = vst [vmem:[%s8845_s29 + $0x2b0] sm:$0xff] %v6357_v34  ;;  %6502 = vst [vmem:[%s8845_s29 + $0x2b8] sm:$0xff] %v6358_v7  ;;  %v6377_v38 = vadd.f32 %v11245_v27, %v6201_v35  ;;  %v6202_v17 = vld [vmem:[#allocation2 + $0x2d8] sm:$0xff]  ;;  %v6207_v36 = vld [vmem:[#allocation2 + $0x108] sm:$0xff]  ;;  %v6382_v55 = vadd.f32 %v11243_v54, %v6206_v5 }
 0x4f1   : > { %6503 = vst [vmem:[%s8845_s29 + $0x2c0] sm:$0xff] %v6359_v21  ;;  %6504 = vst [vmem:[%s8845_s29 + $0x2c8] sm:$0xff] %v6360_v49  ;;  %v6204_v30 = vld [vmem:[#allocation2 + $0x3b8] sm:$0xff]  ;;  %v6378_v18 = vadd.f32 %v11247_v63, %v6202_v17  ;;  %v6383_v10 = vadd.f32 %v11245_v27, %v6207_v36  ;;  %v6209_v8 = vld [vmem:[#allocation2 + $0x440] sm:$0xff] }
 0x4f2   : > { %6505 = vst [vmem:[%s8845_s29 + $0x2d0] sm:$0xff] %v6361_v6  ;;  %6506 = vst [vmem:[%s8845_s29 + $0x2d8] sm:$0xff] %v6362_v37  ;;  %v6380_v57 = vadd.f32 %v11235_v56, %v6204_v30  ;;  %v6208_v11 = vld [vmem:[#allocation2 + $0x378] sm:$0xff]  ;;  %v6385_v16 = vadd.f32 %v11231_v15, %v6209_v8  ;;  %v6211_v28 = vld [vmem:[#allocation2 + $0x360] sm:$0xff] }
 0x4f3   : > { %6507 = vst [vmem:[%s8845_s29 + $0x2e0] sm:$0xff] %v6363_v62  ;;  %6508 = vst [vmem:[%s8845_s29 + $0x2e8] sm:$0xff] %v6364_v9  ;;  %v6210_v61 = vld [vmem:[#allocation2 + $0x158] sm:$0xff]  ;;  %v6384_v23 = vadd.f32 %v11247_v63, %v6208_v11  ;;  %v6212_v34 = vld [vmem:[#allocation2 + $0x50] sm:$0xff]  ;;  %v6387_v21 = vadd.f32 %v11239_v25, %v6211_v28 }
 0x4f4   : > { %6509 = vst [vmem:[%s8845_s29 + $0x2f0] sm:$0xff] %v6365_v24  ;;  %6510 = vst [vmem:[%s8845_s29 + $0x2f8] sm:$0xff] %v6366_v39  ;;  %v6386_v31 = vadd.f32 %v11235_v56, %v6210_v61  ;;  %v6213_v7 = vld [vmem:[#allocation2 + $0x308] sm:$0xff]  ;;  %v6388_v42 = vadd.f32 %v11243_v54, %v6212_v34  ;;  %v6214_v20 = vld [vmem:[#allocation2 + $0x340] sm:$0xff] }
 0x4f5   : > { %6511 = vst [vmem:[%s8845_s29 + $0x300] sm:$0xff] %v6367_v22  ;;  %6512 = vst [vmem:[%s8845_s29 + $0x308] sm:$0xff] %v6368_v32  ;;  %v6389_v53 = vadd.f32 %v11245_v27, %v6213_v7  ;;  %v6215_v49 = vld [vmem:[#allocation2 + $0x2e0] sm:$0xff]  ;;  %v6216_v6 = vld [vmem:[#allocation2 + $0x3e8] sm:$0xff]  ;;  %v6390_v37 = vadd.f32 %v11247_v63, %v6214_v20 }
 0x4f6   : > { %6513 = vst [vmem:[%s8845_s29 + $0x310] sm:$0xff] %v6369_v43  ;;  %6514 = vst [vmem:[%s8845_s29 + $0x318] sm:$0xff] %v6370_v51  ;;  %v6391_v4 = vadd.f32 %v11231_v15, %v6215_v49  ;;  %v6392_v12 = vadd.f32 %v11235_v56, %v6216_v6  ;;  %v6217_v48 = vld [vmem:[#allocation2 + $0x250] sm:$0xff]  ;;  %v6218_v62 = vld [vmem:[#allocation2 + $0x1c8] sm:$0xff] }
 0x4f7   : > { %6515 = vst [vmem:[%s8845_s29 + $0x320] sm:$0xff] %v6371_v47  ;;  %6516 = vst [vmem:[%s8845_s29 + $0x328] sm:$0xff] %v6372_v45  ;;  %v6219_v9 = vld [vmem:[#allocation2 + $0x190] sm:$0xff]  ;;  %v6393_v24 = vadd.f32 %v11239_v25, %v6217_v48  ;;  %v6394_v59 = vadd.f32 %v11243_v54, %v6218_v62  ;;  %v6221_v39 = vld [vmem:[#allocation2 + $0xe8] sm:$0xff] }
 0x4f8   : > { %6517 = vst [vmem:[%s8845_s29 + $0x330] sm:$0xff] %v6373_v33  ;;  %6518 = vst [vmem:[%s8845_s29 + $0x338] sm:$0xff] %v6374_v0  ;;  %v6395_v19 = vadd.f32 %v11245_v27, %v6219_v9  ;;  %v6220_v60 = vld [vmem:[#allocation2 + $0x3d0] sm:$0xff]  ;;  %v6397_v46 = vadd.f32 %v11231_v15, %v6221_v39  ;;  %v6223_v40 = vld [vmem:[#allocation2 + $0x168] sm:$0xff] }
 0x4f9   : > { %6519 = vst [vmem:[%s8845_s29 + $0x340] sm:$0xff] %v6375_v26  ;;  %6520 = vst [vmem:[%s8845_s29 + $0x348] sm:$0xff] %v6376_v13  ;;  %v6222_v22 = vld [vmem:[#allocation2 + $0xf0] sm:$0xff]  ;;  %v6396_v32 = vadd.f32 %v11247_v63, %v6220_v60  ;;  %v6225_v51 = vld [vmem:[#allocation2 + $0x1e0] sm:$0xff]  ;;  %v6399_v47 = vadd.f32 %v11239_v25, %v6223_v40 }
 0x4fa   : > { %6521 = vst [vmem:[%s8845_s29 + $0x350] sm:$0xff] %v6377_v38  ;;  %6522 = vst [vmem:[%s8845_s29 + $0x358] sm:$0xff] %v6378_v18  ;;  %v6398_v2 = vadd.f32 %v11235_v56, %v6222_v22  ;;  %v6224_v43 = vld [vmem:[#allocation2 + $0x90] sm:$0xff]  ;;  %v6401_v58 = vadd.f32 %v11245_v27, %v6225_v51  ;;  %v6226_v14 = vld [vmem:[#allocation2 + $0x38] sm:$0xff] }
 0x4fb   : > { %6523 = vst [vmem:[%s8845_s29 + $0x360] sm:$0xff] %v6379_v44  ;;  %6524 = vst [vmem:[%s8845_s29 + $0x368] sm:$0xff] %v6380_v57  ;;  %v6400_v41 = vadd.f32 %v11243_v54, %v6224_v43  ;;  %v6227_v45 = vld [vmem:[#allocation2 + $0x388] sm:$0xff]  ;;  %v6228_v33 = vld [vmem:[#allocation2 + $0x430] sm:$0xff]  ;;  %v6402_v0 = vadd.f32 %v11247_v63, %v6226_v14 }
 0x4fc   : > { %6525 = vst [vmem:[%s8845_s29 + $0x370] sm:$0xff] %v6381_v52  ;;  %6526 = vst [vmem:[%s8845_s29 + $0x378] sm:$0xff] %v6382_v55  ;;  %v6403_v3 = vadd.f32 %v11231_v15, %v6227_v45  ;;  %v6404_v50 = vadd.f32 %v11235_v56, %v6228_v33  ;;  %v6229_v35 = vld [vmem:[#allocation2 + $0x80] sm:$0xff]  ;;  %v6230_v26 = vld [vmem:[#allocation2 + $0x428] sm:$0xff] }
 0x4fd   : > { %6527 = vst [vmem:[%s8845_s29 + $0x380] sm:$0xff] %v6383_v10  ;;  %6528 = vst [vmem:[%s8845_s29 + $0x388] sm:$0xff] %v6384_v23  ;;  %v6231_v13 = vld [vmem:[#allocation2 + $0x238] sm:$0xff]  ;;  %v6405_v38 = vadd.f32 %v11239_v25, %v6229_v35  ;;  %v6406_v17 = vadd.f32 %v11243_v54, %v6230_v26  ;;  %v6233_v18 = vld [vmem:[#allocation2 + $0x40] sm:$0xff] }
 0x4fe   : > { %6529 = vst [vmem:[%s8845_s29 + $0x390] sm:$0xff] %v6385_v16  ;;  %6530 = vst [vmem:[%s8845_s29 + $0x398] sm:$0xff] %v6386_v31  ;;  %v6407_v29 = vadd.f32 %v11245_v27, %v6231_v13  ;;  %v6232_v30 = vld [vmem:[#allocation2 + $0x2b8] sm:$0xff]  ;;  %v6234_v44 = vld [vmem:[#allocation2 + $0x150] sm:$0xff]  ;;  %v6409_v1 = vadd.f32 %v11231_v15, %v6233_v18 }
 0x4ff   : > { %6531 = vst [vmem:[%s8845_s29 + $0x3a0] sm:$0xff] %v6387_v21  ;;  %6532 = vst [vmem:[%s8845_s29 + $0x3a8] sm:$0xff] %v6388_v42  ;;  %v6408_v57 = vadd.f32 %v11247_v63, %v6232_v30  ;;  %v6410_v5 = vadd.f32 %v11235_v56, %v6234_v44  ;;  %v6235_v36 = vld [vmem:[#allocation2 + $0x3a8] sm:$0xff]  ;;  %v6236_v52 = vld [vmem:[#allocation2 + $0x98] sm:$0xff] }
 0x500   : > { %6533 = vst [vmem:[%s8845_s29 + $0x3b0] sm:$0xff] %v6389_v53  ;;  %6534 = vst [vmem:[%s8845_s29 + $0x3b8] sm:$0xff] %v6390_v37  ;;  %v6237_v55 = vld [vmem:[#allocation2 + $0x58] sm:$0xff]  ;;  %v6411_v10 = vadd.f32 %v11239_v25, %v6235_v36  ;;  %v6412_v11 = vadd.f32 %v11243_v54, %v6236_v52  ;;  %v6238_v61 = vld [vmem:[#allocation2 + $0x188] sm:$0xff] }
 0x501   : > { %6535 = vst [vmem:[%s8845_s29 + $0x3c0] sm:$0xff] %v6391_v4  ;;  %6536 = vst [vmem:[%s8845_s29 + $0x3c8] sm:$0xff] %v6392_v12  ;;  %v6413_v8 = vadd.f32 %v11245_v27, %v6237_v55  ;;  %v6414_v15 = vadd.f32 %v11247_v63, %v6238_v61 }
 0x502   : > { %6537 = vst [vmem:[%s8845_s29 + $0x3d0] sm:$0xff] %v6393_v24  ;;  %6538 = vst [vmem:[%s8845_s29 + $0x3d8] sm:$0xff] %v6394_v59 }
 0x503   : > { %6539 = vst [vmem:[%s8845_s29 + $0x3e0] sm:$0xff] %v6395_v19  ;;  %6540 = vst [vmem:[%s8845_s29 + $0x3e8] sm:$0xff] %v6396_v32 }
 0x504   : > { %6541 = vst [vmem:[%s8845_s29 + $0x3f0] sm:$0xff] %v6397_v46  ;;  %6542 = vst [vmem:[%s8845_s29 + $0x3f8] sm:$0xff] %v6398_v2 }
 0x505   : > { %6543 = vst [vmem:[%s8845_s29 + $0x400] sm:$0xff] %v6399_v47  ;;  %6544 = vst [vmem:[%s8845_s29 + $0x408] sm:$0xff] %v6400_v41 }
 0x506   : > { %6545 = vst [vmem:[%s8845_s29 + $0x410] sm:$0xff] %v6401_v58  ;;  %6546 = vst [vmem:[%s8845_s29 + $0x418] sm:$0xff] %v6402_v0 }
 0x507   : > { %6547 = vst [vmem:[%s8845_s29 + $0x420] sm:$0xff] %v6403_v3  ;;  %6548 = vst [vmem:[%s8845_s29 + $0x428] sm:$0xff] %v6404_v50 }
 0x508   : > { %6549 = vst [vmem:[%s8845_s29 + $0x430] sm:$0xff] %v6405_v38  ;;  %6550 = vst [vmem:[%s8845_s29 + $0x438] sm:$0xff] %v6406_v17 }
 0x509   : > { %6551 = vst [vmem:[%s8845_s29 + $0x440] sm:$0xff] %v6407_v29  ;;  %6552 = vst [vmem:[%s8845_s29 + $0x448] sm:$0xff] %v6408_v57 }
 0x50a   : > { %6553 = vst [vmem:[%s8845_s29 + $0x450] sm:$0xff] %v6409_v1  ;;  %6554 = vst [vmem:[%s8845_s29 + $0x458] sm:$0xff] %v6410_v5 }
 0x50b   : > { %6555 = vst [vmem:[%s8845_s29 + $0x460] sm:$0xff] %v6411_v10  ;;  %6556 = vst [vmem:[%s8845_s29 + $0x468] sm:$0xff] %v6412_v11 }
 0x50c   : > { %6557 = vst [vmem:[%s8845_s29 + $0x470] sm:$0xff] %v6413_v8  ;;  %6558 = vst [vmem:[%s8845_s29 + $0x478] sm:$0xff] %v6414_v15 }
 0x50d PF: > { %s11925_s24 = sld [smem:[#allocation21_spill]]  ;;  %s6574_s10 = sshll.u32 %s8845_s29, 4  ;;  %s11539_s10 = int_to_ptr.vmem [resolvable:$true] %s6574_s10 }
 0x50e   : > { %s11926_s12 = sld [smem:[#allocation24_spill]]  ;;  %s6560_s1 = scalar_lea.sflag [#allocation5], %s8813_s6 }
 0x50f   : > { %s11927_s11 = sld [smem:[#allocation75_spill]]  ;;  %s8399_s4 = scalar_lea.vmem %s11539_s10, 18432 }
 0x510   : > { %p8400_p1 = scmp.ne.s32.totalorder %s11539_s10, %s8399_s4  ;;  %s8544_s17 = smov [#allocation12]  }
 0x511   : > { %s8403_s21 = sshll.u32 %s8544_s17, 4  ;;  %s8404_s21 = int_to_ptr.vmem [resolvable:$false] %s8403_s21 }
 0x512   : > { %s8405_s16 = scalar_lea.vmem %s8404_s21, 36864  ;;  %p8406_p13 = scmp.lt.s32.totalorder %s11539_s10, %s8404_s21 }
 0x513   : > { %s7261_s25 = smul.u32 18432, %s11925_s24  ;;  %p8407_p5 = scmp.lt.s32.totalorder %s8405_s16, %s8399_s4 }
 0x514   : > { %p11928_p0 = scmp.ne.s32.totalorder %s11926_s12, 0 }
 0x515   : > { %s11544_s14 = scalar_lea.hbm %s11927_s11, %s7261_s25  ;;  %p8408_p4 = por %p8407_p5, %p8406_p13 }
 0x516   : > { %p8401_p9 = pnand %p8400_p1, %p11928_p0 }
 0x518   : > { %p8402_p11 = pneg %p8401_p9 }
 0x51a   : > { %p8409_p8 = pnand %p8408_p4, %p8402_p11 }
 0x51c   : > { %8412 = shalt.err (!%p8409_p8)
}
 0x51d   : > { %s8413_s9 = scalar_lea.hbm %s11544_s14, 18432  ;;  %s8417_s19 = scalar_lea.hbm %s11927_s11, 36864 }
 0x51e   : > { %p8414_p7 = scmp.ne.s32.totalorder %s11544_s14, %s8413_s9  ;;  %p8418_p2 = scmp.lt.s32.totalorder %s11544_s14, %s11927_s11 }
 0x51f   : > { %p8419_p10 = scmp.lt.s32.totalorder %s8417_s19, %s8413_s9 }
 0x520   : > { %p8415_p12 = pnand %p8414_p7, %p11928_p0 }
 0x521   : > { %p8420_p3 = por %p8419_p10, %p8418_p2 }
 0x522   : > { %p8416_p6 = pneg %p8415_p12 }
 0x524   : > { %p8421_p1 = pnand %p8420_p3, %p8416_p6 }
 0x526   : > { %8424 = shalt.err (!%p8421_p1)
}
 0x527   : > { %s8545_s5 = smov 768   ;;  %s8546_s24 = smov 48  }
 0x528   : > { %7234 = dma.vmem_to_hbm [thread:$0]  (%p11928_p0), %s11539_s10, 18432, %s11544_s14, %s6560_s1, %s8545_s5, %s8545_s5, %s8546_s24  }
 0x529 PF: > { %s11929_s25 = sld [smem:[#allocation19_spill]]  ;;  %p7262_p9 = scmp.ge.s32.totalorder %s8531_s28, 2 }
 0x52a   : > { %s11930_s18 = sld [smem:[#allocation25_spill]] }
 0x52f   : > { %s6589_s13 = sand.u32 1, %s11929_s25  }
 0x530   : > { %p11931_p11 = scmp.ne.s32.totalorder %s11930_s18, 0  ;;  %s6590_s4 = scalar_lea.sflag [#allocation5], %s6589_s13 }
 0x532   : > { %p7254_p13 = pnand %p7262_p9, %p11931_p11 }
 0x534   : > { %p7255_p5 = pneg %p7254_p13 }
 0x536   : > { %8486 = dma.done.wait (%p7255_p5), %s6590_s4, 18432  }
 0x537   : > { %8488 = vsyncadd (%p7255_p5), %s6590_s4, 4294948864  ;;  %s27_s28 = sadd.s32 1, %s8531_s28   ;;  %s11932_s18 = sld [smem:[#allocation18_spill]] }
 0x538   : > { %p24_p4 = scmp.ge.s32.totalorder %s27_s28, 14   ;;  %s11933_s12 = sld [smem:[#allocation27_spill]] }
 0x539   : > { %s11934_s6 = sld [smem:[#allocation26_spill]]  ;;  %s11935_s19 = smov %s8499_s20 }
 0x53a   : > { %s11937_s21 = smov %s8507_s22  ;;  %s11938_s22 = smov %s8511_s23 }
 0x53b   : > { %s11939_s23 = smov %s8776_s8  ;;  %s11940_s24 = smov %s8523_s26 }
 0x53c   : > { %s11941_s25 = smov %s8527_s27  ;;  %s11943_s27 = smov %s11949_s15 }
 0x53d   :  { %26 = sbr.rel (!%p24_p4) target bundleno = 18 (0x12), region = 134 }
 0x53e   : > { %s11936_s20 = smov %s11933_s12 }
 0x53f   : > { %s11942_s26 = smov %s11934_s6 }
 0x542   :  { %6595 = vsyncpa [#allocation4], 1 }
 0x543   :  { %6597 = vsyncpa [#allocation4 + $0x1], 1 }
 0x544   :  { %6598 = vsyncpa [#allocation7], 1 }
 0x545   :  { %6600 = vsyncpa [#allocation7 + $0x1], 1 }
 0x546   :  { %6601 = vsyncpa [#allocation10], 1 }
 0x547   :  { %6603 = vsyncpa [#allocation10 + $0x1], 1 }
 0x548   :  { %6604 = vsyncpa [#allocation5], 1 }
 0x549   :  { %6606 = vsyncpa [#allocation5 + $0x1], 1 }

</bundles_post_ra>
